<compile_context>
chip_gen: v7x
topology: tpu7x:2x2x1
jax: 0.10.0
libtpu: 0.0.40
codegen_flags: <defaults>
</compile_context>

<pallas_src>
import functools
import numpy as np

import jax
import jax.numpy as jnp
from jax.experimental import pallas as pl
from jax.experimental.pallas import tpu as pltpu


_VMEM_LIMIT = 64 * 1024 * 1024  # raise scoped VMEM so larger row tiles pipeline well


# ----------------------------------------------------------------------------
# Tile-size helpers
# ----------------------------------------------------------------------------

def _pick_row_tile(M, cap=512):
    """Largest power-of-two row tile (<= cap) dividing M; fall back to full M."""
    t = cap
    while t >= 8:
        if t <= M and M % t == 0:
            return t
        t //= 2
    return M


def _pick_window_batch(Bw, N, max_rows=1024):
    """Largest divisor of Bw whose (wb*N) row block fits the budget and is
    sublane-aligned (multiple of 8 rows, or the full array)."""
    for wb in range(Bw, 0, -1):
        if Bw % wb != 0:
            continue
        rows = wb * N
        if rows > max_rows and wb != 1:
            continue
        if rows % 8 == 0 or wb == Bw:
            return wb
    return Bw


# ----------------------------------------------------------------------------
# Pallas kernels
# ----------------------------------------------------------------------------

def _layernorm_kernel(x_ref, g_ref, b_ref, o_ref):
    # Standalone LN — only used on the (rare) padded-resolution fallback path.
    x = x_ref[...].astype(jnp.float32)
    mu = jnp.mean(x, axis=-1, keepdims=True)
    xc = x - mu
    var = jnp.mean(xc * xc, axis=-1, keepdims=True)
    y = xc * jax.lax.rsqrt(var + 1e-5)
    o_ref[...] = (y * g_ref[...] + b_ref[...]).astype(o_ref.dtype)


def layernorm_pallas(x2d, gamma, beta):
    M, C = x2d.shape
    tile_m = _pick_row_tile(M, cap=512)
    return pl.pallas_call(
        _layernorm_kernel,
        out_shape=jax.ShapeDtypeStruct((M, C), x2d.dtype),
        grid=(M // tile_m,),
        in_specs=[
            pl.BlockSpec((tile_m, C), lambda i: (i, 0)),
            pl.BlockSpec((1, C), lambda i: (0, 0)),
            pl.BlockSpec((1, C), lambda i: (0, 0)),
        ],
        out_specs=pl.BlockSpec((tile_m, C), lambda i: (i, 0)),
        compiler_params=pltpu.CompilerParams(
            dimension_semantics=("parallel",),
            vmem_limit_bytes=_VMEM_LIMIT),
    )(x2d, gamma.reshape(1, C), beta.reshape(1, C))


def _window_attn_kernel(x_ref, qkvw_ref, qkvb_ref, projw_ref, projb_ref,
                        g1_ref, b1_ref, bias_ref, *rest,
                        num_heads, scale, wb, n, apply_ln, has_mask):
    """Fused norm1 + window multi-head attention on a batch of `wb` windows.

    x_ref: (wb*n, C) tokens of wb consecutive windows (pre-norm when apply_ln).
    """
    if has_mask:
        mask_ref, o_ref = rest
    else:
        (o_ref,) = rest

    x = x_ref[...]                                   # (wb*n, C)
    C = x.shape[-1]
    hd = C // num_heads
    cdt = x.dtype                                    # MXU operand dtype (bf16-friendly)

    # ---- fused LayerNorm (norm1); statistics in f32 ----
    if apply_ln:
        xf = x.astype(jnp.float32)
        mu = jnp.mean(xf, axis=-1, keepdims=True)
        xc = xf - mu
        var = jnp.mean(xc * xc, axis=-1, keepdims=True)
        xn = xc * jax.lax.rsqrt(var + 1e-5) * g1_ref[...] + b1_ref[...]
        xn = xn.astype(cdt)
    else:
        xn = x

    # ---- QKV: three (C,C) matmuls (no lane-misaligned slicing of a 3C tensor) ----
    q = jnp.dot(xn, qkvw_ref[0], preferred_element_type=jnp.float32) + qkvb_ref[0]
    k = jnp.dot(xn, qkvw_ref[1], preferred_element_type=jnp.float32) + qkvb_ref[1]
    v = jnp.dot(xn, qkvw_ref[2], preferred_element_type=jnp.float32) + qkvb_ref[2]
    q = q * jnp.float32(scale)

    def to_heads(t):                                 # (wb*n, C) -> (wb*nh, n, hd)
        t = t.astype(cdt).reshape(wb, n, num_heads, hd)
        return jnp.swapaxes(t, 1, 2).reshape(wb * num_heads, n, hd)

    qh, kh, vh = to_heads(q), to_heads(k), to_heads(v)

    # ---- scores + relative position bias (+ shift mask); softmax in f32 ----
    s = jnp.einsum('bnd,bmd->bnm', qh, kh,
                   preferred_element_type=jnp.float32)        # (wb*nh, n, n)
    s = s.reshape(wb, num_heads, n, n) + bias_ref[...][None].astype(jnp.float32)
    if has_mask:
        s = s + mask_ref[...][:, None].astype(jnp.float32)
    m = jnp.max(s, axis=-1, keepdims=True)
    e = jnp.exp(s - m)
    denom = jnp.sum(e, axis=-1, keepdims=True)
    p = e * pl.reciprocal(denom, approx=True)                 # EUP reciprocal
    p = p.reshape(wb * num_heads, n, n).astype(cdt)

    # ---- attention output + output projection ----
    o = jnp.einsum('bnm,bmd->bnd', p, vh,
                   preferred_element_type=jnp.float32)        # (wb*nh, n, hd)
    o = o.reshape(wb, num_heads, n, hd)
    o = jnp.swapaxes(o, 1, 2).reshape(wb * n, C)

    out = jnp.dot(o.astype(cdt), projw_ref[...],
                  preferred_element_type=jnp.float32) + projb_ref[...]
    o_ref[...] = out.astype(o_ref.dtype)


def window_attention_pallas(x2d, qkv_w3, qkv_b3, proj_w, proj_b,
                            g1, b1, rel_bias, mask_full, *,
                            num_heads, scale, n, apply_ln):
    """x2d: (Bw*N, C) tokens of all windows, window-major. Returns same shape."""
    M, C = x2d.shape
    Bw = M // n
    wb = _pick_window_batch(Bw, n)
    rows = wb * n
    grid = (Bw // wb,)
    has_mask = mask_full is not None

    kern = functools.partial(
        _window_attn_kernel, num_heads=num_heads, scale=scale,
        wb=wb, n=n, apply_ln=apply_ln, has_mask=has_mask)

    in_specs = [
        pl.BlockSpec((rows, C), lambda i: (i, 0)),
        pl.BlockSpec((3, C, C), lambda i: (0, 0, 0)),
        pl.BlockSpec((3, 1, C), lambda i: (0, 0, 0)),
        pl.BlockSpec((C, C), lambda i: (0, 0)),
        pl.BlockSpec((1, C), lambda i: (0, 0)),
        pl.BlockSpec((1, C), lambda i: (0, 0)),
        pl.BlockSpec((1, C), lambda i: (0, 0)),
        pl.BlockSpec((num_heads, n, n), lambda i: (0, 0, 0)),
    ]
    args = [x2d, qkv_w3, qkv_b3, proj_w, proj_b.reshape(1, C),
            g1.reshape(1, C), b1.reshape(1, C), rel_bias]
    if has_mask:
        in_specs.append(pl.BlockSpec((wb, n, n), lambda i: (i, 0, 0)))
        args.append(mask_full)

    return pl.pallas_call(
        kern,
        out_shape=jax.ShapeDtypeStruct((M, C), x2d.dtype),
        grid=grid,
        in_specs=in_specs,
        out_specs=pl.BlockSpec((rows, C), lambda i: (i, 0)),
        compiler_params=pltpu.CompilerParams(
            dimension_semantics=("parallel",),     # windows are independent (v7x 2-TC)
            vmem_limit_bytes=_VMEM_LIMIT),
    )(*args)


def _residual_mlp_kernel(sc_ref, a_ref, g_ref, be_ref,
                         w1_ref, b1_ref, w2_ref, b2_ref, o_ref):
    # y = shortcut + attn_out ; out = y + fc2(gelu(fc1(LN(y))))
    cdt = sc_ref.dtype
    y = sc_ref[...].astype(jnp.float32) + a_ref[...].astype(jnp.float32)
    mu = jnp.mean(y, axis=-1, keepdims=True)
    yc = y - mu
    var = jnp.mean(yc * yc, axis=-1, keepdims=True)
    h = yc * jax.lax.rsqrt(var + 1e-5) * g_ref[...] + be_ref[...]
    h1 = jnp.dot(h.astype(cdt), w1_ref[...],
                 preferred_element_type=jnp.float32) + b1_ref[...]
    # exact (erf-based) GELU, matching nn.GELU default
    h1 = 0.5 * h1 * (1.0 + jax.lax.erf(h1 * jnp.float32(1.0 / np.sqrt(2.0))))
    h2 = jnp.dot(h1.astype(cdt), w2_ref[...],
                 preferred_element_type=jnp.float32) + b2_ref[...]
    o_ref[...] = (y + h2).astype(o_ref.dtype)


def residual_mlp_pallas(shortcut2d, attn2d, g2, b2, w1, b1, w2, b2f):
    M, C = shortcut2d.shape
    hidden = w1.shape[1]
    tile_m = _pick_row_tile(M, cap=512)
    return pl.pallas_call(
        _residual_mlp_kernel,
        out_shape=jax.ShapeDtypeStruct((M, C), shortcut2d.dtype),
        grid=(M // tile_m,),
        in_specs=[
            pl.BlockSpec((tile_m, C), lambda i: (i, 0)),
            pl.BlockSpec((tile_m, C), lambda i: (i, 0)),
            pl.BlockSpec((1, C), lambda i: (0, 0)),
            pl.BlockSpec((1, C), lambda i: (0, 0)),
            pl.BlockSpec((C, hidden), lambda i: (0, 0)),
            pl.BlockSpec((1, hidden), lambda i: (0, 0)),
            pl.BlockSpec((hidden, C), lambda i: (0, 0)),
            pl.BlockSpec((1, C), lambda i: (0, 0)),
        ],
        out_specs=pl.BlockSpec((tile_m, C), lambda i: (i, 0)),
        compiler_params=pltpu.CompilerParams(
            dimension_semantics=("parallel",),
            vmem_limit_bytes=_VMEM_LIMIT),
    )(shortcut2d, attn2d, g2.reshape(1, C), b2.reshape(1, C),
      w1, b1.reshape(1, hidden), w2, b2f.reshape(1, C))


# ----------------------------------------------------------------------------
# Swin block forward (Pallas kernels for the hot path, JAX glue for reshapes)
# ----------------------------------------------------------------------------

def window_partition_jnp(x, ws):
    B, H, W, C = x.shape
    x = x.reshape(B, H // ws, ws, W // ws, ws, C)
    return x.transpose(0, 1, 3, 2, 4, 5).reshape(-1, ws, ws, C)


def window_reverse_jnp(windows, ws, H, W):
    B = windows.shape[0] // ((H * W) // (ws * ws))
    x = windows.reshape(B, H // ws, W // ws, ws, ws, -1)
    return x.transpose(0, 1, 3, 2, 4, 5).reshape(B, H, W, -1)


def swin_block_forward(x, mask_matrix, params, *, H, W, window_size, shift_size, num_heads):
    B, L, C = x.shape
    assert L == H * W
    ws = window_size
    N = ws * ws
    head_dim = C // num_heads
    scale = head_dim ** (-0.5)

    pad_r = (ws - W % ws) % ws
    pad_b = (ws - H % ws) % ws
    # norm1 commutes with window partition (it is per-token), so it can be fused
    # into the attention kernel whenever no zero-padding is interleaved (the
    # original module pads the already-normalized tensor with zeros).
    fuse_ln = (pad_r == 0 and pad_b == 0)

    shortcut = x
    if fuse_ln:
        xn = x.reshape(B, H, W, C)           # pre-norm; LN applied inside the kernel
    else:
        xn = layernorm_pallas(x.reshape(B * L, C), params["g1"], params["b1"])
        xn = xn.reshape(B, H, W, C)

    xp = jnp.pad(xn, ((0, 0), (0, pad_b), (0, pad_r), (0, 0)))
    Hp, Wp = H + pad_b, W + pad_r

    if shift_size > 0:
        xs = jnp.roll(xp, shift=(-shift_size, -shift_size), axis=(1, 2))
    else:
        xs = xp

    # TODO(synk): fold pad/roll/window-partition/window-reverse into the attention
    # kernel's index_map (scalar-prefetched per-window offsets) to remove these
    # extra HBM passes over the activation.
    x_windows = window_partition_jnp(xs, ws).reshape(-1, N, C)
    Bw = x_windows.shape[0]

    if shift_size > 0:
        nW = mask_matrix.shape[0]
        mask_full = jnp.tile(mask_matrix.astype(jnp.float32), (Bw // nW, 1, 1))
    else:
        mask_full = None                     # W-MSA: skip mask DMA + adds entirely

    qkv_w3 = params["qkv_w"].reshape(C, 3, C).transpose(1, 0, 2)   # (3, C, C)
    qkv_b3 = params["qkv_b"].reshape(3, 1, C)

    attn2d = window_attention_pallas(
        x_windows.reshape(Bw * N, C), qkv_w3, qkv_b3,
        params["proj_w"], params["proj_b"], params["g1"], params["b1"],
        params["rel_bias"], mask_full,
        num_heads=num_heads, scale=scale, n=N, apply_ln=fuse_ln)

    attn_windows = attn2d.reshape(-1, ws, ws, C)
    shifted_x = window_reverse_jnp(attn_windows, ws, Hp, Wp)

    if shift_size > 0:
        shifted_x = jnp.roll(shifted_x, shift=(shift_size, shift_size), axis=(1, 2))
    if pad_r > 0 or pad_b > 0:
        shifted_x = shifted_x[:, :H, :W, :]

    attn_out = shifted_x.reshape(B * L, C)
    out = residual_mlp_pallas(shortcut.reshape(B * L, C), attn_out,
                              params["g2"], params["b2"],
                              params["w1"], params["b1m"], params["w2"], params["b2m"])
    return out.reshape(B, L, C)


# ----------------------------------------------------------------------------
# Pure-JAX reference (mirrors the PyTorch forward) for validation
# ----------------------------------------------------------------------------

def swin_block_reference(x, mask_matrix, params, *, H, W, window_size, shift_size, num_heads):
    def ln(v, g, b):
        mu = v.mean(-1, keepdims=True)
        var = ((v - mu) ** 2).mean(-1, keepdims=True)
        return (v - mu) / jnp.sqrt(var + 1e-5) * g + b

    B, L, C = x.shape
    ws = window_size
    hd = C // num_heads
    scale = hd ** (-0.5)

    shortcut = x
    xn = ln(x, params["g1"], params["b1"]).reshape(B, H, W, C)
    pad_r = (ws - W % ws) % ws
    pad_b = (ws - H % ws) % ws
    xp = jnp.pad(xn, ((0, 0), (0, pad_b), (0, pad_r), (0, 0)))
    Hp, Wp = H + pad_b, W + pad_r

    if shift_size > 0:
        xs = jnp.roll(xp, shift=(-shift_size, -shift_size), axis=(1, 2))
        attn_mask = mask_matrix
    else:
        xs = xp
        attn_mask = None

    xw = window_partition_jnp(xs, ws).reshape(-1, ws * ws, C)
    Bw, N, _ = xw.shape

    qkv = xw @ params["qkv_w"] + params["qkv_b"]
    qkv = qkv.reshape(Bw, N, 3, num_heads, hd).transpose(2, 0, 3, 1, 4)
    q, k, v = qkv[0] * scale, qkv[1], qkv[2]
    attn = q @ jnp.swapaxes(k, -2, -1)
    attn = attn + params["rel_bias"][None]
    if attn_mask is not None:
        nW = attn_mask.shape[0]
        attn = attn.reshape(Bw // nW, nW, num_heads, N, N) + attn_mask[None, :, None]
        attn = attn.reshape(Bw, num_heads, N, N)
    attn = jax.nn.softmax(attn, axis=-1)
    o = (attn @ v).transpose(0, 2, 1, 3).reshape(Bw, N, C)
    o = o @ params["proj_w"] + params["proj_b"]

    o = o.reshape(-1, ws, ws, C)
    shifted_x = window_reverse_jnp(o, ws, Hp, Wp)
    if shift_size > 0:
        shifted_x = jnp.roll(shifted_x, shift=(shift_size, shift_size), axis=(1, 2))
    if pad_r > 0 or pad_b > 0:
        shifted_x = shifted_x[:, :H, :W, :]
    x1 = shortcut + shifted_x.reshape(B, L, C)

    h = ln(x1, params["g2"], params["b2"])
    h = jax.nn.gelu(h @ params["w1"] + params["b1m"], approximate=False)
    h = h @ params["w2"] + params["b2m"]
    return x1 + h


# ----------------------------------------------------------------------------
# Static helpers (relative position index, SW-MSA mask) — computed with numpy
# ----------------------------------------------------------------------------

def relative_position_index_np(ws):
    coords = np.stack(np.meshgrid(np.arange(ws), np.arange(ws), indexing="ij"))
    coords_flatten = coords.reshape(2, -1)
    rel = coords_flatten[:, :, None] - coords_flatten[:, None, :]
    rel = rel.transpose(1, 2, 0).astype(np.int64)
    rel[:, :, 0] += ws - 1
    rel[:, :, 1] += ws - 1
    rel[:, :, 0] *= 2 * ws - 1
    return rel.sum(-1)  # (N, N)


def build_attn_mask_np(Hp, Wp, ws, shift):
    img_mask = np.zeros((1, Hp, Wp, 1), np.float32)
    cnt = 0
    for hs in (slice(0, -ws), slice(-ws, -shift), slice(-shift, None)):
        for wss in (slice(0, -ws), slice(-ws, -shift), slice(-shift, None)):
            img_mask[:, hs, wss, :] = cnt
            cnt += 1
    m = img_mask.reshape(1, Hp // ws, ws, Wp // ws, ws, 1)
    m = m.transpose(0, 1, 3, 2, 4, 5).reshape(-1, ws * ws)
    attn_mask = m[:, None, :] - m[:, :, None]
    return np.where(attn_mask != 0, -100.0, 0.0).astype(np.float32)


# ----------------------------------------------------------------------------
# Main
# ----------------------------------------------------------------------------

if __name__ == "__main__":
    B, H, W = 2, 8, 8
    C = 32
    num_heads = 4
    window_size = 4
    mlp_ratio = 4.0
    hidden = int(C * mlp_ratio)
    N = window_size * window_size
    L = H * W
    dtype = jnp.float32

    key = jax.random.PRNGKey(0)
    ks = jax.random.split(key, 16)

    def w_init(k, shape, std=0.02):
        return (jax.random.normal(k, shape, dtype) * std).astype(dtype)

    params = {
        "g1": (1.0 + 0.1 * jax.random.normal(ks[0], (C,), dtype)),
        "b1": (0.1 * jax.random.normal(ks[1], (C,), dtype)),
        "qkv_w": w_init(ks[2], (C, 3 * C)),
        "qkv_b": w_init(ks[3], (3 * C,)),
        "proj_w": w_init(ks[4], (C, C)),
        "proj_b": w_init(ks[5], (C,)),
        "g2": (1.0 + 0.1 * jax.random.normal(ks[6], (C,), dtype)),
        "b2": (0.1 * jax.random.normal(ks[7], (C,), dtype)),
        "w1": w_init(ks[8], (C, hidden)),
        "b1m": w_init(ks[9], (hidden,)),
        "w2": w_init(ks[10], (hidden, C)),
        "b2m": w_init(ks[11], (C,)),
    }
    rel_table = w_init(ks[12], ((2 * window_size - 1) ** 2, num_heads))
    rel_index = relative_position_index_np(window_size)
    rel_bias = rel_table[rel_index.reshape(-1)].reshape(N, N, num_heads).transpose(2, 0, 1)
    params["rel_bias"] = rel_bias.astype(dtype)

    x = jax.random.normal(ks[13], (B, L, C), dtype)
    mask_matrix = jnp.asarray(build_attn_mask_np(H, W, window_size, 2))

    # SW-MSA (shift_size = 2): masked kernel variant
    out_s = swin_block_forward(x, mask_matrix, params,
                               H=H, W=W, window_size=window_size,
                               shift_size=2, num_heads=num_heads)
    out_s = jax.block_until_ready(out_s)
    ref_s = swin_block_reference(x, mask_matrix, params,
                                 H=H, W=W, window_size=window_size,
                                 shift_size=2, num_heads=num_heads)
    np.testing.assert_allclose(np.asarray(out_s), np.asarray(ref_s), rtol=2e-3, atol=2e-3)

    # W-MSA (shift_size = 0): mask-free kernel variant
    out_w = swin_block_forward(x, mask_matrix, params,
                               H=H, W=W, window_size=window_size,
                               shift_size=0, num_heads=num_heads)
    out_w = jax.block_until_ready(out_w)
    ref_w = swin_block_reference(x, mask_matrix, params,
                                 H=H, W=W, window_size=window_size,
                                 shift_size=0, num_heads=num_heads)
    np.testing.assert_allclose(np.asarray(out_w), np.asarray(ref_w), rtol=2e-3, atol=2e-3)

    print("KERNEL_OK")
</pallas_src>

<mosaic_0001>
module attributes {stable_mosaic.version = 11 : i64} {
  func.func @_window_attn_kernel(%arg0: i32, %arg1: memref<128x32xf32, #tpu.memory_space<vmem>>, %arg2: memref<3x32x32xf32, #tpu.memory_space<vmem>>, %arg3: memref<3x1x32xf32, #tpu.memory_space<vmem>>, %arg4: memref<32x32xf32, #tpu.memory_space<vmem>>, %arg5: memref<1x32xf32, #tpu.memory_space<vmem>>, %arg6: memref<1x32xf32, #tpu.memory_space<vmem>>, %arg7: memref<1x32xf32, #tpu.memory_space<vmem>>, %arg8: memref<4x16x16xf32, #tpu.memory_space<vmem>>, %arg9: memref<8x16x16xf32, #tpu.memory_space<vmem>>, %arg10: memref<128x32xf32, #tpu.memory_space<vmem>>) attributes {dimension_semantics = [#tpu.dimension_semantics<parallel>], iteration_bounds = array<i64: 1>, scalar_prefetch = 0 : i64, scratch_operands = 0 : i64, tpu.core_type = #tpu.core_type<tc>, window_params = [{transform_indices = @transform_0, window_bounds = array<i64: 128, 32>}, {pipeline_mode = #tpu.pipeline_mode<synchronous>, transform_indices = @transform_1, window_bounds = array<i64: 3, 32, 32>}, {pipeline_mode = #tpu.pipeline_mode<synchronous>, transform_indices = @transform_2, window_bounds = array<i64: 3, 1, 32>}, {pipeline_mode = #tpu.pipeline_mode<synchronous>, transform_indices = @transform_3, window_bounds = array<i64: 32, 32>}, {pipeline_mode = #tpu.pipeline_mode<synchronous>, transform_indices = @transform_4, window_bounds = array<i64: 1, 32>}, {pipeline_mode = #tpu.pipeline_mode<synchronous>, transform_indices = @transform_5, window_bounds = array<i64: 1, 32>}, {pipeline_mode = #tpu.pipeline_mode<synchronous>, transform_indices = @transform_6, window_bounds = array<i64: 1, 32>}, {pipeline_mode = #tpu.pipeline_mode<synchronous>, transform_indices = @transform_7, window_bounds = array<i64: 4, 16, 16>}, {transform_indices = @transform_8, window_bounds = array<i64: 8, 16, 16>}, {transform_indices = @transform_9, window_bounds = array<i64: 128, 32>}]} {
    %c0 = arith.constant 0 : index
    %c0_0 = arith.constant 0 : index
    %0 = vector.load %arg1[%c0, %c0_0] : memref<128x32xf32, #tpu.memory_space<vmem>>, vector<128x32xf32>
    %cst = arith.constant dense<0.000000e+00> : vector<128xf32>
    %1 = vector.multi_reduction <add>, %0, %cst [1] : vector<128x32xf32> to vector<128xf32>
    %2 = vector.shape_cast %1 : vector<128xf32> to vector<128x1xf32>
    %cst_1 = arith.constant 3.200000e+01 : f32
    %3 = vector.broadcast %cst_1 : f32 to vector<128x1xf32>
    %4 = arith.divf %2, %3 : vector<128x1xf32>
    %5 = vector.broadcast %4 : vector<128x1xf32> to vector<128x32xf32>
    %6 = arith.subf %0, %5 : vector<128x32xf32>
    %7 = arith.mulf %6, %6 : vector<128x32xf32>
    %cst_2 = arith.constant dense<0.000000e+00> : vector<128xf32>
    %8 = vector.multi_reduction <add>, %7, %cst_2 [1] : vector<128x32xf32> to vector<128xf32>
    %9 = vector.shape_cast %8 : vector<128xf32> to vector<128x1xf32>
    %cst_3 = arith.constant 3.200000e+01 : f32
    %10 = vector.broadcast %cst_3 : f32 to vector<128x1xf32>
    %11 = arith.divf %9, %10 : vector<128x1xf32>
    %cst_4 = arith.constant 9.99999974E-6 : f32
    %12 = vector.broadcast %cst_4 : f32 to vector<128x1xf32>
    %13 = arith.addf %11, %12 : vector<128x1xf32>
    %14 = math.rsqrt %13 : vector<128x1xf32>
    %15 = vector.broadcast %14 : vector<128x1xf32> to vector<128x32xf32>
    %16 = arith.mulf %6, %15 : vector<128x32xf32>
    %c0_5 = arith.constant 0 : index
    %c0_6 = arith.constant 0 : index
    %17 = vector.load %arg6[%c0_5, %c0_6] : memref<1x32xf32, #tpu.memory_space<vmem>>, vector<1x32xf32>
    %18 = vector.broadcast %17 : vector<1x32xf32> to vector<128x32xf32>
    %19 = arith.mulf %16, %18 : vector<128x32xf32>
    %c0_7 = arith.constant 0 : index
    %c0_8 = arith.constant 0 : index
    %20 = vector.load %arg7[%c0_7, %c0_8] : memref<1x32xf32, #tpu.memory_space<vmem>>, vector<1x32xf32>
    %21 = vector.broadcast %20 : vector<1x32xf32> to vector<128x32xf32>
    %22 = arith.addf %19, %21 : vector<128x32xf32>
    %c0_9 = arith.constant 0 : index
    %c0_10 = arith.constant 0 : index
    %c0_11 = arith.constant 0 : index
    %23 = vector.load %arg2[%c0_9, %c0_10, %c0_11] : memref<3x32x32xf32, #tpu.memory_space<vmem>>, vector<1x32x32xf32>
    %24 = vector.shape_cast %23 : vector<1x32x32xf32> to vector<32x32xf32>
    %cst_12 = arith.constant dense<0.000000e+00> : vector<128x32xf32>
    %25 = tpu.matmul %22, %24, %cst_12 {dimension_numbers = #tpu.dot_dimension_numbers<[1], [0], [0], [1], [0, 0, 1, 1], [], []>} : vector<128x32xf32>, vector<32x32xf32>, vector<128x32xf32> -> vector<128x32xf32>
    %c0_13 = arith.constant 0 : index
    %c0_14 = arith.constant 0 : index
    %c0_15 = arith.constant 0 : index
    %26 = vector.load %arg3[%c0_13, %c0_14, %c0_15] : memref<3x1x32xf32, #tpu.memory_space<vmem>>, vector<1x1x32xf32>
    %27 = vector.shape_cast %26 : vector<1x1x32xf32> to vector<1x32xf32>
    %28 = vector.broadcast %27 : vector<1x32xf32> to vector<128x32xf32>
    %29 = arith.addf %25, %28 : vector<128x32xf32>
    %c1 = arith.constant 1 : index
    %c0_16 = arith.constant 0 : index
    %c0_17 = arith.constant 0 : index
    %30 = vector.load %arg2[%c1, %c0_16, %c0_17] : memref<3x32x32xf32, #tpu.memory_space<vmem>>, vector<1x32x32xf32>
    %31 = vector.shape_cast %30 : vector<1x32x32xf32> to vector<32x32xf32>
    %cst_18 = arith.constant dense<0.000000e+00> : vector<128x32xf32>
    %32 = tpu.matmul %22, %31, %cst_18 {dimension_numbers = #tpu.dot_dimension_numbers<[1], [0], [0], [1], [0, 0, 1, 1], [], []>} : vector<128x32xf32>, vector<32x32xf32>, vector<128x32xf32> -> vector<128x32xf32>
    %c1_19 = arith.constant 1 : index
    %c0_20 = arith.constant 0 : index
    %c0_21 = arith.constant 0 : index
    %33 = vector.load %arg3[%c1_19, %c0_20, %c0_21] : memref<3x1x32xf32, #tpu.memory_space<vmem>>, vector<1x1x32xf32>
    %34 = vector.shape_cast %33 : vector<1x1x32xf32> to vector<1x32xf32>
    %35 = vector.broadcast %34 : vector<1x32xf32> to vector<128x32xf32>
    %36 = arith.addf %32, %35 : vector<128x32xf32>
    %c2 = arith.constant 2 : index
    %c0_22 = arith.constant 0 : index
    %c0_23 = arith.constant 0 : index
    %37 = vector.load %arg2[%c2, %c0_22, %c0_23] : memref<3x32x32xf32, #tpu.memory_space<vmem>>, vector<1x32x32xf32>
    %38 = vector.shape_cast %37 : vector<1x32x32xf32> to vector<32x32xf32>
    %cst_24 = arith.constant dense<0.000000e+00> : vector<128x32xf32>
    %39 = tpu.matmul %22, %38, %cst_24 {dimension_numbers = #tpu.dot_dimension_numbers<[1], [0], [0], [1], [0, 0, 1, 1], [], []>} : vector<128x32xf32>, vector<32x32xf32>, vector<128x32xf32> -> vector<128x32xf32>
    %c2_25 = arith.constant 2 : index
    %c0_26 = arith.constant 0 : index
    %c0_27 = arith.constant 0 : index
    %40 = vector.load %arg3[%c2_25, %c0_26, %c0_27] : memref<3x1x32xf32, #tpu.memory_space<vmem>>, vector<1x1x32xf32>
    %41 = vector.shape_cast %40 : vector<1x1x32xf32> to vector<1x32xf32>
    %42 = vector.broadcast %41 : vector<1x32xf32> to vector<128x32xf32>
    %43 = arith.addf %39, %42 : vector<128x32xf32>
    %cst_28 = arith.constant 0.353553385 : f32
    %44 = vector.broadcast %cst_28 : f32 to vector<128x32xf32>
    %45 = arith.mulf %29, %44 : vector<128x32xf32>
    %46 = vector.shape_cast %45 : vector<128x32xf32> to vector<8x16x4x8xf32>
    %47 = tpu.transpose %46, [0, 2, 1, 3] : vector<8x16x4x8xf32> -> vector<8x4x16x8xf32>
    %48 = vector.shape_cast %47 : vector<8x4x16x8xf32> to vector<32x16x8xf32>
    %49 = vector.shape_cast %36 : vector<128x32xf32> to vector<8x16x4x8xf32>
    %50 = tpu.transpose %49, [0, 2, 1, 3] : vector<8x16x4x8xf32> -> vector<8x4x16x8xf32>
    %51 = vector.shape_cast %50 : vector<8x4x16x8xf32> to vector<32x16x8xf32>
    %52 = vector.shape_cast %43 : vector<128x32xf32> to vector<8x16x4x8xf32>
    %53 = tpu.transpose %52, [0, 2, 1, 3] : vector<8x16x4x8xf32> -> vector<8x4x16x8xf32>
    %54 = vector.shape_cast %53 : vector<8x4x16x8xf32> to vector<32x16x8xf32>
    "tpu.trace_start"() <{level = 10 : i32, message = "bnd,bmd->bnm"}> : () -> ()
    %cst_29 = arith.constant dense<0.000000e+00> : vector<32x16x16xf32>
    %55 = tpu.matmul %48, %51, %cst_29 {dimension_numbers = #tpu.dot_dimension_numbers<[2], [2], [1], [1], [0, 0, 0, 1, 1, 1], [0], [0]>} : vector<32x16x8xf32>, vector<32x16x8xf32>, vector<32x16x16xf32> -> vector<32x16x16xf32>
    "tpu.trace_stop"() : () -> ()
    %56 = vector.shape_cast %55 : vector<32x16x16xf32> to vector<8x4x16x16xf32>
    %c0_30 = arith.constant 0 : index
    %c0_31 = arith.constant 0 : index
    %c0_32 = arith.constant 0 : index
    %57 = vector.load %arg8[%c0_30, %c0_31, %c0_32] : memref<4x16x16xf32, #tpu.memory_space<vmem>>, vector<4x16x16xf32>
    %58 = vector.shape_cast %57 : vector<4x16x16xf32> to vector<1x4x16x16xf32>
    %59 = vector.broadcast %58 : vector<1x4x16x16xf32> to vector<8x4x16x16xf32>
    %60 = arith.addf %56, %59 : vector<8x4x16x16xf32>
    %c0_33 = arith.constant 0 : index
    %c0_34 = arith.constant 0 : index
    %c0_35 = arith.constant 0 : index
    %61 = vector.load %arg9[%c0_33, %c0_34, %c0_35] : memref<8x16x16xf32, #tpu.memory_space<vmem>>, vector<8x16x16xf32>
    %62 = vector.shape_cast %61 : vector<8x16x16xf32> to vector<8x1x16x16xf32>
    %63 = vector.broadcast %62 : vector<8x1x16x16xf32> to vector<8x4x16x16xf32>
    %64 = arith.addf %60, %63 : vector<8x4x16x16xf32>
    %cst_36 = arith.constant dense<0xFF800000> : vector<8x4x16xf32>
    %65 = vector.multi_reduction <maximumf>, %64, %cst_36 [3] : vector<8x4x16x16xf32> to vector<8x4x16xf32>
    %66 = vector.shape_cast %65 : vector<8x4x16xf32> to vector<8x4x16x1xf32>
    %67 = vector.broadcast %66 : vector<8x4x16x1xf32> to vector<8x4x16x16xf32>
    %68 = arith.subf %64, %67 : vector<8x4x16x16xf32>
    %69 = math.exp %68 : vector<8x4x16x16xf32>
    %cst_37 = arith.constant dense<0.000000e+00> : vector<8x4x16xf32>
    %70 = vector.multi_reduction <add>, %69, %cst_37 [3] : vector<8x4x16x16xf32> to vector<8x4x16xf32>
    %71 = vector.shape_cast %70 : vector<8x4x16xf32> to vector<8x4x16x1xf32>
    %72 = tpu.reciprocal %71 {approx = true} : vector<8x4x16x1xf32> -> vector<8x4x16x1xf32>
    %73 = vector.broadcast %72 : vector<8x4x16x1xf32> to vector<8x4x16x16xf32>
    %74 = arith.mulf %69, %73 : vector<8x4x16x16xf32>
    %75 = vector.shape_cast %74 : vector<8x4x16x16xf32> to vector<32x16x16xf32>
    "tpu.trace_start"() <{level = 10 : i32, message = "bnm,bmd->bnd"}> : () -> ()
    %cst_38 = arith.constant dense<0.000000e+00> : vector<32x16x8xf32>
    %76 = tpu.matmul %75, %54, %cst_38 {dimension_numbers = #tpu.dot_dimension_numbers<[2], [1], [1], [2], [0, 0, 0, 1, 1, 2], [0], [0]>} : vector<32x16x16xf32>, vector<32x16x8xf32>, vector<32x16x8xf32> -> vector<32x16x8xf32>
    "tpu.trace_stop"() : () -> ()
    %77 = vector.shape_cast %76 : vector<32x16x8xf32> to vector<8x4x16x8xf32>
    %78 = tpu.transpose %77, [0, 2, 1, 3] : vector<8x4x16x8xf32> -> vector<8x16x4x8xf32>
    %79 = vector.shape_cast %78 : vector<8x16x4x8xf32> to vector<128x32xf32>
    %c0_39 = arith.constant 0 : index
    %c0_40 = arith.constant 0 : index
    %80 = vector.load %arg4[%c0_39, %c0_40] : memref<32x32xf32, #tpu.memory_space<vmem>>, vector<32x32xf32>
    %cst_41 = arith.constant dense<0.000000e+00> : vector<128x32xf32>
    %81 = tpu.matmul %79, %80, %cst_41 {dimension_numbers = #tpu.dot_dimension_numbers<[1], [0], [0], [1], [0, 0, 1, 1], [], []>} : vector<128x32xf32>, vector<32x32xf32>, vector<128x32xf32> -> vector<128x32xf32>
    %c0_42 = arith.constant 0 : index
    %c0_43 = arith.constant 0 : index
    %82 = vector.load %arg5[%c0_42, %c0_43] : memref<1x32xf32, #tpu.memory_space<vmem>>, vector<1x32xf32>
    %83 = vector.broadcast %82 : vector<1x32xf32> to vector<128x32xf32>
    %84 = arith.addf %81, %83 : vector<128x32xf32>
    %c0_44 = arith.constant 0 : index
    %c0_45 = arith.constant 0 : index
    %85 = vector.load %arg10[%c0_44, %c0_45] : memref<128x32xf32, #tpu.memory_space<vmem>>, vector<128x32xf32>
    tpu.vector_store %arg10[%c0_44, %c0_45], %84 {strides = array<i32>} : memref<128x32xf32, #tpu.memory_space<vmem>>, vector<128x32xf32>,
    return
  }
  func.func @transform_0(%arg0: i32) -> (i32, i32) {
    %c0_i32 = arith.constant 0 : i32
    %c0_i32_0 = arith.constant 0 : i32
    return %arg0, %c0_i32 : i32, i32
  }
  func.func @transform_1(%arg0: i32) -> (i32, i32, i32) {
    %c0_i32 = arith.constant 0 : i32
    %c0_i32_0 = arith.constant 0 : i32
    %c0_i32_1 = arith.constant 0 : i32
    %c0_i32_2 = arith.constant 0 : i32
    return %c0_i32, %c0_i32_0, %c0_i32_1 : i32, i32, i32
  }
  func.func @transform_2(%arg0: i32) -> (i32, i32, i32) {
    %c0_i32 = arith.constant 0 : i32
    %c0_i32_0 = arith.constant 0 : i32
    %c0_i32_1 = arith.constant 0 : i32
    %c0_i32_2 = arith.constant 0 : i32
    return %c0_i32, %c0_i32_0, %c0_i32_1 : i32, i32, i32
  }
  func.func @transform_3(%arg0: i32) -> (i32, i32) {
    %c0_i32 = arith.constant 0 : i32
    %c0_i32_0 = arith.constant 0 : i32
    %c0_i32_1 = arith.constant 0 : i32
    return %c0_i32, %c0_i32_0 : i32, i32
  }
  func.func @transform_4(%arg0: i32) -> (i32, i32) {
    %c0_i32 = arith.constant 0 : i32
    %c0_i32_0 = arith.constant 0 : i32
    %c0_i32_1 = arith.constant 0 : i32
    return %c0_i32, %c0_i32_0 : i32, i32
  }
  func.func @transform_5(%arg0: i32) -> (i32, i32) {
    %c0_i32 = arith.constant 0 : i32
    %c0_i32_0 = arith.constant 0 : i32
    %c0_i32_1 = arith.constant 0 : i32
    return %c0_i32, %c0_i32_0 : i32, i32
  }
  func.func @transform_6(%arg0: i32) -> (i32, i32) {
    %c0_i32 = arith.constant 0 : i32
    %c0_i32_0 = arith.constant 0 : i32
    %c0_i32_1 = arith.constant 0 : i32
    return %c0_i32, %c0_i32_0 : i32, i32
  }
  func.func @transform_7(%arg0: i32) -> (i32, i32, i32) {
    %c0_i32 = arith.constant 0 : i32
    %c0_i32_0 = arith.constant 0 : i32
    %c0_i32_1 = arith.constant 0 : i32
    %c0_i32_2 = arith.constant 0 : i32
    return %c0_i32, %c0_i32_0, %c0_i32_1 : i32, i32, i32
  }
  func.func @transform_8(%arg0: i32) -> (i32, i32, i32) {
    %c0_i32 = arith.constant 0 : i32
    %c0_i32_0 = arith.constant 0 : i32
    %c0_i32_1 = arith.constant 0 : i32
    return %arg0, %c0_i32, %c0_i32_0 : i32, i32, i32
  }
  func.func @transform_9(%arg0: i32) -> (i32, i32) {
    %c0_i32 = arith.constant 0 : i32
    %c0_i32_0 = arith.constant 0 : i32
    return %arg0, %c0_i32 : i32, i32
  }
}

</mosaic_0001>

<bundles_post_ra>
// kernel: tpu_custom_call.1
= control target key start
LH: loop header
LB: loop body
LE: loop exit
PB: predicated region body
PF: predicated region fallthrough
CT: control target
= control target key end

     0   :  { %14 = vsyncpa [#allocation3], 0  ;;  %s25330_s0 = inlined_call_operand.hbm [shape: f32[128,32], index: 0, kind: input, shape index: {}]   ;;  %s25331_s1 = inlined_call_operand.hbm [shape: f32[3,32,32], index: 1, kind: input, shape index: {}]   ;;  %s25332_s2 = inlined_call_operand.hbm [shape: f32[3,1,32], index: 2, kind: input, shape index: {}]   ;;  %s25333_s3 = inlined_call_operand.hbm [shape: f32[32,32], index: 3, kind: input, shape index: {}]   ;;  %s25334_s4 = inlined_call_operand.hbm [shape: f32[1,32], index: 4, kind: input, shape index: {}]   ;;  %s25335_s5 = inlined_call_operand.hbm [shape: f32[1,32], index: 5, kind: input, shape index: {}]   ;;  %s25336_s6 = inlined_call_operand.hbm [shape: f32[1,32], index: 6, kind: input, shape index: {}]   ;;  %s25337_s7 = inlined_call_operand.hbm [shape: f32[4,16,16], index: 7, kind: input, shape index: {}]   ;;  %s25338_s8 = inlined_call_operand.hbm [shape: f32[8,16,16], index: 8, kind: input, shape index: {}]   ;;  %s25339_s9 = inlined_call_operand.hbm [shape: f32[128,32], index: 9, kind: output, shape index: {}]  }
   0x1   :  { %15 = vsyncpa [#allocation6], 0 }
   0x2   :  { %16 = vsyncpa [#allocation9], 0 }
   0x3   :  { %17 = vsyncpa [#allocation12], 0 }
   0x4   :  { %18 = vsyncpa [#allocation15], 0 }
   0x5   :  { %19 = vsyncpa [#allocation4], 0  ;;  %s19055_s30 = smov [#allocation5]   ;;  %s19056_s11 = smov [#allocation8]  }
   0x6   :  { %s37_s10 = sshll.u32 %s19055_s30, 4  ;;  %s61_s12 = sshll.u32 %s19056_s11, 4  ;;  %s38_s10 = int_to_ptr.vmem [resolvable:$true] %s37_s10  ;;  %s19125_s12 = int_to_ptr.vmem [resolvable:$true] %s61_s12 }
   0x7   :  { %s18823_s15 = scalar_lea.hbm %s25331_s1, 1536 }
   0x8   :  { %p18824_p0 = scmp.ne.s32.totalorder %s25331_s1, %s18823_s15  ;;  %p18827_p1 = scmp.lt.u32.totalorder %s18823_s15, %s25331_s1 }
   0xa   :  { %p18829_p2 = pnand %p18827_p1, %p18824_p0 }
   0xc   :  { %18832 = shalt.err (!%p18829_p2)
}
   0xd   :  { %s18833_s20 = scalar_lea.vmem %s38_s10, 1536  ;;  %p18838_p4 = scmp.lt.s32.totalorder %s38_s10, %s38_s10 }
   0xe   :  { %p18834_p3 = scmp.ne.s32.totalorder %s38_s10, %s18833_s20  ;;  %p18839_p5 = scmp.lt.s32.totalorder %s18833_s20, %s18833_s20 }
  0x10   :  { %p18840_p6 = por %p18839_p5, %p18838_p4 }
  0x12   :  { %p18841_p7 = pnand %p18840_p6, %p18834_p3 }
  0x14   :  { %18844 = shalt.err (!%p18841_p7)
}
  0x15   :  { %s19057_s21 = smov 128   ;;  %s19058_s22 = smov 8  }
  0x16   :  { %43 = dma.hbm_to_vmem [thread:$0]  %s25331_s1, 1536, %s38_s10, [#allocation6], %s19057_s21, %s19057_s21, %s19058_s22  }
  0x17   :  { %s18845_s27 = scalar_lea.hbm %s25333_s3, 512 }
  0x18   :  { %p18846_p8 = scmp.ne.s32.totalorder %s25333_s3, %s18845_s27  ;;  %p18849_p9 = scmp.lt.u32.totalorder %s18845_s27, %s25333_s3 }
  0x1a   :  { %p18851_p10 = pnand %p18849_p9, %p18846_p8 }
  0x1c   :  { %18854 = shalt.err (!%p18851_p10)
}
  0x1d   :  { %s18855_s13 = scalar_lea.vmem %s19125_s12, 512  ;;  %p18860_p12 = scmp.lt.s32.totalorder %s19125_s12, %s19125_s12 }
  0x1e   :  { %p18856_p11 = scmp.ne.s32.totalorder %s19125_s12, %s18855_s13  ;;  %p18861_p13 = scmp.lt.s32.totalorder %s18855_s13, %s18855_s13 }
  0x20   :  { %p18862_p0 = por %p18861_p13, %p18860_p12 }
  0x22   :  { %p18863_p1 = pnand %p18862_p0, %p18856_p11 }
  0x24   :  { %18866 = shalt.err (!%p18863_p1)
}
  0x25   :  { %67 = dma.hbm_to_vmem [thread:$0]  %s25333_s3, 512, %s19125_s12, [#allocation9], %s19057_s21, %s19057_s21, %s19058_s22  }
  0x26   :  { %s19059_s14 = smov [#allocation11]   ;;  %s19060_s16 = smov [#allocation14]  }
  0x27   :  { %s84_s15 = sshll.u32 %s19059_s14, 4  ;;  %s103_s17 = sshll.u32 %s19060_s16, 4  ;;  %s85_s15 = int_to_ptr.vmem [resolvable:$true] %s84_s15  ;;  %s19162_s17 = int_to_ptr.vmem [resolvable:$true] %s103_s17 }
  0x28   :  { %s18867_s20 = scalar_lea.hbm %s25335_s5, 16 }
  0x29   :  { %p18868_p2 = scmp.ne.s32.totalorder %s25335_s5, %s18867_s20  ;;  %p18871_p3 = scmp.lt.u32.totalorder %s18867_s20, %s25335_s5 }
  0x2b   :  { %p18873_p4 = pnand %p18871_p3, %p18868_p2 }
  0x2d   :  { %18876 = shalt.err (!%p18873_p4)
}
  0x2e   :  { %s18877_s3 = scalar_lea.vmem %s85_s15, 16  ;;  %s18881_s12 = scalar_lea.vmem %s85_s15, 32 }
  0x2f   :  { %p18878_p5 = scmp.ne.s32.totalorder %s85_s15, %s18877_s3  ;;  %p18882_p6 = scmp.lt.s32.totalorder %s85_s15, %s85_s15 }
  0x30   :  { %p18883_p7 = scmp.lt.s32.totalorder %s18881_s12, %s18877_s3 }
  0x32   :  { %p18884_p8 = por %p18883_p7, %p18882_p6 }
  0x34   :  { %p18885_p9 = pnand %p18884_p8, %p18878_p5 }
  0x36   :  { %18888 = shalt.err (!%p18885_p9)
}
  0x37   :  { %87 = dma.hbm_to_vmem [thread:$0]  %s25335_s5, 16, %s85_s15, [#allocation12]  }
  0x38   :  { %s18889_s11 = scalar_lea.hbm %s25337_s7, 1024 }
  0x39   :  { %p18890_p10 = scmp.ne.s32.totalorder %s25337_s7, %s18889_s11  ;;  %p18893_p11 = scmp.lt.u32.totalorder %s18889_s11, %s25337_s7 }
  0x3b   :  { %p18895_p12 = pnand %p18893_p11, %p18890_p10 }
  0x3d   :  { %18898 = shalt.err (!%p18895_p12)
}
  0x3e   :  { %s18899_s16 = scalar_lea.vmem %s19162_s17, 1024  ;;  %p18904_p0 = scmp.lt.s32.totalorder %s19162_s17, %s19162_s17 }
  0x3f   :  { %p18900_p13 = scmp.ne.s32.totalorder %s19162_s17, %s18899_s16  ;;  %p18905_p1 = scmp.lt.s32.totalorder %s18899_s16, %s18899_s16 }
  0x41   :  { %p18906_p2 = por %p18905_p1, %p18904_p0 }
  0x43   :  { %p18907_p3 = pnand %p18906_p2, %p18900_p13 }
  0x45   :  { %18910 = shalt.err (!%p18907_p3)
}
  0x46   :  { %109 = dma.hbm_to_vmem [thread:$0]  %s25337_s7, 1024, %s19162_s17, [#allocation15], %s19057_s21, %s19057_s21, %s19058_s22  }
  0x47   :  { %s19061_s18 = smov [#allocation2]   ;;  %s19062_s20 = smov [#allocation7]  }
  0x48   :  { %s25_s19 = sshll.u32 %s19061_s18, 4  ;;  %s49_s23 = sshll.u32 %s19062_s20, 4  ;;  %s26_s19 = int_to_ptr.vmem [resolvable:$true] %s25_s19  ;;  %s19196_s23 = int_to_ptr.vmem [resolvable:$true] %s49_s23 }
  0x49   :  { %s18911_s26 = scalar_lea.hbm %s25330_s0, 2048 }
  0x4a   :  { %p18912_p4 = scmp.ne.s32.totalorder %s25330_s0, %s18911_s26  ;;  %p18915_p5 = scmp.lt.u32.totalorder %s18911_s26, %s25330_s0 }
  0x4c   :  { %p18917_p6 = pnand %p18915_p5, %p18912_p4 }
  0x4e   :  { %18920 = shalt.err (!%p18917_p6)
}
  0x4f   :  { %s18921_s7 = scalar_lea.vmem %s26_s19, 2048  ;;  %p18926_p8 = scmp.lt.s32.totalorder %s26_s19, %s26_s19 }
  0x50   :  { %p18922_p7 = scmp.ne.s32.totalorder %s26_s19, %s18921_s7  ;;  %p18927_p9 = scmp.lt.s32.totalorder %s18921_s7, %s18921_s7 }
  0x52   :  { %p18928_p10 = por %p18927_p9, %p18926_p8 }
  0x54   :  { %p18929_p11 = pnand %p18928_p10, %p18922_p7 }
  0x56   :  { %18932 = shalt.err (!%p18929_p11)
}
  0x57   :  { %31 = dma.hbm_to_vmem [thread:$0]  %s25330_s0, 2048, %s26_s19, [#allocation3], %s19057_s21, %s19057_s21, %s19058_s22  }
  0x58   :  { %s18933_s13 = scalar_lea.hbm %s25332_s2, 48 }
  0x59   :  { %p18934_p12 = scmp.ne.s32.totalorder %s25332_s2, %s18933_s13  ;;  %p18937_p13 = scmp.lt.u32.totalorder %s18933_s13, %s25332_s2 }
  0x5b   :  { %p18939_p0 = pnand %p18937_p13, %p18934_p12 }
  0x5d   :  { %18942 = shalt.err (!%p18939_p0)
}
  0x5e   :  { %s18943_s5 = scalar_lea.vmem %s19196_s23, 48  ;;  %s18947_s0 = scalar_lea.vmem %s19196_s23, 64 }
  0x5f   :  { %p18944_p1 = scmp.ne.s32.totalorder %s19196_s23, %s18943_s5  ;;  %p18948_p2 = scmp.lt.s32.totalorder %s19196_s23, %s19196_s23 }
  0x60   :  { %p18949_p3 = scmp.lt.s32.totalorder %s18947_s0, %s18943_s5 }
  0x62   :  { %p18950_p4 = por %p18949_p3, %p18948_p2 }
  0x64   :  { %p18951_p5 = pnand %p18950_p4, %p18944_p1 }
  0x66   :  { %18954 = shalt.err (!%p18951_p5)
}
  0x67   :  { %s19063_s15 = smov 16   ;;  %s19064_s18 = smov 1  }
  0x68   :  { %55 = dma.hbm_to_vmem [thread:$0]  %s25332_s2, 48, %s19196_s23, [#allocation6], %s19063_s15, %s19063_s15, %s19064_s18  }
  0x69   :  { %s19065_s24 = smov [#allocation10]   ;;  %s19066_s26 = smov [#allocation13]  }
  0x6a   :  { %s74_s25 = sshll.u32 %s19065_s24, 4  ;;  %s94_s3 = sshll.u32 %s19066_s26, 4  ;;  %s75_s25 = int_to_ptr.vmem [resolvable:$true] %s74_s25  ;;  %s95_s3 = int_to_ptr.vmem [resolvable:$true] %s94_s3 }
  0x6b   :  { %s18955_s28 = scalar_lea.hbm %s25334_s4, 16 }
  0x6c   :  { %p18956_p6 = scmp.ne.s32.totalorder %s25334_s4, %s18955_s28  ;;  %p18959_p7 = scmp.lt.u32.totalorder %s18955_s28, %s25334_s4 }
  0x6e   :  { %p18961_p8 = pnand %p18959_p7, %p18956_p6 }
  0x70   :  { %18964 = shalt.err (!%p18961_p8)
}
  0x71   :  { %s18965_s2 = scalar_lea.vmem %s75_s25, 16  ;;  %s18969_s23 = scalar_lea.vmem %s75_s25, 32 }
  0x72   :  { %p18966_p9 = scmp.ne.s32.totalorder %s75_s25, %s18965_s2  ;;  %p18970_p10 = scmp.lt.s32.totalorder %s75_s25, %s75_s25 }
  0x73   :  { %p18971_p11 = scmp.lt.s32.totalorder %s18969_s23, %s18965_s2 }
  0x75   :  { %p18972_p12 = por %p18971_p11, %p18970_p10 }
  0x77   :  { %p18973_p13 = pnand %p18972_p12, %p18966_p9 }
  0x79   :  { %18976 = shalt.err (!%p18973_p13)
}
  0x7a   :  { %77 = dma.hbm_to_vmem [thread:$0]  %s25334_s4, 16, %s75_s25, [#allocation9]  }
  0x7b   :  { %s18977_s14 = scalar_lea.hbm %s25336_s6, 16 }
  0x7c   :  { %p18978_p0 = scmp.ne.s32.totalorder %s25336_s6, %s18977_s14  ;;  %p18981_p1 = scmp.lt.u32.totalorder %s18977_s14, %s25336_s6 }
  0x7e   :  { %p18983_p2 = pnand %p18981_p1, %p18978_p0 }
  0x80   :  { %18986 = shalt.err (!%p18983_p2)
}
  0x81   :  { %s18987_s19 = scalar_lea.vmem %s95_s3, 16  ;;  %s18991_s20 = scalar_lea.vmem %s95_s3, 32 }
  0x82   :  { %p18988_p3 = scmp.ne.s32.totalorder %s95_s3, %s18987_s19  ;;  %p18992_p4 = scmp.lt.s32.totalorder %s95_s3, %s95_s3 }
  0x83   :  { %p18993_p5 = scmp.lt.s32.totalorder %s18991_s20, %s18987_s19 }
  0x85   :  { %p18994_p6 = por %p18993_p5, %p18992_p4 }
  0x87   :  { %p18995_p7 = pnand %p18994_p6, %p18988_p3 }
  0x89   :  { %18998 = shalt.err (!%p18995_p7)
}
  0x8a   :  { %97 = dma.hbm_to_vmem [thread:$0]  %s25336_s6, 16, %s95_s3, [#allocation12]  }
  0x8b   :  { %s19067_s25 = smov [#allocation16]   ;;  %s18999_s28 = scalar_lea.hbm %s25338_s8, 2048 }
  0x8c   :  { %s115_s26 = sshll.u32 %s19067_s25, 4  ;;  %p19000_p8 = scmp.ne.s32.totalorder %s25338_s8, %s18999_s28  ;;  %s116_s26 = int_to_ptr.vmem [resolvable:$true] %s115_s26 }
  0x8d   :  { %p19003_p9 = scmp.lt.u32.totalorder %s18999_s28, %s25338_s8 }
  0x8f   :  { %p19005_p10 = pnand %p19003_p9, %p19000_p8 }
  0x91   :  { %19008 = shalt.err (!%p19005_p10)
}
  0x92   :  { %s19009_s2 = scalar_lea.vmem %s116_s26, 2048  ;;  %p19014_p12 = scmp.lt.s32.totalorder %s116_s26, %s116_s26 }
  0x93   :  { %p19010_p11 = scmp.ne.s32.totalorder %s116_s26, %s19009_s2  ;;  %p19015_p13 = scmp.lt.s32.totalorder %s19009_s2, %s19009_s2 }
  0x95   :  { %p19016_p0 = por %p19015_p13, %p19014_p12 }
  0x97   :  { %p19017_p1 = pnand %p19016_p0, %p19010_p11 }
  0x99   :  { %19020 = shalt.err (!%p19017_p1)
}
  0x9a   :  { %121 = dma.hbm_to_vmem [thread:$0]  %s25338_s8, 2048, %s116_s26, [#allocation15], %s19057_s21, %s19057_s21, %s19058_s22  }
  0x9b   :  { %19043 = dma.done.wait [#allocation3], 2048  }
  0x9c   :  { %19044 = vsyncadd [#allocation3], 4294965248 }
  0x9d   :  { %19045 = dma.done.wait [#allocation6], 1584  }
  0x9e   :  { %19046 = vsyncadd [#allocation6], 4294965712 }
  0x9f   :  { %19047 = dma.done.wait [#allocation9], 528  }
  0xa0   :  { %19048 = vsyncadd [#allocation9], 4294966768 }
  0xa1   :  { %19049 = dma.done.wait [#allocation12], 32  }
  0xa2   :  { %19050 = vsyncadd [#allocation12], 4294967264 }
  0xa3   :  { %19051 = dma.done.wait [#allocation15], 3072  }
  0xa4   :  { %19052 = vsyncadd [#allocation15], 4294964224  ;;  %vm165_vm0 = vcmask 261120   ;;  %v159_v0 = vld [vmem:[#allocation2 + $0x50] sm:$0xff]  ;;  %v157_v1 = vld [vmem:[#allocation2 + $0x40] sm:$0xff]  ;;  %s19068_s8 = smov 112  }
  0xa5   :  { %v160_v2 = vld [vmem:[#allocation2 + $0x58] sm:$0xff]  ;;  %v196_v3 = vsel %vm165_vm0, %v159_v0, 0.0  ;;  %v190_v4 = vsel %vm165_vm0, %v157_v1, 0.0  ;;  %v158_v5 = vld [vmem:[#allocation2 + $0x48] sm:$0xff]  ;;  %v161_v9 = vld [vmem:[#allocation2 + $0x60] sm:$0xff]  ;;  %s19069_s23 = smov 120  }
  0xa6   :  { %197 = vadd.xlane.f32.xlu1 %v196_v3  ;;  %191 = vadd.xlane.f32.xlu0 %v190_v4  ;;  %v199_v6 = vsel %vm165_vm0, %v160_v2, 0.0  ;;  %v193_v7 = vsel %vm165_vm0, %v158_v5, 0.0  ;;  %v162_v8 = vld [vmem:[#allocation2 + $0x68] sm:$0xff]  ;;  %v202_v11 = vsel %vm165_vm0, %v161_v9, 0.0  ;;  %v19278_v12 = vld [vmem:[#allocation2 + $0x78] sm:$0xff]  ;;  %v19280_v13 = vld [vmem:[#allocation2 + $0x70] sm:$0xff] }
  0xa7   :  { %v205_v10 = vsel %vm165_vm0, %v162_v8, 0.0  ;;  %v211_v14 = vsel %vm165_vm0, %v19278_v12, 0.0  ;;  %v208_v15 = vsel %vm165_vm0, %v19280_v13, 0.0  ;;  %v19286_v16 = vld [vmem:[#allocation2 + $0x8] sm:$0xff]  ;;  %v19288_v17 = vld [vmem:[#allocation2] sm:$0xff]  ;;  %v19294_v20 = vld [vmem:[#allocation2 + $0x18] sm:$0xff] }
  0xa8   :  { %v169_v18 = vsel %vm165_vm0, %v19286_v16, 0.0  ;;  %v166_v19 = vsel %vm165_vm0, %v19288_v17, 0.0  ;;  %v19296_v21 = vld [vmem:[#allocation2 + $0x10] sm:$0xff]  ;;  %v175_v22 = vsel %vm165_vm0, %v19294_v20, 0.0  ;;  %v19302_v24 = vld [vmem:[#allocation2 + $0x28] sm:$0xff]  ;;  %v19304_v25 = vld [vmem:[#allocation2 + $0x20] sm:$0xff] }
  0xa9   :  { %v172_v23 = vsel %vm165_vm0, %v19296_v21, 0.0  ;;  %v181_v26 = vsel %vm165_vm0, %v19302_v24, 0.0  ;;  %v178_v27 = vsel %vm165_vm0, %v19304_v25, 0.0  ;;  %v19310_v28 = vld [vmem:[#allocation2 + $0x30] sm:$0xff]  ;;  %v19314_v30 = vld [vmem:[#allocation2 + $0x38] sm:$0xff]  ;;  %s19070_s11 = smov 104  }
  0xaa   :  { %200 = vadd.xlane.f32.xlu1 %v199_v6  ;;  %194 = vadd.xlane.f32.xlu0 %v193_v7  ;;  %v184_v29 = vsel %vm165_vm0, %v19310_v28, 0.0  ;;  %v187_v31 = vsel %vm165_vm0, %v19314_v30, 0.0  ;;  %vm7965_vm1 = vcmask 64512   ;;  %vm10902_vm3 = vcmask 130048   ;;  %s19073_s13 = smov 24  }
  0xab   :  { %vm20396_vm2 = vmpackc.low %vm7965_vm1, %vm7965_vm1  ;;  %vm16599_vm4 = vcmask 195584  }
  0xae   :  { %206 = vadd.xlane.f32.xlu1 %v205_v10  ;;  %203 = vadd.xlane.f32.xlu0 %v202_v11 }
  0xb2   :  { %212 = vadd.xlane.f32.xlu1 %v211_v14  ;;  %209 = vadd.xlane.f32.xlu0 %v208_v15 }
  0xb6   :  { %170 = vadd.xlane.f32.xlu1 %v169_v18  ;;  %167 = vadd.xlane.f32.xlu0 %v166_v19 }
  0xba   :  { %176 = vadd.xlane.f32.xlu1 %v175_v22  ;;  %173 = vadd.xlane.f32.xlu0 %v172_v23 }
  0xbe   :  { %182 = vadd.xlane.f32.xlu1 %v181_v26  ;;  %179 = vadd.xlane.f32.xlu0 %v178_v27 }
  0xc2   :  { %185 = vadd.xlane.f32.xlu1 %v184_v29 }
  0xc6   :  { %188 = vadd.xlane.f32.xlu1 %v187_v31 }
 0x133   :  { %v198_v32 = vpop.xlane.xlu1 %197  ;;  %v192_v33 = vpop.xlane.xlu0 %191 }
 0x134   :  { %v223_v34 = vmul.f32 0.03125, %v192_v33  ;;  %v225_v35 = vmul.f32 0.03125, %v198_v32 }
 0x136   :  { %v19318_v36 = vsub.f32 %v157_v1, %v223_v34  ;;  %v19322_v42 = vsub.f32 %v159_v0, %v225_v35 }
 0x137   :  { %v201_v37 = vpop.xlane.xlu1 %200  ;;  %v195_v38 = vpop.xlane.xlu0 %194 }
 0x138   :  { %v226_v39 = vmul.f32 0.03125, %v201_v37  ;;  %v224_v40 = vmul.f32 0.03125, %v195_v38  ;;  %v255_v41 = vmul.f32 %v19318_v36, %v19318_v36  ;;  %v257_v52 = vmul.f32 %v19322_v42, %v19322_v42 }
 0x13a   :  { %v19324_v43 = vsub.f32 %v160_v2, %v226_v39  ;;  %v19326_v44 = vsub.f32 %v158_v5, %v224_v40  ;;  %v287_v45 = vsel %vm165_vm0, %v255_v41, 0.0  ;;  %v293_v2 = vsel %vm165_vm0, %v257_v52, 0.0  ;;  %v421_v52 = vld [vmem:[#allocation5] sm:$0xff] }
 0x13b   :  { %v207_v46 = vpop.xlane.xlu1 %206  ;;  %288 = vadd.xlane.f32.xlu0 %v287_v45  ;;  %v204_v47 = vpop.xlane.xlu0 %203 }
 0x13c   :  { %v228_v48 = vmul.f32 0.03125, %v207_v46  ;;  %v227_v49 = vmul.f32 0.03125, %v204_v47  ;;  %v258_v50 = vmul.f32 %v19324_v43, %v19324_v43  ;;  %v256_v51 = vmul.f32 %v19326_v44, %v19326_v44 }
 0x13e   :  { %v19335_v53 = vsub.f32 %v162_v8, %v228_v48  ;;  %v19337_v54 = vsub.f32 %v161_v9, %v227_v49  ;;  %v296_v55 = vsel %vm165_vm0, %v258_v50, 0.0  ;;  %v290_v56 = vsel %vm165_vm0, %v256_v51, 0.0 }
 0x13f   :  { %v213_v57 = vpop.xlane.xlu1 %212  ;;  %297 = vadd.xlane.f32.xlu1 %v296_v55  ;;  %291 = vadd.xlane.f32.xlu0 %v290_v56  ;;  %v210_v58 = vpop.xlane.xlu0 %209  ;;  %v422_v55 = vld [vmem:[#allocation5 + $0x8] sm:$0xff] }
 0x140   :  { %v230_v59 = vmul.f32 0.03125, %v213_v57  ;;  %v229_v60 = vmul.f32 0.03125, %v210_v58  ;;  %v260_v61 = vmul.f32 %v19335_v53, %v19335_v53  ;;  %v259_v62 = vmul.f32 %v19337_v54, %v19337_v54  ;;  %v423_v58 = vld [vmem:[#allocation5 + $0x10] sm:$0xff] }
 0x141   :  { %v18159_v56 = vpack.c.bf16 %v422_v55, %v421_v52 }
 0x142   :  { %v19346_v63 = vsub.f32 %v19278_v12, %v230_v59  ;;  %v19349_v0 = vsub.f32 %v19280_v13, %v229_v60  ;;  %v302_v1 = vsel %vm165_vm0, %v260_v61, 0.0  ;;  %v299_v4 = vsel %vm165_vm0, %v259_v62, 0.0  ;;  %v424_v59 = vld [vmem:[#allocation5 + $0x18] sm:$0xff]  ;;  %v626_v60 = vld [vmem:[#allocation5 + $0x20] sm:$0xff]  ;;  %v627_v61 = vld [vmem:[#allocation5 + $0x28] sm:$0xff] }
 0x143   :  { %303 = vadd.xlane.f32.xlu1 %v302_v1  ;;  %v171_v3 = vpop.xlane.xlu1 %170  ;;  %294 = vadd.xlane.f32.xlu0 %v293_v2  ;;  %v168_v5 = vpop.xlane.xlu0 %167  ;;  %v19408_v62 = vpack.c.bf16 %v627_v61, %v626_v60  ;;  %v784_v1 = vld [vmem:[#allocation5 + $0x40] sm:$0xff]  ;;  %v785_v2 = vld [vmem:[#allocation5 + $0x48] sm:$0xff] }
 0x144   :  { %v216_v6 = vmul.f32 0.03125, %v171_v3  ;;  %v262_v7 = vmul.f32 %v19346_v63, %v19346_v63  ;;  %v215_v8 = vmul.f32 0.03125, %v168_v5  ;;  %v261_v9 = vmul.f32 %v19349_v0, %v19349_v0  ;;  %18511 = vmatprep.subr.bf16.mxu1 %v18159_v56  ;;  %18160 = vmatprep.subr.bf16.mxu0 %v18159_v56 }
 0x145   :  { %18513 = vmatpush3.bf16.msra.mxu1 %v18159_v56  ;;  %18162 = vmatpush3.bf16.msra.mxu0 %v18159_v56  ;;  %v19411_v3 = vpack.c.bf16 %v785_v2, %v784_v1 }
 0x146   :  { %v19359_v10 = vsub.f32 %v19286_v16, %v216_v6  ;;  %v308_v11 = vsel %vm165_vm0, %v262_v7, 0.0  ;;  %v19363_v12 = vsub.f32 %v19288_v17, %v215_v8  ;;  %v305_v14 = vsel %vm165_vm0, %v261_v9, 0.0 }
 0x147   :  { %309 = vadd.xlane.f32.xlu1 %v308_v11  ;;  %v177_v13 = vpop.xlane.xlu1 %176  ;;  %300 = vadd.xlane.f32.xlu0 %v299_v4  ;;  %v174_v15 = vpop.xlane.xlu0 %173 }
 0x148   :  { %v218_v18 = vmul.f32 0.03125, %v177_v13  ;;  %v248_v19 = vmul.f32 %v19359_v10, %v19359_v10  ;;  %v217_v22 = vmul.f32 0.03125, %v174_v15  ;;  %v247_v16 = vmul.f32 %v19363_v12, %v19363_v12 }
 0x14a   :  { %v19371_v23 = vsub.f32 %v19294_v20, %v218_v18  ;;  %v266_v17 = vsel %vm165_vm0, %v248_v19, 0.0  ;;  %v19375_v26 = vsub.f32 %v19296_v21, %v217_v22  ;;  %v263_v29 = vsel %vm165_vm0, %v247_v16, 0.0 }
 0x14b   :  { %267 = vadd.xlane.f32.xlu1 %v266_v17  ;;  %v183_v27 = vpop.xlane.xlu1 %182  ;;  %306 = vadd.xlane.f32.xlu0 %v305_v14  ;;  %v180_v31 = vpop.xlane.xlu0 %179 }
 0x14c   :  { %v220_v32 = vmul.f32 0.03125, %v183_v27  ;;  %v250_v33 = vmul.f32 %v19371_v23, %v19371_v23  ;;  %v219_v34 = vmul.f32 0.03125, %v180_v31  ;;  %v249_v20 = vmul.f32 %v19375_v26, %v19375_v26 }
 0x14e   :  { %v19383_v35 = vsub.f32 %v19302_v24, %v220_v32  ;;  %v272_v21 = vsel %vm165_vm0, %v250_v33, 0.0  ;;  %v19387_v37 = vsub.f32 %v19304_v25, %v219_v34  ;;  %v269_v41 = vsel %vm165_vm0, %v249_v20, 0.0 }
 0x14f   :  { %273 = vadd.xlane.f32.xlu1 %v272_v21  ;;  %v186_v38 = vpop.xlane.xlu1 %185  ;;  %264 = vadd.xlane.f32.xlu0 %v263_v29  ;;  %v19414_v21 = vld [vmem:[#allocation11] ss:$0 sm:$0xff] }
 0x150   :  { %v221_v39 = vmul.f32 0.03125, %v186_v38  ;;  %v252_v40 = vmul.f32 %v19383_v35, %v19383_v35  ;;  %v251_v45 = vmul.f32 %v19387_v37, %v19387_v37 }
 0x152   :  { %v19395_v24 = vsub.f32 %v19310_v28, %v221_v39  ;;  %v278_v46 = vsel %vm165_vm0, %v252_v40, 0.0  ;;  %v275_v48 = vsel %vm165_vm0, %v251_v45, 0.0 }
 0x153   :  { %279 = vadd.xlane.f32.xlu1 %v278_v46  ;;  %v189_v25 = vpop.xlane.xlu1 %188  ;;  %270 = vadd.xlane.f32.xlu0 %v269_v41  ;;  %v19417_v46 = vld [vmem:[#allocation13] ss:$0 sm:$0xff] }
 0x154   :  { %v222_v47 = vmul.f32 0.03125, %v189_v25  ;;  %v253_v49 = vmul.f32 %v19395_v24, %v19395_v24 }
 0x156   :  { %v19402_v50 = vsub.f32 %v19314_v30, %v222_v47  ;;  %v281_v28 = vsel %vm165_vm0, %v253_v49, 0.0  ;;  %v18163_v30 = vpack.c.bf16 %v424_v59, %v423_v58  ;;  %v628_v58 = vld [vmem:[#allocation5 + $0x30] sm:$0xff]  ;;  %v629_v59 = vld [vmem:[#allocation5 + $0x38] sm:$0xff] }
 0x157   :  { %276 = vadd.xlane.f32.xlu0 %v275_v48 }
 0x158   :  { %v254_v51 = vmul.f32 %v19402_v50, %v19402_v50  ;;  %18512 = vmatprep.subr.bf16.mxu1 %v18163_v30  ;;  %18164 = vmatprep.subr.bf16.mxu0 %v18163_v30 }
 0x159   :  { %18514 = vmatpush3.bf16.msra.mxu1 %v18163_v30  ;;  %18166 = vmatpush3.bf16.msra.mxu0 %v18163_v30 }
 0x15a   :  { %v284_v57 = vsel %vm165_vm0, %v254_v51, 0.0  ;;  %18168 = vmatprep.subr.bf16.mxu1 %v19408_v62  ;;  %18176 = vmatprep.subr.bf16.mxu0 %v19411_v3 }
 0x15b   :  { %285 = vadd.xlane.f32.xlu1 %v284_v57  ;;  %282 = vadd.xlane.f32.xlu0 %v281_v28 }
 0x1c8   :  { %v289_v4 = vpop.xlane.xlu0 %288 }
 0x1c9   :  { %v319_v5 = vmul.f32 0.03125, %v289_v4 }
 0x1cb   :  { %v335_v6 = vadd.f32 1e-05, %v319_v5 }
 0x1cc   :  { %v298_v7 = vpop.xlane.xlu1 %297  ;;  %v292_v8 = vpop.xlane.xlu0 %291 }
 0x1cd   :  { %18535 = vrsqrt.f32 %v335_v6  ;;  %v322_v9 = vmul.f32 0.03125, %v298_v7  ;;  %v320_v11 = vmul.f32 0.03125, %v292_v8  ;;  %v18171_v7 = vpack.c.bf16 %v629_v59, %v628_v58  ;;  %v786_v59 = vld [vmem:[#allocation5 + $0x50] sm:$0xff] }
 0x1cf   :  { %v338_v13 = vadd.f32 1e-05, %v322_v9  ;;  %v336_v14 = vadd.f32 1e-05, %v320_v11 }
 0x1d0   :  { %v304_v15 = vpop.xlane.xlu1 %303  ;;  %v295_v18 = vpop.xlane.xlu0 %294 }
 0x1d1   :  { %18537 = vrsqrt.f32 %v338_v13  ;;  %v324_v19 = vmul.f32 0.03125, %v304_v15  ;;  %v321_v22 = vmul.f32 0.03125, %v295_v18 }
 0x1d2   :  { %18539 = vrsqrt.f32 %v336_v14 }
 0x1d3   :  { %v340_v16 = vadd.f32 1e-05, %v324_v19  ;;  %v337_v17 = vadd.f32 1e-05, %v321_v22 }
 0x1d4   :  { %v310_v27 = vpop.xlane.xlu1 %309  ;;  %v301_v29 = vpop.xlane.xlu0 %300 }
 0x1d5   :  { %18541 = vrsqrt.f32 %v340_v16  ;;  %v326_v31 = vmul.f32 0.03125, %v310_v27  ;;  %v323_v32 = vmul.f32 0.03125, %v301_v29 }
 0x1d6   :  { %18543 = vrsqrt.f32 %v337_v17 }
 0x1d7   :  { %v18536_v33 = vpop.eup %18535  ;;  %v342_v34 = vadd.f32 1e-05, %v326_v31  ;;  %v339_v20 = vadd.f32 1e-05, %v323_v32 }
 0x1d8   :  { %v268_v38 = vpop.xlane.xlu1 %267  ;;  %v307_v39 = vpop.xlane.xlu0 %306  ;;  %v367_v40 = vmul.f32 %v18536_v33, %v19318_v36 }
 0x1d9   :  { %18545 = vrsqrt.f32 %v342_v34  ;;  %v312_v41 = vmul.f32 0.03125, %v268_v38  ;;  %v325_v45 = vmul.f32 0.03125, %v307_v39 }
 0x1da   :  { %18547 = vrsqrt.f32 %v339_v20  ;;  %v390_v25 = vmul.f32 %v19414_v21, %v367_v40 }
 0x1db   :  { %v18538_v47 = vpop.eup %18537  ;;  %v328_v48 = vadd.f32 1e-05, %v312_v41  ;;  %v341_v49 = vadd.f32 1e-05, %v325_v45 }
 0x1dc   :  { %v18540_v51 = vpop.eup %18539  ;;  %v274_v28 = vpop.xlane.xlu1 %273  ;;  %v19421_v55 = vadd.f32 %v19417_v46, %v390_v25  ;;  %v370_v30 = vmul.f32 %v18538_v47, %v19324_v43 }
 0x1dd   :  { %v265_v52 = vpop.xlane.xlu0 %264  ;;  %18549 = vrsqrt.f32 %v328_v48  ;;  %v314_v56 = vmul.f32 0.03125, %v274_v28  ;;  %v368_v57 = vmul.f32 %v18540_v51, %v19326_v44 }
 0x1de   :  { %v311_v36 = vmul.f32 0.03125, %v265_v52  ;;  %18551 = vrsqrt.f32 %v341_v49  ;;  %17603 = vmatprep.mubr.msk.f32.mxu1 %vm165_vm0, %v19421_v55  ;;  %v393_v43 = vmul.f32 %v19414_v21, %v370_v30  ;;  %v787_v30 = vld [vmem:[#allocation5 + $0x58] sm:$0xff] }
 0x1df   :  { %v18542_v60 = vpop.eup %18541  ;;  %v330_v61 = vadd.f32 1e-05, %v314_v56  ;;  %v391_v2 = vmul.f32 %v19414_v21, %v368_v57 }
 0x1e0   :  { %v327_v1 = vadd.f32 1e-05, %v311_v36  ;;  %v18544_v4 = vpop.eup %18543  ;;  %v280_v5 = vpop.xlane.xlu1 %279  ;;  %v372_v18 = vmul.f32 %v18542_v60, %v19335_v53  ;;  %v19443_v29 = vadd.f32 %v19417_v46, %v393_v43 }
 0x1e1   :  { %v271_v6 = vpop.xlane.xlu0 %270  ;;  %18553 = vrsqrt.f32 %v330_v61  ;;  %v316_v8 = vmul.f32 0.03125, %v280_v5  ;;  %v19429_v9 = vadd.f32 %v19417_v46, %v391_v2  ;;  %v369_v11 = vmul.f32 %v18544_v4, %v19322_v42 }
 0x1e2   :  { %v313_v44 = vmul.f32 0.03125, %v271_v6  ;;  %18555 = vrsqrt.f32 %v327_v1  ;;  %v395_v33 = vmul.f32 %v19414_v21, %v372_v18  ;;  %v18179_v4 = vpack.c.bf16 %v787_v30, %v786_v59 }
 0x1e3   :  { %v18546_v13 = vpop.eup %18545  ;;  %v332_v14 = vadd.f32 1e-05, %v316_v8  ;;  %17604 = vmatmul.mubr.msk.f32.vlgmr.msra.gmra.mrb[0].mxu1 %vm165_vm0, %v19429_v9  ;;  %v392_v16 = vmul.f32 %v19414_v21, %v369_v11 }
 0x1e4   :  { %v329_v15 = vadd.f32 1e-05, %v313_v44  ;;  %v18548_v19 = vpop.eup %18547  ;;  %18170 = vmatpush3.bf16.msra.mxu1 %v19408_v62  ;;  %v374_v62 = vmul.f32 %v18546_v13, %v19346_v63  ;;  %v19460_v48 = vadd.f32 %v19417_v46, %v395_v33 }
 0x1e5   :  { %v277_v22 = vpop.xlane.xlu0 %276  ;;  %18557 = vrsqrt.f32 %v332_v14  ;;  %v371_v42 = vmul.f32 %v18548_v19, %v19337_v54  ;;  %18172 = vmatprep.subr.bf16.mxu1 %v18171_v7  ;;  %v19440_v27 = vadd.f32 %v19417_v46, %v392_v16 }
 0x1e6   :  { %v315_v17 = vmul.f32 0.03125, %v277_v22  ;;  %18559 = vrsqrt.f32 %v329_v15  ;;  %v397_v49 = vmul.f32 %v19414_v21, %v374_v62 }
 0x1e7   :  { %v18550_v31 = vpop.eup %18549  ;;  %v394_v32 = vmul.f32 %v19414_v21, %v371_v42  ;;  %17606 = vmatprep.mubr.msk.f32.mxu1 %vm165_vm0, %v19440_v27 }
 0x1e8   :  { %v331_v53 = vadd.f32 1e-05, %v315_v17  ;;  %v18552_v34 = vpop.eup %18551  ;;  %v286_v54 = vpop.xlane.xlu1 %285  ;;  %18174 = vmatpush3.bf16.msra.mxu1 %v18171_v7  ;;  %v360_v63 = vmul.f32 %v18550_v31, %v19359_v10  ;;  %v19473_v57 = vadd.f32 %v19417_v46, %v397_v49 }
 0x1e9   :  { %v283_v20 = vpop.xlane.xlu0 %282  ;;  %17607 = vmatmul.mubr.msk.f32.gmra.mrb[2].mxu1 %vm165_vm0, %v19443_v29  ;;  %v318_v38 = vmul.f32 0.03125, %v286_v54  ;;  %v19453_v40 = vadd.f32 %v19417_v46, %v394_v32  ;;  %v373_v41 = vmul.f32 %v18552_v34, %v19349_v0 }
 0x1ea   :  { %18561 = vrsqrt.f32 %v331_v53  ;;  %v317_v39 = vmul.f32 0.03125, %v283_v20  ;;  %v383_v52 = vmul.f32 %v19414_v21, %v360_v63 }
 0x1eb   :  { %v18554_v45 = vpop.eup %18553  ;;  %v334_v25 = vadd.f32 1e-05, %v318_v38  ;;  %17609 = vmatprep.mubr.msk.f32.mxu1 %vm165_vm0, %v19453_v40  ;;  %v396_v28 = vmul.f32 %v19414_v21, %v373_v41 }
 0x1ec   :  { %v333_v47 = vadd.f32 1e-05, %v317_v39  ;;  %v18556_v51 = vpop.eup %18555  ;;  %v362_v56 = vmul.f32 %v18554_v45, %v19371_v23  ;;  %v406_v23 = vadd.f32 %v19417_v46, %v383_v52 }
 0x1ed   :  { %18563 = vrsqrt.f32 %v334_v25  ;;  %17610 = vmatmul.mubr.msk.f32.gmra.mrb[4].mxu1 %vm165_vm0, %v19460_v48  ;;  %v359_v0 = vmul.f32 %v18556_v51, %v19363_v12  ;;  %v19468_v10 = vadd.f32 %v19417_v46, %v396_v28 }
 0x1ee   :  { %18565 = vrsqrt.f32 %v333_v47  ;;  %v385_v1 = vmul.f32 %v19414_v21, %v362_v56  ;;  %v19610_v56 = vld [vmem:[#allocation7 + $0x1] ss:$0 sm:$0xff] }
 0x1ef   :  { %v18558_v36 = vpop.eup %18557  ;;  %v382_v58 = vmul.f32 %v19414_v21, %v359_v0  ;;  %17612 = vmatprep.mubr.msk.f32.mxu1 %vm165_vm0, %v19468_v10 }
 0x1f0   :  { %v18560_v60 = vpop.eup %18559  ;;  %v364_v2 = vmul.f32 %v18558_v36, %v19383_v35  ;;  %v408_v35 = vadd.f32 %v19417_v46, %v385_v1 }
 0x1f1   :  { %17613 = vmatmul.mubr.msk.f32.gmra.mrb[6].mxu1 %vm165_vm0, %v19473_v57  ;;  %v405_v12 = vadd.f32 %v19417_v46, %v382_v58  ;;  %v361_v61 = vmul.f32 %v18560_v60, %v19375_v26 }
 0x1f2   :  { %v387_v44 = vmul.f32 %v19414_v21, %v364_v2 }
 0x1f3   :  { %17591 = vmatprep.mubr.msk.f32.mxu0 %vm165_vm0, %v405_v12  ;;  %17623 = vmatprep.mubr.msk.f32.mxu1 %vm165_vm0, %v405_v12  ;;  %v384_v6 = vmul.f32 %v19414_v21, %v361_v61 }
 0x1f4   :  { %v18562_v5 = vpop.eup %18561  ;;  %17592 = vmatmul.mubr.msk.f32.vlgmr.msra.gmra.mrb[0].mxu0 %vm165_vm0, %v406_v23  ;;  %v410_v14 = vadd.f32 %v19417_v46, %v387_v44 }
 0x1f5   :  { %v363_v7 = vmul.f32 %v18562_v5, %v19387_v37  ;;  %17624 = vmatmul.mubr.msk.f32.vlgmr.msra.gmra.mrb[8].mxu1 %vm165_vm0, %v406_v23  ;;  %v407_v26 = vadd.f32 %v19417_v46, %v384_v6  ;;  %18178 = vmatpush3.bf16.msra.mxu0 %v19411_v3 }
 0x1f6   :  { %18180 = vmatprep.subr.bf16.mxu0 %v18179_v4 }
 0x1f7   :  { %v386_v8 = vmul.f32 %v19414_v21, %v363_v7  ;;  %v18564_v11 = vpop.eup %18563  ;;  %17594 = vmatprep.mubr.msk.f32.mxu0 %vm165_vm0, %v407_v26  ;;  %17626 = vmatprep.mubr.msk.f32.mxu1 %vm165_vm0, %v407_v26 }
 0x1f8   :  { %v18566_v43 = vpop.eup %18565  ;;  %17595 = vmatmul.mubr.msk.f32.gmra.mrb[2].mxu0 %vm165_vm0, %v408_v35  ;;  %v366_v13 = vmul.f32 %v18564_v11, %v19402_v50 }
 0x1f9   :  { %v409_v37 = vadd.f32 %v19417_v46, %v386_v8  ;;  %17627 = vmatmul.mubr.msk.f32.gmra.mrb[10].mxu1 %vm165_vm0, %v408_v35  ;;  %v365_v3 = vmul.f32 %v18566_v43, %v19395_v24  ;;  %18182 = vmatpush3.bf16.msra.mxu0 %v18179_v4  ;;  %v19556_v24 = vld [vmem:[#allocation7] ss:$0 sm:$0xff] }
 0x1fa   :  { %v389_v15 = vmul.f32 %v19414_v21, %v366_v13 }
 0x1fb   :  { %17597 = vmatprep.mubr.msk.f32.mxu0 %vm165_vm0, %v409_v37  ;;  %17629 = vmatprep.mubr.msk.f32.mxu1 %vm165_vm0, %v409_v37  ;;  %v388_v18 = vmul.f32 %v19414_v21, %v365_v3 }
 0x1fc   :  { %17598 = vmatmul.mubr.msk.f32.gmra.mrb[4].mxu0 %vm165_vm0, %v410_v14  ;;  %v412_v19 = vadd.f32 %v19417_v46, %v389_v15 }
 0x1fd   :  { %17630 = vmatmul.mubr.msk.f32.gmra.mrb[12].mxu1 %vm165_vm0, %v410_v14  ;;  %v411_v50 = vadd.f32 %v19417_v46, %v388_v18 }
 0x1ff   :  { %17600 = vmatprep.mubr.msk.f32.mxu0 %vm165_vm0, %v411_v50  ;;  %17632 = vmatprep.mubr.msk.f32.mxu1 %vm165_vm0, %v411_v50 }
 0x200   :  { %17601 = vmatmul.mubr.msk.f32.gmra.mrb[6].mxu0 %vm165_vm0, %v412_v19 }
 0x201   :  { %17633 = vmatmul.mubr.msk.f32.gmra.mrb[14].mxu1 %vm165_vm0, %v412_v19  ;;  %17655 = vmatprep.mubr.msk.f32.mxu0 %vm165_vm0, %v405_v12 }
 0x202   :  { %17635 = vmatprep.mubr.msk.f32.mxu1 %vm165_vm0, %v19421_v55 }
 0x204   :  { %17656 = vmatmul.mubr.msk.f32.vlgmr.msra.gmra.mrb[8].mxu0 %vm165_vm0, %v406_v23 }
 0x205   :  { %17636 = vmatmul.mubr.msk.f32.gmra.mrb[16].mxu1 %vm165_vm0, %v19429_v9  ;;  %17658 = vmatprep.mubr.msk.f32.mxu0 %vm165_vm0, %v407_v26 }
 0x206   :  { %17638 = vmatprep.mubr.msk.f32.mxu1 %vm165_vm0, %v19440_v27 }
 0x208   :  { %17659 = vmatmul.mubr.msk.f32.gmra.mrb[10].mxu0 %vm165_vm0, %v408_v35 }
 0x209   :  { %17639 = vmatmul.mubr.msk.f32.gmra.mrb[18].mxu1 %vm165_vm0, %v19443_v29  ;;  %17661 = vmatprep.mubr.msk.f32.mxu0 %vm165_vm0, %v409_v37 }
 0x20a   :  { %17641 = vmatprep.mubr.msk.f32.mxu1 %vm165_vm0, %v19453_v40 }
 0x20c   :  { %17662 = vmatmul.mubr.msk.f32.gmra.mrb[12].mxu0 %vm165_vm0, %v410_v14 }
 0x20d   :  { %17642 = vmatmul.mubr.msk.f32.gmra.mrb[20].mxu1 %vm165_vm0, %v19460_v48  ;;  %17664 = vmatprep.mubr.msk.f32.mxu0 %vm165_vm0, %v411_v50 }
 0x20e   :  { %17644 = vmatprep.mubr.msk.f32.mxu1 %vm165_vm0, %v19468_v10 }
 0x210   :  { %17665 = vmatmul.mubr.msk.f32.gmra.mrb[14].mxu0 %vm165_vm0, %v412_v19 }
 0x211   :  { %17645 = vmatmul.mubr.msk.f32.gmra.mrb[22].mxu1 %vm165_vm0, %v19473_v57  ;;  %17667 = vmatprep.mubr.msk.f32.mxu0 %vm165_vm0, %v19421_v55 }
 0x214   :  { %17668 = vmatmul.mubr.msk.f32.gmra.mrb[16].mxu0 %vm165_vm0, %v19429_v9 }
 0x215   :  { %17670 = vmatprep.mubr.msk.f32.mxu0 %vm165_vm0, %v19440_v27 }
 0x218   :  { %17671 = vmatmul.mubr.msk.f32.gmra.mrb[18].mxu0 %vm165_vm0, %v19443_v29 }
 0x219   :  { %17673 = vmatprep.mubr.msk.f32.mxu0 %vm165_vm0, %v19453_v40 }
 0x21c   :  { %17674 = vmatmul.mubr.msk.f32.gmra.mrb[20].mxu0 %vm165_vm0, %v19460_v48 }
 0x21d   :  { %17676 = vmatprep.mubr.msk.f32.mxu0 %vm165_vm0, %v19468_v10 }
 0x220   :  { %17677 = vmatmul.mubr.msk.f32.gmra.mrb[22].mxu0 %vm165_vm0, %v19473_v57 }
 0x2b6   :  { %v17605_v21 = vpop.f32.mrb[0].mxu1 }
 0x2b7   :  { %v19559_v46 = vadd.f32 %v17605_v21, %v19556_v24  ;;  %v19561_v55 = vpop.f32.mrb[1].mxu1 }
 0x2bc   :  { %v17608_v9 = vpop.f32.mrb[2].mxu1 }
 0x2bd   :  { %v19564_v22 = vadd.f32 %v17608_v9, %v19556_v24  ;;  %v596_v16 = vpop.f32.mrb[3].mxu1 }
 0x2be   :  { %v19567_v17 = vadd.f32 %v19556_v24, %v596_v16 }
 0x2c0   :  { %v17611_v42 = vpop.f32.mrb[4].mxu1 }
 0x2c1   :  { %v19570_v27 = vadd.f32 %v17611_v42, %v19556_v24  ;;  %v606_v29 = vpop.f32.mrb[5].mxu1 }
 0x2c2   :  { %v19573_v31 = vadd.f32 %v19556_v24, %v606_v29 }
 0x2c4   :  { %v17614_v53 = vpop.f32.mrb[6].mxu1 }
 0x2c5   :  { %v19576_v32 = vadd.f32 %v17614_v53, %v19556_v24  ;;  %v616_v33 = vpop.f32.mrb[7].mxu1 }
 0x2c6   :  { %v19579_v62 = vadd.f32 %v19556_v24, %v616_v33  ;;  %v19688_v33 = vld [vmem:[#allocation7 + $0x2] ss:$0 sm:$0xff] }
 0x2c7   :  { %v17593_v34 = vpop.f32.mrb[0].mxu0 }
 0x2c8   :  { %v552_v54 = vadd.f32 %v17593_v34, %v19556_v24  ;;  %v19582_v20 = vpop.f32.mrb[8].mxu1  ;;  %v546_v38 = vpop.f32.mrb[1].mxu0 }
 0x2c9   :  { %v19584_v39 = vpop.f32.mrb[9].mxu1  ;;  %v547_v41 = vadd.f32 %v19556_v24, %v546_v38 }
 0x2ca   :  { %v19586_v40 = vmul.f32 0.35355338, %v552_v54 }
 0x2cb   :  { %v17596_v63 = vpop.f32.mrb[2].mxu0  ;;  %v19597_v48 = vmul.f32 0.35355338, %v547_v41 }
 0x2cc   :  { %v19589_v45 = vpop.f32.mrb[10].mxu1  ;;  %1023 = vrot.lane.b32.xlu0 %v19586_v40, %s19068_s8  ;;  %975 = vrot.lane.b32.xlu1 %v19586_v40, %s19069_s23  ;;  %v556_v25 = vpop.f32.mrb[3].mxu0  ;;  %v562_v10 = vadd.f32 %v17596_v63, %v19556_v24 }
 0x2cd   :  { %v19595_v47 = vpop.f32.mrb[11].mxu1  ;;  %v557_v60 = vadd.f32 %v19556_v24, %v556_v25 }
 0x2ce   :  { %v19621_v30 = vmul.f32 0.35355338, %v562_v10 }
 0x2cf   :  { %v17599_v49 = vpop.f32.mrb[4].mxu0  ;;  %v19635_v4 = vmul.f32 0.35355338, %v557_v60 }
 0x2d0   :  { %v19599_v51 = vpop.f32.mrb[12].mxu1  ;;  %1071 = vrot.lane.b32.xlu1 %v19586_v40, %s19070_s11  ;;  %973 = vrot.lane.b32.xlu0 %v19597_v48, %s19069_s23  ;;  %v566_v28 = vpop.f32.mrb[5].mxu0  ;;  %v572_v44 = vadd.f32 %v17599_v49, %v19556_v24 }
 0x2d1   :  { %v19605_v0 = vpop.f32.mrb[13].mxu1  ;;  %v567_v18 = vadd.f32 %v19556_v24, %v566_v28 }
 0x2d2   :  { %v19666_v15 = vmul.f32 0.35355338, %v572_v44 }
 0x2d3   :  { %v19608_v52 = vpop.f32.mrb[6].mxu0  ;;  %v19683_v29 = vmul.f32 0.35355338, %v567_v18 }
 0x2d4   :  { %v17634_v36 = vpop.f32.mrb[14].mxu1  ;;  %1021 = vrot.lane.b32.xlu1 %v19597_v48, %s19068_s8  ;;  %1069 = vrot.lane.b32.xlu0 %v19597_v48, %s19070_s11  ;;  %v576_v57 = vpop.f32.mrb[7].mxu0 }
 0x2d5   :  { %v19617_v58 = vadd.f32 %v17634_v36, %v19610_v56  ;;  %v19619_v59 = vpop.f32.mrb[15].mxu1  ;;  %v577_v41 = vadd.f32 %v19556_v24, %v576_v57  ;;  %v19722_v57 = vadd.f32 %v19582_v20, %v19610_v56  ;;  %v582_v20 = vadd.f32 %v19608_v52, %v19556_v24 }
 0x2d6   :  { %v19802_v52 = vadd.f32 %v19610_v56, %v19605_v0  ;;  %v19071_v0 = vmov 1983009808  }
 0x2d7   :  { %25581 = vst [vmem:[#allocation24_spill] sm:$0xff] %v19617_v58  ;;  %v19624_v12 = vpop.f32.mrb[8].mxu0  ;;  %v19709_v28 = vmul.f32 0.35355338, %v577_v41 }
 0x2d8   :  { %v17637_v61 = vpop.f32.mrb[16].mxu1  ;;  %1027 = vrot.lane.b32.xlu0 %v19621_v30, %s19068_s8  ;;  %979 = vrot.lane.b32.xlu1 %v19621_v30, %s19069_s23  ;;  %v19630_v23 = vpop.f32.mrb[9].mxu0  ;;  %25596 = vst [vmem:[#allocation39_spill] sm:$0xff] %v19802_v52 }
 0x2d9   :  { %v19633_v1 = vadd.f32 %v17637_v61, %v19610_v56  ;;  %v744_v2 = vpop.f32.mrb[17].mxu1  ;;  %v19726_v61 = vadd.f32 %v19610_v56, %v19584_v39  ;;  %v587_v39 = vadd.f32 %v19556_v24, %v19561_v55  ;;  %v19767_v24 = vmul.f32 0.35355338, %v19559_v46 }
 0x2da   :  { %v19638_v5 = vadd.f32 %v19610_v56, %v744_v2  ;;  %v19775_v55 = vadd.f32 %v19610_v56, %v19595_v47  ;;  %v19787_v46 = vadd.f32 %v19589_v45, %v19610_v56  ;;  %v19794_v47 = vmul.f32 0.35355338, %v19567_v17 }
 0x2db   :  { %25582 = vst [vmem:[#allocation25_spill] sm:$0xff] %v19633_v1  ;;  %v19640_v6 = vpop.f32.mrb[10].mxu0  ;;  %v19814_v17 = vadd.f32 %v19599_v51, %v19610_v56  ;;  %v19826_v45 = vadd.f32 %v19610_v56, %v19619_v59  ;;  %v19833_v51 = vmul.f32 0.35355338, %v19564_v22  ;;  %v1122_v59 = vlaneseq }
 0x2dc   :  { %25583 = vst [vmem:[#allocation26_spill] sm:$0xff] %v19638_v5  ;;  %v17640_v7 = vpop.f32.mrb[18].mxu1  ;;  %1075 = vrot.lane.b32.xlu1 %v19621_v30, %s19070_s11  ;;  %977 = vrot.lane.b32.xlu0 %v19635_v4, %s19069_s23  ;;  %v19646_v26 = vpop.f32.mrb[11].mxu0  ;;  %25595 = vst [vmem:[#allocation38_spill] sm:$0xff] %v19794_v47 }
 0x2dd   :  { %v19649_v35 = vadd.f32 %v17640_v7, %v19610_v56  ;;  %v754_v8 = vpop.f32.mrb[19].mxu1  ;;  %25597 = vst [vmem:[#allocation40_spill] sm:$0xff] %v19814_v17  ;;  %25598 = vst [vmem:[#allocation41_spill] sm:$0xff] %v19826_v45 }
 0x2de   :  { %v19653_v11 = vadd.f32 %v19610_v56, %v754_v8  ;;  %25599 = vst [vmem:[#allocation42_spill] sm:$0xff] %v19833_v51 }
 0x2df   :  { %25584 = vst [vmem:[#allocation27_spill] sm:$0xff] %v19649_v35  ;;  %v19655_v43 = vpop.f32.mrb[12].mxu0 }
 0x2e0   :  { %25585 = vst [vmem:[#allocation28_spill] sm:$0xff] %v19653_v11  ;;  %v17643_v37 = vpop.f32.mrb[20].mxu1  ;;  %1025 = vrot.lane.b32.xlu1 %v19635_v4, %s19068_s8  ;;  %1073 = vrot.lane.b32.xlu0 %v19635_v4, %s19070_s11  ;;  %v19661_v13 = vpop.f32.mrb[13].mxu0 }
 0x2e1   :  { %v19664_v3 = vadd.f32 %v17643_v37, %v19610_v56  ;;  %v764_v14 = vpop.f32.mrb[21].mxu1  ;;  %v19750_v37 = vmul.f32 0.35355338, %v582_v20 }
 0x2e2   :  { %v19670_v19 = vadd.f32 %v19610_v56, %v764_v14  ;;  %v19756_v14 = vmul.f32 0.35355338, %v587_v39 }
 0x2e3   :  { %25586 = vst [vmem:[#allocation29_spill] sm:$0xff] %v19664_v3  ;;  %v19672_v50 = vpop.f32.mrb[14].mxu0 }
 0x2e4   :  { %25587 = vst [vmem:[#allocation30_spill] sm:$0xff] %v19670_v19  ;;  %v17646_v21 = vpop.f32.mrb[22].mxu1  ;;  %1031 = vrot.lane.b32.xlu0 %v19666_v15, %s19068_s8  ;;  %983 = vrot.lane.b32.xlu1 %v19666_v15, %s19069_s23  ;;  %v19678_v9 = vpop.f32.mrb[15].mxu0 }
 0x2e5   :  { %v19681_v16 = vadd.f32 %v17646_v21, %v19610_v56  ;;  %v774_v42 = vpop.f32.mrb[23].mxu1 }
 0x2e6   :  { %v19686_v53 = vadd.f32 %v19610_v56, %v774_v42  ;;  %v1120_v56 = vunpack.c.l.s4 %v19071_v0  ;;  %v1123_v42 = vshrl.u32 %v1122_v59, 7 }
 0x2e7   :  { %25588 = vst [vmem:[#allocation31_spill] sm:$0xff] %v19681_v16  ;;  %v17669_v34 = vpop.f32.mrb[16].mxu0 }
 0x2e8   :  { %25589 = vst [vmem:[#allocation32_spill] sm:$0xff] %v19686_v53  ;;  %v19691_v54 = vadd.f32 %v17669_v34, %v19688_v33  ;;  %1079 = vrot.lane.b32.xlu1 %v19666_v15, %s19070_s11  ;;  %981 = vrot.lane.b32.xlu0 %v19683_v29, %s19069_s23  ;;  %v19697_v38 = vpop.f32.mrb[17].mxu0  ;;  %v1121_v21 = vunpack.c.0.s8 %v1120_v56  ;;  %v19072_v34 = vmov 1934713408  }
 0x2e9   :  { %v1152_v41 = vunpack.c.l.s4 %v19072_v34 }
 0x2ea   :  { %25590 = vst [vmem:[#allocation33_spill] sm:$0xff] %v19691_v54 }
 0x2eb   :  { %v17672_v63 = vpop.f32.mrb[18].mxu0  ;;  %v1153_v56 = vunpack.c.0.s8 %v1152_v41 }
 0x2ec   :  { %v19701_v25 = vadd.f32 %v17672_v63, %v19688_v33  ;;  %1029 = vrot.lane.b32.xlu1 %v19683_v29, %s19068_s8  ;;  %1077 = vrot.lane.b32.xlu0 %v19683_v29, %s19070_s11  ;;  %v19707_v49 = vpop.f32.mrb[19].mxu0 }
 0x2ed   :  { %v19870_v41 = vsub.s32 %v1153_v56, %v1123_v42 }
 0x2ee   :  { %25591 = vst [vmem:[#allocation34_spill] sm:$0xff] %v19701_v25 }
 0x2ef   :  { %v17675_v10 = vpop.f32.mrb[20].mxu0  ;;  %25602 = vst [vmem:[#allocation45_spill] sm:$0xff] %v19870_v41 }
 0x2f0   :  { %v19712_v36 = vadd.f32 %v17675_v10, %v19688_v33  ;;  %v19714_v60 = vpop.f32.mrb[21].mxu0  ;;  %1033 = vrot.lane.b32.xlu1 %v19709_v28, %s19068_s8  ;;  %985 = vrot.lane.b32.xlu0 %v19709_v28, %s19069_s23 }
 0x2f2   :  { %25592 = vst [vmem:[#allocation35_spill] sm:$0xff] %v19712_v36 }
 0x2f3   :  { %v17678_v2 = vpop.f32.mrb[22].mxu0 }
 0x2f4   :  { %v19729_v7 = vadd.f32 %v17678_v2, %v19688_v33  ;;  %v932_v8 = vpop.f32.mrb[23].mxu0  ;;  %3311 = vrot.lane.b32.xlu1 %v19722_v57, %s19069_s23  ;;  %3309 = vrot.lane.b32.xlu0 %v19726_v61, %s19069_s23  ;;  %v19851_v2 = vsub.s32 %v1121_v21, %v1123_v42  ;;  %v19879_v42 = vmul.f32 0.35355338, %v19570_v27  ;;  %v19897_v27 = vadd.f32 %v19688_v33, %v19630_v23 }
 0x2f5   :  { %v19736_v44 = vadd.f32 %v19688_v33, %v932_v8  ;;  %v19911_v23 = vadd.f32 %v19688_v33, %v19646_v26 }
 0x2f6   :  { %25593 = vst [vmem:[#allocation36_spill] sm:$0xff] %v19729_v7  ;;  %25600 = vst [vmem:[#allocation43_spill] sm:$0xff] %v19851_v2 }
 0x2f7   :  { %25594 = vst [vmem:[#allocation37_spill] sm:$0xff] %v19736_v44  ;;  %25603 = vst [vmem:[#allocation46_spill] sm:$0xff] %v19879_v42 }
 0x2f8   :  { %3359 = vrot.lane.b32.xlu1 %v19722_v57, %s19068_s8  ;;  %3405 = vrot.lane.b32.xlu0 %v19726_v61, %s19070_s11  ;;  %25607 = vst [vmem:[#allocation50_spill] sm:$0xff] %v19897_v27  ;;  %25609 = vst [vmem:[#allocation52_spill] sm:$0xff] %v19911_v23 }
 0x2fc   :  { %3407 = vrot.lane.b32.xlu1 %v19722_v57, %s19070_s11  ;;  %1081 = vrot.lane.b32.xlu0 %v19709_v28, %s19070_s11 }
 0x300   :  { %3357 = vrot.lane.b32.xlu1 %v19726_v61, %s19068_s8  ;;  %1035 = vrot.lane.b32.xlu0 %v19750_v37, %s19068_s8 }
 0x304   :  { %987 = vrot.lane.b32.xlu1 %v19750_v37, %s19069_s23  ;;  %989 = vrot.lane.b32.xlu0 %v19756_v14, %s19069_s23 }
 0x308   :  { %1083 = vrot.lane.b32.xlu1 %v19750_v37, %s19070_s11  ;;  %1085 = vrot.lane.b32.xlu0 %v19756_v14, %s19070_s11 }
 0x30c   :  { %1037 = vrot.lane.b32.xlu1 %v19756_v14, %s19068_s8  ;;  %1039 = vrot.lane.b32.xlu0 %v19767_v24, %s19068_s8 }
 0x310   :  { %991 = vrot.lane.b32.xlu1 %v19767_v24, %s19069_s23  ;;  %3313 = vrot.lane.b32.xlu0 %v19775_v55, %s19069_s23 }
 0x314   :  { %1087 = vrot.lane.b32.xlu1 %v19767_v24, %s19070_s11  ;;  %3361 = vrot.lane.b32.xlu0 %v19775_v55, %s19068_s8 }
 0x318   :  { %3315 = vrot.lane.b32.xlu1 %v19787_v46, %s19069_s23  ;;  %3409 = vrot.lane.b32.xlu0 %v19775_v55, %s19070_s11 }
 0x31c   :  { %3363 = vrot.lane.b32.xlu1 %v19787_v46, %s19068_s8  ;;  %993 = vrot.lane.b32.xlu0 %v19794_v47, %s19069_s23 }
 0x320   :  { %3411 = vrot.lane.b32.xlu1 %v19787_v46, %s19070_s11  ;;  %3317 = vrot.lane.b32.xlu0 %v19802_v52, %s19069_s23 }
 0x324   :  { %1041 = vrot.lane.b32.xlu1 %v19794_v47, %s19068_s8  ;;  %3365 = vrot.lane.b32.xlu0 %v19802_v52, %s19068_s8 }
 0x328   :  { %3319 = vrot.lane.b32.xlu1 %v19814_v17, %s19069_s23  ;;  %3413 = vrot.lane.b32.xlu0 %v19802_v52, %s19070_s11 }
 0x32c   :  { %3367 = vrot.lane.b32.xlu1 %v19814_v17, %s19068_s8  ;;  %1089 = vrot.lane.b32.xlu0 %v19794_v47, %s19070_s11 }
 0x330   :  { %3415 = vrot.lane.b32.xlu1 %v19814_v17, %s19070_s11  ;;  %3321 = vrot.lane.b32.xlu0 %v19826_v45, %s19069_s23 }
 0x334   :  { %995 = vrot.lane.b32.xlu1 %v19833_v51, %s19069_s23  ;;  %3369 = vrot.lane.b32.xlu0 %v19826_v45, %s19068_s8 }
 0x338   :  { %3323 = vrot.lane.b32.xlu1 %v19617_v58, %s19069_s23  ;;  %3417 = vrot.lane.b32.xlu0 %v19826_v45, %s19070_s11 }
 0x33c   :  { %3371 = vrot.lane.b32.xlu1 %v19617_v58, %s19068_s8  ;;  %1043 = vrot.lane.b32.xlu0 %v19833_v51, %s19068_s8 }
 0x33e   :  { %v976_v22 = vpop.permute.xlu1 %975  ;;  %v1024_v18 = vpop.permute.xlu0 %1023 }
 0x33f   :  { %v1185_v8 = vcombine.low %v19586_v40, %v1024_v18  ;;  %v1186_v0 = vcombine.high %v19586_v40, %v1024_v18  ;;  %v19867_v40 = vmul.f32 0.35355338, %v19573_v31 }
 0x340   :  { %3419 = vrot.lane.b32.xlu1 %v19617_v58, %s19070_s11  ;;  %3325 = vrot.lane.b32.xlu0 %v19638_v5, %s19069_s23 }
 0x341   :  { %v1193_v21 = vrot.slane %v1185_v8, %v19851_v2  ;;  %25601 = vst [vmem:[#allocation44_spill] sm:$0xff] %v19867_v40  ;;  %v1200_v18 = vrot.slane %v1186_v0, %v19851_v2  ;;  %v19884_v0 = vmul.f32 0.35355338, %v19576_v32 }
 0x342   :  { %v1072_v63 = vpop.permute.xlu1 %1071  ;;  %v974_v10 = vpop.permute.xlu0 %973 }
 0x343   :  { %v1201_v20 = vcombine.low %v976_v22, %v1072_v63  ;;  %v1202_v39 = vcombine.high %v976_v22, %v1072_v63  ;;  %25604 = vst [vmem:[#allocation47_spill] sm:$0xff] %v19884_v0 }
 0x344   :  { %1091 = vrot.lane.b32.xlu1 %v19833_v51, %s19070_s11  ;;  %3373 = vrot.lane.b32.xlu0 %v19638_v5, %s19068_s8 }
 0x345   :  { %v1209_v59 = vrot.slane %v1201_v20, %v19851_v2  ;;  %v1216_v36 = vrot.slane %v1202_v39, %v19851_v2 }
 0x346   :  { %v1022_v34 = vpop.permute.xlu1 %1021  ;;  %v1070_v7 = vpop.permute.xlu0 %1069 }
 0x347   :  { %v1117_v25 = vcombine.low %v19597_v48, %v1022_v34  ;;  %v1118_v22 = vcombine.high %v19597_v48, %v1022_v34  ;;  %v1133_v63 = vcombine.low %v974_v10, %v1070_v7  ;;  %v1134_v54 = vcombine.high %v974_v10, %v1070_v7 }
 0x348   :  { %3327 = vrot.lane.b32.xlu1 %v19633_v1, %s19069_s23  ;;  %3421 = vrot.lane.b32.xlu0 %v19638_v5, %s19070_s11  ;;  %v1217_v8 = vcombine.low %v1193_v21, %v1209_v59  ;;  %v1218_v20 = vcombine.high %v1193_v21, %v1209_v59  ;;  %v1233_v34 = vcombine.low %v1200_v18, %v1216_v36 }
 0x349   :  { %v1125_v39 = vrot.slane %v1117_v25, %v19851_v2  ;;  %v1141_v48 = vrot.slane %v1133_v63, %v19851_v2  ;;  %v1234_v51 = vcombine.high %v1200_v18, %v1216_v36  ;;  %v1132_v31 = vrot.slane %v1118_v22, %v19851_v2 }
 0x34a   :  { %v980_v7 = vpop.permute.xlu1 %979  ;;  %v1028_v10 = vpop.permute.xlu0 %1027  ;;  %v1148_v44 = vrot.slane %v1134_v54, %v19851_v2  ;;  %v19887_v25 = vmul.f32 0.35355338, %v19579_v62  ;;  %v19893_v54 = vadd.f32 %v19624_v12, %v19688_v33  ;;  %v1225_v36 = vrot.slane %v1217_v8, %v19870_v41 }
 0x34b   :  { %v1149_v56 = vcombine.low %v1125_v39, %v1141_v48  ;;  %v1150_v59 = vcombine.high %v1125_v39, %v1141_v48  ;;  %v1232_v32 = vrot.slane %v1218_v20, %v19870_v41  ;;  %v1241_v22 = vrot.slane %v1233_v34, %v19870_v41 }
 0x34c   :  { %3375 = vrot.lane.b32.xlu1 %v19633_v1, %s19068_s8  ;;  %25605 = vst [vmem:[#allocation48_spill] sm:$0xff] %v19887_v25  ;;  %997 = vrot.lane.b32.xlu0 %v19867_v40, %s19069_s23  ;;  %25606 = vst [vmem:[#allocation49_spill] sm:$0xff] %v19893_v54  ;;  %v1248_v63 = vrot.slane %v1234_v51, %v19870_v41  ;;  %v1165_v18 = vcombine.low %v1132_v31, %v1148_v44 }
 0x34d   :  { %v1166_v39 = vcombine.high %v1132_v31, %v1148_v44  ;;  %v19907_v12 = vadd.f32 %v19640_v6, %v19688_v33  ;;  %v19915_v8 = vadd.f32 %v19655_v43, %v19688_v33  ;;  %v19919_v20 = vadd.f32 %v19688_v33, %v19661_v13 }
 0x34e   :  { %v1076_v21 = vpop.permute.xlu1 %1075  ;;  %v19901_v62 = vpop.permute.xlu0 %977  ;;  %v1157_v44 = vrot.slane %v1149_v56, %v19870_v41  ;;  %v1164_v6 = vrot.slane %v1150_v59, %v19870_v41  ;;  %v1321_v51 = vcombine.low %v19621_v30, %v1028_v10  ;;  %v1322_v26 = vcombine.high %v19621_v30, %v1028_v10 }
 0x34f   :  { %25608 = vst [vmem:[#allocation51_spill] sm:$0xff] %v19907_v12  ;;  %25610 = vst [vmem:[#allocation53_spill] sm:$0xff] %v19915_v8  ;;  %v19931_v43 = vadd.f32 %v19672_v50, %v19688_v33  ;;  %v2273_v13 = vcombine.low %v1225_v36, %v1232_v32  ;;  %v1337_v48 = vcombine.low %v980_v7, %v1076_v21 }
 0x350   :  { %25611 = vst [vmem:[#allocation54_spill] sm:$0xff] %v19919_v20  ;;  %3423 = vrot.lane.b32.xlu1 %v19633_v1, %s19070_s11  ;;  %3329 = vrot.lane.b32.xlu0 %v19653_v11, %s19069_s23  ;;  %v1338_v34 = vcombine.high %v980_v7, %v1076_v21  ;;  %v16912_v5 = vcombine.high %v1225_v36, %v1232_v32 }
 0x351   :  { %25612 = vst [vmem:[#allocation55_spill] sm:$0xff] %v19931_v43  ;;  %v2289_v56 = vcombine.low %v1241_v22, %v1248_v63  ;;  %v1173_v59 = vrot.slane %v1165_v18, %v19870_v41  ;;  %v1180_v58 = vrot.slane %v1166_v39, %v19870_v41  ;;  %v16913_v45 = vcombine.high %v1241_v22, %v1248_v63 }
 0x352   :  { %v1026_v31 = vpop.permute.xlu1 %1025  ;;  %v1074_v1 = vpop.permute.xlu0 %1073  ;;  %v1329_v30 = vrot.slane %v1321_v51, %v19851_v2  ;;  %v1345_v10 = vrot.slane %v1337_v48, %v19851_v2  ;;  %v1352_v8 = vrot.slane %v1338_v34, %v19851_v2  ;;  %v19942_v50 = vadd.f32 %v19688_v33, %v19678_v9 }
 0x353   :  { %v2205_v7 = vcombine.low %v1157_v44, %v1164_v6  ;;  %v16910_v36 = vcombine.high %v1157_v44, %v1164_v6  ;;  %v1336_v32 = vrot.slane %v1322_v26, %v19851_v2  ;;  %v1253_v63 = vcombine.low %v19635_v4, %v1026_v31 }
 0x354   :  { %1045 = vrot.lane.b32.xlu1 %v19867_v40, %s19068_s8  ;;  %25613 = vst [vmem:[#allocation56_spill] sm:$0xff] %v19942_v50  ;;  %3377 = vrot.lane.b32.xlu0 %v19653_v11, %s19068_s8  ;;  %v1353_v21 = vcombine.low %v1329_v30, %v1345_v10  ;;  %v1354_v22 = vcombine.high %v1329_v30, %v1345_v10 }
 0x355   :  { %v1269_v18 = vcombine.low %v19901_v62, %v1074_v1  ;;  %v2221_v48 = vcombine.low %v1173_v59, %v1180_v58  ;;  %v16911_v9 = vcombine.high %v1173_v59, %v1180_v58  ;;  %v1369_v34 = vcombine.low %v1336_v32, %v1352_v8 }
 0x356   :  { %v19949_v39 = vpop.permute.xlu1 %983  ;;  %v19951_v51 = vpop.permute.xlu0 %1031  ;;  %v1370_v43 = vcombine.high %v1336_v32, %v1352_v8  ;;  %v19954_v44 = vrot.slane %v2273_v13, %v19851_v2  ;;  %v19957_v6 = vrot.slane %v16912_v5, %v19851_v2  ;;  %v19960_v26 = vrot.slane %v2289_v56, %v19851_v2 }
 0x357   :  { %v19963_v30 = vrot.slane %v16913_v45, %v19851_v2  ;;  %v1254_v10 = vcombine.high %v19635_v4, %v1026_v31  ;;  %v1270_v58 = vcombine.high %v19901_v62, %v1074_v1  ;;  %v19972_v8 = vrot.slane %v2205_v7, %v19851_v2 }
 0x358   :  { %25614 = vst [vmem:[#allocation57_spill] sm:$0xff] %v19954_v44  ;;  %25615 = vst [vmem:[#allocation58_spill] sm:$0xff] %v19957_v6  ;;  %3331 = vrot.lane.b32.xlu1 %v19649_v35, %s19069_s23  ;;  %3425 = vrot.lane.b32.xlu0 %v19653_v11, %s19070_s11  ;;  %v19975_v5 = vrot.slane %v16910_v36, %v19851_v2  ;;  %v1361_v13 = vrot.slane %v1353_v21, %v19870_v41 }
 0x359   :  { %25616 = vst [vmem:[#allocation59_spill] sm:$0xff] %v19960_v26  ;;  %25617 = vst [vmem:[#allocation60_spill] sm:$0xff] %v19963_v30  ;;  %v1368_v45 = vrot.slane %v1354_v22, %v19870_v41  ;;  %v1261_v56 = vrot.slane %v1253_v63, %v19851_v2  ;;  %v1277_v59 = vrot.slane %v1269_v18, %v19851_v2 }
 0x35a   :  { %v1080_v4 = vpop.permute.xlu1 %1079  ;;  %v19981_v1 = vpop.permute.xlu0 %981  ;;  %v1377_v62 = vrot.slane %v1369_v34, %v19870_v41  ;;  %v1384_v31 = vrot.slane %v1370_v43, %v19870_v41  ;;  %v19986_v7 = vrot.slane %v2221_v48, %v19851_v2  ;;  %v19989_v36 = vrot.slane %v16911_v9, %v19851_v2 }
 0x35b   :  { %v19993_v32 = vadd.f32 %v19688_v33, %v19697_v38  ;;  %v19997_v21 = vadd.f32 %v19688_v33, %v19707_v49  ;;  %v20001_v22 = vadd.f32 %v19688_v33, %v19714_v60  ;;  %v2305_v43 = vcombine.low %v19954_v44, %v19957_v6 }
 0x35c   :  { %3379 = vrot.lane.b32.xlu1 %v19649_v35, %s19068_s8  ;;  %v2321_v38 = vcombine.low %v19960_v26, %v19963_v30  ;;  %v1268_v18 = vrot.slane %v1254_v10, %v19851_v2  ;;  %v1284_v49 = vrot.slane %v1270_v58, %v19851_v2  ;;  %1093 = vrot.lane.b32.xlu0 %v19867_v40, %s19070_s11 }
 0x35d   :  { %25618 = vst [vmem:[#allocation61_spill] sm:$0xff] %v19993_v32  ;;  %25619 = vst [vmem:[#allocation62_spill] sm:$0xff] %v19997_v21  ;;  %v2409_v33 = vcombine.low %v1361_v13, %v1368_v45  ;;  %v1285_v60 = vcombine.low %v1261_v56, %v1277_v59  ;;  %v1457_v48 = vcombine.low %v19666_v15, %v19951_v51 }
 0x35e   :  { %25620 = vst [vmem:[#allocation63_spill] sm:$0xff] %v20001_v22  ;;  %v1458_v9 = vcombine.high %v19666_v15, %v19951_v51  ;;  %v1030_v34 = vpop.permute.xlu1 %1029  ;;  %v1078_v63 = vpop.permute.xlu0 %1077  ;;  %v16916_v11 = vcombine.high %v1361_v13, %v1368_v45  ;;  %v2425_v22 = vcombine.low %v1377_v62, %v1384_v31  ;;  %v2237_v10 = vcombine.low %v19972_v8, %v19975_v5 }
 0x35f   :  { %v2253_v58 = vcombine.low %v19986_v7, %v19989_v36  ;;  %v16917_v21 = vcombine.high %v1377_v62, %v1384_v31  ;;  %v1286_v40 = vcombine.high %v1261_v56, %v1277_v59  ;;  %v1473_v6 = vcombine.low %v19949_v39, %v1080_v4 }
 0x360   :  { %v1474_v44 = vcombine.high %v19949_v39, %v1080_v4  ;;  %3427 = vrot.lane.b32.xlu1 %v19649_v35, %s19070_s11  ;;  %v1301_v15 = vcombine.low %v1268_v18, %v1284_v49  ;;  %v1302_v51 = vcombine.high %v1268_v18, %v1284_v49  ;;  %v20028_v13 = vrot.slane %v2237_v10, %v19870_v41 }
 0x361   :  { %v20031_v45 = vrot.slane %v2253_v58, %v19870_v41  ;;  %3333 = vrot.lane.b32.xlu0 %v19670_v19, %s19069_s23  ;;  %v20038_v59 = vrot.slane %v2409_v33, %v19851_v2  ;;  %v1293_v39 = vrot.slane %v1285_v60, %v19870_v41  ;;  %v1481_v4 = vrot.slane %v1473_v6, %v19851_v2 }
 0x362   :  { %v20042_v62 = vpop.permute.xlu1 %1033  ;;  %v20044_v31 = vpop.permute.xlu0 %985  ;;  %v20047_v18 = vrot.slane %v16916_v11, %v19851_v2  ;;  %v20050_v49 = vrot.slane %v2425_v22, %v19851_v2  ;;  %v1488_v33 = vrot.slane %v1474_v44, %v19851_v2  ;;  %v20056_v58 = vrot.slane %v16917_v21, %v19851_v2 }
 0x363   :  { %25621 = vst [vmem:[#allocation64_spill] sm:$0xff] %v20038_v59  ;;  %v2269_v10 = vcombine.low %v20028_v13, %v20031_v45  ;;  %v1465_v6 = vrot.slane %v1457_v48, %v19851_v2  ;;  %v1389_v60 = vcombine.low %v19683_v29, %v1030_v34  ;;  %v1405_v56 = vcombine.low %v19981_v1, %v1078_v63 }
 0x364   :  { %25622 = vst [vmem:[#allocation65_spill] sm:$0xff] %v20047_v18  ;;  %25623 = vst [vmem:[#allocation66_spill] sm:$0xff] %v20050_v49  ;;  %999 = vrot.lane.b32.xlu1 %v19879_v42, %s19069_s23  ;;  %v1300_v11 = vrot.slane %v1286_v40, %v19870_v41  ;;  %v1309_v22 = vrot.slane %v1301_v15, %v19870_v41  ;;  %v1316_v35 = vrot.slane %v1302_v51, %v19870_v41 }
 0x365   :  { %25624 = vst [vmem:[#allocation67_spill] sm:$0xff] %v20056_v58  ;;  %v1472_v44 = vrot.slane %v1458_v9, %v19851_v2  ;;  %17683 = vmatprep.mubr.msk.f32.mxu1 %vm7965_vm1, %v2269_v10  ;;  %v1489_v21 = vcombine.low %v1465_v6, %v1481_v4  ;;  %v1490_v30 = vcombine.high %v1465_v6, %v1481_v4 }
 0x366   :  { %v1390_v48 = vcombine.high %v19683_v29, %v1030_v34  ;;  %v1406_v26 = vcombine.high %v19981_v1, %v1078_v63  ;;  %3381 = vrot.lane.b32.xlu0 %v19670_v19, %s19068_s8  ;;  %v20072_v17 = vpop.permute.xlu1 %3311  ;;  %v20074_v40 = vpop.permute.xlu0 %3309  ;;  %v20077_v15 = vrot.slane %v2305_v43, %v19870_v41  ;;  %v20080_v9 = vrot.slane %v2321_v38, %v19870_v41 }
 0x367   :  { %v1505_v51 = vcombine.low %v1472_v44, %v1488_v33  ;;  %v1506_v10 = vcombine.high %v1472_v44, %v1488_v33  ;;  %v2441_v29 = vcombine.low %v20038_v59, %v20047_v18  ;;  %v2457_v1 = vcombine.low %v20050_v49, %v20056_v58 }
 0x368   :  { %v1397_v63 = vrot.slane %v1389_v60, %v19851_v2  ;;  %v1413_v34 = vrot.slane %v1405_v56, %v19851_v2  ;;  %3335 = vrot.lane.b32.xlu1 %v19664_v3, %s19069_s23  ;;  %v2341_v43 = vcombine.low %v1293_v39, %v1300_v11  ;;  %v16914_v4 = vcombine.high %v1293_v39, %v1300_v11 }
 0x369   :  { %v2357_v6 = vcombine.low %v1309_v22, %v1316_v35  ;;  %v16915_v38 = vcombine.high %v1309_v22, %v1316_v35  ;;  %v1497_v32 = vrot.slane %v1489_v21, %v19870_v41  ;;  %v1504_v33 = vrot.slane %v1490_v30, %v19870_v41 }
 0x36a   :  { %v1404_v44 = vrot.slane %v1390_v48, %v19851_v2  ;;  %v1420_v47 = vrot.slane %v1406_v26, %v19851_v2  ;;  %3429 = vrot.lane.b32.xlu0 %v19670_v19, %s19070_s11  ;;  %v3360_v60 = vpop.permute.xlu1 %3359  ;;  %v20096_v56 = vpop.permute.xlu0 %3405  ;;  %v1513_v39 = vrot.slane %v1505_v51, %v19870_v41  ;;  %v1520_v30 = vrot.slane %v1506_v10, %v19870_v41 }
 0x36b   :  { %v20105_v11 = vrot.slane %v2441_v29, %v19870_v41  ;;  %v20108_v26 = vrot.slane %v2457_v1, %v19870_v41  ;;  %v1421_v22 = vcombine.low %v1397_v63, %v1413_v34  ;;  %v1525_v21 = vcombine.low %v19709_v28, %v20042_v62 }
 0x36c   :  { %3383 = vrot.lane.b32.xlu1 %v19664_v3, %s19068_s8  ;;  %v1422_v48 = vcombine.high %v1397_v63, %v1413_v34  ;;  %v20115_v35 = vrot.slane %v2341_v43, %v19851_v2  ;;  %v20118_v51 = vrot.slane %v16914_v4, %v19851_v2  ;;  %v20121_v10 = vrot.slane %v2357_v6, %v19851_v2 }
 0x36d   :  { %v2545_v29 = vcombine.low %v1497_v32, %v1504_v33  ;;  %v1437_v1 = vcombine.low %v1404_v44, %v1420_v47  ;;  %v1438_v52 = vcombine.high %v1404_v44, %v1420_v47  ;;  %v20124_v19 = vrot.slane %v16915_v38, %v19851_v2 }
 0x36e   :  { %25625 = vst [vmem:[#allocation68_spill] sm:$0xff] %v20121_v10  ;;  %1047 = vrot.lane.b32.xlu0 %v19879_v42, %s19068_s8  ;;  %v3408_v58 = vpop.permute.xlu1 %3407  ;;  %v1082_v63 = vpop.permute.xlu0 %1081  ;;  %v16920_v34 = vcombine.high %v1497_v32, %v1504_v33  ;;  %v2561_v43 = vcombine.low %v1513_v39, %v1520_v30  ;;  %v2373_v4 = vcombine.low %v20115_v35, %v20118_v51 }
 0x36f   :  { %25626 = vst [vmem:[#allocation69_spill] sm:$0xff] %v20124_v19  ;;  %v3537_v49 = vcombine.low %v20072_v17, %v3408_v58  ;;  %v16921_v6 = vcombine.high %v1513_v39, %v1520_v30  ;;  %v2389_v18 = vcombine.low %v20121_v10, %v20124_v19  ;;  %v3521_v47 = vcombine.low %v19722_v57, %v3360_v60 }
 0x370   :  { %v3538_v38 = vcombine.high %v20072_v17, %v3408_v58  ;;  %3431 = vrot.lane.b32.xlu1 %v19664_v3, %s19070_s11  ;;  %v20138_v44 = vrot.slane %v1421_v22, %v19870_v41  ;;  %v20141_v32 = vrot.slane %v1422_v48, %v19870_v41  ;;  %v1526_v33 = vcombine.high %v19709_v28, %v20042_v62 }
 0x371   :  { %v20146_v39 = vrot.slane %v2373_v4, %v19870_v41  ;;  %v20149_v30 = vrot.slane %v1437_v1, %v19870_v41  ;;  %v20152_v17 = vrot.slane %v2389_v18, %v19870_v41  ;;  %v3522_v58 = vcombine.high %v19722_v57, %v3360_v60 }
 0x372   :  { %25627 = vst [vmem:[#allocation70_spill] sm:$0xff] %v20138_v44  ;;  %25628 = vst [vmem:[#allocation71_spill] sm:$0xff] %v20141_v32  ;;  %v3545_v22 = vrot.slane %v3537_v49, %v19851_v2  ;;  %3337 = vrot.lane.b32.xlu0 %v19686_v53, %s19069_s23  ;;  %v3358_v48 = vpop.permute.xlu1 %3357  ;;  %v1036_v3 = vpop.permute.xlu0 %1035  ;;  %v20159_v28 = vrot.slane %v2545_v29, %v19851_v2  ;;  %v20162_v62 = vrot.slane %v16920_v34, %v19851_v2 }
 0x373   :  { %25629 = vst [vmem:[#allocation72_spill] sm:$0xff] %v20149_v30  ;;  %v20165_v1 = vrot.slane %v2561_v43, %v19851_v2  ;;  %v20168_v18 = vrot.slane %v1438_v52, %v19870_v41  ;;  %v20171_v57 = vrot.slane %v16921_v6, %v19851_v2  ;;  %v2405_v49 = vcombine.low %v20146_v39, %v20152_v17 }
 0x374   :  { %25630 = vst [vmem:[#allocation73_spill] sm:$0xff] %v20159_v28  ;;  %25631 = vst [vmem:[#allocation74_spill] sm:$0xff] %v20162_v62  ;;  %v3529_v60 = vrot.slane %v3521_v47, %v19851_v2  ;;  %v3552_v29 = vrot.slane %v3538_v38, %v19851_v2  ;;  %1095 = vrot.lane.b32.xlu1 %v19879_v42, %s19070_s11  ;;  %v20184_v43 = vrot.slane %v1525_v21, %v19851_v2 }
 0x375   :  { %25632 = vst [vmem:[#allocation75_spill] sm:$0xff] %v20165_v1  ;;  %25633 = vst [vmem:[#allocation76_spill] sm:$0xff] %v20168_v18  ;;  %v3469_v4 = vcombine.low %v20074_v40, %v20096_v56  ;;  %17711 = vmatprep.mubr.msk.f32.mxu0 %vm7965_vm1, %v2405_v49  ;;  %v3536_v6 = vrot.slane %v3522_v58, %v19851_v2  ;;  %v1541_v38 = vcombine.low %v20044_v31, %v1082_v63 }
 0x376   :  { %25634 = vst [vmem:[#allocation77_spill] sm:$0xff] %v20171_v57  ;;  %v3553_v47 = vcombine.low %v3529_v60, %v3545_v22  ;;  %v1542_v42 = vcombine.high %v20044_v31, %v1082_v63  ;;  %v988_v59 = vpop.permute.xlu1 %987  ;;  %v20192_v34 = vpop.permute.xlu0 %989  ;;  %v3453_v49 = vcombine.low %v19726_v61, %v3358_v48  ;;  %3385 = vrot.lane.b32.xlu0 %v19686_v53, %s19068_s8 }
 0x377   :  { %v3554_v58 = vcombine.high %v3529_v60, %v3545_v22  ;;  %v3569_v44 = vcombine.low %v3536_v6, %v3552_v29  ;;  %v1540_v32 = vrot.slane %v1526_v33, %v19851_v2  ;;  %v3470_v21 = vcombine.high %v20074_v40, %v20096_v56 }
 0x378   :  { %3339 = vrot.lane.b32.xlu1 %v19681_v16, %s19069_s23  ;;  %v3570_v18 = vcombine.high %v3536_v6, %v3552_v29  ;;  %v3477_v30 = vrot.slane %v3469_v4, %v19851_v2  ;;  %v3561_v31 = vrot.slane %v3553_v47, %v19870_v41  ;;  %v1549_v63 = vrot.slane %v1541_v38, %v19851_v2 }
 0x379   :  { %v1556_v22 = vrot.slane %v1542_v42, %v19851_v2  ;;  %v3454_v28 = vcombine.high %v19726_v61, %v3358_v48  ;;  %v3461_v52 = vrot.slane %v3453_v49, %v19851_v2  ;;  %v1593_v33 = vcombine.low %v19750_v37, %v1036_v3 }
 0x37a   :  { %v1084_v60 = vpop.permute.xlu1 %1083  ;;  %v20218_v62 = vpop.permute.xlu0 %1085  ;;  %v1594_v40 = vcombine.high %v19750_v37, %v1036_v3  ;;  %3433 = vrot.lane.b32.xlu0 %v19686_v53, %s19070_s11  ;;  %v3568_v56 = vrot.slane %v3554_v58, %v19870_v41  ;;  %v3577_v29 = vrot.slane %v3569_v44, %v19870_v41  ;;  %v3584_v61 = vrot.slane %v3570_v18, %v19870_v41 }
 0x37b   :  { %v1609_v4 = vcombine.low %v988_v59, %v1084_v60  ;;  %v1610_v42 = vcombine.high %v988_v59, %v1084_v60  ;;  %v3468_v48 = vrot.slane %v3454_v28, %v19851_v2  ;;  %v3485_v6 = vcombine.low %v3461_v52, %v3477_v30 }
 0x37c   :  { %3387 = vrot.lane.b32.xlu1 %v19681_v16, %s19068_s8  ;;  %v3486_v47 = vcombine.high %v3461_v52, %v3477_v30  ;;  %v1601_v3 = vrot.slane %v1593_v33, %v19851_v2  ;;  %v1608_v37 = vrot.slane %v1594_v40, %v19851_v2  ;;  %v3484_v58 = vrot.slane %v3470_v21, %v19851_v2 }
 0x37d   :  { %v1617_v38 = vrot.slane %v1609_v4, %v19851_v2  ;;  %v1624_v49 = vrot.slane %v1610_v42, %v19851_v2  ;;  %v1557_v18 = vcombine.low %v20184_v43, %v1549_v63  ;;  %v1558_v28 = vcombine.high %v20184_v43, %v1549_v63 }
 0x37e   :  { %v20236_v44 = vpop.permute.xlu1 %1037  ;;  %v20238_v59 = vpop.permute.xlu0 %1039  ;;  %v1573_v60 = vcombine.low %v1540_v32, %v1556_v22  ;;  %1001 = vrot.lane.b32.xlu0 %v19887_v25, %s19069_s23  ;;  %v4609_v4 = vcombine.low %v3561_v31, %v3568_v56  ;;  %v1574_v42 = vcombine.high %v1540_v32, %v1556_v22  ;;  %v3501_v53 = vcombine.low %v3468_v48, %v3484_v58 }
 0x37f   :  { %v1625_v30 = vcombine.low %v1601_v3, %v1617_v38  ;;  %v1626_v52 = vcombine.high %v1601_v3, %v1617_v38  ;;  %v1641_v33 = vcombine.low %v1608_v37, %v1624_v49  ;;  %v1642_v40 = vcombine.high %v1608_v37, %v1624_v49 }
 0x380   :  { %3435 = vrot.lane.b32.xlu1 %v19681_v16, %s19070_s11  ;;  %v3502_v57 = vcombine.high %v3468_v48, %v3484_v58  ;;  %v16944_v21 = vcombine.high %v3561_v31, %v3568_v56  ;;  %v4625_v1 = vcombine.low %v3577_v29, %v3584_v61  ;;  %v3493_v10 = vrot.slane %v3485_v6, %v19870_v41 }
 0x381   :  { %v3500_v43 = vrot.slane %v3486_v47, %v19870_v41  ;;  %v1633_v3 = vrot.slane %v1625_v30, %v19870_v41  ;;  %v1640_v37 = vrot.slane %v1626_v52, %v19870_v41  ;;  %v1649_v38 = vrot.slane %v1641_v33, %v19870_v41 }
 0x382   :  { %v992_v63 = vpop.permute.xlu1 %991  ;;  %v20249_v19 = vpop.permute.xlu0 %3313  ;;  %v1656_v49 = vrot.slane %v1642_v40, %v19870_v41  ;;  %1097 = vrot.lane.b32.xlu0 %v19887_v25, %s19070_s11  ;;  %v16945_v32 = vcombine.high %v3577_v29, %v3584_v61  ;;  %v20258_v31 = vrot.slane %v1557_v18, %v19870_v41  ;;  %v20261_v22 = vrot.slane %v1558_v28, %v19870_v41 }
 0x383   :  { %v20268_v48 = vrot.slane %v1573_v60, %v19870_v41  ;;  %v20271_v6 = vrot.slane %v1574_v42, %v19870_v41  ;;  %v3509_v29 = vrot.slane %v3501_v53, %v19870_v41  ;;  %v3516_v61 = vrot.slane %v3502_v57, %v19870_v41 }
 0x384   :  { %25635 = vst [vmem:[#allocation78_spill] sm:$0xff] %v20261_v22  ;;  %1049 = vrot.lane.b32.xlu1 %v19887_v25, %s19068_s8  ;;  %v20276_v47 = vrot.slane %v4609_v4, %v19851_v2  ;;  %v20279_v58 = vrot.slane %v16944_v21, %v19851_v2  ;;  %v20282_v18 = vrot.slane %v4625_v1, %v19851_v2 }
 0x385   :  { %25636 = vst [vmem:[#allocation79_spill] sm:$0xff] %v20268_v48  ;;  %25637 = vst [vmem:[#allocation80_spill] sm:$0xff] %v20271_v6  ;;  %v4541_v28 = vcombine.low %v3493_v10, %v3500_v43  ;;  %v16942_v60 = vcombine.high %v3493_v10, %v3500_v43  ;;  %v2681_v52 = vcombine.low %v1633_v3, %v1640_v37 }
 0x386   :  { %v1088_v30 = vpop.permute.xlu1 %1087  ;;  %v16924_v33 = vcombine.high %v1633_v3, %v1640_v37  ;;  %v2697_v40 = vcombine.low %v1649_v38, %v1656_v49  ;;  %1051 = vrot.lane.b32.xlu0 %v19884_v0, %s19068_s8  ;;  %v20286_v53 = vpop.permute.xlu0 %3361  ;;  %v20289_v57 = vrot.slane %v16945_v32, %v19851_v2  ;;  %v16925_v42 = vcombine.high %v1649_v38, %v1656_v49 }
 0x387   :  { %v1661_v1 = vcombine.low %v19756_v14, %v20236_v44  ;;  %v4557_v21 = vcombine.low %v3509_v29, %v3516_v61  ;;  %v16943_v43 = vcombine.high %v3509_v29, %v3516_v61  ;;  %v1677_v3 = vcombine.low %v20192_v34, %v20218_v62 }
 0x388   :  { %1003 = vrot.lane.b32.xlu1 %v19884_v0, %s19069_s23  ;;  %v20302_v37 = vrot.slane %v4541_v28, %v19851_v2  ;;  %v1678_v38 = vcombine.high %v20192_v34, %v20218_v62  ;;  %v1745_v49 = vcombine.low %v992_v63, %v1088_v30  ;;  %v1746_v32 = vcombine.high %v992_v63, %v1088_v30 }
 0x389   :  { %v20309_v56 = vrot.slane %v16942_v60, %v19851_v2  ;;  %v20312_v10 = vrot.slane %v2681_v52, %v19851_v2  ;;  %v20315_v29 = vrot.slane %v16924_v33, %v19851_v2  ;;  %v20318_v61 = vrot.slane %v2697_v40, %v19851_v2 }
 0x38a   :  { %v20306_v4 = vpop.permute.xlu1 %3315  ;;  %5645 = vrot.lane.b32.xlu0 %v19897_v27, %s19069_s23  ;;  %v20323_v62 = vrot.slane %v16925_v42, %v19851_v2  ;;  %v1669_v34 = vrot.slane %v1661_v1, %v19851_v2  ;;  %v1729_v63 = vcombine.low %v19767_v24, %v20238_v59  ;;  %v1730_v28 = vcombine.high %v19767_v24, %v20238_v59  ;;  %v20342_v40 = vpop.permute.xlu0 %3409 }
 0x38b   :  { %25638 = vst [vmem:[#allocation81_spill] sm:$0xff] %v20312_v10  ;;  %25639 = vst [vmem:[#allocation82_spill] sm:$0xff] %v20315_v29  ;;  %v20337_v52 = vrot.slane %v4557_v21, %v19851_v2  ;;  %v20340_v33 = vrot.slane %v16943_v43, %v19851_v2  ;;  %v1685_v42 = vrot.slane %v1677_v3, %v19851_v2 }
 0x38c   :  { %25640 = vst [vmem:[#allocation83_spill] sm:$0xff] %v20323_v62  ;;  %1099 = vrot.lane.b32.xlu1 %v19884_v0, %s19070_s11  ;;  %v1662_v24 = vcombine.high %v19756_v14, %v20236_v44  ;;  %v1753_v59 = vrot.slane %v1745_v49, %v19851_v2  ;;  %v1760_v1 = vrot.slane %v1746_v32, %v19851_v2 }
 0x38d   :  { %v1692_v43 = vrot.slane %v1678_v38, %v19851_v2  ;;  %v4573_v30 = vcombine.low %v20302_v37, %v20309_v56  ;;  %v1693_v44 = vcombine.low %v1669_v34, %v1685_v42  ;;  %v1737_v3 = vrot.slane %v1729_v63, %v19851_v2 }
 0x38e   :  { %5741 = vrot.lane.b32.xlu0 %v19897_v27, %s19070_s11  ;;  %v1744_v49 = vrot.slane %v1730_v28, %v19851_v2  ;;  %v20362_v32 = vpop.permute.xlu1 %3363  ;;  %v4589_v21 = vcombine.low %v20337_v52, %v20340_v33  ;;  %v4641_v60 = vcombine.low %v20276_v47, %v20279_v58  ;;  %v4657_v14 = vcombine.low %v20282_v18, %v20289_v57  ;;  %v20377_v6 = vpop.permute.xlu0 %993 }
 0x38f   :  { %v4581_v38 = vrot.slane %v4573_v30, %v19870_v41  ;;  %v1676_v63 = vrot.slane %v1662_v24, %v19851_v2  ;;  %v1761_v0 = vcombine.low %v1737_v3, %v1753_v59  ;;  %v1762_v28 = vcombine.high %v1737_v3, %v1753_v59 }
 0x390   :  { %5647 = vrot.lane.b32.xlu1 %v19893_v54, %s19069_s23  ;;  %v1777_v25 = vcombine.low %v1744_v49, %v1760_v1  ;;  %v1778_v16 = vcombine.high %v1744_v49, %v1760_v1  ;;  %v4597_v29 = vrot.slane %v4589_v21, %v19870_v41  ;;  %v4649_v10 = vrot.slane %v4641_v60, %v19870_v41 }
 0x391   :  { %v4665_v30 = vrot.slane %v4657_v14, %v19870_v41  ;;  %v1694_v22 = vcombine.high %v1669_v34, %v1685_v42  ;;  %v20384_v24 = vrot.slane %v1693_v44, %v19870_v41  ;;  %v3589_v59 = vcombine.low %v19775_v55, %v20286_v53 }
 0x392   :  { %5649 = vrot.lane.b32.xlu0 %v19911_v23, %s19069_s23  ;;  %v4605_v60 = vcombine.low %v4581_v38, %v4597_v29  ;;  %v4606_v21 = vcombine.high %v4581_v38, %v4597_v29  ;;  %v3605_v14 = vcombine.low %v20249_v19, %v20342_v40  ;;  %v1709_v3 = vcombine.low %v1676_v63, %v1692_v43  ;;  %v3412_v44 = vpop.permute.xlu1 %3411 }
 0x393   :  { %v4673_v1 = vcombine.low %v4649_v10, %v4665_v30  ;;  %v1710_v49 = vcombine.high %v1676_v63, %v1692_v43  ;;  %v1769_v48 = vrot.slane %v1761_v0, %v19870_v41  ;;  %v1776_v34 = vrot.slane %v1762_v28, %v19870_v41 }
 0x394   :  { %5693 = vrot.lane.b32.xlu1 %v19897_v27, %s19068_s8  ;;  %v1785_v27 = vrot.slane %v1777_v25, %v19870_v41  ;;  %v1792_v29 = vrot.slane %v1778_v16, %v19870_v41  ;;  %v4674_v62 = vcombine.high %v4649_v10, %v4665_v30  ;;  %v20405_v0 = vrot.slane %v1694_v22, %v19870_v41 }
 0x395   :  { %v18183_v38 = vpack.c.bf16 %v4673_v1, %v4605_v60  ;;  %v3590_v43 = vcombine.high %v19775_v55, %v20286_v53  ;;  %v3597_v63 = vrot.slane %v3589_v59, %v19851_v2  ;;  %v4574_v28 = vcombine.high %v20302_v37, %v20309_v56  ;;  %v20421_v53 = vpop.permute.xlu0 %3317 }
 0x396   :  { %5745 = vrot.lane.b32.xlu0 %v19911_v23, %s19070_s11  ;;  %v18189_v16 = vpack.c.bf16 %v4674_v62, %v4606_v21  ;;  %v3606_v25 = vcombine.high %v20249_v19, %v20342_v40  ;;  %v3613_v22 = vrot.slane %v3605_v14, %v19851_v2  ;;  %v4590_v55 = vcombine.high %v20337_v52, %v20340_v33 }
 0x397   :  { %18185 = vmatprep.subr.msk.bf16.mxu1 %vm20396_vm2, %v18183_v38  ;;  %v20424_v10 = vrot.slane %v1709_v3, %v19870_v41  ;;  %v20427_v56 = vrot.slane %v1710_v49, %v19870_v41  ;;  %v20432_v37 = vrot.slane %v4574_v28, %v19870_v41  ;;  %v4642_v19 = vcombine.high %v20276_v47, %v20279_v58  ;;  %v20448_v47 = vpop.permute.xlu1 %1041 }
 0x398   :  { %5695 = vrot.lane.b32.xlu1 %v19893_v54, %s19068_s8  ;;  %18188 = vmatpush3.bf16.xpose.msk.msra.mxu1 %vm20396_vm2, %v18183_v38  ;;  %v2817_v62 = vcombine.low %v1769_v48, %v1776_v34  ;;  %v16928_v40 = vcombine.high %v1769_v48, %v1776_v34  ;;  %v2833_v52 = vcombine.low %v1785_v27, %v1792_v29 }
 0x399   :  { %v16929_v33 = vcombine.high %v1785_v27, %v1792_v29  ;;  %18191 = vmatprep.subr.msk.bf16.mxu1 %vm20396_vm2, %v18189_v16  ;;  %v20441_v59 = vrot.slane %v4590_v55, %v19870_v41  ;;  %v20444_v60 = vrot.slane %v4642_v19, %v19870_v41  ;;  %v4658_v1 = vcombine.high %v20282_v18, %v20289_v57 }
 0x39a   :  { %5653 = vrot.lane.b32.xlu0 %v19919_v20, %s19069_s23  ;;  %v3604_v27 = vrot.slane %v3590_v43, %v19851_v2  ;;  %v3620_v48 = vrot.slane %v3606_v25, %v19851_v2  ;;  %v3621_v58 = vcombine.low %v3597_v63, %v3613_v22  ;;  %v3622_v21 = vcombine.high %v3597_v63, %v3613_v22  ;;  %v20475_v43 = vpop.permute.xlu0 %3365 }
 0x39b   :  { %v4607_v14 = vcombine.low %v20432_v37, %v20441_v59  ;;  %v20459_v3 = vrot.slane %v4658_v1, %v19870_v41  ;;  %v3673_v18 = vcombine.low %v20306_v4, %v3412_v44  ;;  %v3674_v57 = vcombine.high %v20306_v4, %v3412_v44 }
 0x39c   :  { %5743 = vrot.lane.b32.xlu1 %v19893_v54, %s19070_s11  ;;  %v20464_v49 = vrot.slane %v2817_v62, %v19851_v2  ;;  %v20467_v34 = vrot.slane %v16928_v40, %v19851_v2  ;;  %v20470_v29 = vrot.slane %v2833_v52, %v19851_v2  ;;  %v20473_v38 = vrot.slane %v16929_v33, %v19851_v2 }
 0x39d   :  { %v3657_v63 = vcombine.low %v19787_v46, %v20362_v32  ;;  %v3658_v4 = vcombine.high %v19787_v46, %v20362_v32  ;;  %v2270_v44 = vcombine.high %v20028_v13, %v20031_v45  ;;  %v4675_v28 = vcombine.low %v20444_v60, %v20459_v3  ;;  %v20498_v32 = vpop.permute.xlu1 %3319 }
 0x39e   :  { %5749 = vrot.lane.b32.xlu0 %v19919_v20, %s19070_s11  ;;  %v3629_v25 = vrot.slane %v3621_v58, %v19870_v41  ;;  %v3636_v22 = vrot.slane %v3622_v21, %v19870_v41  ;;  %v3637_v55 = vcombine.low %v3604_v27, %v3620_v48  ;;  %v3638_v19 = vcombine.high %v3604_v27, %v3620_v48 }
 0x39f   :  { %v25643_v62 = vcombine.low %v20077_v15, %v20080_v9  ;;  %v18195_v46 = vpack.c.bf16 %v4675_v28, %v4607_v14  ;;  %v3681_v13 = vrot.slane %v3673_v18, %v19851_v2  ;;  %v3688_v45 = vrot.slane %v3674_v57, %v19851_v2 }
 0x3a0   :  { %5651 = vrot.lane.b32.xlu1 %v19907_v12, %s19069_s23  ;;  %v3665_v48 = vrot.slane %v3657_v63, %v19851_v2  ;;  %v3672_v58 = vrot.slane %v3658_v4, %v19851_v2  ;;  %v3645_v21 = vrot.slane %v3637_v55, %v19870_v41  ;;  %v3652_v14 = vrot.slane %v3638_v19, %v19870_v41 }
 0x3a1   :  { %17684 = vmatmul.mubr.msk.f32.vlgmr.msra.gmra.mrb[24].mxu1 %vm7965_vm1, %v25643_v62  ;;  %v4677_v18 = vcombine.low %v3629_v25, %v3636_v22  ;;  %v2238_v57 = vcombine.high %v19972_v8, %v19975_v5  ;;  %v16946_v28 = vcombine.high %v3629_v25, %v3636_v22  ;;  %v2338_v27 = vcombine.high %v20077_v15, %v20080_v9  ;;  %v20539_v15 = vpop.permute.xlu1 %3367  ;;  %v25647_v9 = vld [vmem:[#allocation40_spill] sm:$0xff] }
 0x3a2   :  { %18194 = vmatpush3.bf16.xpose.msk.msra.mxu1 %vm20396_vm2, %v18189_v16  ;;  %17690 = vmatprep.mubr.msk.f32.mxu1 %vm7965_vm1, %v2270_v44  ;;  %v3414_v44 = vpop.permute.xlu0 %3413  ;;  %v3689_v62 = vcombine.low %v3665_v48, %v3681_v13  ;;  %v3690_v63 = vcombine.high %v3665_v48, %v3681_v13  ;;  %v3705_v1 = vcombine.low %v3672_v58, %v3688_v45 }
 0x3a3   :  { %18197 = vmatprep.subr.msk.bf16.mxu1 %vm20396_vm2, %v18195_v46  ;;  %5657 = vrot.lane.b32.xlu0 %v19942_v50, %s19069_s23  ;;  %v3706_v4 = vcombine.high %v3672_v58, %v3688_v45  ;;  %v20527_v55 = vrot.slane %v2238_v57, %v19870_v41  ;;  %v2254_v19 = vcombine.high %v19986_v7, %v19989_v36  ;;  %v25644_v7 = vld [vmem:[#allocation39_spill] sm:$0xff] }
 0x3a4   :  { %5697 = vrot.lane.b32.xlu1 %v19911_v23, %s19068_s8  ;;  %v4608_v8 = vcombine.high %v20432_v37, %v20441_v59  ;;  %v4676_v5 = vcombine.high %v20444_v60, %v20459_v3  ;;  %v3741_v25 = vcombine.low %v20421_v53, %v3414_v44  ;;  %v3742_v22 = vcombine.high %v20421_v53, %v3414_v44 }
 0x3a5   :  { %v4693_v13 = vcombine.low %v3645_v21, %v3652_v14  ;;  %v3725_v36 = vcombine.low %v25644_v7, %v20475_v43  ;;  %v20547_v37 = vrot.slane %v2254_v19, %v19870_v41  ;;  %v3697_v59 = vrot.slane %v3689_v62, %v19870_v41 }
 0x3a6   :  { %v3704_v60 = vrot.slane %v3690_v63, %v19870_v41  ;;  %v3726_v53 = vcombine.high %v25644_v7, %v20475_v43  ;;  %v20555_v3 = vpack.c.bf16 %v4676_v5, %v4608_v8  ;;  %v3713_v45 = vrot.slane %v3705_v1, %v19870_v41  ;;  %v1090_v57 = vpop.permute.xlu0 %1089  ;;  %v25645_v63 = vld [vmem:[#allocation38_spill] sm:$0xff]  ;;  %v20586_v5 = vpop.permute.xlu1 %3415  ;;  %v25646_v7 = vld [vmem:[#allocation61_spill] sm:$0xff] }
 0x3a7   :  { %v3720_v48 = vrot.slane %v3706_v4, %v19870_v41  ;;  %v3749_v58 = vrot.slane %v3741_v25, %v19851_v2  ;;  %5753 = vrot.lane.b32.xlu0 %v19942_v50, %s19070_s11  ;;  %v20565_v43 = vrot.slane %v4677_v18, %v19851_v2  ;;  %v16947_v44 = vcombine.high %v3645_v21, %v3652_v14 }
 0x3a8   :  { %v3756_v1 = vrot.slane %v3742_v22, %v19851_v2  ;;  %v20575_v62 = vrot.slane %v4693_v13, %v19851_v2  ;;  %v1797_v4 = vcombine.low %v25645_v63, %v20448_v47  ;;  %v1798_v18 = vcombine.high %v25645_v63, %v20448_v47  ;;  %5699 = vrot.lane.b32.xlu1 %v19907_v12, %s19068_s8 }
 0x3a9   :  { %17691 = vmatmul.mubr.msk.f32.vlgmr.msra.gmra.mrb[26].mxu1 %vm7965_vm1, %v2338_v27  ;;  %v2271_v27 = vcombine.low %v20527_v55, %v20547_v37  ;;  %v3733_v19 = vrot.slane %v3725_v36, %v19851_v2  ;;  %v4745_v21 = vcombine.low %v3697_v59, %v3704_v60  ;;  %v3740_v14 = vrot.slane %v3726_v53, %v19851_v2 }
 0x3aa   :  { %18200 = vmatpush3.bf16.xpose.msk.msra.mxu1 %vm20396_vm2, %v18195_v46  ;;  %v20568_v46 = vrot.slane %v16946_v28, %v19851_v2  ;;  %v1813_v28 = vcombine.low %v20377_v6, %v1090_v57  ;;  %v1814_v8 = vcombine.high %v20377_v6, %v1090_v57  ;;  %v16948_v25 = vcombine.high %v3697_v59, %v3704_v60  ;;  %v20601_v60 = vpop.permute.xlu0 %3321 }
 0x3ab   :  { %18203 = vmatprep.subr.msk.bf16.mxu1 %vm20396_vm2, %v20555_v3  ;;  %17697 = vmatprep.mubr.msk.f32.mxu1 %vm7965_vm1, %v2271_v27  ;;  %v4761_v22 = vcombine.low %v3713_v45, %v3720_v48  ;;  %v3757_v13 = vcombine.low %v3733_v19, %v3749_v58  ;;  %v3758_v47 = vcombine.high %v3733_v19, %v3749_v58 }
 0x3ac   :  { %5661 = vrot.lane.b32.xlu0 %v25646_v7, %s19069_s23  ;;  %v20593_v36 = vrot.slane %v16947_v44, %v19851_v2  ;;  %v16949_v53 = vcombine.high %v3713_v45, %v3720_v48  ;;  %v3773_v27 = vcombine.low %v3740_v14, %v3756_v1  ;;  %v3774_v63 = vcombine.high %v3740_v14, %v3756_v1  ;;  %v25648_v48 = vld [vmem:[#allocation57_spill] sm:$0xff]  ;;  %v25649_v1 = vld [vmem:[#allocation58_spill] sm:$0xff] }
 0x3ad   :  { %v1805_v6 = vrot.slane %v1797_v4, %v19851_v2  ;;  %v1812_v57 = vrot.slane %v1798_v18, %v19851_v2  ;;  %v3793_v16 = vcombine.low %v25647_v9, %v20539_v15  ;;  %v3794_v59 = vcombine.high %v25647_v9, %v20539_v15  ;;  %5747 = vrot.lane.b32.xlu1 %v19907_v12, %s19070_s11  ;;  %v25655_v12 = vld [vmem:[#allocation62_spill] sm:$0xff] }
 0x3ae   :  { %v20604_v58 = vrot.slane %v4745_v21, %v19851_v2  ;;  %v1821_v44 = vrot.slane %v1813_v28, %v19851_v2  ;;  %v1828_v45 = vrot.slane %v1814_v8, %v19851_v2  ;;  %v25650_v4 = vcombine.high %v25648_v48, %v25649_v1  ;;  %v25652_v48 = vld [vmem:[#allocation60_spill] sm:$0xff]  ;;  %v20652_v30 = vpop.permute.xlu0 %3369 }
 0x3af   :  { %v20617_v15 = vrot.slane %v16948_v25, %v19851_v2  ;;  %v20620_v9 = vrot.slane %v4761_v22, %v19851_v2  ;;  %v3765_v19 = vrot.slane %v3757_v13, %v19870_v41  ;;  %v3772_v21 = vrot.slane %v3758_v47, %v19870_v41  ;;  %v25651_v25 = vld [vmem:[#allocation59_spill] sm:$0xff] }
 0x3b0   :  { %v20612_v18 = vrot.slane %v25650_v4, %v19870_v41  ;;  %5757 = vrot.lane.b32.xlu0 %v25646_v7, %s19070_s11  ;;  %v20627_v14 = vrot.slane %v16949_v53, %v19851_v2  ;;  %v3781_v28 = vrot.slane %v3773_v27, %v19870_v41  ;;  %v3788_v8 = vrot.slane %v3774_v63, %v19870_v41  ;;  %v20635_v4 = vpop.permute.xlu1 %995 }
 0x3b1   :  { %v25653_v1 = vcombine.high %v25651_v25, %v25652_v48  ;;  %v20638_v13 = vrot.slane %v3793_v16, %v19851_v2  ;;  %v20641_v47 = vrot.slane %v3794_v59, %v19851_v2  ;;  %v4709_v53 = vcombine.low %v20565_v43, %v20568_v46  ;;  %v25654_v48 = vld [vmem:[#allocation53_spill] sm:$0xff] }
 0x3b2   :  { %v4725_v27 = vcombine.low %v20575_v62, %v20593_v36  ;;  %v1829_v63 = vcombine.low %v1805_v6, %v1821_v44  ;;  %v1830_v33 = vcombine.high %v1805_v6, %v1821_v44  ;;  %v1845_v52 = vcombine.low %v1812_v57, %v1828_v45  ;;  %5655 = vrot.lane.b32.xlu1 %v25654_v48, %s19069_s23 }
 0x3b3   :  { %v2336_v22 = vrot.slane %v25653_v1, %v19870_v41  ;;  %v4813_v1 = vcombine.low %v3765_v19, %v3772_v21  ;;  %v16950_v16 = vcombine.high %v3765_v19, %v3772_v21  ;;  %v1846_v40 = vcombine.high %v1812_v57, %v1828_v45 }
 0x3b4   :  { %v2272_v59 = vcombine.high %v20527_v55, %v20547_v37  ;;  %5665 = vrot.lane.b32.xlu0 %v25655_v12, %s19069_s23  ;;  %v4829_v23 = vcombine.low %v3781_v28, %v3788_v8  ;;  %v3809_v6 = vcombine.low %v20498_v32, %v20586_v5  ;;  %v4717_v44 = vrot.slane %v4709_v53, %v19870_v41 }
 0x3b5   :  { %v2339_v25 = vcombine.low %v20612_v18, %v2336_v22  ;;  %v4733_v54 = vrot.slane %v4725_v27, %v19870_v41  ;;  %v16951_v19 = vcombine.high %v3781_v28, %v3788_v8  ;;  %v4777_v55 = vcombine.low %v20604_v58, %v20617_v15  ;;  %v20680_v28 = vpop.permute.xlu1 %3323 }
 0x3b6   :  { %v4793_v37 = vcombine.low %v20620_v9, %v20627_v14  ;;  %v20670_v57 = vrot.slane %v1829_v63, %v19870_v41  ;;  %v20673_v45 = vrot.slane %v1830_v33, %v19870_v41  ;;  %v20676_v21 = vrot.slane %v1845_v52, %v19870_v41  ;;  %5701 = vrot.lane.b32.xlu1 %v19919_v20, %s19068_s8 }
 0x3b7   :  { %17698 = vmatmul.mubr.msk.f32.vlgmr.msra.gmra.mrb[28].mxu1 %vm7965_vm1, %v2339_v25  ;;  %v20685_v8 = vrot.slane %v4813_v1, %v19851_v2  ;;  %v20688_v53 = vrot.slane %v1846_v40, %v19870_v41  ;;  %v4785_v33 = vrot.slane %v4777_v55, %v19870_v41  ;;  %v3817_v52 = vrot.slane %v3809_v6, %v19851_v2  ;;  %v3418_v55 = vpop.permute.xlu0 %3417 }
 0x3b8   :  { %18206 = vmatpush3.bf16.xpose.msk.msra.mxu1 %vm20396_vm2, %v20555_v3  ;;  %17704 = vmatprep.mubr.msk.f32.mxu1 %vm7965_vm1, %v2272_v59  ;;  %v3810_v3 = vcombine.high %v20498_v32, %v20586_v5  ;;  %v4801_v27 = vrot.slane %v4793_v37, %v19870_v41  ;;  %v20695_v32 = vrot.slane %v16950_v16, %v19851_v2 }
 0x3b9   :  { %25656 = vst [vmem:[#allocation39_spill] sm:$0xff] %v20688_v53  ;;  %5761 = vrot.lane.b32.xlu0 %v25655_v12, %s19070_s11  ;;  %v4741_v5 = vcombine.low %v4717_v44, %v4733_v54  ;;  %v4742_v63 = vcombine.high %v4717_v44, %v4733_v54  ;;  %v4710_v40 = vcombine.high %v20565_v43, %v20568_v46 }
 0x3ba   :  { %v4809_v25 = vcombine.low %v4785_v33, %v4801_v27  ;;  %v4810_v1 = vcombine.high %v4785_v33, %v4801_v27  ;;  %v4726_v59 = vcombine.high %v20575_v62, %v20593_v36  ;;  %v20703_v37 = vrot.slane %v4829_v23, %v19851_v2  ;;  %5703 = vrot.lane.b32.xlu1 %v25654_v48, %s19068_s8  ;;  %v25657_v62 = vld [vmem:[#allocation63_spill] sm:$0xff]  ;;  %v25658_v23 = vld [vmem:[#allocation41_spill] sm:$0xff] }
 0x3bb   :  { %v20706_v20 = vrot.slane %v16951_v19, %v19851_v2  ;;  %v3824_v16 = vrot.slane %v3810_v3, %v19851_v2  ;;  %v2340_v6 = vcombine.high %v20612_v18, %v2336_v22  ;;  %v4724_v43 = vrot.slane %v4710_v40, %v19870_v41  ;;  %v20724_v3 = vpop.permute.xlu1 %3371 }
 0x3bc   :  { %v18207_v54 = vpack.c.bf16 %v4809_v25, %v4741_v5  ;;  %v18213_v44 = vpack.c.bf16 %v4810_v1, %v4742_v63  ;;  %v4740_v46 = vrot.slane %v4726_v59, %v19870_v41  ;;  %v3861_v36 = vcombine.low %v25658_v23, %v20652_v30  ;;  %v25672_v1 = vld [vmem:[#allocation33_spill] sm:$0xff] }
 0x3bd   :  { %5669 = vrot.lane.b32.xlu0 %v25657_v62, %s19069_s23  ;;  %v4778_v18 = vcombine.high %v20604_v58, %v20617_v15  ;;  %v4794_v22 = vcombine.high %v20620_v9, %v20627_v14  ;;  %v3877_v19 = vcombine.low %v20601_v60, %v3418_v55  ;;  %v3825_v33 = vcombine.low %v20638_v13, %v3817_v52 }
 0x3be   :  { %18209 = vmatprep.subr.msk.bf16.mxu0 %vm20396_vm2, %v18207_v54  ;;  %18215 = vmatprep.subr.msk.bf16.mxu1 %vm20396_vm2, %v18213_v44  ;;  %v2406_v27 = vcombine.high %v20146_v39, %v20152_v17  ;;  %v3878_v58 = vcombine.high %v20601_v60, %v3418_v55  ;;  %v3826_v15 = vcombine.high %v20638_v13, %v3817_v52 }
 0x3bf   :  { %17705 = vmatmul.mubr.msk.f32.vlgmr.msra.gmra.mrb[30].mxu1 %vm7965_vm1, %v2340_v6  ;;  %18212 = vmatpush3.bf16.xpose.msk.msra.mxu0 %vm20396_vm2, %v18207_v54  ;;  %v4792_v9 = vrot.slane %v4778_v18, %v19870_v41  ;;  %v4808_v14 = vrot.slane %v4794_v22, %v19870_v41  ;;  %v3841_v5 = vcombine.low %v20641_v47, %v3824_v16  ;;  %v3420_v54 = vpop.permute.xlu1 %3419 }
 0x3c0   :  { %18218 = vmatpush3.bf16.xpose.msk.msra.mxu1 %vm20396_vm2, %v18213_v44  ;;  %v3842_v63 = vcombine.high %v20641_v47, %v3824_v16  ;;  %v3862_v39 = vcombine.high %v25658_v23, %v20652_v30  ;;  %17718 = vmatprep.mubr.msk.f32.mxu1 %vm7965_vm1, %v2406_v27  ;;  %v4743_v17 = vcombine.low %v4724_v43, %v4740_v46 }
 0x3c1   :  { %v4811_v60 = vcombine.low %v4792_v9, %v4808_v14  ;;  %v4744_v13 = vcombine.high %v4724_v43, %v4740_v46  ;;  %v4812_v52 = vcombine.high %v4792_v9, %v4808_v14  ;;  %v3885_v25 = vrot.slane %v3877_v19, %v19851_v2  ;;  %5751 = vrot.lane.b32.xlu1 %v25654_v48, %s19070_s11  ;;  %v25659_v9 = vld [vmem:[#allocation55_spill] sm:$0xff] }
 0x3c2   :  { %v3869_v40 = vrot.slane %v3861_v36, %v19851_v2  ;;  %v3892_v30 = vrot.slane %v3878_v58, %v19851_v2  ;;  %5765 = vrot.lane.b32.xlu0 %v25657_v62, %s19070_s11  ;;  %v3833_v59 = vrot.slane %v3825_v33, %v19870_v41  ;;  %v3840_v55 = vrot.slane %v3826_v15, %v19870_v41  ;;  %v20764_v36 = vpop.permute.xlu0 %1043 }
 0x3c3   :  { %v18219_v16 = vpack.c.bf16 %v4811_v60, %v4743_v17  ;;  %v18225_v6 = vpack.c.bf16 %v4812_v52, %v4744_v13  ;;  %v3849_v43 = vrot.slane %v3841_v5, %v19870_v41  ;;  %v3856_v46 = vrot.slane %v3842_v63, %v19870_v41  ;;  %v25660_v63 = vld [vmem:[#allocation69_spill] sm:$0xff] }
 0x3c4   :  { %v3876_v23 = vrot.slane %v3862_v39, %v19851_v2  ;;  %v3893_v18 = vcombine.low %v3869_v40, %v3885_v25  ;;  %v3894_v22 = vcombine.high %v3869_v40, %v3885_v25  ;;  %v2473_v19 = vcombine.low %v20105_v11, %v20108_v26  ;;  %v25661_v39 = vld [vmem:[#allocation68_spill] sm:$0xff] }
 0x3c5   :  { %18221 = vmatprep.subr.msk.bf16.mxu0 %vm20396_vm2, %v18219_v16  ;;  %18227 = vmatprep.subr.msk.bf16.mxu1 %vm20396_vm2, %v18225_v6  ;;  %v2474_v58 = vcombine.high %v20105_v11, %v20108_v26  ;;  %v2374_v15 = vcombine.high %v20115_v35, %v20118_v51  ;;  %v4881_v5 = vcombine.low %v3833_v59, %v3840_v55  ;;  %v25662_v11 = vld [vmem:[#allocation24_spill] sm:$0xff] }
 0x3c6   :  { %v3909_v33 = vcombine.low %v3876_v23, %v3892_v30  ;;  %v3910_v27 = vcombine.high %v3876_v23, %v3892_v30  ;;  %5659 = vrot.lane.b32.xlu1 %v25659_v9, %s19069_s23  ;;  %17712 = vmatmul.mubr.msk.f32.vlgmr.msra.gmra.mrb[24].mxu0 %vm7965_vm1, %v2473_v19  ;;  %v2390_v17 = vcombine.high %v25661_v39, %v25660_v63  ;;  %v1092_v30 = vpop.permute.xlu1 %1091  ;;  %v20798_v19 = vpop.permute.xlu0 %3325 }
 0x3c7   :  { %v3945_v60 = vcombine.low %v20680_v28, %v3420_v54  ;;  %v16952_v13 = vcombine.high %v3833_v59, %v3840_v55  ;;  %v3929_v26 = vcombine.low %v25662_v11, %v20724_v3  ;;  %17719 = vmatmul.mubr.msk.f32.vlgmr.msra.gmra.mrb[32].mxu1 %vm7965_vm1, %v2474_v58  ;;  %18224 = vmatpush3.bf16.xpose.msk.msra.mxu0 %vm20396_vm2, %v18219_v16  ;;  %v25663_v58 = vld [vmem:[#allocation37_spill] sm:$0xff] }
 0x3c8   :  { %v2388_v35 = vrot.slane %v2374_v15, %v19870_v41  ;;  %v4897_v51 = vcombine.low %v3849_v43, %v3856_v46  ;;  %v3901_v52 = vrot.slane %v3893_v18, %v19870_v41  ;;  %v3908_v25 = vrot.slane %v3894_v22, %v19870_v41  ;;  %18230 = vmatpush3.bf16.xpose.msk.msra.mxu1 %vm20396_vm2, %v18225_v6 }
 0x3c9   :  { %v2404_v40 = vrot.slane %v2390_v17, %v19870_v41  ;;  %v16953_v59 = vcombine.high %v3849_v43, %v3856_v46  ;;  %v3917_v55 = vrot.slane %v3909_v33, %v19870_v41  ;;  %v3924_v23 = vrot.slane %v3910_v27, %v19870_v41  ;;  %5673 = vrot.lane.b32.xlu0 %v25663_v58, %s19069_s23  ;;  %v25664_v46 = vld [vmem:[#allocation42_spill] sm:$0xff] }
 0x3ca   :  { %v3946_v16 = vcombine.high %v20680_v28, %v3420_v54  ;;  %v3930_v18 = vcombine.high %v25662_v11, %v20724_v3  ;;  %v3953_v6 = vrot.slane %v3945_v60, %v19851_v2  ;;  %5705 = vrot.lane.b32.xlu1 %v19942_v50, %s19068_s8  ;;  %v3937_v43 = vrot.slane %v3929_v26, %v19851_v2 }
 0x3cb   :  { %v2407_v22 = vcombine.low %v2388_v35, %v2404_v40  ;;  %v2408_v15 = vcombine.high %v2388_v35, %v2404_v40  ;;  %v1865_v28 = vcombine.low %v25664_v46, %v20764_v36  ;;  %v1866_v54 = vcombine.high %v25664_v46, %v20764_v36  ;;  %v20834_v40 = vpop.permute.xlu0 %3373 }
 0x3cc   :  { %v1881_v33 = vcombine.low %v20635_v4, %v1092_v30  ;;  %v4949_v27 = vcombine.low %v3901_v52, %v3908_v25  ;;  %v16954_v63 = vcombine.high %v3901_v52, %v3908_v25  ;;  %v1882_v3 = vcombine.high %v20635_v4, %v1092_v30 }
 0x3cd   :  { %17725 = vmatprep.mubr.msk.f32.mxu0 %vm7965_vm1, %v2407_v22  ;;  %17732 = vmatprep.mubr.msk.f32.mxu1 %vm7965_vm1, %v2408_v15  ;;  %v20817_v39 = vrot.slane %v4881_v5, %v19851_v2  ;;  %v20820_v17 = vrot.slane %v16952_v13, %v19851_v2  ;;  %v4965_v60 = vcombine.low %v3917_v55, %v3924_v23  ;;  %v25665_v22 = vld [vmem:[#allocation64_spill] sm:$0xff]  ;;  %v25666_v15 = vld [vmem:[#allocation65_spill] sm:$0xff] }
 0x3ce   :  { %v3960_v11 = vrot.slane %v3946_v16, %v19851_v2  ;;  %5769 = vrot.lane.b32.xlu0 %v25663_v58, %s19070_s11  ;;  %v20826_v36 = vrot.slane %v4897_v51, %v19851_v2  ;;  %v16955_v26 = vcombine.high %v3917_v55, %v3924_v23  ;;  %v3961_v35 = vcombine.low %v3937_v43, %v3953_v6 }
 0x3cf   :  { %v3962_v52 = vcombine.high %v3937_v43, %v3953_v6  ;;  %5707 = vrot.lane.b32.xlu1 %v25659_v9, %s19068_s8  ;;  %v4912_v4 = vrot.slane %v16953_v59, %v19851_v2  ;;  %v3944_v5 = vrot.slane %v3930_v18, %v19851_v2  ;;  %v1873_v13 = vrot.slane %v1865_v28, %v19851_v2 }
 0x3d0   :  { %v1889_v25 = vrot.slane %v1881_v33, %v19851_v2  ;;  %v20837_v30 = vrot.slane %v4949_v27, %v19851_v2  ;;  %v20840_v51 = vrot.slane %v16954_v63, %v19851_v2  ;;  %v20843_v55 = vrot.slane %v1866_v54, %v19851_v2  ;;  %v25668_v33 = vld [vmem:[#allocation26_spill] sm:$0xff] }
 0x3d1   :  { %v20846_v23 = vrot.slane %v1882_v3, %v19851_v2  ;;  %v20849_v59 = vrot.slane %v4965_v60, %v19851_v2  ;;  %v3977_v16 = vcombine.low %v3944_v5, %v3960_v11  ;;  %v3978_v18 = vcombine.high %v3944_v5, %v3960_v11  ;;  %v25669_v60 = vld [vmem:[#allocation66_spill] sm:$0xff]  ;;  %v25670_v11 = vld [vmem:[#allocation67_spill] sm:$0xff] }
 0x3d2   :  { %v25667_v6 = vcombine.high %v25665_v22, %v25666_v15  ;;  %v20856_v46 = vrot.slane %v16955_v26, %v19851_v2  ;;  %v20859_v28 = vrot.slane %v3961_v35, %v19870_v41  ;;  %v20862_v54 = vrot.slane %v3962_v52, %v19870_v41 }
 0x3d3   :  { %5755 = vrot.lane.b32.xlu1 %v25659_v9, %s19070_s11  ;;  %v1897_v63 = vcombine.low %v1873_v13, %v1889_v25  ;;  %v25671_v26 = vcombine.high %v25669_v60, %v25670_v11  ;;  %v4845_v35 = vcombine.low %v20685_v8, %v20695_v32  ;;  %v1898_v52 = vcombine.high %v1873_v13, %v1889_v25 }
 0x3d4   :  { %v2456_v43 = vrot.slane %v25667_v6, %v19870_v41  ;;  %v1913_v22 = vcombine.low %v20843_v55, %v20846_v23  ;;  %v4861_v15 = vcombine.low %v20703_v37, %v20706_v20  ;;  %v4913_v6 = vcombine.low %v20817_v39, %v20820_v17 }
 0x3d5   :  { %v2472_v5 = vrot.slane %v25671_v26, %v19870_v41  ;;  %v20883_v14 = vrot.slane %v3977_v16, %v19870_v41  ;;  %v20886_v44 = vrot.slane %v3978_v18, %v19870_v41  ;;  %v1914_v25 = vcombine.high %v20843_v55, %v20846_v23 }
 0x3d6   :  { %v4853_v26 = vrot.slane %v4845_v35, %v19870_v41  ;;  %v4869_v47 = vrot.slane %v4861_v15, %v19870_v41  ;;  %v4921_v16 = vrot.slane %v4913_v6, %v19870_v41  ;;  %v4929_v18 = vcombine.low %v20826_v36, %v4912_v4  ;;  %v25677_v6 = vld [vmem:[#allocation72_spill] sm:$0xff] }
 0x3d7   :  { %v2475_v60 = vcombine.low %v2456_v43, %v2472_v5  ;;  %v2476_v11 = vcombine.high %v2456_v43, %v2472_v5  ;;  %5663 = vrot.lane.b32.xlu1 %v25672_v1, %s19069_s23  ;;  %v25673_v43 = vld [vmem:[#allocation70_spill] sm:$0xff]  ;;  %v25674_v5 = vld [vmem:[#allocation71_spill] sm:$0xff]  ;;  %v20907_v23 = vrot.slane %v1897_v63, %v19870_v41  ;;  %v4846_v50 = vcombine.high %v20685_v8, %v20695_v32 }
 0x3d8   :  { %v25675_v13 = vcombine.low %v25673_v43, %v25674_v5  ;;  %v4877_v35 = vcombine.low %v4853_v26, %v4869_v47  ;;  %v25676_v15 = vcombine.high %v25673_v43, %v25674_v5  ;;  %v4937_v9 = vrot.slane %v4929_v18, %v19870_v41  ;;  %v20932_v5 = vpop.permute.xlu1 %3327 }
 0x3d9   :  { %17726 = vmatmul.mubr.msk.f32.vlgmr.msra.gmra.mrb[26].mxu0 %vm7965_vm1, %v2475_v60  ;;  %17733 = vmatmul.mubr.msk.f32.vlgmr.msra.gmra.mrb[34].mxu1 %vm7965_vm1, %v2476_v11  ;;  %v25678_v11 = vld [vmem:[#allocation76_spill] sm:$0xff]  ;;  %v4862_v43 = vcombine.high %v20703_v37, %v20706_v20  ;;  %v4914_v18 = vcombine.high %v20817_v39, %v20820_v17  ;;  %v4930_v48 = vcombine.high %v20826_v36, %v4912_v4  ;;  %v3422_v17 = vpop.permute.xlu0 %3421 }
 0x3da   :  { %v20904_v55 = vrot.slane %v25675_v13, %v19851_v2  ;;  %v20913_v60 = vrot.slane %v25676_v15, %v19851_v2  ;;  %v25679_v3 = vcombine.low %v25677_v6, %v25678_v11  ;;  %v25680_v63 = vcombine.high %v25677_v6, %v25678_v11 }
 0x3db   :  { %v4878_v15 = vcombine.high %v4853_v26, %v4869_v47  ;;  %5709 = vrot.lane.b32.xlu1 %v25646_v7, %s19068_s8  ;;  %v4945_v6 = vcombine.low %v4921_v16, %v4937_v9  ;;  %v4946_v11 = vcombine.high %v4921_v16, %v4937_v9  ;;  %v4860_v20 = vrot.slane %v4846_v50, %v19870_v41 }
 0x3dc   :  { %v20919_v27 = vrot.slane %v25679_v3, %v19851_v2  ;;  %v20926_v13 = vrot.slane %v25680_v63, %v19851_v2  ;;  %v2509_v3 = vcombine.low %v20904_v55, %v20913_v60  ;;  %v4876_v37 = vrot.slane %v4862_v43, %v19870_v41 }
 0x3dd   :  { %v4928_v47 = vrot.slane %v4914_v18, %v19870_v41  ;;  %v4944_v39 = vrot.slane %v4930_v48, %v19870_v41  ;;  %v1912_v36 = vrot.slane %v1898_v52, %v19870_v41  ;;  %v18231_v4 = vpack.c.bf16 %v4945_v6, %v4877_v35  ;;  %v20957_v35 = vpop.permute.xlu1 %3375 }
 0x3de   :  { %v2525_v8 = vcombine.low %v20919_v27, %v20926_v13  ;;  %v2517_v32 = vrot.slane %v2509_v3, %v19870_v41  ;;  %v18237_v26 = vpack.c.bf16 %v4946_v11, %v4878_v15  ;;  %v4879_v16 = vcombine.low %v4860_v20, %v4876_v37 }
 0x3df   :  { %v4947_v63 = vcombine.low %v4928_v47, %v4944_v39  ;;  %v4880_v7 = vcombine.high %v4860_v20, %v4876_v37  ;;  %v4948_v53 = vcombine.high %v4928_v47, %v4944_v39  ;;  %5711 = vrot.lane.b32.xlu1 %v25672_v1, %s19068_s8  ;;  %18233 = vmatprep.subr.msk.bf16.mxu0 %vm20396_vm2, %v18231_v4  ;;  %v25683_v37 = vld [vmem:[#allocation73_spill] sm:$0xff] }
 0x3e0   :  { %v2533_v9 = vrot.slane %v2525_v8, %v19870_v41  ;;  %18239 = vmatprep.subr.msk.bf16.mxu1 %vm20396_vm2, %v18237_v26  ;;  %v4013_v52 = vcombine.low %v20798_v19, %v3422_v17  ;;  %18236 = vmatpush3.bf16.xpose.msk.msra.mxu0 %vm20396_vm2, %v18231_v4  ;;  %v4014_v3 = vcombine.high %v20798_v19, %v3422_v17 }
 0x3e1   :  { %18242 = vmatpush3.bf16.xpose.msk.msra.mxu1 %vm20396_vm2, %v18237_v26  ;;  %v18243_v43 = vpack.c.bf16 %v4947_v63, %v4879_v16  ;;  %v18249_v15 = vpack.c.bf16 %v4948_v53, %v4880_v7  ;;  %v1921_v18 = vrot.slane %v1913_v22, %v19870_v41  ;;  %v1928_v6 = vrot.slane %v1914_v25, %v19870_v41  ;;  %v25687_v26 = vld [vmem:[#allocation75_spill] sm:$0xff] }
 0x3e2   :  { %v2541_v50 = vcombine.low %v2517_v32, %v2533_v9  ;;  %v2542_v48 = vcombine.high %v2517_v32, %v2533_v9  ;;  %v25681_v11 = vcombine.low %v25668_v33, %v20834_v40  ;;  %v2953_v20 = vcombine.low %v20907_v23, %v1912_v36  ;;  %v25688_v9 = vld [vmem:[#allocation77_spill] sm:$0xff] }
 0x3e3   :  { %v16932_v32 = vcombine.high %v20907_v23, %v1912_v36  ;;  %v25682_v7 = vcombine.high %v25668_v33, %v20834_v40  ;;  %18245 = vmatprep.subr.msk.bf16.mxu0 %vm20396_vm2, %v18243_v43  ;;  %18251 = vmatprep.subr.msk.bf16.mxu1 %vm20396_vm2, %v18249_v15  ;;  %v16956_v19 = vcombine.high %v20859_v28, %v20862_v54  ;;  %v20987_v23 = vpop.permute.xlu0 %997  ;;  %v25684_v40 = vld [vmem:[#allocation74_spill] sm:$0xff] }
 0x3e4   :  { %v4005_v8 = vrot.slane %v25681_v11, %v19851_v2  ;;  %17739 = vmatprep.mubr.msk.f32.mxu0 %vm7965_vm1, %v2541_v50  ;;  %17746 = vmatprep.mubr.msk.f32.mxu1 %vm7965_vm1, %v2542_v48  ;;  %v5033_v22 = vcombine.low %v20883_v14, %v20886_v44  ;;  %v4021_v25 = vrot.slane %v4013_v52, %v19851_v2 }
 0x3e5   :  { %v4012_v53 = vrot.slane %v25682_v7, %v19851_v2  ;;  %v25685_v33 = vcombine.low %v25683_v37, %v25684_v40  ;;  %5759 = vrot.lane.b32.xlu1 %v25672_v1, %s19070_s11  ;;  %v25686_v39 = vcombine.low %v20859_v28, %v20862_v54  ;;  %v16957_v36 = vcombine.high %v20883_v14, %v20886_v44  ;;  %v3424_v54 = vpop.permute.xlu1 %3423 }
 0x3e6   :  { %v4028_v4 = vrot.slane %v4014_v3, %v19851_v2  ;;  %v25689_v16 = vcombine.low %v25687_v26, %v25688_v9  ;;  %v2969_v50 = vcombine.low %v1921_v18, %v1928_v6  ;;  %v16933_v48 = vcombine.high %v1921_v18, %v1928_v6 }
 0x3e7   :  { %v2585_v47 = vrot.slane %v25685_v33, %v19870_v41  ;;  %v20999_v17 = vrot.slane %v25686_v39, %v19851_v2  ;;  %v2510_v52 = vcombine.high %v20904_v55, %v20913_v60  ;;  %v2526_v28 = vcombine.high %v20919_v27, %v20926_v13  ;;  %v25690_v55 = vld [vmem:[#allocation34_spill] sm:$0xff]  ;;  %v25691_v27 = vld [vmem:[#allocation25_spill] sm:$0xff] }
 0x3e8   :  { %v2601_v63 = vrot.slane %v25689_v16, %v19870_v41  ;;  %v21013_v11 = vrot.slane %v2953_v20, %v19851_v2  ;;  %v21016_v44 = vrot.slane %v16932_v32, %v19851_v2  ;;  %v4029_v7 = vcombine.low %v4005_v8, %v4021_v25 }
 0x3e9   :  { %v4030_v33 = vcombine.high %v4005_v8, %v4021_v25  ;;  %v2524_v39 = vrot.slane %v2510_v52, %v19870_v41  ;;  %v2540_v18 = vrot.slane %v2526_v28, %v19870_v41  ;;  %5667 = vrot.lane.b32.xlu1 %v25690_v55, %s19069_s23  ;;  %v4045_v60 = vcombine.low %v4012_v53, %v4028_v4  ;;  %v21031_v25 = vpop.permute.xlu0 %3329 }
 0x3ea   :  { %v2609_v14 = vcombine.low %v2585_v47, %v2601_v63  ;;  %v2610_v3 = vcombine.high %v2585_v47, %v2601_v63  ;;  %v4065_v13 = vcombine.low %v25691_v27, %v20957_v35  ;;  %v4081_v6 = vcombine.low %v20932_v5, %v3424_v54 }
 0x3eb   :  { %v4046_v20 = vcombine.high %v4012_v53, %v4028_v4  ;;  %v2543_v8 = vcombine.low %v2524_v39, %v2540_v18  ;;  %v2544_v32 = vcombine.high %v2524_v39, %v2540_v18  ;;  %v21034_v47 = vrot.slane %v16956_v19, %v19851_v2 }
 0x3ec   :  { %17740 = vmatmul.mubr.msk.f32.vlgmr.msra.gmra.mrb[28].mxu0 %vm7965_vm1, %v2609_v14  ;;  %17747 = vmatmul.mubr.msk.f32.vlgmr.msra.gmra.mrb[36].mxu1 %vm7965_vm1, %v2610_v3  ;;  %v21037_v16 = vrot.slane %v5033_v22, %v19851_v2  ;;  %v21040_v63 = vrot.slane %v16957_v36, %v19851_v2  ;;  %v4082_v53 = vcombine.high %v20932_v5, %v3424_v54 }
 0x3ed   :  { %18248 = vmatpush3.bf16.xpose.msk.msra.mxu0 %vm20396_vm2, %v18243_v43  ;;  %18254 = vmatpush3.bf16.xpose.msk.msra.mxu1 %vm20396_vm2, %v18249_v15  ;;  %v21044_v43 = vrot.slane %v2969_v50, %v19851_v2  ;;  %v21047_v4 = vrot.slane %v16933_v48, %v19851_v2  ;;  %v21052_v15 = vrot.slane %v4081_v6, %v19851_v2  ;;  %v21094_v39 = vpop.permute.xlu0 %3377 }
 0x3ee   :  { %17753 = vmatprep.mubr.msk.f32.mxu0 %vm7965_vm1, %v2543_v8  ;;  %17760 = vmatprep.mubr.msk.f32.mxu1 %vm7965_vm1, %v2544_v32  ;;  %v21055_v19 = vrot.slane %v4029_v7, %v19870_v41  ;;  %v21058_v22 = vrot.slane %v4030_v33, %v19870_v41  ;;  %v4066_v5 = vcombine.high %v25691_v27, %v20957_v35  ;;  %v21111_v8 = vpop.permute.xlu1 %1045  ;;  %v25695_v35 = vld [vmem:[#allocation78_spill] sm:$0xff] }
 0x3ef   :  { %v25692_v36 = vcombine.high %v25683_v37, %v25684_v40  ;;  %5713 = vrot.lane.b32.xlu1 %v25655_v12, %s19068_s8  ;;  %v21071_v52 = vrot.slane %v4045_v60, %v19870_v41  ;;  %v21074_v28 = vrot.slane %v4046_v20, %v19870_v41  ;;  %v21077_v54 = vrot.slane %v4065_v13, %v19851_v2 }
 0x3f0   :  { %v21082_v37 = vrot.slane %v4082_v53, %v19851_v2  ;;  %v25693_v40 = vcombine.high %v25687_v26, %v25688_v9  ;;  %v4981_v3 = vcombine.low %v20837_v30, %v20840_v51  ;;  %v4997_v18 = vcombine.low %v20849_v59, %v20856_v46 }
 0x3f1   :  { %v2592_v50 = vrot.slane %v25692_v36, %v19870_v41  ;;  %v4097_v33 = vcombine.low %v21077_v54, %v21052_v15  ;;  %v5049_v60 = vcombine.low %v20999_v17, %v21034_v47  ;;  %v21103_v9 = vrot.slane %v4066_v5, %v19851_v2  ;;  %v3426_v26 = vpop.permute.xlu0 %3425 }
 0x3f2   :  { %v2608_v14 = vrot.slane %v25693_v40, %v19870_v41  ;;  %v4989_v32 = vrot.slane %v4981_v3, %v19870_v41  ;;  %v5005_v53 = vrot.slane %v4997_v18, %v19870_v41  ;;  %v4098_v5 = vcombine.high %v21077_v54, %v21052_v15 }
 0x3f3   :  { %5715 = vrot.lane.b32.xlu1 %v25690_v55, %s19068_s8  ;;  %v4113_v36 = vcombine.low %v21103_v9, %v21082_v37  ;;  %v4114_v3 = vcombine.high %v21103_v9, %v21082_v37  ;;  %v5057_v18 = vrot.slane %v5049_v60, %v19870_v41  ;;  %v5065_v15 = vcombine.low %v21037_v16, %v21040_v63  ;;  %v25698_v37 = vld [vmem:[#allocation79_spill] sm:$0xff]  ;;  %v25699_v9 = vld [vmem:[#allocation80_spill] sm:$0xff] }
 0x3f4   :  { %v2611_v27 = vcombine.low %v2592_v50, %v2608_v14  ;;  %v2612_v13 = vcombine.high %v2592_v50, %v2608_v14  ;;  %v25694_v50 = vld [vmem:[#allocation28_spill] sm:$0xff]  ;;  %v21124_v14 = vrot.slane %v4097_v33, %v19870_v41  ;;  %v5013_v54 = vcombine.low %v4989_v32, %v5005_v53 }
 0x3f5   :  { %v25696_v7 = vcombine.low %v20258_v31, %v25695_v35  ;;  %v25697_v33 = vcombine.high %v20258_v31, %v25695_v35  ;;  %v25700_v60 = vcombine.low %v25698_v37, %v25699_v9  ;;  %v5073_v40 = vrot.slane %v5065_v15, %v19870_v41 }
 0x3f6   :  { %17754 = vmatmul.mubr.msk.f32.vlgmr.msra.gmra.mrb[30].mxu0 %vm7965_vm1, %v2611_v27  ;;  %17761 = vmatmul.mubr.msk.f32.vlgmr.msra.gmra.mrb[38].mxu1 %vm7965_vm1, %v2612_v13  ;;  %v4982_v31 = vcombine.high %v20837_v30, %v20840_v51  ;;  %v4998_v35 = vcombine.high %v20849_v59, %v20856_v46  ;;  %v5050_v6 = vcombine.high %v20999_v17, %v21034_v47  ;;  %v21171_v51 = vpop.permute.xlu1 %3331  ;;  %v25702_v47 = vld [vmem:[#allocation35_spill] sm:$0xff] }
 0x3f7   :  { %v21135_v48 = vrot.slane %v25696_v7, %v19851_v2  ;;  %v21141_v27 = vrot.slane %v25697_v33, %v19851_v2  ;;  %v21147_v13 = vrot.slane %v25700_v60, %v19851_v2  ;;  %5763 = vrot.lane.b32.xlu1 %v25690_v55, %s19070_s11  ;;  %v25701_v7 = vcombine.high %v25698_v37, %v25699_v9 }
 0x3f8   :  { %v5014_v33 = vcombine.high %v4989_v32, %v5005_v53  ;;  %v5066_v15 = vcombine.high %v21037_v16, %v21040_v63  ;;  %v5081_v37 = vcombine.low %v5057_v18, %v5073_v40  ;;  %v5082_v9 = vcombine.high %v5057_v18, %v5073_v40 }
 0x3f9   :  { %v21156_v20 = vrot.slane %v25701_v7, %v19851_v2  ;;  %v2645_v60 = vcombine.low %v21135_v48, %v21141_v27  ;;  %v4996_v30 = vrot.slane %v4982_v31, %v19870_v41  ;;  %v5012_v46 = vrot.slane %v4998_v35, %v19870_v41 }
 0x3fa   :  { %v5064_v32 = vrot.slane %v5050_v6, %v19870_v41  ;;  %v5080_v17 = vrot.slane %v5066_v15, %v19870_v41  ;;  %v18255_v16 = vpack.c.bf16 %v5081_v37, %v5013_v54  ;;  %v18261_v63 = vpack.c.bf16 %v5082_v9, %v5014_v33  ;;  %v25703_v9 = vld [vmem:[#allocation44_spill] sm:$0xff] }
 0x3fb   :  { %v2661_v7 = vcombine.low %v21147_v13, %v21156_v20  ;;  %v2653_v59 = vrot.slane %v2645_v60, %v19870_v41  ;;  %5671 = vrot.lane.b32.xlu1 %v25702_v47, %s19069_s23  ;;  %v4149_v40 = vcombine.low %v21031_v25, %v3426_v26  ;;  %v5015_v18 = vcombine.low %v4996_v30, %v5012_v46 }
 0x3fc   :  { %v5083_v31 = vcombine.low %v5064_v32, %v5080_v17  ;;  %v5016_v55 = vcombine.high %v4996_v30, %v5012_v46  ;;  %v5084_v12 = vcombine.high %v5064_v32, %v5080_v17  ;;  %18257 = vmatprep.subr.msk.bf16.mxu0 %vm20396_vm2, %v18255_v16  ;;  %18263 = vmatprep.subr.msk.bf16.mxu1 %vm20396_vm2, %v18261_v63 }
 0x3fd   :  { %v2669_v53 = vrot.slane %v2661_v7, %v19870_v41  ;;  %v4150_v60 = vcombine.high %v21031_v25, %v3426_v26  ;;  %v4112_v54 = vrot.slane %v4098_v5, %v19870_v41  ;;  %18260 = vmatpush3.bf16.xpose.msk.msra.mxu0 %vm20396_vm2, %v18255_v16  ;;  %18266 = vmatpush3.bf16.xpose.msk.msra.mxu1 %vm20396_vm2, %v18261_v63  ;;  %v3380_v25 = vpop.permute.xlu1 %3379 }
 0x3fe   :  { %v18267_v33 = vpack.c.bf16 %v5083_v31, %v5015_v18  ;;  %v18273_v15 = vpack.c.bf16 %v5084_v12, %v5016_v55  ;;  %v16959_v37 = vcombine.high %v21071_v52, %v21074_v28  ;;  %v1933_v7 = vcombine.low %v25703_v9, %v21111_v8  ;;  %v1094_v31 = vpop.permute.xlu0 %1093 }
 0x3ff   :  { %v2677_v6 = vcombine.low %v2653_v59, %v2669_v53  ;;  %v2678_v35 = vcombine.high %v2653_v59, %v2669_v53  ;;  %v4134_v30 = vcombine.high %v25694_v50, %v21094_v39  ;;  %v1934_v12 = vcombine.high %v25703_v9, %v21111_v8  ;;  %5717 = vrot.lane.b32.xlu1 %v25657_v62, %s19068_s8 }
 0x400   :  { %18269 = vmatprep.subr.msk.bf16.mxu0 %vm20396_vm2, %v18267_v33  ;;  %18275 = vmatprep.subr.msk.bf16.mxu1 %vm20396_vm2, %v18273_v15  ;;  %v4157_v55 = vrot.slane %v4149_v40, %v19851_v2  ;;  %v25704_v5 = vcombine.low %v21055_v19, %v21058_v22  ;;  %v4121_v46 = vrot.slane %v4113_v36, %v19870_v41 }
 0x401   :  { %17767 = vmatprep.mubr.msk.f32.mxu0 %vm7965_vm1, %v2677_v6  ;;  %17774 = vmatprep.mubr.msk.f32.mxu1 %vm7965_vm1, %v2678_v35  ;;  %v4128_v32 = vrot.slane %v4114_v3, %v19870_v41  ;;  %v4164_v8 = vrot.slane %v4150_v60, %v19851_v2  ;;  %v25705_v17 = vcombine.high %v21055_v19, %v21058_v22 }
 0x402   :  { %v21212_v59 = vrot.slane %v25704_v5, %v19851_v2  ;;  %v25706_v63 = vcombine.low %v21071_v52, %v21074_v28  ;;  %v5153_v36 = vcombine.low %v21124_v14, %v4112_v54  ;;  %v25707_v3 = vcombine.low %v25694_v50, %v21094_v39  ;;  %v25708_v52 = vld [vmem:[#allocation81_spill] sm:$0xff]  ;;  %v25709_v28 = vld [vmem:[#allocation82_spill] sm:$0xff]  ;;  %v25711_v50 = vld [vmem:[#allocation83_spill] sm:$0xff] }
 0x403   :  { %v21223_v16 = vrot.slane %v25705_v17, %v19851_v2  ;;  %v21237_v18 = vrot.slane %v16959_v37, %v19851_v2  ;;  %v21240_v19 = vrot.slane %v1933_v7, %v19851_v2  ;;  %v4148_v22 = vrot.slane %v4134_v30, %v19851_v2  ;;  %5719 = vrot.lane.b32.xlu1 %v25702_v47, %s19068_s8 }
 0x404   :  { %v21229_v53 = vrot.slane %v25706_v63, %v19851_v2  ;;  %v4141_v40 = vrot.slane %v25707_v3, %v19851_v2  ;;  %v25710_v6 = vcombine.low %v25708_v52, %v25709_v28  ;;  %v16960_v60 = vcombine.high %v21124_v14, %v4112_v54  ;;  %v21255_v3 = vpop.permute.xlu1 %3427 }
 0x405   :  { %v21249_v9 = vrot.slane %v1934_v12, %v19851_v2  ;;  %v25712_v37 = vcombine.low %v20318_v61, %v25711_v50  ;;  %v5169_v5 = vcombine.low %v4121_v46, %v4128_v32  ;;  %v4181_v30 = vcombine.low %v4148_v22, %v4164_v8  ;;  %v25713_v12 = vld [vmem:[#allocation27_spill] sm:$0xff] }
 0x406   :  { %v2721_v35 = vrot.slane %v25710_v6, %v19870_v41  ;;  %v4165_v39 = vcombine.low %v4141_v40, %v4157_v55  ;;  %v4166_v17 = vcombine.high %v4141_v40, %v4157_v55  ;;  %v4182_v63 = vcombine.high %v4148_v22, %v4164_v8 }
 0x407   :  { %v2737_v7 = vrot.slane %v25712_v37, %v19870_v41  ;;  %v21260_v14 = vrot.slane %v5153_v36, %v19851_v2  ;;  %v16961_v54 = vcombine.high %v4121_v46, %v4128_v32  ;;  %v4201_v6 = vcombine.low %v25713_v12, %v3380_v25  ;;  %5767 = vrot.lane.b32.xlu1 %v25702_v47, %s19070_s11 }
 0x408   :  { %v1949_v26 = vcombine.low %v20987_v23, %v1094_v31  ;;  %v4202_v62 = vcombine.high %v25713_v12, %v3380_v25  ;;  %v1950_v37 = vcombine.high %v20987_v23, %v1094_v31  ;;  %v21267_v8 = vrot.slane %v16960_v60, %v19851_v2 }
 0x409   :  { %v2745_v55 = vcombine.low %v2721_v35, %v2737_v7  ;;  %v2746_v40 = vcombine.high %v2721_v35, %v2737_v7  ;;  %v4173_v22 = vrot.slane %v4165_v39, %v19870_v41  ;;  %v2646_v36 = vcombine.high %v21135_v48, %v21141_v27  ;;  %v21305_v7 = vpop.permute.xlu0 %3333 }
 0x40a   :  { %v2662_v46 = vcombine.high %v21147_v13, %v21156_v20  ;;  %v4180_v32 = vrot.slane %v4166_v17, %v19870_v41  ;;  %v21276_v1 = vrot.slane %v4181_v30, %v19870_v41  ;;  %v21279_v23 = vrot.slane %v4182_v63, %v19870_v41 }
 0x40b   :  { %17768 = vmatmul.mubr.msk.f32.vlgmr.msra.gmra.mrb[32].mxu0 %vm7965_vm1, %v2745_v55  ;;  %17775 = vmatmul.mubr.msk.f32.vlgmr.msra.gmra.mrb[40].mxu1 %vm7965_vm1, %v2746_v40  ;;  %v21284_v25 = vrot.slane %v5169_v5, %v19851_v2  ;;  %v1957_v48 = vrot.slane %v1949_v26, %v19851_v2  ;;  %v2660_v20 = vrot.slane %v2646_v36, %v19870_v41  ;;  %v21303_v26 = vpop.permute.xlu1 %999 }
 0x40c   :  { %18272 = vmatpush3.bf16.xpose.msk.msra.mxu0 %vm20396_vm2, %v18267_v33  ;;  %v2676_v27 = vrot.slane %v2662_v46, %v19870_v41  ;;  %v21292_v13 = vrot.slane %v16961_v54, %v19851_v2  ;;  %v21295_v31 = vrot.slane %v4201_v6, %v19851_v2  ;;  %v21298_v35 = vrot.slane %v4202_v62, %v19851_v2  ;;  %v25716_v46 = vld [vmem:[#allocation36_spill] sm:$0xff] }
 0x40d   :  { %v1964_v60 = vrot.slane %v1950_v37, %v19851_v2  ;;  %18278 = vmatpush3.bf16.xpose.msk.msra.mxu1 %vm20396_vm2, %v18273_v15  ;;  %v25714_v5 = vcombine.high %v25708_v52, %v25709_v28  ;;  %v25715_v62 = vcombine.high %v20318_v61, %v25711_v50  ;;  %v5221_v15 = vcombine.low %v4173_v22, %v4180_v32 }
 0x40e   :  { %v2679_v33 = vcombine.low %v2660_v20, %v2676_v27  ;;  %v2680_v39 = vcombine.high %v2660_v20, %v2676_v27  ;;  %v16962_v63 = vcombine.high %v4173_v22, %v4180_v32  ;;  %v5237_v54 = vcombine.low %v21276_v1, %v21279_v23  ;;  %5675 = vrot.lane.b32.xlu1 %v25716_v46, %s19069_s23 }
 0x40f   :  { %v2728_v17 = vrot.slane %v25714_v5, %v19870_v41  ;;  %v2744_v30 = vrot.slane %v25715_v62, %v19870_v41  ;;  %v4217_v12 = vcombine.low %v21171_v51, %v21255_v3  ;;  %v16963_v52 = vcombine.high %v21276_v1, %v21279_v23  ;;  %v21349_v27 = vpop.permute.xlu1 %3335 }
 0x410   :  { %v1965_v28 = vcombine.low %v21240_v19, %v1957_v48  ;;  %v1966_v6 = vcombine.high %v21240_v19, %v1957_v48  ;;  %17781 = vmatprep.mubr.msk.f32.mxu0 %vm7965_vm1, %v2679_v33  ;;  %17788 = vmatprep.mubr.msk.f32.mxu1 %vm7965_vm1, %v2680_v39  ;;  %v1981_v61 = vcombine.low %v21249_v9, %v1964_v60 }
 0x411   :  { %v1982_v50 = vcombine.high %v21249_v9, %v1964_v60  ;;  %v2747_v37 = vcombine.low %v2728_v17, %v2744_v30  ;;  %v2748_v55 = vcombine.high %v2728_v17, %v2744_v30  ;;  %v5117_v40 = vcombine.low %v21212_v59, %v21223_v16  ;;  %v21351_v60 = vpop.permute.xlu0 %3381 }
 0x412   :  { %v5133_v22 = vcombine.low %v21229_v53, %v21237_v18  ;;  %v5185_v36 = vcombine.low %v21260_v14, %v21267_v8  ;;  %v5201_v19 = vcombine.low %v21284_v25, %v21292_v13  ;;  %v21340_v32 = vrot.slane %v5221_v15, %v19851_v2  ;;  %5723 = vrot.lane.b32.xlu1 %v25716_v46, %s19068_s8 }
 0x413   :  { %v21343_v9 = vrot.slane %v16962_v63, %v19851_v2  ;;  %v4218_v48 = vcombine.high %v21171_v51, %v21255_v3  ;;  %v4225_v20 = vrot.slane %v4217_v12, %v19851_v2  ;;  %17782 = vmatmul.mubr.msk.f32.vlgmr.msra.gmra.mrb[34].mxu0 %vm7965_vm1, %v2747_v37  ;;  %v5125_v33 = vrot.slane %v5117_v40, %v19870_v41 }
 0x414   :  { %17789 = vmatmul.mubr.msk.f32.vlgmr.msra.gmra.mrb[42].mxu1 %vm7965_vm1, %v2748_v55  ;;  %v5141_v39 = vrot.slane %v5133_v22, %v19870_v41  ;;  %v5193_v5 = vrot.slane %v5185_v36, %v19870_v41  ;;  %v5209_v17 = vrot.slane %v5201_v19, %v19870_v41  ;;  %v21359_v51 = vrot.slane %v1965_v28, %v19870_v41 }
 0x415   :  { %v21362_v3 = vrot.slane %v1966_v6, %v19870_v41  ;;  %v21365_v62 = vrot.slane %v1981_v61, %v19870_v41  ;;  %v21368_v30 = vrot.slane %v1982_v50, %v19870_v41  ;;  %v4232_v55 = vrot.slane %v4218_v48, %v19851_v2 }
 0x416   :  { %v5149_v15 = vcombine.low %v5125_v33, %v5141_v39  ;;  %v5217_v63 = vcombine.low %v5193_v5, %v5209_v17  ;;  %v5150_v12 = vcombine.high %v5125_v33, %v5141_v39  ;;  %v5218_v37 = vcombine.high %v5193_v5, %v5209_v17  ;;  %5771 = vrot.lane.b32.xlu1 %v25716_v46, %s19070_s11 }
 0x417   :  { %v4233_v28 = vcombine.low %v21295_v31, %v4225_v20  ;;  %v25717_v6 = vcombine.low %v20384_v24, %v20405_v0  ;;  %v25718_v50 = vcombine.high %v20384_v24, %v20405_v0  ;;  %v25719_v19 = vcombine.low %v20424_v10, %v20427_v56 }
 0x418   :  { %v18279_v22 = vpack.c.bf16 %v5217_v63, %v5149_v15  ;;  %v18285_v36 = vpack.c.bf16 %v5218_v37, %v5150_v12  ;;  %v25720_v33 = vcombine.high %v20424_v10, %v20427_v56  ;;  %v5118_v24 = vcombine.high %v21212_v59, %v21223_v16  ;;  %v21406_v15 = vpop.permute.xlu1 %3383  ;;  %v3430_v59 = vpop.permute.xlu0 %3429 }
 0x419   :  { %v21378_v61 = vrot.slane %v25717_v6, %v19851_v2  ;;  %v21384_v40 = vrot.slane %v25718_v50, %v19851_v2  ;;  %v21390_v48 = vrot.slane %v25719_v19, %v19851_v2  ;;  %v5134_v0 = vcombine.high %v21229_v53, %v21237_v18 }
 0x41a   :  { %v21396_v39 = vrot.slane %v25720_v33, %v19851_v2  ;;  %v5186_v17 = vcombine.high %v21260_v14, %v21267_v8  ;;  %v4234_v63 = vcombine.high %v21295_v31, %v4225_v20  ;;  %18281 = vmatprep.subr.msk.bf16.mxu0 %vm20396_vm2, %v18279_v22  ;;  %18287 = vmatprep.subr.msk.bf16.mxu1 %vm20396_vm2, %v18285_v36  ;;  %v25721_v14 = vld [vmem:[#allocation30_spill] sm:$0xff] }
 0x41b   :  { %v2781_v5 = vcombine.low %v21378_v61, %v21384_v40  ;;  %v5202_v56 = vcombine.high %v21284_v25, %v21292_v13  ;;  %18284 = vmatpush3.bf16.xpose.msk.msra.mxu0 %vm20396_vm2, %v18279_v22  ;;  %18290 = vmatpush3.bf16.xpose.msk.msra.mxu1 %vm20396_vm2, %v18285_v36  ;;  %v5132_v53 = vrot.slane %v5118_v24, %v19870_v41 }
 0x41c   :  { %v2797_v10 = vcombine.low %v21390_v48, %v21396_v39  ;;  %v5148_v18 = vrot.slane %v5134_v0, %v19870_v41  ;;  %v4269_v8 = vcombine.low %v25721_v14, %v21351_v60  ;;  %v5200_v25 = vrot.slane %v5186_v17, %v19870_v41  ;;  %v3432_v17 = vpop.permute.xlu1 %3431  ;;  %5721 = vrot.lane.b32.xlu1 %v25663_v58, %s19068_s8 }
 0x41d   :  { %v2789_v16 = vrot.slane %v2781_v5, %v19870_v41  ;;  %v5216_v13 = vrot.slane %v5202_v56, %v19870_v41  ;;  %v4285_v37 = vcombine.low %v21305_v7, %v3430_v59  ;;  %v4286_v6 = vcombine.high %v21305_v7, %v3430_v59 }
 0x41e   :  { %v2805_v31 = vrot.slane %v2797_v10, %v19870_v41  ;;  %v5151_v20 = vcombine.low %v5132_v53, %v5148_v18  ;;  %v5152_v12 = vcombine.high %v5132_v53, %v5148_v18  ;;  %v21434_v33 = vrot.slane %v4233_v28, %v19870_v41 }
 0x41f   :  { %v5219_v36 = vcombine.low %v5200_v25, %v5216_v13  ;;  %v5220_v19 = vcombine.high %v5200_v25, %v5216_v13  ;;  %v21437_v5 = vrot.slane %v4234_v63, %v19870_v41  ;;  %v4249_v24 = vcombine.low %v21298_v35, %v4232_v55 }
 0x420   :  { %v2813_v50 = vcombine.low %v2789_v16, %v2805_v31  ;;  %v2814_v22 = vcombine.high %v2789_v16, %v2805_v31  ;;  %v4270_v0 = vcombine.high %v25721_v14, %v21351_v60  ;;  %v4250_v10 = vcombine.high %v21298_v35, %v4232_v55  ;;  %v1048_v14 = vpop.permute.xlu0 %1047 }
 0x421   :  { %v18291_v7 = vpack.c.bf16 %v5219_v36, %v5151_v20  ;;  %v18297_v56 = vpack.c.bf16 %v5220_v19, %v5152_v12  ;;  %v21449_v28 = vrot.slane %v5237_v54, %v19851_v2  ;;  %v21455_v60 = vrot.slane %v16963_v52, %v19851_v2 }
 0x422   :  { %17795 = vmatprep.mubr.msk.f32.mxu0 %vm7965_vm1, %v2813_v50  ;;  %17802 = vmatprep.mubr.msk.f32.mxu1 %vm7965_vm1, %v2814_v22  ;;  %v4293_v35 = vrot.slane %v4285_v37, %v19851_v2  ;;  %v4300_v55 = vrot.slane %v4286_v6, %v19851_v2  ;;  %v3021_v63 = vcombine.low %v21359_v51, %v21362_v3  ;;  %v1096_v50 = vpop.permute.xlu1 %1095 }
 0x423   :  { %v16934_v54 = vcombine.high %v21359_v51, %v21362_v3  ;;  %v3037_v59 = vcombine.low %v21365_v62, %v21368_v30  ;;  %18293 = vmatprep.subr.msk.bf16.mxu0 %vm20396_vm2, %v18291_v7  ;;  %18299 = vmatprep.subr.msk.bf16.mxu1 %vm20396_vm2, %v18297_v56  ;;  %v16935_v1 = vcombine.high %v21365_v62, %v21368_v30 }
 0x424   :  { %v21474_v23 = vrot.slane %v4249_v24, %v19870_v41  ;;  %v4277_v52 = vrot.slane %v4269_v8, %v19851_v2  ;;  %v4284_v16 = vrot.slane %v4270_v0, %v19851_v2  ;;  %v4264_v53 = vrot.slane %v4250_v10, %v19870_v41  ;;  %v25724_v0 = vld [vmem:[#allocation29_spill] sm:$0xff] }
 0x425   :  { %v5289_v18 = vcombine.low %v21434_v33, %v21437_v5  ;;  %v25722_v31 = vcombine.low %v20464_v49, %v20467_v34  ;;  %v25723_v13 = vcombine.low %v20470_v29, %v20473_v38  ;;  %v2782_v19 = vcombine.high %v21378_v61, %v21384_v40 }
 0x426   :  { %v4301_v12 = vcombine.low %v4277_v52, %v4293_v35  ;;  %v4302_v8 = vcombine.high %v4277_v52, %v4293_v35  ;;  %v4317_v37 = vcombine.low %v4284_v16, %v4300_v55  ;;  %v4318_v6 = vcombine.high %v4284_v16, %v4300_v55  ;;  %v25725_v52 = vld [vmem:[#allocation46_spill] sm:$0xff] }
 0x427   :  { %v2857_v25 = vrot.slane %v25722_v31, %v19870_v41  ;;  %v2873_v20 = vrot.slane %v25723_v13, %v19870_v41  ;;  %v2798_v24 = vcombine.high %v21390_v48, %v21396_v39  ;;  %v4337_v10 = vcombine.low %v25724_v0, %v21406_v15 }
 0x428   :  { %v4338_v31 = vcombine.high %v25724_v0, %v21406_v15  ;;  %v4353_v13 = vcombine.low %v21349_v27, %v3432_v17  ;;  %v4354_v35 = vcombine.high %v21349_v27, %v3432_v17  ;;  %v2796_v55 = vrot.slane %v2782_v19, %v19870_v41 }
 0x429   :  { %v2881_v22 = vcombine.low %v2857_v25, %v2873_v20  ;;  %v2882_v36 = vcombine.high %v2857_v25, %v2873_v20  ;;  %v2812_v61 = vrot.slane %v2798_v24, %v19870_v41  ;;  %v2017_v40 = vcombine.low %v21303_v26, %v1096_v50  ;;  %v21513_v20 = vpop.permute.xlu0 %3337 }
 0x42a   :  { %v4309_v48 = vrot.slane %v4301_v12, %v19870_v41  ;;  %v4316_v39 = vrot.slane %v4302_v8, %v19870_v41  ;;  %v2001_v15 = vcombine.low %v25725_v52, %v1048_v14  ;;  %v4325_v27 = vrot.slane %v4317_v37, %v19870_v41 }
 0x42b   :  { %17796 = vmatmul.mubr.msk.f32.vlgmr.msra.gmra.mrb[36].mxu0 %vm7965_vm1, %v2881_v22  ;;  %17803 = vmatmul.mubr.msk.f32.vlgmr.msra.gmra.mrb[44].mxu1 %vm7965_vm1, %v2882_v36  ;;  %v4332_v17 = vrot.slane %v4318_v6, %v19870_v41  ;;  %v2815_v16 = vcombine.low %v2796_v55, %v2812_v61  ;;  %v2816_v25 = vcombine.high %v2796_v55, %v2812_v61 }
 0x42c   :  { %18296 = vmatpush3.bf16.xpose.msk.msra.mxu0 %vm20396_vm2, %v18291_v7  ;;  %18302 = vmatpush3.bf16.xpose.msk.msra.mxu1 %vm20396_vm2, %v18297_v56  ;;  %v16964_v12 = vcombine.high %v21434_v33, %v21437_v5  ;;  %v5305_v8 = vcombine.low %v21474_v23, %v4264_v53  ;;  %v16965_v22 = vcombine.high %v21474_v23, %v4264_v53 }
 0x42d   :  { %v4361_v7 = vrot.slane %v4353_v13, %v19851_v2  ;;  %v4345_v36 = vrot.slane %v4337_v10, %v19851_v2  ;;  %17809 = vmatprep.mubr.msk.f32.mxu0 %vm7965_vm1, %v2815_v16  ;;  %17816 = vmatprep.mubr.msk.f32.mxu1 %vm7965_vm1, %v2816_v25  ;;  %v4368_v56 = vrot.slane %v4354_v35, %v19851_v2  ;;  %v25726_v25 = vld [vmem:[#allocation32_spill] sm:$0xff] }
 0x42e   :  { %v2025_v37 = vrot.slane %v2017_v40, %v19851_v2  ;;  %v5357_v6 = vcombine.low %v4309_v48, %v4316_v39  ;;  %v16966_v19 = vcombine.high %v4309_v48, %v4316_v39  ;;  %v4352_v33 = vrot.slane %v4338_v31, %v19851_v2  ;;  %v21534_v39 = vpop.permute.xlu0 %3385 }
 0x42f   :  { %v2002_v5 = vcombine.high %v25725_v52, %v1048_v14  ;;  %v5373_v24 = vcombine.low %v4325_v27, %v4332_v17  ;;  %v16967_v23 = vcombine.high %v4325_v27, %v4332_v17  ;;  %v2009_v53 = vrot.slane %v2001_v15, %v19851_v2 }
 0x430   :  { %v2018_v0 = vcombine.high %v21303_v26, %v1096_v50  ;;  %v5296_v10 = vrot.slane %v5289_v18, %v19851_v2  ;;  %v5304_v13 = vrot.slane %v16964_v12, %v19851_v2  ;;  %v21532_v35 = vrot.slane %v5305_v8, %v19851_v2 }
 0x431   :  { %v4369_v55 = vcombine.low %v4345_v36, %v4361_v7  ;;  %v4370_v61 = vcombine.high %v4345_v36, %v4361_v7  ;;  %v4385_v40 = vcombine.low %v4352_v33, %v4368_v56  ;;  %v4386_v48 = vcombine.high %v4352_v33, %v4368_v56 }
 0x432   :  { %v2033_v31 = vcombine.low %v2009_v53, %v2025_v37  ;;  %v5320_v14 = vrot.slane %v16965_v22, %v19851_v2  ;;  %v21538_v52 = vrot.slane %v5357_v6, %v19851_v2  ;;  %v21541_v26 = vrot.slane %v2002_v5, %v19851_v2 }
 0x433   :  { %v2034_v18 = vcombine.high %v2009_v53, %v2025_v37  ;;  %v21544_v50 = vrot.slane %v16966_v19, %v19851_v2  ;;  %v21547_v15 = vrot.slane %v5373_v24, %v19851_v2  ;;  %v21550_v27 = vrot.slane %v16967_v23, %v19851_v2 }
 0x434   :  { %v21553_v17 = vrot.slane %v2018_v0, %v19851_v2  ;;  %v21556_v16 = vrot.slane %v4369_v55, %v19870_v41  ;;  %v4405_v12 = vcombine.low %v25726_v25, %v21534_v39  ;;  %v25727_v8 = vcombine.high %v20464_v49, %v20467_v34 }
 0x435   :  { %v25728_v7 = vcombine.high %v20470_v29, %v20473_v38  ;;  %v21569_v56 = vrot.slane %v4370_v61, %v19870_v41  ;;  %v21572_v37 = vrot.slane %v4385_v40, %v19870_v41  ;;  %v21575_v6 = vrot.slane %v4386_v48, %v19870_v41 }
 0x436   :  { %v2864_v22 = vrot.slane %v25727_v8, %v19870_v41  ;;  %v21578_v19 = vrot.slane %v2033_v31, %v19870_v41  ;;  %v21581_v49 = vrot.slane %v2034_v18, %v19870_v41  ;;  %v5253_v29 = vcombine.low %v21340_v32, %v21343_v9  ;;  %v25731_v18 = vld [vmem:[#allocation39_spill] sm:$0xff] }
 0x437   :  { %v2880_v36 = vrot.slane %v25728_v7, %v19870_v41  ;;  %v2049_v38 = vcombine.low %v21541_v26, %v21553_v17  ;;  %v2050_v5 = vcombine.high %v21541_v26, %v21553_v17  ;;  %v5269_v24 = vcombine.low %v21449_v28, %v21455_v60 }
 0x438   :  { %v5321_v23 = vcombine.low %v5296_v10, %v5304_v13  ;;  %v5261_v53 = vrot.slane %v5253_v29, %v19870_v41  ;;  %v5337_v0 = vcombine.low %v21532_v35, %v5320_v14  ;;  %v25729_v55 = vcombine.low %v20670_v57, %v20673_v45 }
 0x439   :  { %v2883_v34 = vcombine.low %v2864_v22, %v2880_v36  ;;  %v2884_v33 = vcombine.high %v2864_v22, %v2880_v36  ;;  %v5277_v40 = vrot.slane %v5269_v24, %v19870_v41  ;;  %v25730_v31 = vcombine.high %v20670_v57, %v20673_v45 }
 0x43a   :  { %v21599_v61 = vrot.slane %v25729_v55, %v19851_v2  ;;  %v5329_v48 = vrot.slane %v5321_v23, %v19870_v41  ;;  %v25732_v17 = vcombine.low %v20676_v21, %v25731_v18  ;;  %v5345_v22 = vrot.slane %v5337_v0, %v19870_v41  ;;  %v21628_v23 = vpop.permute.xlu1 %3339  ;;  %v3434_v0 = vpop.permute.xlu0 %3433 }
 0x43b   :  { %17810 = vmatmul.mubr.msk.f32.vlgmr.msra.gmra.mrb[38].mxu0 %vm7965_vm1, %v2883_v34  ;;  %17817 = vmatmul.mubr.msk.f32.vlgmr.msra.gmra.mrb[46].mxu1 %vm7965_vm1, %v2884_v33  ;;  %v21607_v26 = vrot.slane %v25730_v31, %v19851_v2  ;;  %v25733_v7 = vcombine.high %v20676_v21, %v25731_v18  ;;  %v5254_v34 = vcombine.high %v21340_v32, %v21343_v9 }
 0x43c   :  { %v21613_v8 = vrot.slane %v25732_v17, %v19851_v2  ;;  %v5270_v57 = vcombine.high %v21449_v28, %v21455_v60  ;;  %v5285_v45 = vcombine.low %v5261_v53, %v5277_v40  ;;  %v5286_v33 = vcombine.high %v5261_v53, %v5277_v40 }
 0x43d   :  { %v21620_v36 = vrot.slane %v25733_v7, %v19851_v2  ;;  %v2917_v29 = vcombine.low %v21599_v61, %v21607_v26  ;;  %v5322_v24 = vcombine.high %v5296_v10, %v5304_v13  ;;  %v5353_v55 = vcombine.low %v5329_v48, %v5345_v22 }
 0x43e   :  { %v5354_v31 = vcombine.high %v5329_v48, %v5345_v22  ;;  %v5268_v18 = vrot.slane %v5254_v34, %v19870_v41  ;;  %v5284_v9 = vrot.slane %v5270_v57, %v19870_v41  ;;  %v5338_v60 = vcombine.high %v21532_v35, %v5320_v14 }
 0x43f   :  { %v2933_v21 = vcombine.low %v21613_v8, %v21620_v36  ;;  %v2925_v32 = vrot.slane %v2917_v29, %v19870_v41  ;;  %v5336_v28 = vrot.slane %v5322_v24, %v19870_v41  ;;  %v18303_v53 = vpack.c.bf16 %v5353_v55, %v5285_v45  ;;  %v21653_v45 = vpop.permute.xlu1 %3387  ;;  %v21662_v55 = vpop.permute.xlu0 %1001 }
 0x440   :  { %v18309_v10 = vpack.c.bf16 %v5354_v31, %v5286_v33  ;;  %v4421_v40 = vcombine.low %v21513_v20, %v3434_v0  ;;  %v5425_v48 = vcombine.low %v21556_v16, %v21569_v56  ;;  %v16968_v17 = vcombine.high %v21556_v16, %v21569_v56 }
 0x441   :  { %v2941_v13 = vrot.slane %v2933_v21, %v19870_v41  ;;  %v5287_v22 = vcombine.low %v5268_v18, %v5284_v9  ;;  %v5352_v7 = vrot.slane %v5338_v60, %v19870_v41  ;;  %18305 = vmatprep.subr.msk.bf16.mxu0 %vm20396_vm2, %v18303_v53  ;;  %v5288_v34 = vcombine.high %v5268_v18, %v5284_v9 }
 0x442   :  { %18311 = vmatprep.subr.msk.bf16.mxu1 %vm20396_vm2, %v18309_v10  ;;  %18308 = vmatpush3.bf16.xpose.msk.msra.mxu0 %vm20396_vm2, %v18303_v53  ;;  %v4422_v56 = vcombine.high %v21513_v20, %v3434_v0  ;;  %v3089_v33 = vcombine.low %v21578_v19, %v21581_v49  ;;  %v16936_v29 = vcombine.high %v21578_v19, %v21581_v49 }
 0x443   :  { %v2949_v35 = vcombine.low %v2925_v32, %v2941_v13  ;;  %v2950_v14 = vcombine.high %v2925_v32, %v2941_v13  ;;  %18314 = vmatpush3.bf16.xpose.msk.msra.mxu1 %vm20396_vm2, %v18309_v10  ;;  %v5355_v57 = vcombine.low %v5336_v28, %v5352_v7  ;;  %v5356_v16 = vcombine.high %v5336_v28, %v5352_v7 }
 0x444   :  { %v4429_v24 = vrot.slane %v4421_v40, %v19851_v2  ;;  %v5441_v31 = vcombine.low %v21572_v37, %v21575_v6  ;;  %v4406_v20 = vcombine.high %v25726_v25, %v21534_v39  ;;  %v16969_v18 = vcombine.high %v21572_v37, %v21575_v6  ;;  %v3436_v40 = vpop.permute.xlu1 %3435 }
 0x445   :  { %17823 = vmatprep.mubr.msk.f32.mxu0 %vm7965_vm1, %v2949_v35  ;;  %17830 = vmatprep.mubr.msk.f32.mxu1 %vm7965_vm1, %v2950_v14  ;;  %v18315_v0 = vpack.c.bf16 %v5355_v57, %v5287_v22  ;;  %v18321_v21 = vpack.c.bf16 %v5356_v16, %v5288_v34  ;;  %v2057_v19 = vrot.slane %v2049_v38, %v19870_v41  ;;  %v1098_v14 = vpop.permute.xlu0 %1097  ;;  %v25736_v57 = vld [vmem:[#allocation31_spill] sm:$0xff] }
 0x446   :  { %v2064_v49 = vrot.slane %v2050_v5, %v19870_v41  ;;  %v4413_v32 = vrot.slane %v4405_v12, %v19851_v2  ;;  %v21677_v9 = vrot.slane %v5425_v48, %v19851_v2  ;;  %v4436_v37 = vrot.slane %v4422_v56, %v19851_v2 }
 0x447   :  { %18317 = vmatprep.subr.msk.bf16.mxu0 %vm20396_vm2, %v18315_v0  ;;  %18323 = vmatprep.subr.msk.bf16.mxu1 %vm20396_vm2, %v18321_v21  ;;  %v25734_v6 = vcombine.low %v21013_v11, %v21016_v44  ;;  %v21689_v5 = vrot.slane %v3089_v33, %v19851_v2  ;;  %v21692_v39 = vrot.slane %v16936_v29, %v19851_v2 }
 0x448   :  { %v4437_v25 = vcombine.low %v4413_v32, %v4429_v24  ;;  %v25735_v12 = vcombine.low %v21044_v43, %v21047_v4  ;;  %v4420_v60 = vrot.slane %v4406_v20, %v19851_v2  ;;  %v4438_v53 = vcombine.high %v4413_v32, %v4429_v24 }
 0x449   :  { %v2993_v38 = vrot.slane %v25734_v6, %v19870_v41  ;;  %v2918_v10 = vcombine.high %v21599_v61, %v21607_v26  ;;  %v2934_v13 = vcombine.high %v21613_v8, %v21620_v36  ;;  %v3105_v48 = vcombine.low %v2057_v19, %v2064_v49 }
 0x44a   :  { %v3009_v28 = vrot.slane %v25735_v12, %v19870_v41  ;;  %v16937_v22 = vcombine.high %v2057_v19, %v2064_v49  ;;  %v4453_v34 = vcombine.low %v4420_v60, %v4436_v37  ;;  %v4473_v16 = vcombine.low %v25736_v57, %v21653_v45 }
 0x44b   :  { %v2932_v56 = vrot.slane %v2918_v10, %v19870_v41  ;;  %v2948_v33 = vrot.slane %v2934_v13, %v19870_v41  ;;  %v4445_v29 = vrot.slane %v4437_v25, %v19870_v41  ;;  %v4454_v61 = vcombine.high %v4420_v60, %v4436_v37 }
 0x44c   :  { %v3017_v7 = vcombine.low %v2993_v38, %v3009_v28  ;;  %v3018_v35 = vcombine.high %v2993_v38, %v3009_v28  ;;  %v4489_v26 = vcombine.low %v21628_v23, %v3436_v40  ;;  %v4452_v8 = vrot.slane %v4438_v53, %v19870_v41  ;;  %v21745_v38 = vpop.permute.xlu0 %1051 }
 0x44d   :  { %v2951_v36 = vcombine.low %v2932_v56, %v2948_v33  ;;  %v2952_v24 = vcombine.high %v2932_v56, %v2948_v33  ;;  %v21717_v20 = vrot.slane %v16968_v17, %v19851_v2  ;;  %v21720_v19 = vrot.slane %v5441_v31, %v19851_v2 }
 0x44e   :  { %17824 = vmatmul.mubr.msk.f32.vlgmr.msra.gmra.mrb[40].mxu0 %vm7965_vm1, %v3017_v7  ;;  %17831 = vmatmul.mubr.msk.f32.vlgmr.msra.gmra.mrb[48].mxu1 %vm7965_vm1, %v3018_v35  ;;  %v21723_v49 = vrot.slane %v16969_v18, %v19851_v2  ;;  %v4490_v32 = vcombine.high %v21628_v23, %v3436_v40  ;;  %v21727_v37 = vrot.slane %v3105_v48, %v19851_v2  ;;  %v25737_v40 = vld [vmem:[#allocation48_spill] sm:$0xff]  ;;  %v25738_v35 = vld [vmem:[#allocation47_spill] sm:$0xff] }
 0x44f   :  { %18320 = vmatpush3.bf16.xpose.msk.msra.mxu0 %vm20396_vm2, %v18315_v0  ;;  %18326 = vmatpush3.bf16.xpose.msk.msra.mxu1 %vm20396_vm2, %v18321_v21  ;;  %v21730_v0 = vrot.slane %v16937_v22, %v19851_v2  ;;  %v4497_v17 = vrot.slane %v4489_v26, %v19851_v2  ;;  %v1050_v21 = vpop.permute.xlu1 %1049  ;;  %v3121_v31 = vcombine.low %v21689_v5, %v21692_v39 }
 0x450   :  { %17837 = vmatprep.mubr.msk.f32.mxu0 %vm7965_vm1, %v2951_v36  ;;  %17844 = vmatprep.mubr.msk.f32.mxu1 %vm7965_vm1, %v2952_v24  ;;  %v21738_v18 = vrot.slane %v4453_v34, %v19870_v41  ;;  %v21741_v23 = vrot.slane %v4454_v61, %v19870_v41  ;;  %v4474_v6 = vcombine.high %v25736_v57, %v21653_v45 }
 0x451   :  { %v5493_v25 = vcombine.low %v4445_v29, %v4452_v8  ;;  %v16970_v12 = vcombine.high %v4445_v29, %v4452_v8  ;;  %v4481_v28 = vrot.slane %v4473_v16, %v19851_v2  ;;  %v2085_v60 = vcombine.low %v21662_v55, %v1098_v14 }
 0x452   :  { %v3122_v53 = vcombine.high %v21689_v5, %v21692_v39  ;;  %v21752_v10 = vrot.slane %v4490_v32, %v19851_v2  ;;  %v2086_v13 = vcombine.high %v21662_v55, %v1098_v14  ;;  %v2069_v48 = vcombine.low %v25737_v40, %v1050_v21 }
 0x453   :  { %v3137_v45 = vcombine.low %v21727_v37, %v21730_v0  ;;  %v4505_v22 = vcombine.low %v4481_v28, %v4497_v17  ;;  %v2070_v7 = vcombine.high %v25737_v40, %v1050_v21  ;;  %v2137_v34 = vcombine.low %v25738_v35, %v21745_v38 }
 0x454   :  { %v3138_v57 = vcombine.high %v21727_v37, %v21730_v0  ;;  %v5509_v16 = vcombine.low %v21738_v18, %v21741_v23  ;;  %v21766_v56 = vrot.slane %v4474_v6, %v19851_v2  ;;  %v4506_v55 = vcombine.high %v4481_v28, %v4497_v17 }
 0x455   :  { %v21769_v14 = vrot.slane %v5493_v25, %v19851_v2  ;;  %v21772_v33 = vrot.slane %v16970_v12, %v19851_v2  ;;  %v16971_v29 = vcombine.high %v21738_v18, %v21741_v23  ;;  %v21777_v61 = vrot.slane %v2085_v60, %v19851_v2  ;;  %v1004_v25 = vpop.permute.xlu1 %1003 }
 0x456   :  { %v4521_v26 = vcombine.low %v21766_v56, %v21752_v10  ;;  %v4522_v8 = vcombine.high %v21766_v56, %v21752_v10  ;;  %v21784_v36 = vrot.slane %v2086_v13, %v19851_v2  ;;  %v21787_v24 = vrot.slane %v2069_v48, %v19851_v2 }
 0x457   :  { %v21790_v32 = vrot.slane %v4505_v22, %v19870_v41  ;;  %v21793_v17 = vrot.slane %v2070_v7, %v19851_v2  ;;  %v2138_v21 = vcombine.high %v25738_v35, %v21745_v38  ;;  %v21798_v6 = vrot.slane %v2137_v34, %v19851_v2 }
 0x458   :  { %v21801_v12 = vrot.slane %v4506_v55, %v19870_v41  ;;  %v25739_v28 = vcombine.high %v21013_v11, %v21016_v44  ;;  %v25740_v10 = vcombine.high %v21044_v43, %v21047_v4  ;;  %v5389_v40 = vcombine.low %v21538_v52, %v21544_v50 }
 0x459   :  { %v5405_v48 = vcombine.low %v21547_v15, %v21550_v27  ;;  %v5457_v22 = vcombine.low %v21677_v9, %v21717_v20  ;;  %v5473_v7 = vcombine.low %v21720_v19, %v21723_v49  ;;  %v21823_v11 = vrot.slane %v3021_v63, %v19851_v2 }
 0x45a   :  { %v3000_v60 = vrot.slane %v25739_v28, %v19870_v41  ;;  %v3016_v13 = vrot.slane %v25740_v10, %v19870_v41  ;;  %v5397_v4 = vrot.slane %v5389_v40, %v19870_v41  ;;  %v21830_v34 = vrot.slane %v16934_v54, %v19851_v2  ;;  %v1100_v40 = vpop.permute.xlu1 %1099 }
 0x45b   :  { %v5413_v56 = vrot.slane %v5405_v48, %v19870_v41  ;;  %v5465_v55 = vrot.slane %v5457_v22, %v19870_v41  ;;  %v5481_v28 = vrot.slane %v5473_v7, %v19870_v41  ;;  %v21839_v63 = vrot.slane %v3037_v59, %v19851_v2 }
 0x45c   :  { %v3019_v44 = vcombine.low %v3000_v60, %v3016_v13  ;;  %v3020_v43 = vcombine.high %v3000_v60, %v3016_v13  ;;  %v21847_v51 = vrot.slane %v16935_v1, %v19851_v2  ;;  %v3053_v3 = vcombine.low %v21823_v11, %v21830_v34 }
 0x45d   :  { %v5390_v54 = vcombine.high %v21538_v52, %v21544_v50  ;;  %v5421_v60 = vcombine.low %v5397_v4, %v5413_v56  ;;  %v5489_v10 = vcombine.low %v5465_v55, %v5481_v28  ;;  %v5422_v59 = vcombine.high %v5397_v4, %v5413_v56 }
 0x45e   :  { %17838 = vmatmul.mubr.msk.f32.vlgmr.msra.gmra.mrb[42].mxu0 %vm7965_vm1, %v3019_v44  ;;  %17845 = vmatmul.mubr.msk.f32.vlgmr.msra.gmra.mrb[50].mxu1 %vm7965_vm1, %v3020_v43  ;;  %v5490_v13 = vcombine.high %v5465_v55, %v5481_v28  ;;  %v3061_v48 = vrot.slane %v3053_v3, %v19870_v41  ;;  %v3069_v22 = vcombine.low %v21839_v63, %v21847_v51 }
 0x45f   :  { %v5404_v62 = vrot.slane %v5390_v54, %v19870_v41  ;;  %v5406_v30 = vcombine.high %v21547_v15, %v21550_v27  ;;  %v18327_v1 = vpack.c.bf16 %v5489_v10, %v5421_v60  ;;  %v5458_v52 = vcombine.high %v21677_v9, %v21717_v20 }
 0x460   :  { %v18333_v7 = vpack.c.bf16 %v5490_v13, %v5422_v59  ;;  %v5474_v50 = vcombine.high %v21720_v19, %v21723_v49  ;;  %v3077_v44 = vrot.slane %v3069_v22, %v19870_v41  ;;  %v2153_v4 = vcombine.low %v1004_v25, %v1100_v40 }
 0x461   :  { %v5420_v43 = vrot.slane %v5406_v30, %v19870_v41  ;;  %v2154_v56 = vcombine.high %v1004_v25, %v1100_v40  ;;  %v21866_v55 = vrot.slane %v4521_v26, %v19870_v41  ;;  %18329 = vmatprep.subr.msk.bf16.mxu0 %vm20396_vm2, %v18327_v1  ;;  %v5472_v15 = vrot.slane %v5458_v52, %v19870_v41 }
 0x462   :  { %18335 = vmatprep.subr.msk.bf16.mxu1 %vm20396_vm2, %v18333_v7  ;;  %v5488_v27 = vrot.slane %v5474_v50, %v19870_v41  ;;  %18332 = vmatpush3.bf16.xpose.msk.msra.mxu0 %vm20396_vm2, %v18327_v1  ;;  %v3085_v9 = vcombine.low %v3061_v48, %v3077_v44  ;;  %v3086_v20 = vcombine.high %v3061_v48, %v3077_v44 }
 0x463   :  { %18338 = vmatpush3.bf16.xpose.msk.msra.mxu1 %vm20396_vm2, %v18333_v7  ;;  %v5423_v19 = vcombine.low %v5404_v62, %v5420_v43  ;;  %v5424_v26 = vcombine.high %v5404_v62, %v5420_v43  ;;  %v2161_v28 = vrot.slane %v2153_v4, %v19851_v2  ;;  %v4536_v3 = vrot.slane %v4522_v8, %v19870_v41 }
 0x464   :  { %v5491_v49 = vcombine.low %v5472_v15, %v5488_v27  ;;  %v5492_v25 = vcombine.high %v5472_v15, %v5488_v27  ;;  %v2101_v54 = vcombine.low %v21787_v24, %v21777_v61  ;;  %17851 = vmatprep.mubr.msk.f32.mxu0 %vm7965_vm1, %v3085_v9  ;;  %17858 = vmatprep.mubr.msk.f32.mxu1 %vm7965_vm1, %v3086_v20 }
 0x465   :  { %v2168_v60 = vrot.slane %v2154_v56, %v19851_v2  ;;  %v2169_v13 = vcombine.low %v21798_v6, %v2161_v28  ;;  %v2170_v40 = vcombine.high %v21798_v6, %v2161_v28  ;;  %v2102_v48 = vcombine.high %v21787_v24, %v21777_v61 }
 0x466   :  { %v18339_v10 = vpack.c.bf16 %v5491_v49, %v5423_v19  ;;  %v18345_v59 = vpack.c.bf16 %v5492_v25, %v5424_v26  ;;  %v2117_v8 = vcombine.low %v21793_v17, %v21784_v36  ;;  %v2152_v22 = vrot.slane %v2138_v21, %v19851_v2 }
 0x467   :  { %v3129_v62 = vrot.slane %v3121_v31, %v19870_v41  ;;  %v5561_v30 = vcombine.low %v21790_v32, %v21801_v12  ;;  %v2118_v6 = vcombine.high %v21793_v17, %v21784_v36  ;;  %v3145_v38 = vrot.slane %v3137_v45, %v19870_v41  ;;  %v21920_v45 = vpop.permute.xlu0 %5645 }
 0x468   :  { %18341 = vmatprep.subr.msk.bf16.mxu0 %vm20396_vm2, %v18339_v10  ;;  %18347 = vmatprep.subr.msk.bf16.mxu1 %vm20396_vm2, %v18345_v59  ;;  %v2185_v35 = vcombine.low %v2152_v22, %v2168_v60  ;;  %v2186_v61 = vcombine.high %v2152_v22, %v2168_v60  ;;  %v3054_v31 = vcombine.high %v21823_v11, %v21830_v34  ;;  %v21924_v34 = vpop.permute.xlu1 %5647  ;;  %v25741_v22 = vld [vmem:[#allocation50_spill] sm:$0xff] }
 0x469   :  { %v3070_v24 = vcombine.high %v21839_v63, %v21847_v51  ;;  %v2177_v36 = vrot.slane %v2169_v13, %v19870_v41  ;;  %v2184_v17 = vrot.slane %v2170_v40, %v19870_v41  ;;  %v3153_v21 = vcombine.low %v3129_v62, %v3145_v38 }
 0x46a   :  { %v3154_v1 = vcombine.high %v3129_v62, %v3145_v38  ;;  %v16972_v7 = vcombine.high %v21790_v32, %v21801_v12  ;;  %v5577_v52 = vcombine.low %v21866_v55, %v4536_v3  ;;  %v3068_v50 = vrot.slane %v3054_v31, %v19870_v41 }
 0x46b   :  { %v3084_v11 = vrot.slane %v3070_v24, %v19870_v41  ;;  %v16973_v63 = vcombine.high %v21866_v55, %v4536_v3  ;;  %v2109_v51 = vrot.slane %v2101_v54, %v19870_v41  ;;  %v2116_v44 = vrot.slane %v2102_v48, %v19870_v41  ;;  %17852 = vmatmul.mubr.msk.f32.vlgmr.msra.gmra.mrb[44].mxu0 %vm7965_vm1, %v3153_v21  ;;  %v21963_v28 = vpop.permute.xlu0 %5741 }
 0x46c   :  { %17859 = vmatmul.mubr.msk.f32.vlgmr.msra.gmra.mrb[52].mxu1 %vm7965_vm1, %v3154_v1  ;;  %v2193_v32 = vrot.slane %v2185_v35, %v19870_v41  ;;  %v2200_v12 = vrot.slane %v2186_v61, %v19870_v41  ;;  %18344 = vmatpush3.bf16.xpose.msk.msra.mxu0 %vm20396_vm2, %v18339_v10  ;;  %v5516_v4 = vrot.slane %v5509_v16, %v19851_v2  ;;  %v21965_v3 = vpop.permute.xlu1 %5693 }
 0x46d   :  { %v3087_v43 = vcombine.low %v3068_v50, %v3084_v11  ;;  %18350 = vmatpush3.bf16.xpose.msk.msra.mxu1 %vm20396_vm2, %v18345_v59  ;;  %v3225_v56 = vcombine.low %v2177_v36, %v2184_v17  ;;  %v16940_v55 = vcombine.high %v2177_v36, %v2184_v17  ;;  %v3088_v15 = vcombine.high %v3068_v50, %v3084_v11 }
 0x46e   :  { %v5524_v27 = vrot.slane %v16971_v29, %v19851_v2  ;;  %v21946_v9 = vrot.slane %v5561_v30, %v19851_v2  ;;  %v2125_v20 = vrot.slane %v2117_v8, %v19870_v41  ;;  %v2132_v19 = vrot.slane %v2118_v6, %v19870_v41 }
 0x46f   :  { %17865 = vmatprep.mubr.msk.f32.mxu0 %vm7965_vm1, %v3087_v43  ;;  %v5576_v49 = vrot.slane %v16972_v7, %v19851_v2  ;;  %v5584_v16 = vrot.slane %v5577_v52, %v19851_v2  ;;  %17872 = vmatprep.mubr.msk.f32.mxu1 %vm7965_vm1, %v3088_v15  ;;  %v3136_v18 = vrot.slane %v3122_v53, %v19870_v41 }
 0x470   :  { %v3152_v23 = vrot.slane %v3138_v57, %v19870_v41  ;;  %v5592_v29 = vrot.slane %v16973_v63, %v19851_v2  ;;  %v3157_v26 = vcombine.low %v2109_v51, %v2116_v44  ;;  %v3241_v25 = vcombine.low %v2193_v32, %v2200_v12  ;;  %v22006_v1 = vpop.permute.xlu1 %5695 }
 0x471   :  { %v5525_v54 = vcombine.low %v21769_v14, %v21772_v33  ;;  %v21970_v60 = vrot.slane %v3225_v56, %v19851_v2  ;;  %v21973_v5 = vrot.slane %v16940_v55, %v19851_v2  ;;  %v16941_v39 = vcombine.high %v2193_v32, %v2200_v12 }
 0x472   :  { %v3155_v37 = vcombine.low %v3136_v18, %v3152_v23  ;;  %v16938_v0 = vcombine.high %v2109_v51, %v2116_v44  ;;  %v3173_v53 = vcombine.low %v2125_v20, %v2132_v19  ;;  %v16939_v57 = vcombine.high %v2125_v20, %v2132_v19 }
 0x473   :  { %v3156_v10 = vcombine.high %v3136_v18, %v3152_v23  ;;  %v5805_v59 = vcombine.low %v21920_v45, %v21963_v28  ;;  %v5533_v13 = vrot.slane %v5525_v54, %v19870_v41  ;;  %v5541_v40 = vcombine.low %v5516_v4, %v5524_v27 }
 0x474   :  { %17866 = vmatmul.mubr.msk.f32.vlgmr.msra.gmra.mrb[46].mxu0 %vm7965_vm1, %v3155_v37  ;;  %v5593_v48 = vcombine.low %v21946_v9, %v5576_v49  ;;  %v21981_v8 = vrot.slane %v3241_v25, %v19851_v2  ;;  %v5789_v62 = vcombine.low %v25741_v22, %v21965_v3  ;;  %v5609_v30 = vcombine.low %v5584_v16, %v5592_v29  ;;  %v22010_v63 = vpop.f32.mrb[24].mxu1 }
 0x475   :  { %17873 = vmatmul.mubr.msk.f32.vlgmr.msra.gmra.mrb[54].mxu1 %vm7965_vm1, %v3156_v10  ;;  %v21987_v6 = vrot.slane %v3157_v26, %v19851_v2  ;;  %v21990_v38 = vrot.slane %v16941_v39, %v19851_v2  ;;  %v3257_v35 = vcombine.low %v21970_v60, %v21973_v5  ;;  %v5549_v61 = vrot.slane %v5541_v40, %v19870_v41  ;;  %v22016_v43 = vpop.f32.mrb[25].mxu1 }
 0x476   :  { %v5601_v31 = vrot.slane %v5593_v48, %v19870_v41  ;;  %v5617_v24 = vrot.slane %v5609_v30, %v19870_v41  ;;  %v21998_v36 = vrot.slane %v16938_v0, %v19851_v2  ;;  %v22001_v17 = vrot.slane %v3173_v53, %v19851_v2  ;;  %v25742_v48 = vld [vmem:[#allocation49_spill] sm:$0xff] }
 0x477   :  { %v22004_v21 = vrot.slane %v16939_v57, %v19851_v2  ;;  %v5557_v7 = vcombine.low %v5533_v13, %v5549_v61  ;;  %v5558_v52 = vcombine.high %v5533_v13, %v5549_v61  ;;  %v5526_v50 = vcombine.high %v21769_v14, %v21772_v33 }
 0x478   :  { %v5542_v11 = vcombine.high %v5516_v4, %v5524_v27  ;;  %v5625_v51 = vcombine.low %v5601_v31, %v5617_v24  ;;  %v5626_v44 = vcombine.high %v5601_v31, %v5617_v24  ;;  %v3189_v32 = vcombine.low %v21987_v6, %v21998_v36 }
 0x479   :  { %v3205_v12 = vcombine.low %v22001_v17, %v22004_v21  ;;  %v5540_v56 = vrot.slane %v5526_v50, %v19870_v41  ;;  %v5594_v15 = vcombine.high %v21946_v9, %v5576_v49  ;;  %v5610_v14 = vcombine.high %v5584_v16, %v5592_v29  ;;  %v5744_v29 = vpop.permute.xlu1 %5743 }
 0x47a   :  { %v5556_v55 = vrot.slane %v5542_v11, %v19870_v41  ;;  %v18351_v33 = vpack.c.bf16 %v5625_v51, %v5557_v7  ;;  %v18357_v4 = vpack.c.bf16 %v5626_v44, %v5558_v52  ;;  %v3197_v27 = vrot.slane %v3189_v32, %v19870_v41 }
 0x47b   :  { %v3213_v20 = vrot.slane %v3205_v12, %v19870_v41  ;;  %v3273_v19 = vcombine.low %v21981_v8, %v21990_v38  ;;  %v5790_v18 = vcombine.high %v25741_v22, %v21965_v3  ;;  %v5608_v23 = vrot.slane %v5594_v15, %v19870_v41 }
 0x47c   :  { %v5624_v26 = vrot.slane %v5610_v14, %v19870_v41  ;;  %18353 = vmatprep.subr.msk.bf16.mxu0 %vm20396_vm2, %v18351_v33  ;;  %18359 = vmatprep.subr.msk.bf16.mxu1 %vm20396_vm2, %v18357_v4  ;;  %v5559_v16 = vcombine.low %v5540_v56, %v5556_v55  ;;  %v5560_v3 = vcombine.high %v5540_v56, %v5556_v55  ;;  %v22043_v10 = vpop.f32.mrb[26].mxu1 }
 0x47d   :  { %v3221_v9 = vcombine.low %v3197_v27, %v3213_v20  ;;  %v3222_v49 = vcombine.high %v3197_v27, %v3213_v20  ;;  %18356 = vmatpush3.bf16.xpose.msk.msra.mxu0 %vm20396_vm2, %v18351_v33  ;;  %18362 = vmatpush3.bf16.xpose.msk.msra.mxu1 %vm20396_vm2, %v18357_v4  ;;  %v5806_v39 = vcombine.high %v21920_v45, %v21963_v28  ;;  %v22050_v28 = vpop.f32.mrb[27].mxu1 }
 0x47e   :  { %v5627_v25 = vcombine.low %v5608_v23, %v5624_v26  ;;  %v5628_v54 = vcombine.high %v5608_v23, %v5624_v26  ;;  %v5797_v37 = vrot.slane %v5789_v62, %v19851_v2  ;;  %v5873_v57 = vcombine.low %v21924_v34, %v5744_v29 }
 0x47f   :  { %17879 = vmatprep.mubr.msk.f32.mxu0 %vm7965_vm1, %v3221_v9  ;;  %17886 = vmatprep.mubr.msk.f32.mxu1 %vm7965_vm1, %v3222_v49  ;;  %v5813_v13 = vrot.slane %v5805_v59, %v19851_v2  ;;  %v5804_v40 = vrot.slane %v5790_v18, %v19851_v2  ;;  %v5857_v22 = vcombine.low %v25742_v48, %v22006_v1 }
 0x480   :  { %v18363_v0 = vpack.c.bf16 %v5627_v25, %v5559_v16  ;;  %v18369_v53 = vpack.c.bf16 %v5628_v54, %v5560_v3  ;;  %v3265_v45 = vrot.slane %v3257_v35, %v19870_v41  ;;  %v5874_v62 = vcombine.high %v21924_v34, %v5744_v29 }
 0x481   :  { %v3281_v30 = vrot.slane %v3273_v19, %v19870_v41  ;;  %v3190_v59 = vcombine.high %v21987_v6, %v21998_v36  ;;  %v3258_v61 = vcombine.high %v21970_v60, %v21973_v5  ;;  %v5820_v35 = vrot.slane %v5806_v39, %v19851_v2 }
 0x482   :  { %18365 = vmatprep.subr.msk.bf16.mxu0 %vm20396_vm2, %v18363_v0  ;;  %18371 = vmatprep.subr.msk.bf16.mxu1 %vm20396_vm2, %v18369_v53  ;;  %v5821_v31 = vcombine.low %v5797_v37, %v5813_v13  ;;  %v5822_v24 = vcombine.high %v5797_v37, %v5813_v13  ;;  %v5858_v7 = vcombine.high %v25742_v48, %v22006_v1 }
 0x483   :  { %v5881_v52 = vrot.slane %v5873_v57, %v19851_v2  ;;  %v3289_v50 = vcombine.low %v3265_v45, %v3281_v30  ;;  %v3290_v11 = vcombine.high %v3265_v45, %v3281_v30  ;;  %v3274_v34 = vcombine.high %v21981_v8, %v21990_v38 }
 0x484   :  { %v5837_v51 = vcombine.low %v5804_v40, %v5820_v35  ;;  %v5838_v44 = vcombine.high %v5804_v40, %v5820_v35  ;;  %v5865_v6 = vrot.slane %v5857_v22, %v19851_v2  ;;  %v5888_v60 = vrot.slane %v5874_v62, %v19851_v2 }
 0x485   :  { %17880 = vmatmul.mubr.msk.f32.vlgmr.msra.gmra.mrb[48].mxu0 %vm7965_vm1, %v3289_v50  ;;  %17887 = vmatmul.mubr.msk.f32.vlgmr.msra.gmra.mrb[56].mxu1 %vm7965_vm1, %v3290_v11  ;;  %v3204_v5 = vrot.slane %v3190_v59, %v19870_v41  ;;  %v3206_v36 = vcombine.high %v22001_v17, %v22004_v21  ;;  %v5829_v1 = vrot.slane %v5821_v31, %v19870_v41 }
 0x486   :  { %v5836_v32 = vrot.slane %v5822_v24, %v19870_v41  ;;  %18368 = vmatpush3.bf16.xpose.msk.msra.mxu0 %vm20396_vm2, %v18363_v0  ;;  %v5872_v8 = vrot.slane %v5858_v7, %v19851_v2  ;;  %v5889_v38 = vcombine.low %v5865_v6, %v5881_v52  ;;  %v5890_v12 = vcombine.high %v5865_v6, %v5881_v52 }
 0x487   :  { %18374 = vmatpush3.bf16.xpose.msk.msra.mxu1 %vm20396_vm2, %v18369_v53  ;;  %v3220_v56 = vrot.slane %v3206_v36, %v19870_v41  ;;  %v5845_v55 = vrot.slane %v5837_v51, %v19870_v41  ;;  %v5852_v17 = vrot.slane %v5838_v44, %v19870_v41  ;;  %v3272_v21 = vrot.slane %v3258_v61, %v19870_v41 }
 0x488   :  { %v3288_v15 = vrot.slane %v3274_v34, %v19870_v41  ;;  %v5905_v14 = vcombine.low %v5872_v8, %v5888_v60  ;;  %v5906_v33 = vcombine.high %v5872_v8, %v5888_v60  ;;  %v6877_v20 = vcombine.low %v5829_v1, %v5836_v32 }
 0x489   :  { %v3223_v4 = vcombine.low %v3204_v5, %v3220_v56  ;;  %v3224_v27 = vcombine.high %v3204_v5, %v3220_v56  ;;  %v5897_v19 = vrot.slane %v5889_v38, %v19870_v41  ;;  %v5904_v42 = vrot.slane %v5890_v12, %v19870_v41 }
 0x48a   :  { %v3291_v18 = vcombine.low %v3272_v21, %v3288_v15  ;;  %v16974_v23 = vcombine.high %v5829_v1, %v5836_v32  ;;  %v6893_v26 = vcombine.low %v5845_v55, %v5852_v17  ;;  %v16975_v9 = vcombine.high %v5845_v55, %v5852_v17  ;;  %v22095_v25 = vpop.f32.mrb[28].mxu1 }
 0x48b   :  { %17893 = vmatprep.mubr.msk.f32.mxu0 %vm7965_vm1, %v3223_v4  ;;  %17900 = vmatprep.mubr.msk.f32.mxu1 %vm7965_vm1, %v3224_v27  ;;  %v3292_v49 = vcombine.high %v3272_v21, %v3288_v15  ;;  %v5913_v16 = vrot.slane %v5905_v14, %v19870_v41  ;;  %v5920_v29 = vrot.slane %v5906_v33, %v19870_v41  ;;  %v22098_v37 = vpop.f32.mrb[29].mxu1 }
 0x48c   :  { %v6945_v3 = vcombine.low %v5897_v19, %v5904_v42  ;;  %v16976_v54 = vcombine.high %v5897_v19, %v5904_v42  ;;  %v6884_v39 = vrot.slane %v6877_v20, %v19851_v2  ;;  %v6892_v0 = vrot.slane %v16974_v23, %v19851_v2 }
 0x48d   :  { %17894 = vmatmul.mubr.msk.f32.vlgmr.msra.gmra.mrb[50].mxu0 %vm7965_vm1, %v3291_v18  ;;  %v6900_v53 = vrot.slane %v6893_v26, %v19851_v2  ;;  %v6908_v57 = vrot.slane %v16975_v9, %v19851_v2  ;;  %v6961_v13 = vcombine.low %v5913_v16, %v5920_v29  ;;  %v16977_v40 = vcombine.high %v5913_v16, %v5920_v29  ;;  %v22135_v29 = vld [vmem:[#allocation14 + $0x8] sm:$0xff] }
 0x48e   :  { %17901 = vmatmul.mubr.msk.f32.vlgmr.msra.gmra.mrb[58].mxu1 %vm7965_vm1, %v3292_v49  ;;  %v6909_v48 = vcombine.low %v6884_v39, %v6892_v0  ;;  %v6952_v45 = vrot.slane %v6945_v3, %v19851_v2  ;;  %v6960_v62 = vrot.slane %v16976_v54, %v19851_v2  ;;  %v6910_v52 = vcombine.high %v6884_v39, %v6892_v0  ;;  %v22131_v49 = vpop.permute.xlu1 %5651  ;;  %v22139_v54 = vld [vmem:[#allocation16 + $0x8] sm:$0xff]  ;;  %v22141_v39 = vld [vmem:[#allocation14] sm:$0xff] }
 0x48f   :  { %v6925_v22 = vcombine.low %v6900_v53, %v6908_v57  ;;  %v6968_v30 = vrot.slane %v6961_v13, %v19851_v2  ;;  %v6976_v59 = vrot.slane %v16977_v40, %v19851_v2  ;;  %v6926_v50 = vcombine.high %v6900_v53, %v6908_v57  ;;  %25745 = vst [vmem:[#allocation57_spill] sm:$0xff] %v22131_v49  ;;  %v10832_v2 = vld [vmem:[#allocation16 + $0x50] sm:$0xff] }
 0x490   :  { %v6917_v61 = vrot.slane %v6909_v48, %v19870_v41  ;;  %v6977_v35 = vcombine.low %v6952_v45, %v6960_v62  ;;  %v6978_v51 = vcombine.high %v6952_v45, %v6960_v62  ;;  %v6924_v60 = vrot.slane %v6910_v52, %v19870_v41  ;;  %v22154_v48 = vld [vmem:[#allocation16] sm:$0xff]  ;;  %v22162_v62 = vld [vmem:[#allocation14 + $0x10] sm:$0xff] }
 0x491   :  { %v6933_v24 = vrot.slane %v6925_v22, %v19870_v41  ;;  %v6993_v7 = vcombine.low %v6968_v30, %v6976_v59  ;;  %v6994_v44 = vcombine.high %v6968_v30, %v6976_v59  ;;  %v6940_v5 = vrot.slane %v6926_v50, %v19870_v41 }
 0x492   :  { %v22108_v31 = vpop.f32.mrb[30].mxu1  ;;  %v6985_v34 = vrot.slane %v6977_v35, %v19870_v41  ;;  %v6992_v36 = vrot.slane %v6978_v51, %v19870_v41  ;;  %v22133_v16 = vpop.permute.xlu1 %5697  ;;  %v10759_v3 = vadd.f32 %v22010_v63, %v22135_v29  ;;  %v10758_v40 = vadd.f32 %v22141_v39, %v22016_v43  ;;  %v22188_v51 = vld [vmem:[#allocation14 + $0x38] sm:$0xff] }
 0x493   :  { %v22111_v11 = vpop.f32.mrb[31].mxu1  ;;  %v7001_v6 = vrot.slane %v6993_v7, %v19870_v41  ;;  %v7008_v1 = vrot.slane %v6994_v44, %v19870_v41  ;;  %v6941_v32 = vcombine.low %v6917_v61, %v6933_v24  ;;  %v6942_v38 = vcombine.high %v6917_v61, %v6933_v24  ;;  %25746 = vst [vmem:[#allocation58_spill] sm:$0xff] %v22133_v16  ;;  %v22190_v44 = vld [vmem:[#allocation14 + $0x30] sm:$0xff] }
 0x494   :  { %v6943_v15 = vcombine.low %v6924_v60, %v6940_v5  ;;  %v6944_v14 = vcombine.high %v6924_v60, %v6940_v5  ;;  %v22150_v13 = vadd.f32 %v22139_v54, %v10759_v3  ;;  %v22165_v30 = vadd.f32 %v22154_v48, %v10758_v40  ;;  %v22229_v40 = vld [vmem:[#allocation14 + $0x28] sm:$0xff] }
 0x495   :  { %v7009_v8 = vcombine.low %v6985_v34, %v7001_v6  ;;  %v7010_v12 = vcombine.high %v6985_v34, %v7001_v6  ;;  %v7011_v56 = vcombine.low %v6992_v36, %v7008_v1  ;;  %v7012_v55 = vcombine.high %v6992_v36, %v7008_v1  ;;  %v10825_v1 = vld [vmem:[#allocation16 + $0x18] sm:$0xff] }
 0x496   :  { %v22143_v0 = vpop.permute.xlu1 %5699  ;;  %v10906_v45 = vsel %vm10902_vm3, %v22150_v13, -inf  ;;  %v10760_v43 = vadd.f32 %v22162_v62, %v22050_v28  ;;  %v10903_v35 = vsel %vm10902_vm3, %v22165_v30, -inf  ;;  %v10765_v6 = vadd.f32 %v22108_v31, %v22188_v51 }
 0x497   :  { %v18375_v17 = vpack.c.bf16 %v7009_v8, %v6941_v32  ;;  %v18379_v21 = vpack.c.bf16 %v7010_v12, %v6942_v38  ;;  %v22119_v33 = vpack.c.bf16 %v7011_v56, %v6943_v15  ;;  %v22121_v4 = vpack.c.bf16 %v7012_v55, %v6944_v14  ;;  %25747 = vst [vmem:[#allocation59_spill] sm:$0xff] %v22143_v0  ;;  %v22207_v12 = vld [vmem:[#allocation14 + $0x18] sm:$0xff]  ;;  %v10824_v55 = vld [vmem:[#allocation16 + $0x10] sm:$0xff] }
 0x498   :  { %10907 = vmax.xlane.f32.xlu0 %v10906_v45  ;;  %v22172_v61 = vadd.f32 %v22154_v48, %v10760_v43  ;;  %v10764_v60 = vadd.f32 %v22190_v44, %v22111_v11  ;;  %v22199_v36 = vadd.f32 %v22139_v54, %v10765_v6  ;;  %v10761_v3 = vadd.f32 %v22043_v10, %v22207_v12 }
 0x499   :  { %18376 = vmatprep.subr.bf16.mxu0 %v18375_v17  ;;  %18380 = vmatprep.subr.bf16.mxu1 %v18379_v21  ;;  %25743 = vst [vmem:[#allocation38_spill] sm:$0xff] %v22119_v33  ;;  %25744 = vst [vmem:[#allocation40_spill] sm:$0xff] %v22121_v4  ;;  %v17713_v27 = vpop.f32.mrb[24].mxu0 }
 0x49a   :  { %18378 = vmatpush3.bf16.msra.mxu0 %v18375_v17  ;;  %18382 = vmatpush3.bf16.msra.mxu1 %v18379_v21  ;;  %v17720_v20 = vpop.f32.mrb[32].mxu1  ;;  %v8392_v19 = vpop.f32.mrb[25].mxu0  ;;  %v10909_v24 = vsel %vm10902_vm3, %v22172_v61, -inf  ;;  %v22202_v32 = vadd.f32 %v22154_v48, %v10764_v60  ;;  %v10924_v8 = vsel %vm10902_vm3, %v22199_v36, -inf  ;;  %v10767_v38 = vadd.f32 %v17713_v27, %v22135_v29 }
 0x49b   :  { %18384 = vmatprep.subr.bf16.mxu0 %v22119_v33  ;;  %18388 = vmatprep.subr.bf16.mxu1 %v22121_v4  ;;  %v8479_v42 = vpop.f32.mrb[33].mxu1  ;;  %v22167_v59 = vpop.permute.xlu1 %5747  ;;  %v10769_v11 = vadd.f32 %v17720_v20, %v22207_v12  ;;  %v10766_v56 = vadd.f32 %v22141_v39, %v8392_v19  ;;  %v22238_v10 = vadd.f32 %v22139_v54, %v10761_v3 }
 0x49c   :  { %25748 = vst [vmem:[#allocation60_spill] sm:$0xff] %v22167_v59  ;;  %10904 = vmax.xlane.f32.xlu0 %v10903_v35  ;;  %10910 = vmax.xlane.f32.xlu1 %v10909_v24  ;;  %v22209_v31 = vadd.f32 %v10825_v1, %v10767_v38  ;;  %v10768_v21 = vadd.f32 %v22162_v62, %v8479_v42  ;;  %v10921_v15 = vsel %vm10902_vm3, %v22202_v32, -inf }
 0x49d   :  { %v22218_v14 = vadd.f32 %v10825_v1, %v10769_v11  ;;  %v22224_v20 = vadd.f32 %v10824_v55, %v10766_v56  ;;  %v22252_v56 = vld [vmem:[#allocation14 + $0x20] sm:$0xff] }
 0x49e   :  { %v10930_v27 = vsel %vm10902_vm3, %v22209_v31, -inf  ;;  %v22231_v45 = vadd.f32 %v10824_v55, %v10768_v21 }
 0x49f   :  { %v22186_v28 = vpop.permute.xlu1 %5655  ;;  %v10936_v19 = vsel %vm10902_vm3, %v22218_v14, -inf  ;;  %v10927_v6 = vsel %vm10902_vm3, %v22224_v20, -inf }
 0x4a0   :  { %25749 = vst [vmem:[#allocation41_spill] sm:$0xff] %v22186_v28  ;;  %10925 = vmax.xlane.f32.xlu1 %v10924_v8  ;;  %10931 = vmax.xlane.f32.xlu0 %v10930_v27  ;;  %v22349_v28 = vpop.permute.xlu0 %5649 }
 0x4a1   :  { %25757 = vst [vmem:[#allocation66_spill] sm:$0xff] %v22349_v28 }
 0x4a3   :  { %v22196_v5 = vpop.permute.xlu1 %5701 }
 0x4a4   :  { %25750 = vst [vmem:[#allocation69_spill] sm:$0xff] %v22196_v5  ;;  %10922 = vmax.xlane.f32.xlu1 %v10921_v15  ;;  %10928 = vmax.xlane.f32.xlu0 %v10927_v6 }
 0x4a7   :  { %v22213_v17 = vpop.permute.xlu1 %5703 }
 0x4a8   :  { %25751 = vst [vmem:[#allocation68_spill] sm:$0xff] %v22213_v17  ;;  %10937 = vmax.xlane.f32.xlu1 %v10936_v19  ;;  %v10827_v19 = vld [vmem:[#allocation16 + $0x28] sm:$0xff] }
 0x4ab   :  { %v22235_v35 = vpop.permute.xlu1 %5751 }
 0x4ac   :  { %v22125_v18 = vpop.f32.mrb[26].mxu0  ;;  %v17734_v23 = vpop.f32.mrb[34].mxu1  ;;  %25752 = vst [vmem:[#allocation24_spill] sm:$0xff] %v22235_v35 }
 0x4ad   :  { %v22127_v26 = vpop.f32.mrb[27].mxu0  ;;  %v22129_v9 = vpop.f32.mrb[35].mxu1  ;;  %v10773_v42 = vadd.f32 %v17734_v23, %v22188_v51  ;;  %v10771_v43 = vadd.f32 %v22125_v18, %v22229_v40  ;;  %v10933_v18 = vsel %vm10902_vm3, %v22231_v45, -inf }
 0x4ae   :  { %v10772_v8 = vadd.f32 %v22190_v44, %v22129_v9  ;;  %10934 = vmax.xlane.f32.xlu1 %v10933_v18  ;;  %v10770_v15 = vadd.f32 %v22252_v56, %v22127_v26  ;;  %v10912_v9 = vsel %vm10902_vm3, %v22238_v10, -inf }
 0x4af   :  { %v22240_v24 = vadd.f32 %v10825_v1, %v10773_v42  ;;  %v22254_v21 = vadd.f32 %v10825_v1, %v10771_v43  ;;  %10913 = vmax.xlane.f32.xlu0 %v10912_v9  ;;  %v22266_v1 = vpop.permute.xlu1 %5659  ;;  %v10763_v43 = vadd.f32 %v22095_v25, %v22229_v40  ;;  %v10762_v25 = vadd.f32 %v22252_v56, %v22098_v37 }
 0x4b0   :  { %v22264_v42 = vadd.f32 %v10824_v55, %v10772_v8  ;;  %25753 = vst [vmem:[#allocation42_spill] sm:$0xff] %v22266_v1  ;;  %v22270_v26 = vadd.f32 %v10824_v55, %v10770_v15  ;;  %v10826_v55 = vld [vmem:[#allocation16 + $0x20] sm:$0xff] }
 0x4b1   :  { %v10948_v27 = vsel %vm10902_vm3, %v22240_v24, -inf  ;;  %v10942_v18 = vsel %vm10902_vm3, %v22254_v21, -inf  ;;  %v22300_v37 = vadd.f32 %v22154_v48, %v10762_v25 }
 0x4b2   :  { %10949 = vmax.xlane.f32.xlu1 %v10948_v27  ;;  %v10945_v8 = vsel %vm10902_vm3, %v22264_v42, -inf }
 0x4b3   :  { %10943 = vmax.xlane.f32.xlu0 %v10942_v18  ;;  %v10939_v18 = vsel %vm10902_vm3, %v22270_v26, -inf  ;;  %v22295_v47 = vpop.permute.xlu1 %5705 }
 0x4b4   :  { %25754 = vst [vmem:[#allocation64_spill] sm:$0xff] %v22295_v47 }
 0x4b6   :  { %10946 = vmax.xlane.f32.xlu1 %v10945_v8 }
 0x4b7   :  { %10940 = vmax.xlane.f32.xlu0 %v10939_v18  ;;  %v22314_v48 = vpop.permute.xlu1 %5707 }
 0x4b8   :  { %25755 = vst [vmem:[#allocation65_spill] sm:$0xff] %v22314_v48 }
 0x4bb   :  { %v22333_v48 = vpop.permute.xlu1 %5755 }
 0x4bc   :  { %25756 = vst [vmem:[#allocation26_spill] sm:$0xff] %v22333_v48 }
 0x4bf   :  { %v22145_v53 = vpop.f32.mrb[28].mxu0  ;;  %v22147_v57 = vpop.f32.mrb[36].mxu1 }
 0x4c0   :  { %v22156_v63 = vpop.f32.mrb[29].mxu0  ;;  %v22158_v22 = vpop.f32.mrb[37].mxu1  ;;  %v10777_v3 = vadd.f32 %v22147_v57, %v22207_v12 }
 0x4c1   :  { %v10776_v57 = vadd.f32 %v22162_v62, %v22158_v22  ;;  %v10774_v18 = vadd.f32 %v22141_v39, %v22156_v63 }
 0x4c2   :  { %v22272_v6 = vadd.f32 %v10827_v19, %v10777_v3  ;;  %v22287_v3 = vadd.f32 %v22139_v54, %v10763_v43  ;;  %v10775_v54 = vadd.f32 %v22145_v53, %v22135_v29 }
 0x4c3   :  { %v22297_v4 = vadd.f32 %v10826_v55, %v10776_v57  ;;  %v22325_v33 = vadd.f32 %v10826_v55, %v10774_v18 }
 0x4c4   :  { %v10960_v22 = vsel %vm10902_vm3, %v22272_v6, -inf  ;;  %v10918_v8 = vsel %vm10902_vm3, %v22287_v3, -inf  ;;  %v22316_v25 = vadd.f32 %v10827_v19, %v10775_v54 }
 0x4c5   :  { %10961 = vmax.xlane.f32.xlu1 %v10960_v22  ;;  %10919 = vmax.xlane.f32.xlu0 %v10918_v8  ;;  %v10957_v57 = vsel %vm10902_vm3, %v22297_v4, -inf }
 0x4c9   :  { %v22178_v7 = vpop.f32.mrb[30].mxu0  ;;  %v22180_v52 = vpop.f32.mrb[38].mxu1  ;;  %10958 = vmax.xlane.f32.xlu1 %v10957_v57  ;;  %v10954_v57 = vsel %vm10902_vm3, %v22316_v25, -inf }
 0x4ca   :  { %v22182_v50 = vpop.f32.mrb[31].mxu0  ;;  %v22184_v34 = vpop.f32.mrb[39].mxu1  ;;  %v10781_v46 = vadd.f32 %v22180_v52, %v22188_v51  ;;  %v10779_v63 = vadd.f32 %v22178_v7, %v22229_v40  ;;  %v10951_v7 = vsel %vm10902_vm3, %v22325_v33, -inf }
 0x4cb   :  { %v10780_v52 = vadd.f32 %v22190_v44, %v22184_v34  ;;  %v10829_v34 = vld [vmem:[#allocation16 + $0x38] sm:$0xff]  ;;  %v10778_v18 = vadd.f32 %v22252_v56, %v22182_v50 }
 0x4cc   :  { %v22304_v43 = vadd.f32 %v10827_v19, %v10781_v46  ;;  %v10915_v46 = vsel %vm10902_vm3, %v22300_v37, -inf }
 0x4cd   :  { %10916 = vmax.xlane.f32.xlu0 %v10915_v46  ;;  %v22323_v8 = vadd.f32 %v10826_v55, %v10780_v52  ;;  %v10828_v46 = vld [vmem:[#allocation16 + $0x30] sm:$0xff] }
 0x4ce   :  { %v10972_v53 = vsel %vm10902_vm3, %v22304_v43, -inf }
 0x4cf   :  { %10973 = vmax.xlane.f32.xlu1 %v10972_v53  ;;  %v10969_v52 = vsel %vm10902_vm3, %v22323_v8, -inf  ;;  %v22340_v53 = vadd.f32 %v10827_v19, %v10779_v63  ;;  %v22351_v19 = vpop.permute.xlu1 %5663  ;;  %v22353_v63 = vadd.f32 %v10826_v55, %v10778_v18 }
 0x4d0   :  { %25758 = vst [vmem:[#allocation67_spill] sm:$0xff] %v22351_v19 }
 0x4d1   :  { %10955 = vmax.xlane.f32.xlu0 %v10954_v57 }
 0x4d3   :  { %10970 = vmax.xlane.f32.xlu1 %v10969_v52  ;;  %v22375_v19 = vpop.permute.xlu1 %5709 }
 0x4d4   :  { %25761 = vst [vmem:[#allocation72_spill] sm:$0xff] %v22375_v19  ;;  %v10830_v19 = vld [vmem:[#allocation16 + $0x40] sm:$0xff] }
 0x4d5   :  { %10952 = vmax.xlane.f32.xlu0 %v10951_v7 }
 0x4de   :  { %v22244_v23 = vpop.f32.mrb[32].mxu0  ;;  %v17776_v60 = vpop.f32.mrb[40].mxu1 }
 0x4df   :  { %v22250_v38 = vpop.f32.mrb[33].mxu0  ;;  %v9175_v11 = vpop.f32.mrb[41].mxu1  ;;  %v10785_v22 = vadd.f32 %v17776_v60, %v22207_v12  ;;  %v10783_v52 = vadd.f32 %v22244_v23, %v22135_v29  ;;  %v10963_v23 = vsel %vm10902_vm3, %v22353_v63, -inf }
 0x4e0   :  { %v10784_v60 = vadd.f32 %v22162_v62, %v9175_v11 }
 0x4e1   :  { %v22329_v54 = vadd.f32 %v10829_v34, %v10785_v22  ;;  %v22366_v55 = vadd.f32 %v10829_v34, %v10783_v52 }
 0x4e2   :  { %v22347_v11 = vadd.f32 %v10828_v46, %v10784_v60 }
 0x4e3   :  { %v10984_v22 = vsel %vm10902_vm3, %v22329_v54, -inf  ;;  %v10978_v5 = vsel %vm10902_vm3, %v22366_v55, -inf }
 0x4e4   :  { %10985 = vmax.xlane.f32.xlu1 %v10984_v22  ;;  %v10981_v7 = vsel %vm10902_vm3, %v22347_v11, -inf  ;;  %v10782_v22 = vadd.f32 %v22141_v39, %v22250_v38 }
 0x4e6   :  { %v22276_v58 = vpop.f32.mrb[34].mxu0  ;;  %v22379_v38 = vadd.f32 %v10828_v46, %v10782_v22  ;;  %v22392_v22 = vpop.permute.xlu1 %5711 }
 0x4e7   :  { %v17790_v27 = vpop.f32.mrb[42].mxu1  ;;  %v22282_v9 = vpop.f32.mrb[35].mxu0  ;;  %v10787_v52 = vadd.f32 %v22276_v58, %v22229_v40  ;;  %25763 = vst [vmem:[#allocation73_spill] sm:$0xff] %v22392_v22 }
 0x4e8   :  { %v9349_v15 = vpop.f32.mrb[43].mxu1  ;;  %v10789_v57 = vadd.f32 %v17790_v27, %v22188_v51  ;;  %v10966_v27 = vsel %vm10902_vm3, %v22340_v53, -inf  ;;  %10982 = vmax.xlane.f32.xlu1 %v10981_v7  ;;  %v10786_v58 = vadd.f32 %v22252_v56, %v22282_v9 }
 0x4e9   :  { %10967 = vmax.xlane.f32.xlu0 %v10966_v27  ;;  %v10788_v60 = vadd.f32 %v22190_v44, %v9349_v15  ;;  %v10831_v27 = vld [vmem:[#allocation16 + $0x48] sm:$0xff]  ;;  %v22373_v15 = vpop.permute.xlu0 %5745 }
 0x4ea   :  { %v22357_v35 = vadd.f32 %v10829_v34, %v10789_v57  ;;  %25760 = vst [vmem:[#allocation71_spill] sm:$0xff] %v22373_v15 }
 0x4eb   :  { %v22377_v17 = vadd.f32 %v10828_v46, %v10788_v60 }
 0x4ec   :  { %25759 = vst [vmem:[#allocation70_spill] sm:$0xff] %v22357_v35  ;;  %v10996_v18 = vsel %vm10902_vm3, %v22357_v35, -inf }
 0x4ed   :  { %10964 = vmax.xlane.f32.xlu0 %v10963_v23  ;;  %10997 = vmax.xlane.f32.xlu1 %v10996_v18  ;;  %v10993_v23 = vsel %vm10902_vm3, %v22377_v17, -inf  ;;  %v22390_v60 = vpop.permute.xlu0 %5653  ;;  %v22394_v18 = vadd.f32 %v10829_v34, %v10787_v52  ;;  %v22405_v34 = vadd.f32 %v10828_v46, %v10786_v58 }
 0x4ee   :  { %25762 = vst [vmem:[#allocation76_spill] sm:$0xff] %v22390_v60  ;;  %v22414_v60 = vpop.permute.xlu1 %5759 }
 0x4ef   :  { %v10990_v0 = vsel %vm10902_vm3, %v22394_v18, -inf  ;;  %25766 = vst [vmem:[#allocation77_spill] sm:$0xff] %v22414_v60  ;;  %v10987_v58 = vsel %vm10902_vm3, %v22405_v34, -inf }
 0x4f1   :  { %10979 = vmax.xlane.f32.xlu0 %v10978_v5  ;;  %10994 = vmax.xlane.f32.xlu1 %v10993_v23 }
 0x4fe   :  { %v17797_v1 = vpop.f32.mrb[36].mxu0  ;;  %v17804_v48 = vpop.f32.mrb[44].mxu1 }
 0x4ff   :  { %v9436_v47 = vpop.f32.mrb[37].mxu0  ;;  %v9523_v50 = vpop.f32.mrb[45].mxu1  ;;  %v10793_v57 = vadd.f32 %v17804_v48, %v22207_v12  ;;  %v10791_v9 = vadd.f32 %v17797_v1, %v22135_v29 }
 0x500   :  { %v10792_v48 = vadd.f32 %v22162_v62, %v9523_v50  ;;  %v10790_v1 = vadd.f32 %v22141_v39, %v9436_v47 }
 0x501   :  { %v22383_v7 = vadd.f32 %v10831_v27, %v10793_v57  ;;  %v10975_v57 = vsel %vm10902_vm3, %v22379_v38, -inf  ;;  %v22419_v46 = vadd.f32 %v10831_v27, %v10791_v9 }
 0x502   :  { %10976 = vmax.xlane.f32.xlu0 %v10975_v57  ;;  %v22402_v49 = vadd.f32 %v10830_v19, %v10792_v48  ;;  %v22412_v57 = vpop.permute.xlu0 %5749  ;;  %v22432_v60 = vadd.f32 %v10830_v19, %v10790_v1 }
 0x503   :  { %v11008_v5 = vsel %vm10902_vm3, %v22383_v7, -inf  ;;  %25765 = vst [vmem:[#allocation75_spill] sm:$0xff] %v22412_v57  ;;  %v11002_v47 = vsel %vm10902_vm3, %v22419_v46, -inf }
 0x504   :  { %11009 = vmax.xlane.f32.xlu1 %v11008_v5 }
 0x506   :  { %10991 = vmax.xlane.f32.xlu0 %v10990_v0 }
 0x50a   :  { %10988 = vmax.xlane.f32.xlu0 %v10987_v58 }
 0x50e   :  { %v17811_v50 = vpop.f32.mrb[38].mxu0  ;;  %v17818_v41 = vpop.f32.mrb[46].mxu1  ;;  %11003 = vmax.xlane.f32.xlu0 %v11002_v47  ;;  %v10833_v47 = vld [vmem:[#allocation16 + $0x58] sm:$0xff] }
 0x50f   :  { %v10797_v23 = vadd.f32 %v17818_v41, %v22188_v51  ;;  %v9610_v59 = vpop.f32.mrb[39].mxu0  ;;  %v9697_v22 = vpop.f32.mrb[47].mxu1  ;;  %v11005_v41 = vsel %vm10902_vm3, %v22402_v49, -inf  ;;  %v10795_v9 = vadd.f32 %v17811_v50, %v22229_v40 }
 0x510   :  { %v10796_v48 = vadd.f32 %v22190_v44, %v9697_v22  ;;  %11006 = vmax.xlane.f32.xlu1 %v11005_v41  ;;  %v22430_v22 = vpop.permute.xlu1 %5667  ;;  %v10794_v58 = vadd.f32 %v22252_v56, %v9610_v59 }
 0x511   :  { %v22408_v52 = vadd.f32 %v10831_v27, %v10797_v23  ;;  %v22428_v23 = vpop.permute.xlu0 %5657  ;;  %25768 = vst [vmem:[#allocation28_spill] sm:$0xff] %v22430_v22 }
 0x512   :  { %v22426_v5 = vadd.f32 %v10830_v19, %v10796_v48  ;;  %25767 = vst [vmem:[#allocation25_spill] sm:$0xff] %v22428_v23  ;;  %v22440_v48 = vadd.f32 %v10831_v27, %v10795_v9  ;;  %v22448_v50 = vadd.f32 %v10830_v19, %v10794_v58 }
 0x513   :  { %25764 = vst [vmem:[#allocation74_spill] sm:$0xff] %v22408_v52  ;;  %v11020_v0 = vsel %vm10902_vm3, %v22408_v52, -inf }
 0x514   :  { %11021 = vmax.xlane.f32.xlu1 %v11020_v0  ;;  %v11017_v41 = vsel %vm10902_vm3, %v22426_v5, -inf  ;;  %v10999_v0 = vsel %vm10902_vm3, %v22432_v60, -inf  ;;  %v22446_v22 = vpop.permute.xlu1 %5713  ;;  %25771 = vst [vmem:[#allocation80_spill] sm:$0xff] %v22448_v50  ;;  %v11014_v9 = vsel %vm10902_vm3, %v22440_v48, -inf  ;;  %v11011_v19 = vsel %vm10902_vm3, %v22448_v50, -inf }
 0x515   :  { %11000 = vmax.xlane.f32.xlu0 %v10999_v0  ;;  %v22444_v1 = vpop.permute.xlu0 %5753  ;;  %25770 = vst [vmem:[#allocation79_spill] sm:$0xff] %v22446_v22 }
 0x516   :  { %25769 = vst [vmem:[#allocation78_spill] sm:$0xff] %v22444_v1 }
 0x518   :  { %11018 = vmax.xlane.f32.xlu1 %v11017_v41  ;;  %v22468_v15 = vpop.permute.xlu1 %5715 }
 0x519   :  { %11015 = vmax.xlane.f32.xlu0 %v11014_v9  ;;  %v22466_v28 = vpop.permute.xlu0 %5661  ;;  %25774 = vst [vmem:[#allocation82_spill] sm:$0xff] %v22468_v15 }
 0x51a   :  { %25773 = vst [vmem:[#allocation81_spill] sm:$0xff] %v22466_v28 }
 0x51c   :  { %v22478_v9 = vpop.permute.xlu1 %5763 }
 0x51d   :  { %11012 = vmax.xlane.f32.xlu0 %v11011_v19  ;;  %25777 = vst [vmem:[#allocation30_spill] sm:$0xff] %v22478_v9 }
 0x521   :  { %v17825_v52 = vpop.f32.mrb[40].mxu0  ;;  %v17832_v23 = vpop.f32.mrb[48].mxu1 }
 0x522   :  { %v10799_v57 = vadd.f32 %v17825_v52, %v22135_v29  ;;  %v10801_v59 = vadd.f32 %v17832_v23, %v22207_v12  ;;  %v9784_v41 = vpop.f32.mrb[41].mxu0  ;;  %v9871_v27 = vpop.f32.mrb[49].mxu1 }
 0x523   :  { %v10800_v0 = vadd.f32 %v22162_v62, %v9871_v27  ;;  %v10798_v52 = vadd.f32 %v22141_v39, %v9784_v41  ;;  %v22476_v41 = vpop.permute.xlu0 %5757 }
 0x524   :  { %v22455_v1 = vadd.f32 %v10833_v47, %v10801_v59  ;;  %v22459_v58 = vadd.f32 %v10833_v47, %v10799_v57  ;;  %25776 = vst [vmem:[#allocation27_spill] sm:$0xff] %v22476_v41 }
 0x525   :  { %v22462_v22 = vadd.f32 %v10832_v2, %v10800_v0  ;;  %v22470_v59 = vadd.f32 %v10832_v2, %v10798_v52 }
 0x526   :  { %25772 = vst [vmem:[#allocation44_spill] sm:$0xff] %v22459_v58  ;;  %v11032_v23 = vsel %vm10902_vm3, %v22455_v1, -inf  ;;  %v11026_v57 = vsel %vm10902_vm3, %v22459_v58, -inf }
 0x527   :  { %11033 = vmax.xlane.f32.xlu1 %v11032_v23  ;;  %25775 = vst [vmem:[#allocation83_spill] sm:$0xff] %v22470_v59  ;;  %v11029_v27 = vsel %vm10902_vm3, %v22462_v22, -inf  ;;  %11027 = vmax.xlane.f32.xlu0 %v11026_v57  ;;  %v11023_v0 = vsel %vm10902_vm3, %v22470_v59, -inf  ;;  %v22484_v35 = vpop.permute.xlu0 %5665 }
 0x528   :  { %25778 = vst [vmem:[#allocation29_spill] sm:$0xff] %v22484_v35 }
 0x52b   :  { %11030 = vmax.xlane.f32.xlu1 %v11029_v27  ;;  %11024 = vmax.xlane.f32.xlu0 %v11023_v0  ;;  %v22486_v27 = vpop.permute.xlu1 %5671 }
 0x52c   :  { %25779 = vst [vmem:[#allocation46_spill] sm:$0xff] %v22486_v27  ;;  %v22502_v27 = vpop.permute.xlu0 %5761 }
 0x52d   :  { %25784 = vst [vmem:[#allocation47_spill] sm:$0xff] %v22502_v27  ;;  %v10834_v27 = vld [vmem:[#allocation16 + $0x60] sm:$0xff] }
 0x531   :  { %v17839_v23 = vpop.f32.mrb[42].mxu0  ;;  %v17846_v19 = vpop.f32.mrb[50].mxu1 }
 0x532   :  { %v10803_v52 = vadd.f32 %v17839_v23, %v22229_v40  ;;  %v10805_v15 = vadd.f32 %v17846_v19, %v22188_v51  ;;  %v9958_v28 = vpop.f32.mrb[43].mxu0  ;;  %v10045_v16 = vpop.f32.mrb[51].mxu1 }
 0x533   :  { %v10802_v57 = vadd.f32 %v22252_v56, %v9958_v28  ;;  %v10804_v9 = vadd.f32 %v22190_v44, %v10045_v16  ;;  %v22504_v28 = vpop.permute.xlu1 %5717 }
 0x534   :  { %v22490_v41 = vadd.f32 %v10833_v47, %v10803_v52  ;;  %v22492_v59 = vadd.f32 %v10833_v47, %v10805_v15  ;;  %25785 = vst [vmem:[#allocation50_spill] sm:$0xff] %v22504_v28  ;;  %v10835_v52 = vld [vmem:[#allocation16 + $0x68] sm:$0xff] }
 0x535   :  { %v22494_v0 = vadd.f32 %v10832_v2, %v10802_v57  ;;  %v22496_v58 = vadd.f32 %v10832_v2, %v10804_v9  ;;  %v22510_v2 = vpop.permute.xlu0 %5669 }
 0x536   :  { %25780 = vst [vmem:[#allocation32_spill] sm:$0xff] %v22490_v41  ;;  %25781 = vst [vmem:[#allocation39_spill] sm:$0xff] %v22492_v59  ;;  %v11044_v23 = vsel %vm10902_vm3, %v22492_v59, -inf  ;;  %v11038_v19 = vsel %vm10902_vm3, %v22490_v41, -inf }
 0x537   :  { %25782 = vst [vmem:[#allocation31_spill] sm:$0xff] %v22494_v0  ;;  %25783 = vst [vmem:[#allocation48_spill] sm:$0xff] %v22496_v58  ;;  %11045 = vmax.xlane.f32.xlu1 %v11044_v23  ;;  %11039 = vmax.xlane.f32.xlu0 %v11038_v19  ;;  %v11041_v16 = vsel %vm10902_vm3, %v22496_v58, -inf  ;;  %v11035_v15 = vsel %vm10902_vm3, %v22494_v0, -inf  ;;  %v22512_v47 = vpop.permute.xlu1 %5719 }
 0x538   :  { %25786 = vst [vmem:[#allocation49_spill] sm:$0xff] %v22510_v2  ;;  %25787 = vst [vmem:[#allocation84_spill] sm:$0xff] %v22512_v47 }
 0x539   :  { %v22522_v2 = vpop.permute.xlu0 %5765 }
 0x53a   :  { %25790 = vst [vmem:[#allocation87_spill] sm:$0xff] %v22522_v2 }
 0x53b   :  { %11042 = vmax.xlane.f32.xlu1 %v11041_v16  ;;  %11036 = vmax.xlane.f32.xlu0 %v11035_v15 }
 0x53e   :  { %v17853_v9 = vpop.f32.mrb[44].mxu0 }
 0x53f   :  { %v17860_v57 = vpop.f32.mrb[52].mxu1  ;;  %v10807_v23 = vadd.f32 %v17853_v9, %v22135_v29  ;;  %v10132_v28 = vpop.f32.mrb[45].mxu0 }
 0x540   :  { %v10809_v19 = vadd.f32 %v17860_v57, %v22207_v12  ;;  %v10219_v59 = vpop.f32.mrb[53].mxu1  ;;  %v10806_v35 = vadd.f32 %v22141_v39, %v10132_v28  ;;  %v22532_v28 = vpop.permute.xlu1 %5767 }
 0x541   :  { %v10808_v0 = vadd.f32 %v22162_v62, %v10219_v59  ;;  %v22518_v16 = vadd.f32 %v10835_v52, %v10807_v23  ;;  %25793 = vst [vmem:[#allocation90_spill] sm:$0xff] %v22532_v28 }
 0x542   :  { %v22520_v15 = vadd.f32 %v10835_v52, %v10809_v19  ;;  %v22524_v47 = vadd.f32 %v10834_v27, %v10806_v35 }
 0x543   :  { %25788 = vst [vmem:[#allocation85_spill] sm:$0xff] %v22518_v16  ;;  %v22526_v41 = vadd.f32 %v10834_v27, %v10808_v0  ;;  %v11050_v57 = vsel %vm10902_vm3, %v22518_v16, -inf }
 0x544   :  { %25789 = vst [vmem:[#allocation86_spill] sm:$0xff] %v22520_v15  ;;  %25791 = vst [vmem:[#allocation88_spill] sm:$0xff] %v22524_v47  ;;  %v11056_v9 = vsel %vm10902_vm3, %v22520_v15, -inf  ;;  %11051 = vmax.xlane.f32.xlu0 %v11050_v57  ;;  %v11047_v0 = vsel %vm10902_vm3, %v22524_v47, -inf  ;;  %v22546_v28 = vpop.permute.xlu1 %5675 }
 0x545   :  { %25792 = vst [vmem:[#allocation89_spill] sm:$0xff] %v22526_v41  ;;  %11057 = vmax.xlane.f32.xlu1 %v11056_v9  ;;  %v11053_v35 = vsel %vm10902_vm3, %v22526_v41, -inf  ;;  %v22541_v9 = vpop.permute.xlu0 %5673  ;;  %25795 = vst [vmem:[#allocation92_spill] sm:$0xff] %v22546_v28 }
 0x546   :  { %25794 = vst [vmem:[#allocation91_spill] sm:$0xff] %v22541_v9 }
 0x547   :  { %v17867_v59 = vpop.f32.mrb[46].mxu0 }
 0x548   :  { %v10811_v23 = vadd.f32 %v17867_v59, %v22229_v40  ;;  %v17874_v19 = vpop.f32.mrb[54].mxu1  ;;  %v10306_v58 = vpop.f32.mrb[47].mxu0  ;;  %11048 = vmax.xlane.f32.xlu0 %v11047_v0 }
 0x549   :  { %v10813_v2 = vadd.f32 %v17874_v19, %v22188_v51  ;;  %v10810_v15 = vadd.f32 %v22252_v56, %v10306_v58  ;;  %v10393_v16 = vpop.f32.mrb[55].mxu1  ;;  %11054 = vmax.xlane.f32.xlu1 %v11053_v35  ;;  %v22562_v35 = vpop.permute.xlu1 %5723 }
 0x54a   :  { %v22543_v57 = vadd.f32 %v10835_v52, %v10811_v23  ;;  %v10812_v59 = vadd.f32 %v22190_v44, %v10393_v16  ;;  %v22558_v23 = vpop.permute.xlu0 %5769  ;;  %25800 = vst [vmem:[#allocation97_spill] sm:$0xff] %v22562_v35 }
 0x54b   :  { %v22548_v50 = vadd.f32 %v10835_v52, %v10813_v2  ;;  %v22550_v41 = vadd.f32 %v10834_v27, %v10810_v15  ;;  %25799 = vst [vmem:[#allocation96_spill] sm:$0xff] %v22558_v23  ;;  %v10836_v23 = vld [vmem:[#allocation16 + $0x70] sm:$0xff] }
 0x54c   :  { %v11062_v19 = vsel %vm10902_vm3, %v22543_v57, -inf  ;;  %v22554_v47 = vadd.f32 %v10834_v27, %v10812_v59  ;;  %v10837_v59 = vld [vmem:[#allocation16 + $0x78] sm:$0xff] }
 0x54d   :  { %25796 = vst [vmem:[#allocation93_spill] sm:$0xff] %v22548_v50  ;;  %25797 = vst [vmem:[#allocation94_spill] sm:$0xff] %v22550_v41  ;;  %v11068_v58 = vsel %vm10902_vm3, %v22548_v50, -inf  ;;  %11063 = vmax.xlane.f32.xlu0 %v11062_v19  ;;  %v11059_v16 = vsel %vm10902_vm3, %v22550_v41, -inf  ;;  %v22566_v27 = vpop.permute.xlu1 %5771 }
 0x54e   :  { %25798 = vst [vmem:[#allocation95_spill] sm:$0xff] %v22554_v47  ;;  %11069 = vmax.xlane.f32.xlu1 %v11068_v58  ;;  %v11065_v2 = vsel %vm10902_vm3, %v22554_v47, -inf  ;;  %v10908_v52 = vpop.xlane.xlu0 %10907  ;;  %25801 = vst [vmem:[#allocation98_spill] sm:$0xff] %v22566_v27 }
 0x54f   :  { %v11096_v15 = vsub.f32 %v22150_v13, %v10908_v52 }
 0x551   :  { %11060 = vmax.xlane.f32.xlu0 %v11059_v16  ;;  %v22578_v52 = vpop.permute.xlu1 %5721 }
 0x552   :  { %11066 = vmax.xlane.f32.xlu1 %v11065_v2  ;;  %v11161_v2 = vmul.f32 1.442695, %v11096_v15  ;;  %v10905_v41 = vpop.xlane.xlu0 %10904  ;;  %25802 = vst [vmem:[#allocation99_spill] sm:$0xff] %v22578_v52 }
 0x553   :  { %v11095_v13 = vsub.f32 %v22165_v30, %v10905_v41 }
 0x554   :  { %18567 = vpow2.f32 %v11161_v2 }
 0x558   :  { %v17881_v0 = vpop.f32.mrb[48].mxu0  ;;  %v17888_v19 = vpop.f32.mrb[56].mxu1 }
 0x559   :  { %v10815_v58 = vadd.f32 %v17881_v0, %v22135_v29  ;;  %v10817_v28 = vadd.f32 %v17888_v19, %v22207_v12  ;;  %v10480_v50 = vpop.f32.mrb[49].mxu0  ;;  %v10567_v9 = vpop.f32.mrb[57].mxu1 }
 0x55a   :  { %v10814_v35 = vadd.f32 %v22141_v39, %v10480_v50  ;;  %v10816_v16 = vadd.f32 %v22162_v62, %v10567_v9  ;;  %v11159_v50 = vmul.f32 1.442695, %v11095_v13  ;;  %v10911_v9 = vpop.xlane.xlu1 %10910 }
 0x55b   :  { %v22573_v47 = vadd.f32 %v10837_v59, %v10815_v58  ;;  %v22575_v27 = vadd.f32 %v10837_v59, %v10817_v28 }
 0x55c   :  { %v22580_v29 = vadd.f32 %v10836_v23, %v10814_v35  ;;  %v22582_v12 = vadd.f32 %v10836_v23, %v10816_v16  ;;  %18569 = vpow2.f32 %v11159_v50 }
 0x55d   :  { %v11080_v39 = vsel %vm10902_vm3, %v22575_v27, -inf  ;;  %v11074_v62 = vsel %vm10902_vm3, %v22573_v47, -inf }
 0x55e   :  { %11081 = vmax.xlane.f32.xlu1 %v11080_v39  ;;  %11075 = vmax.xlane.f32.xlu0 %v11074_v62  ;;  %v11077_v35 = vsel %vm10902_vm3, %v22582_v12, -inf  ;;  %v11071_v0 = vsel %vm10902_vm3, %v22580_v29, -inf  ;;  %v22600_v39 = vpop.xlane.xlu1 %10925  ;;  %v22610_v50 = vpop.eup %18567 }
 0x55f   :  { %25803 = vst [vmem:[#allocation100_spill] sm:$0xff] %v22610_v50 }
 0x560   :  { %v17895_v28 = vpop.f32.mrb[50].mxu0 }
 0x561   :  { %v10819_v30 = vadd.f32 %v17895_v28, %v22229_v40  ;;  %v17902_v41 = vpop.f32.mrb[58].mxu1  ;;  %v10654_v15 = vpop.f32.mrb[51].mxu0 }
 0x562   :  { %v10821_v19 = vadd.f32 %v17902_v41, %v22188_v51  ;;  %v10818_v58 = vadd.f32 %v22252_v56, %v10654_v15  ;;  %v10741_v16 = vpop.f32.mrb[59].mxu1  ;;  %11078 = vmax.xlane.f32.xlu1 %v11077_v35  ;;  %11072 = vmax.xlane.f32.xlu0 %v11071_v0 }
 0x563   :  { %v22595_v2 = vadd.f32 %v10837_v59, %v10819_v30  ;;  %v10820_v40 = vadd.f32 %v22190_v44, %v10741_v16  ;;  %v10923_v30 = vpop.xlane.xlu1 %10922 }
 0x564   :  { %v22598_v13 = vadd.f32 %v10837_v59, %v10821_v19  ;;  %v22602_v62 = vadd.f32 %v10836_v23, %v10818_v58  ;;  %v10932_v59 = vpop.xlane.xlu0 %10931 }
 0x565   :  { %v11086_v28 = vsel %vm10902_vm3, %v22595_v2, -inf  ;;  %v22606_v51 = vadd.f32 %v10836_v23, %v10820_v40  ;;  %v11104_v15 = vsub.f32 %v22209_v31, %v10932_v59  ;;  %v11290_v23 = vsel %vm10902_vm3, %v22610_v50, 0.0 }
 0x566   :  { %v11092_v56 = vsel %vm10902_vm3, %v22598_v13, -inf  ;;  %11087 = vmax.xlane.f32.xlu0 %v11086_v28  ;;  %v11083_v44 = vsel %vm10902_vm3, %v22602_v62, -inf  ;;  %v22619_v35 = vpop.eup %18569  ;;  %v11097_v28 = vsub.f32 %v22172_v61, %v10911_v9 }
 0x567   :  { %11093 = vmax.xlane.f32.xlu1 %v11092_v56  ;;  %v11089_v41 = vsel %vm10902_vm3, %v22606_v51, -inf  ;;  %v10938_v0 = vpop.xlane.xlu1 %10937  ;;  %v11177_v19 = vmul.f32 1.442695, %v11104_v15  ;;  %v11287_v16 = vsel %vm10902_vm3, %v22619_v35, 0.0  ;;  %v11101_v15 = vsub.f32 %v22202_v32, %v10923_v30 }
 0x568   :  { %v10929_v58 = vpop.xlane.xlu0 %10928 }
 0x569   :  { %18571 = vpow2.f32 %v11177_v19  ;;  %v11103_v40 = vsub.f32 %v22224_v20, %v10929_v58  ;;  %v11171_v9 = vmul.f32 1.442695, %v11101_v15  ;;  %v11106_v58 = vsub.f32 %v22218_v14, %v10938_v0 }
 0x56a   :  { %11084 = vmax.xlane.f32.xlu0 %v11083_v44 }
 0x56b   :  { %11090 = vmax.xlane.f32.xlu1 %v11089_v41  ;;  %v10935_v56 = vpop.xlane.xlu1 %10934  ;;  %v11175_v31 = vmul.f32 1.442695, %v11103_v40  ;;  %v11163_v41 = vmul.f32 1.442695, %v11097_v28 }
 0x56c   :  { %v10914_v44 = vpop.xlane.xlu0 %10913 }
 0x56d   :  { %18573 = vpow2.f32 %v11175_v31  ;;  %v11098_v59 = vsub.f32 %v22238_v10, %v10914_v44  ;;  %v11105_v31 = vsub.f32 %v22231_v45, %v10935_v56 }
 0x56e   :  { %11291 = vadd.xlane.f32.xlu0 %v11290_v23 }
 0x56f   :  { %v22626_v52 = vpop.xlane.xlu1 %10949  ;;  %v11165_v23 = vmul.f32 1.442695, %v11098_v59 }
 0x570   :  { %v10944_v19 = vpop.xlane.xlu0 %10943 }
 0x571   :  { %18575 = vpow2.f32 %v11165_v23  ;;  %v11108_v50 = vsub.f32 %v22254_v21, %v10944_v19  ;;  %v11181_v21 = vmul.f32 1.442695, %v11106_v58 }
 0x572   :  { %11288 = vadd.xlane.f32.xlu0 %v11287_v16  ;;  %18577 = vpow2.f32 %v11163_v41 }
 0x573   :  { %v22630_v20 = vpop.eup %18571  ;;  %v10947_v61 = vpop.xlane.xlu1 %10946  ;;  %v11185_v16 = vmul.f32 1.442695, %v11108_v50 }
 0x574   :  { %25804 = vst [vmem:[#allocation101_spill] sm:$0xff] %v22630_v20  ;;  %v11314_v10 = vsel %vm10902_vm3, %v22630_v20, 0.0  ;;  %v10941_v40 = vpop.xlane.xlu0 %10940  ;;  %v11109_v15 = vsub.f32 %v22264_v42, %v10947_v61 }
 0x575   :  { %18579 = vpow2.f32 %v11185_v16  ;;  %v11107_v32 = vsub.f32 %v22270_v26, %v10941_v40  ;;  %v11179_v26 = vmul.f32 1.442695, %v11105_v31  ;;  %v11102_v31 = vsub.f32 %v22199_v36, %v22600_v39 }
 0x576   :  { %11315 = vadd.xlane.f32.xlu0 %v11314_v10  ;;  %18581 = vpow2.f32 %v11171_v9  ;;  %v11187_v16 = vmul.f32 1.442695, %v11109_v15 }
 0x577   :  { %v10962_v30 = vpop.xlane.xlu1 %10961  ;;  %v22636_v28 = vpop.eup %18573  ;;  %v11183_v44 = vmul.f32 1.442695, %v11107_v32  ;;  %v11173_v39 = vmul.f32 1.442695, %v11102_v31 }
 0x578   :  { %25805 = vst [vmem:[#allocation102_spill] sm:$0xff] %v22636_v28  ;;  %v10920_v59 = vpop.xlane.xlu0 %10919  ;;  %v11311_v14 = vsel %vm10902_vm3, %v22636_v28, 0.0  ;;  %v11114_v10 = vsub.f32 %v22272_v6, %v10962_v30  ;;  %v25932_v28 = vld [vmem:[#allocation79_spill] sm:$0xff] }
 0x579   :  { %18583 = vpow2.f32 %v11183_v44  ;;  %v11100_v50 = vsub.f32 %v22287_v3, %v10920_v59 }
 0x57a   :  { %11312 = vadd.xlane.f32.xlu0 %v11311_v14  ;;  %18585 = vpow2.f32 %v11181_v21  ;;  %v11197_v30 = vmul.f32 1.442695, %v11114_v10 }
 0x57b   :  { %v10959_v0 = vpop.xlane.xlu1 %10958  ;;  %v22642_v41 = vpop.eup %18575  ;;  %v11169_v23 = vmul.f32 1.442695, %v11100_v50 }
 0x57c   :  { %v22645_v19 = vpop.eup %18577  ;;  %v10917_v45 = vpop.xlane.xlu0 %10916  ;;  %v11296_v56 = vsel %vm10902_vm3, %v22642_v41, 0.0  ;;  %v11113_v59 = vsub.f32 %v22297_v4, %v10959_v0 }
 0x57d   :  { %18587 = vpow2.f32 %v11169_v23  ;;  %v11099_v9 = vsub.f32 %v22300_v37, %v10917_v45  ;;  %11297 = vadd.xlane.f32.xlu1 %v11296_v56  ;;  %v11293_v40 = vsel %vm10902_vm3, %v22645_v19, 0.0 }
 0x57e   :  { %18589 = vpow2.f32 %v11179_v26  ;;  %v11195_v0 = vmul.f32 1.442695, %v11113_v59 }
 0x57f   :  { %v22650_v3 = vpop.xlane.xlu1 %10973  ;;  %v22652_v58 = vpop.eup %18579  ;;  %v11167_v42 = vmul.f32 1.442695, %v11099_v9 }
 0x580   :  { %25806 = vst [vmem:[#allocation103_spill] sm:$0xff] %v22652_v58  ;;  %v10956_v61 = vpop.xlane.xlu0 %10955  ;;  %v11326_v32 = vsel %vm10902_vm3, %v22652_v58, 0.0  ;;  %v22659_v21 = vpop.eup %18581  ;;  %v25929_v58 = vld [vmem:[#allocation100_spill] sm:$0xff] }
 0x581   :  { %18591 = vpow2.f32 %v11167_v42  ;;  %v11112_v37 = vsub.f32 %v22316_v25, %v10956_v61  ;;  %11294 = vadd.xlane.f32.xlu1 %v11293_v40  ;;  %11327 = vadd.xlane.f32.xlu0 %v11326_v32  ;;  %v11305_v26 = vsel %vm10902_vm3, %v22659_v21, 0.0 }
 0x582   :  { %18593 = vpow2.f32 %v11187_v16 }
 0x583   :  { %v10971_v44 = vpop.xlane.xlu1 %10970  ;;  %v22664_v6 = vpop.eup %18583  ;;  %v11193_v14 = vmul.f32 1.442695, %v11112_v37 }
 0x584   :  { %25807 = vst [vmem:[#allocation104_spill] sm:$0xff] %v22664_v6  ;;  %v10953_v50 = vpop.xlane.xlu0 %10952  ;;  %v11323_v25 = vsel %vm10902_vm3, %v22664_v6, 0.0  ;;  %v22671_v15 = vpop.eup %18585  ;;  %v11117_v23 = vsub.f32 %v22323_v8, %v10971_v44 }
 0x585   :  { %25808 = vst [vmem:[#allocation105_spill] sm:$0xff] %v22671_v15  ;;  %18595 = vpow2.f32 %v11193_v14  ;;  %v11111_v36 = vsub.f32 %v22325_v33, %v10953_v50  ;;  %11306 = vadd.xlane.f32.xlu1 %v11305_v26  ;;  %11324 = vadd.xlane.f32.xlu0 %v11323_v25  ;;  %v11320_v16 = vsel %vm10902_vm3, %v22671_v15, 0.0 }
 0x586   :  { %18597 = vpow2.f32 %v11197_v30  ;;  %v11203_v8 = vmul.f32 1.442695, %v11117_v23 }
 0x587   :  { %v10986_v45 = vpop.xlane.xlu1 %10985  ;;  %v22675_v4 = vpop.eup %18587  ;;  %v11191_v56 = vmul.f32 1.442695, %v11111_v36 }
 0x588   :  { %25809 = vst [vmem:[#allocation106_spill] sm:$0xff] %v22675_v4  ;;  %v10968_v9 = vpop.xlane.xlu0 %10967  ;;  %v11302_v10 = vsel %vm10902_vm3, %v22675_v4, 0.0  ;;  %v22681_v42 = vpop.eup %18589  ;;  %v11122_v61 = vsub.f32 %v22329_v54, %v10986_v45 }
 0x589   :  { %25810 = vst [vmem:[#allocation107_spill] sm:$0xff] %v22681_v42  ;;  %18599 = vpow2.f32 %v11191_v56  ;;  %v11116_v33 = vsub.f32 %v22340_v53, %v10968_v9  ;;  %11321 = vadd.xlane.f32.xlu1 %v11320_v16  ;;  %11303 = vadd.xlane.f32.xlu0 %v11302_v10  ;;  %v11317_v44 = vsel %vm10902_vm3, %v22681_v42, 0.0 }
 0x58a   :  { %18601 = vpow2.f32 %v11173_v39  ;;  %v11213_v54 = vmul.f32 1.442695, %v11122_v61 }
 0x58b   :  { %v10983_v40 = vpop.xlane.xlu1 %10982  ;;  %v22685_v32 = vpop.eup %18591  ;;  %18603 = vpow2.f32 %v11195_v0  ;;  %v11201_v37 = vmul.f32 1.442695, %v11116_v33 }
 0x58c   :  { %25811 = vst [vmem:[#allocation108_spill] sm:$0xff] %v22685_v32  ;;  %v10965_v31 = vpop.xlane.xlu0 %10964  ;;  %v11299_v30 = vsel %vm10902_vm3, %v22685_v32, 0.0  ;;  %v22691_v59 = vpop.eup %18593  ;;  %18605 = vpow2.f32 %v11203_v8  ;;  %v11121_v14 = vsub.f32 %v22347_v11, %v10983_v40 }
 0x58d   :  { %25812 = vst [vmem:[#allocation109_spill] sm:$0xff] %v22691_v59  ;;  %v11115_v53 = vsub.f32 %v22353_v63, %v10965_v31  ;;  %11318 = vadd.xlane.f32.xlu1 %v11317_v44  ;;  %11300 = vadd.xlane.f32.xlu0 %v11299_v30  ;;  %18607 = vpow2.f32 %v11201_v37  ;;  %v11329_v39 = vsel %vm10902_vm3, %v22691_v59, 0.0  ;;  %v11110_v37 = vsub.f32 %v22240_v24, %v22626_v52 }
 0x58e   :  { %18609 = vpow2.f32 %v11213_v54  ;;  %v11211_v11 = vmul.f32 1.442695, %v11121_v14 }
 0x58f   :  { %v22695_v50 = vpop.xlane.xlu1 %10997  ;;  %v22697_v26 = vpop.eup %18595  ;;  %v11199_v25 = vmul.f32 1.442695, %v11115_v53  ;;  %v11189_v24 = vmul.f32 1.442695, %v11110_v37 }
 0x590   :  { %25813 = vst [vmem:[#allocation110_spill] sm:$0xff] %v22697_v26  ;;  %v10980_v36 = vpop.xlane.xlu0 %10979  ;;  %v11338_v23 = vsel %vm10902_vm3, %v22697_v26, 0.0  ;;  %v22703_v63 = vpop.eup %18597 }
 0x591   :  { %25814 = vst [vmem:[#allocation111_spill] sm:$0xff] %v22703_v63  ;;  %v11120_v45 = vsub.f32 %v22366_v55, %v10980_v36  ;;  %11330 = vadd.xlane.f32.xlu1 %v11329_v39  ;;  %11339 = vadd.xlane.f32.xlu0 %v11338_v23  ;;  %18611 = vpow2.f32 %v11199_v25  ;;  %v11344_v8 = vsel %vm10902_vm3, %v22703_v63, 0.0 }
 0x592   :  { %18613 = vpow2.f32 %v11211_v11 }
 0x593   :  { %v10995_v0 = vpop.xlane.xlu1 %10994  ;;  %v22706_v56 = vpop.eup %18599  ;;  %v11209_v16 = vmul.f32 1.442695, %v11120_v45 }
 0x594   :  { %25815 = vst [vmem:[#allocation112_spill] sm:$0xff] %v22706_v56  ;;  %v11125_v9 = vsub.f32 %v22377_v17, %v10995_v0  ;;  %v22709_v10 = vpop.eup %18601  ;;  %v10977_v33 = vpop.xlane.xlu0 %10976  ;;  %v11335_v55 = vsel %vm10902_vm3, %v22706_v56, 0.0 }
 0x595   :  { %25816 = vst [vmem:[#allocation113_spill] sm:$0xff] %v22709_v10  ;;  %v22715_v61 = vpop.eup %18603  ;;  %v11119_v40 = vsub.f32 %v22379_v38, %v10977_v33  ;;  %11345 = vadd.xlane.f32.xlu1 %v11344_v8  ;;  %11336 = vadd.xlane.f32.xlu0 %v11335_v55  ;;  %18615 = vpow2.f32 %v11209_v16  ;;  %v11308_v38 = vsel %vm10902_vm3, %v22709_v10, 0.0 }
 0x596   :  { %25817 = vst [vmem:[#allocation114_spill] sm:$0xff] %v22715_v61  ;;  %v11219_v17 = vmul.f32 1.442695, %v11125_v9  ;;  %v22721_v53 = vpop.eup %18605  ;;  %v11341_v14 = vsel %vm10902_vm3, %v22715_v61, 0.0 }
 0x597   :  { %v11010_v31 = vpop.xlane.xlu1 %11009  ;;  %v11207_v30 = vmul.f32 1.442695, %v11119_v40  ;;  %25818 = vst [vmem:[#allocation115_spill] sm:$0xff] %v22721_v53  ;;  %v22727_v25 = vpop.eup %18607  ;;  %v11353_v11 = vsel %vm10902_vm3, %v22721_v53, 0.0 }
 0x598   :  { %v11130_v44 = vsub.f32 %v22383_v7, %v11010_v31  ;;  %v10992_v54 = vpop.xlane.xlu0 %10991  ;;  %25819 = vst [vmem:[#allocation116_spill] sm:$0xff] %v22727_v25  ;;  %18617 = vpow2.f32 %v11219_v17  ;;  %v22731_v23 = vpop.eup %18609  ;;  %v11350_v0 = vsel %vm10902_vm3, %v22727_v25, 0.0 }
 0x599   :  { %11342 = vadd.xlane.f32.xlu1 %v11341_v14  ;;  %11309 = vadd.xlane.f32.xlu0 %v11308_v38  ;;  %v11124_v36 = vsub.f32 %v22394_v18, %v10992_v54  ;;  %18619 = vpow2.f32 %v11207_v30  ;;  %25820 = vst [vmem:[#allocation117_spill] sm:$0xff] %v22731_v23  ;;  %v11368_v40 = vsel %vm10902_vm3, %v22731_v23, 0.0 }
 0x59a   :  { %v11229_v7 = vmul.f32 1.442695, %v11130_v44  ;;  %18621 = vpow2.f32 %v11189_v24 }
 0x59b   :  { %v22737_v9 = vpop.eup %18611  ;;  %v11217_v16 = vmul.f32 1.442695, %v11124_v36 }
 0x59c   :  { %v10989_v45 = vpop.xlane.xlu0 %10988  ;;  %25821 = vst [vmem:[#allocation118_spill] sm:$0xff] %v22737_v9  ;;  %18623 = vpow2.f32 %v11229_v7  ;;  %v22742_v8 = vpop.eup %18613  ;;  %v11347_v37 = vsel %vm10902_vm3, %v22737_v9, 0.0 }
 0x59d   :  { %v11007_v52 = vpop.xlane.xlu1 %11006  ;;  %11354 = vadd.xlane.f32.xlu1 %v11353_v11  ;;  %11351 = vadd.xlane.f32.xlu0 %v11350_v0  ;;  %v11123_v33 = vsub.f32 %v22405_v34, %v10989_v45  ;;  %25822 = vst [vmem:[#allocation119_spill] sm:$0xff] %v22742_v8  ;;  %18625 = vpow2.f32 %v11217_v16  ;;  %v11365_v38 = vsel %vm10902_vm3, %v22742_v8, 0.0  ;;  %v11118_v16 = vsub.f32 %v22304_v43, %v22650_v3 }
 0x59e   :  { %v11129_v39 = vsub.f32 %v22402_v49, %v11007_v52 }
 0x59f   :  { %v22748_v17 = vpop.eup %18615  ;;  %v11215_v31 = vmul.f32 1.442695, %v11123_v33 }
 0x5a0   :  { %v11227_v49 = vmul.f32 1.442695, %v11129_v39  ;;  %v11004_v55 = vpop.xlane.xlu0 %11003  ;;  %25823 = vst [vmem:[#allocation120_spill] sm:$0xff] %v22748_v17  ;;  %v11362_v24 = vsel %vm10902_vm3, %v22748_v17, 0.0  ;;  %v25875_v17 = vld [vmem:[#allocation94_spill] sm:$0xff] }
 0x5a1   :  { %v22739_v18 = vpop.xlane.xlu1 %11021  ;;  %11369 = vadd.xlane.f32.xlu1 %v11368_v40  ;;  %11348 = vadd.xlane.f32.xlu0 %v11347_v37  ;;  %v11128_v30 = vsub.f32 %v22419_v46, %v11004_v55 }
 0x5a2   :  { %18627 = vpow2.f32 %v11227_v49  ;;  %v22752_v54 = vpop.eup %18617 }
 0x5a3   :  { %25824 = vst [vmem:[#allocation121_spill] sm:$0xff] %v22752_v54  ;;  %v22758_v52 = vpop.eup %18619  ;;  %18629 = vpow2.f32 %v11215_v31  ;;  %v11225_v7 = vmul.f32 1.442695, %v11128_v30  ;;  %v11377_v45 = vsel %vm10902_vm3, %v22752_v54, 0.0  ;;  %v25854_v54 = vld [vmem:[#allocation85_spill] sm:$0xff] }
 0x5a4   :  { %v11001_v14 = vpop.xlane.xlu0 %11000  ;;  %25825 = vst [vmem:[#allocation122_spill] sm:$0xff] %v22758_v52  ;;  %v22761_v46 = vpop.eup %18621  ;;  %v11359_v11 = vsel %vm10902_vm3, %v22758_v52, 0.0 }
 0x5a5   :  { %v11019_v44 = vpop.xlane.xlu1 %11018  ;;  %11366 = vadd.xlane.f32.xlu1 %v11365_v38  ;;  %11363 = vadd.xlane.f32.xlu0 %v11362_v24  ;;  %25826 = vst [vmem:[#allocation123_spill] sm:$0xff] %v22761_v46  ;;  %v11332_v37 = vsel %vm10902_vm3, %v22761_v46, 0.0 }
 0x5a6   :  { %v11133_v34 = vsub.f32 %v22426_v5, %v11019_v44  ;;  %v11127_v5 = vsub.f32 %v22432_v60, %v11001_v14  ;;  %v22767_v0 = vpop.eup %18623 }
 0x5a7   :  { %25827 = vst [vmem:[#allocation124_spill] sm:$0xff] %v22767_v0  ;;  %v22771_v49 = vpop.eup %18625  ;;  %v11392_v40 = vsel %vm10902_vm3, %v22767_v0, 0.0 }
 0x5a8   :  { %v11235_v36 = vmul.f32 1.442695, %v11133_v34  ;;  %v11016_v39 = vpop.xlane.xlu0 %11015  ;;  %v11223_v33 = vmul.f32 1.442695, %v11127_v5  ;;  %25828 = vst [vmem:[#allocation125_spill] sm:$0xff] %v22771_v49  ;;  %v11374_v24 = vsel %vm10902_vm3, %v22771_v49, 0.0 }
 0x5a9   :  { %11378 = vadd.xlane.f32.xlu1 %v11377_v45  ;;  %11360 = vadd.xlane.f32.xlu0 %v11359_v11  ;;  %v11205_v34 = vmul.f32 1.442695, %v11118_v16  ;;  %v11132_v3 = vsub.f32 %v22440_v48, %v11016_v39  ;;  %v25832_v39 = vld [vmem:[#allocation80_spill] sm:$0xff]  ;;  %v25868_v49 = vld [vmem:[#allocation45_spill] sm:$0xff] }
 0x5aa   :  { %18631 = vpow2.f32 %v11235_v36 }
 0x5ab   :  { %18633 = vpow2.f32 %v11225_v7  ;;  %v11233_v48 = vmul.f32 1.442695, %v11132_v3 }
 0x5ac   :  { %v11013_v55 = vpop.xlane.xlu0 %11012  ;;  %v22777_v31 = vpop.eup %18627  ;;  %18635 = vpow2.f32 %v11223_v33 }
 0x5ad   :  { %25829 = vst [vmem:[#allocation126_spill] sm:$0xff] %v22777_v31  ;;  %11393 = vadd.xlane.f32.xlu1 %v11392_v40  ;;  %11333 = vadd.xlane.f32.xlu0 %v11332_v37  ;;  %v22781_v30 = vpop.eup %18629  ;;  %v11389_v38 = vsel %vm10902_vm3, %v22777_v31, 0.0  ;;  %v11131_v45 = vsub.f32 %v25832_v39, %v11013_v55 }
 0x5ae   :  { %25830 = vst [vmem:[#allocation127_spill] sm:$0xff] %v22781_v30  ;;  %v11371_v16 = vsel %vm10902_vm3, %v22781_v30, 0.0 }
 0x5b1   :  { %11390 = vadd.xlane.f32.xlu1 %v11389_v38  ;;  %11375 = vadd.xlane.f32.xlu0 %v11374_v24 }
 0x5b4   :  { %v11034_v60 = vpop.xlane.xlu1 %11033  ;;  %v22787_v36 = vpop.eup %18631 }
 0x5b5   :  { %v11138_v44 = vsub.f32 %v22455_v1, %v11034_v60  ;;  %25831 = vst [vmem:[#allocation128_spill] sm:$0xff] %v22787_v36  ;;  %v11028_v7 = vpop.xlane.xlu0 %11027  ;;  %v11401_v11 = vsel %vm10902_vm3, %v22787_v36, 0.0  ;;  %v22795_v33 = vpop.eup %18633  ;;  %11372 = vadd.xlane.f32.xlu0 %v11371_v16  ;;  %v25834_v60 = vld [vmem:[#allocation44_spill] sm:$0xff] }
 0x5b6   :  { %25833 = vst [vmem:[#allocation80_spill] sm:$0xff] %v22795_v33  ;;  %11402 = vadd.xlane.f32.xlu1 %v11401_v11  ;;  %v11136_v40 = vsub.f32 %v25834_v60, %v11028_v7  ;;  %v22800_v55 = vpop.eup %18635 }
 0x5b7   :  { %v11245_v43 = vmul.f32 1.442695, %v11138_v44  ;;  %v11386_v44 = vsel %vm10902_vm3, %v22795_v33, 0.0  ;;  %25835 = vst [vmem:[#allocation44_spill] sm:$0xff] %v22800_v55  ;;  %v25862_v33 = vld [vmem:[#allocation25_spill] sm:$0xff] }
 0x5b8   :  { %v11031_v14 = vpop.xlane.xlu1 %11030 }
 0x5b9   :  { %18637 = vpow2.f32 %v11245_v43  ;;  %v11137_v1 = vsub.f32 %v22462_v22, %v11031_v14  ;;  %v11231_v22 = vmul.f32 1.442695, %v11131_v45  ;;  %v11025_v37 = vpop.xlane.xlu0 %11024  ;;  %11387 = vadd.xlane.f32.xlu0 %v11386_v44  ;;  %v11241_v14 = vmul.f32 1.442695, %v11136_v40  ;;  %v25840_v45 = vld [vmem:[#allocation70_spill] sm:$0xff] }
 0x5ba   :  { %18639 = vpow2.f32 %v11205_v34  ;;  %v25836_v34 = vld [vmem:[#allocation83_spill] sm:$0xff]  ;;  %v11126_v11 = vsub.f32 %v25840_v45, %v22695_v50 }
 0x5bb   :  { %v11243_v5 = vmul.f32 1.442695, %v11137_v1  ;;  %v11135_v43 = vsub.f32 %v25836_v34, %v11025_v37  ;;  %v11383_v1 = vsel %vm10902_vm3, %v22800_v55, 0.0  ;;  %v25842_v37 = vld [vmem:[#allocation48_spill] sm:$0xff] }
 0x5bc   :  { %v11221_v34 = vmul.f32 1.442695, %v11126_v11  ;;  %v25849_v11 = vld [vmem:[#allocation66_spill] sm:$0xff] }
 0x5bd   :  { %18641 = vpow2.f32 %v11243_v5  ;;  %11384 = vadd.xlane.f32.xlu0 %v11383_v1  ;;  %v11239_v5 = vmul.f32 1.442695, %v11135_v43 }
 0x5be   :  { %18643 = vpow2.f32 %v11233_v48 }
 0x5bf   :  { %18645 = vpow2.f32 %v11231_v22 }
 0x5c0   :  { %18647 = vpow2.f32 %v11241_v14 }
 0x5c1   :  { %18649 = vpow2.f32 %v11239_v5  ;;  %v25848_v5 = vld [vmem:[#allocation71_spill] sm:$0xff] }
 0x5c3   :  { %v22803_v3 = vpop.eup %18637 }
 0x5c4   :  { %25837 = vst [vmem:[#allocation83_spill] sm:$0xff] %v22803_v3  ;;  %v22805_v38 = vpop.xlane.xlu1 %11045  ;;  %v11416_v24 = vsel %vm10902_vm3, %v22803_v3, 0.0  ;;  %v22811_v7 = vpop.eup %18639  ;;  %v25845_v3 = vld [vmem:[#allocation58_spill] sm:$0xff] }
 0x5c5   :  { %25838 = vst [vmem:[#allocation129_spill] sm:$0xff] %v22811_v7  ;;  %11417 = vadd.xlane.f32.xlu1 %v11416_v24  ;;  %v11040_v48 = vpop.xlane.xlu0 %11039  ;;  %v11356_v60 = vsel %vm10902_vm3, %v22811_v7, 0.0  ;;  %v25843_v24 = vld [vmem:[#allocation32_spill] sm:$0xff] }
 0x5c6   :  { %11357 = vadd.xlane.f32.xlu0 %v11356_v60  ;;  %v11140_v1 = vsub.f32 %v25843_v24, %v11040_v48  ;;  %v5942_v24 = vcombine.high %v25849_v11, %v25848_v5 }
 0x5c7   :  { %v22813_v39 = vpop.eup %18641 }
 0x5c8   :  { %25839 = vst [vmem:[#allocation130_spill] sm:$0xff] %v22813_v39  ;;  %v11043_v16 = vpop.xlane.xlu1 %11042  ;;  %v11413_v22 = vsel %vm10902_vm3, %v22813_v39, 0.0  ;;  %v22821_v40 = vpop.eup %18643  ;;  %v25846_v39 = vld [vmem:[#allocation52_spill] sm:$0xff] }
 0x5c9   :  { %25841 = vst [vmem:[#allocation70_spill] sm:$0xff] %v22821_v40  ;;  %v11141_v44 = vsub.f32 %v25842_v37, %v11043_v16  ;;  %11414 = vadd.xlane.f32.xlu1 %v11413_v22  ;;  %v11037_v50 = vpop.xlane.xlu0 %11036  ;;  %v11398_v14 = vsel %vm10902_vm3, %v22821_v40, 0.0  ;;  %v22827_v45 = vpop.eup %18645  ;;  %v5925_v36 = vcombine.low %v25846_v39, %v25845_v3  ;;  %v11249_v16 = vmul.f32 1.442695, %v11140_v1  ;;  %v25847_v22 = vld [vmem:[#allocation31_spill] sm:$0xff]  ;;  %v25853_v40 = vld [vmem:[#allocation86_spill] sm:$0xff] }
 0x5ca   :  { %25844 = vst [vmem:[#allocation48_spill] sm:$0xff] %v22827_v45  ;;  %11399 = vadd.xlane.f32.xlu0 %v11398_v14  ;;  %v11139_v60 = vsub.f32 %v25847_v22, %v11037_v50  ;;  %v5941_v37 = vcombine.low %v25849_v11, %v25848_v5  ;;  %v11395_v48 = vsel %vm10902_vm3, %v22827_v45, 0.0  ;;  %v25851_v14 = vld [vmem:[#allocation43_spill] sm:$0xff] }
 0x5cb   :  { %v11251_v43 = vmul.f32 1.442695, %v11141_v44  ;;  %v22836_v44 = vpop.eup %18647  ;;  %v5956_v11 = vrot.slane %v5942_v24, %v25851_v14 }
 0x5cc   :  { %25850 = vst [vmem:[#allocation32_spill] sm:$0xff] %v22836_v44  ;;  %v11247_v50 = vmul.f32 1.442695, %v11139_v60  ;;  %v22843_v0 = vpop.eup %18649  ;;  %v5949_v31 = vrot.slane %v5941_v37, %v25851_v14  ;;  %v11410_v5 = vsel %vm10902_vm3, %v22836_v44, 0.0  ;;  %v25858_v44 = vld [vmem:[#allocation89_spill] sm:$0xff] }
 0x5cd   :  { %18651 = vpow2.f32 %v11251_v43  ;;  %v5926_v43 = vcombine.high %v25846_v39, %v25845_v3  ;;  %25852 = vst [vmem:[#allocation58_spill] sm:$0xff] %v22843_v0  ;;  %v25855_v3 = vld [vmem:[#allocation75_spill] sm:$0xff]  ;;  %v25856_v39 = vld [vmem:[#allocation76_spill] sm:$0xff]  ;;  %v11407_v24 = vsel %vm10902_vm3, %v22843_v0, 0.0 }
 0x5ce   :  { %18653 = vpow2.f32 %v11221_v34  ;;  %11396 = vadd.xlane.f32.xlu0 %v11395_v48  ;;  %v5933_v34 = vrot.slane %v5925_v36, %v25851_v14  ;;  %v6077_v36 = vcombine.low %v25856_v39, %v25855_v3 }
 0x5cf   :  { %18655 = vpow2.f32 %v11249_v16  ;;  %v6078_v16 = vcombine.high %v25856_v39, %v25855_v3  ;;  %v5940_v60 = vrot.slane %v5926_v43, %v25851_v14  ;;  %v25859_v39 = vld [vmem:[#allocation88_spill] sm:$0xff] }
 0x5d0   :  { %v5957_v48 = vcombine.low %v5933_v34, %v5949_v31  ;;  %18657 = vpow2.f32 %v11247_v50  ;;  %v25864_v50 = vld [vmem:[#allocation51_spill] sm:$0xff] }
 0x5d1   :  { %v11052_v22 = vpop.xlane.xlu0 %11051  ;;  %v5974_v53 = vcombine.high %v5940_v60, %v5956_v11 }
 0x5d2   :  { %v11058_v1 = vpop.xlane.xlu1 %11057  ;;  %v11144_v23 = vsub.f32 %v25854_v54, %v11052_v22  ;;  %11411 = vadd.xlane.f32.xlu0 %v11410_v5  ;;  %v22877_v30 = vrot.slane %v5957_v48, %v25868_v49  ;;  %v22891_v48 = vrot.slane %v6077_v36, %v25851_v14 }
 0x5d3   :  { %v11146_v45 = vsub.f32 %v25853_v40, %v11058_v1  ;;  %v5958_v40 = vcombine.high %v5933_v34, %v5949_v31  ;;  %v25863_v34 = vld [vmem:[#allocation59_spill] sm:$0xff] }
 0x5d4   :  { %v11257_v1 = vmul.f32 1.442695, %v11144_v23  ;;  %v5993_v55 = vcombine.low %v25864_v50, %v25863_v34 }
 0x5d5   :  { %v11261_v37 = vmul.f32 1.442695, %v11146_v45  ;;  %v11049_v22 = vpop.xlane.xlu0 %11048  ;;  %v25861_v45 = vld [vmem:[#allocation78_spill] sm:$0xff] }
 0x5d6   :  { %v11055_v54 = vpop.xlane.xlu1 %11054  ;;  %v11143_v43 = vsub.f32 %v25859_v39, %v11049_v22  ;;  %v6213_v31 = vcombine.low %v25862_v33, %v25861_v45  ;;  %v6214_v23 = vcombine.high %v25862_v33, %v25861_v45  ;;  %11408 = vadd.xlane.f32.xlu0 %v11407_v24  ;;  %v22880_v45 = vrot.slane %v5958_v40, %v25868_v49 }
 0x5d7   :  { %v22856_v8 = vpop.eup %18651  ;;  %18659 = vpow2.f32 %v11261_v37  ;;  %v11145_v5 = vsub.f32 %v25858_v44, %v11055_v54  ;;  %v5973_v37 = vcombine.low %v5940_v60, %v5956_v11  ;;  %v25865_v44 = vld [vmem:[#allocation60_spill] sm:$0xff]  ;;  %v25866_v54 = vld [vmem:[#allocation57_spill] sm:$0xff]  ;;  %v22894_v11 = vrot.slane %v6078_v16, %v25851_v14 }
 0x5d8   :  { %25857 = vst [vmem:[#allocation52_spill] sm:$0xff] %v22856_v8  ;;  %v11425_v3 = vsel %vm10902_vm3, %v22856_v8, 0.0  ;;  %v22864_v7 = vpop.eup %18653  ;;  %v6009_v0 = vcombine.low %v25866_v54, %v25865_v44  ;;  %v25867_v8 = vld [vmem:[#allocation74_spill] sm:$0xff]  ;;  %18661 = vpow2.f32 %v11257_v1  ;;  %v11255_v63 = vmul.f32 1.442695, %v11143_v43  ;;  %v25870_v43 = vld [vmem:[#allocation69_spill] sm:$0xff] }
 0x5d9   :  { %25860 = vst [vmem:[#allocation31_spill] sm:$0xff] %v22864_v7  ;;  %11426 = vadd.xlane.f32.xlu1 %v11425_v3  ;;  %v11134_v22 = vsub.f32 %v25867_v8, %v22739_v18  ;;  %v11259_v39 = vmul.f32 1.442695, %v11145_v5  ;;  %v6010_v24 = vcombine.high %v25866_v54, %v25865_v44  ;;  %v11380_v18 = vsel %vm10902_vm3, %v22864_v7, 0.0  ;;  %v22888_v8 = vpop.eup %18655  ;;  %v25871_v44 = vld [vmem:[#allocation54_spill] sm:$0xff] }
 0x5da   :  { %v11064_v33 = vpop.xlane.xlu0 %11063  ;;  %25869 = vst [vmem:[#allocation71_spill] sm:$0xff] %v22888_v8  ;;  %v22897_v60 = vrot.slane %v6213_v31, %v25851_v14  ;;  %v5994_v40 = vcombine.high %v25864_v50, %v25863_v34  ;;  %11381 = vadd.xlane.f32.xlu0 %v11380_v18  ;;  %v22902_v1 = vrot.slane %v6214_v23, %v25851_v14 }
 0x5db   :  { %18663 = vpow2.f32 %v11259_v39  ;;  %v22884_v3 = vpop.xlane.xlu1 %11069  ;;  %v6017_v5 = vrot.slane %v6009_v0, %v25851_v14  ;;  %v6061_v54 = vcombine.low %v25871_v44, %v25870_v43  ;;  %v11237_v36 = vmul.f32 1.442695, %v11134_v22 }
 0x5dc   :  { %v22908_v39 = vrot.slane %v5973_v37, %v25868_v49  ;;  %v22911_v16 = vrot.slane %v5974_v53, %v25868_v49  ;;  %18665 = vpow2.f32 %v11255_v63  ;;  %v11148_v31 = vsub.f32 %v22543_v57, %v11064_v33  ;;  %v22920_v37 = vpop.eup %18657  ;;  %v25873_v33 = vld [vmem:[#allocation95_spill] sm:$0xff] }
 0x5dd   :  { %v6001_v23 = vrot.slane %v5993_v55, %v25851_v14  ;;  %v6024_v0 = vrot.slane %v6010_v24, %v25851_v14  ;;  %v11422_v22 = vsel %vm10902_vm3, %v22888_v8, 0.0  ;;  %25872 = vst [vmem:[#allocation66_spill] sm:$0xff] %v22920_v37  ;;  %v6008_v63 = vrot.slane %v5994_v40, %v25851_v14 }
 0x5de   :  { %v11061_v18 = vpop.xlane.xlu0 %11060  ;;  %v6062_v57 = vcombine.high %v25871_v44, %v25870_v43  ;;  %11423 = vadd.xlane.f32.xlu0 %v11422_v22  ;;  %v6069_v61 = vrot.slane %v6061_v54, %v25851_v14  ;;  %18667 = vpow2.f32 %v11237_v36  ;;  %v11265_v53 = vmul.f32 1.442695, %v11148_v31  ;;  %v25876_v43 = vld [vmem:[#allocation27_spill] sm:$0xff]  ;;  %v25877_v44 = vld [vmem:[#allocation81_spill] sm:$0xff] }
 0x5df   :  { %v11067_v50 = vpop.xlane.xlu1 %11066  ;;  %v6025_v24 = vcombine.low %v6001_v23, %v6017_v5  ;;  %v6026_v7 = vcombine.high %v6001_v23, %v6017_v5  ;;  %v11147_v40 = vsub.f32 %v25875_v17, %v11061_v18  ;;  %v6041_v52 = vcombine.low %v6008_v63, %v6024_v0  ;;  %v25884_v18 = vld [vmem:[#allocation53_spill] sm:$0xff] }
 0x5e0   :  { %v11149_v34 = vsub.f32 %v25873_v33, %v11067_v50  ;;  %v6042_v25 = vcombine.high %v6008_v63, %v6024_v0  ;;  %v6349_v50 = vcombine.low %v25877_v44, %v25876_v43  ;;  %v11419_v22 = vsel %vm10902_vm3, %v22920_v37, 0.0 }
 0x5e1   :  { %v22928_v55 = vpop.eup %18659  ;;  %v6350_v36 = vcombine.high %v25877_v44, %v25876_v43  ;;  %v6076_v31 = vrot.slane %v6062_v57, %v25851_v14  ;;  %v6093_v23 = vcombine.low %v6069_v61, %v22891_v48  ;;  %v6094_v0 = vcombine.high %v6069_v61, %v22891_v48 }
 0x5e2   :  { %25874 = vst [vmem:[#allocation43_spill] sm:$0xff] %v22928_v55  ;;  %v11267_v8 = vmul.f32 1.442695, %v11149_v34  ;;  %v11440_v46 = vsel %vm10902_vm3, %v22928_v55, 0.0  ;;  %v22938_v5 = vpop.eup %18661  ;;  %11420 = vadd.xlane.f32.xlu0 %v11419_v22  ;;  %v22948_v34 = vrot.slane %v6025_v24, %v25868_v49  ;;  %v11263_v63 = vmul.f32 1.442695, %v11147_v40 }
 0x5e3   :  { %11441 = vadd.xlane.f32.xlu1 %v11440_v46  ;;  %25878 = vst [vmem:[#allocation86_spill] sm:$0xff] %v22938_v5  ;;  %v22951_v46 = vrot.slane %v6026_v7, %v25868_v49  ;;  %v22960_v57 = vrot.slane %v6041_v52, %v25868_v49  ;;  %v22963_v33 = vrot.slane %v6042_v25, %v25868_v49  ;;  %v11434_v61 = vsel %vm10902_vm3, %v22938_v5, 0.0  ;;  %v25881_v40 = vld [vmem:[#allocation47_spill] sm:$0xff]  ;;  %v25882_v52 = vld [vmem:[#allocation29_spill] sm:$0xff]  ;;  %v25885_v55 = vld [vmem:[#allocation24_spill] sm:$0xff] }
 0x5e4   :  { %18669 = vpow2.f32 %v11267_v8  ;;  %v22966_v7 = vrot.slane %v6349_v50, %v25851_v14  ;;  %v6109_v24 = vcombine.low %v6076_v31, %v22894_v11  ;;  %v6485_v43 = vcombine.low %v25882_v52, %v25881_v40 }
 0x5e5   :  { %v22945_v17 = vpop.eup %18663  ;;  %18671 = vpow2.f32 %v11265_v53  ;;  %v22973_v53 = vrot.slane %v6350_v36, %v25851_v14  ;;  %v6486_v25 = vcombine.high %v25882_v52, %v25881_v40  ;;  %v22983_v50 = vrot.slane %v6093_v23, %v25868_v49 }
 0x5e6   :  { %25879 = vst [vmem:[#allocation85_spill] sm:$0xff] %v22945_v17  ;;  %v11437_v8 = vsel %vm10902_vm3, %v22945_v17, 0.0  ;;  %v22970_v48 = vpop.eup %18665  ;;  %11435 = vadd.xlane.f32.xlu0 %v11434_v61  ;;  %v22986_v22 = vrot.slane %v6094_v0, %v25868_v49  ;;  %v6110_v36 = vcombine.high %v6076_v31, %v22894_v11  ;;  %v25886_v17 = vld [vmem:[#allocation41_spill] sm:$0xff]  ;;  %18673 = vpow2.f32 %v11263_v63 }
 0x5e7   :  { %11438 = vadd.xlane.f32.xlu1 %v11437_v8  ;;  %25880 = vst [vmem:[#allocation75_spill] sm:$0xff] %v22970_v48  ;;  %v25883_v8 = vld [vmem:[#allocation68_spill] sm:$0xff]  ;;  %v6145_v5 = vcombine.low %v25886_v17, %v25885_v55  ;;  %v6146_v61 = vcombine.high %v25886_v17, %v25885_v55  ;;  %v11431_v31 = vsel %vm10902_vm3, %v22970_v48, 0.0  ;;  %v23006_v52 = vrot.slane %v6109_v24, %v25868_v49 }
 0x5e8   :  { %v6129_v54 = vcombine.low %v25884_v18, %v25883_v8  ;;  %v22995_v40 = vpop.eup %18667  ;;  %v23009_v55 = vrot.slane %v6485_v43, %v25851_v14  ;;  %v23012_v17 = vrot.slane %v6486_v25, %v25851_v14  ;;  %v6130_v63 = vcombine.high %v25884_v18, %v25883_v8  ;;  %v25891_v25 = vld [vmem:[#allocation56_spill] sm:$0xff] }
 0x5e9   :  { %25887 = vst [vmem:[#allocation76_spill] sm:$0xff] %v22995_v40  ;;  %v23017_v11 = vrot.slane %v6110_v36, %v25868_v49  ;;  %v6153_v8 = vrot.slane %v6145_v5, %v25851_v14 }
 0x5ea   :  { %11432 = vadd.xlane.f32.xlu0 %v11431_v31  ;;  %v6137_v18 = vrot.slane %v6129_v54, %v25851_v14  ;;  %v6160_v31 = vrot.slane %v6146_v61, %v25851_v14  ;;  %v25892_v54 = vld [vmem:[#allocation39_spill] sm:$0xff] }
 0x5eb   :  { %v11082_v23 = vpop.xlane.xlu1 %11081  ;;  %v11076_v0 = vpop.xlane.xlu0 %11075  ;;  %v11142_v5 = vsub.f32 %v25892_v54, %v22805_v38  ;;  %v25895_v54 = vld [vmem:[#allocation49_spill] sm:$0xff] }
 0x5ec   :  { %v11154_v24 = vsub.f32 %v22575_v27, %v11082_v23  ;;  %v11152_v43 = vsub.f32 %v22573_v47, %v11076_v0  ;;  %v11404_v27 = vsel %vm10902_vm3, %v22995_v40, 0.0  ;;  %v6144_v23 = vrot.slane %v6130_v63, %v25851_v14  ;;  %v25890_v0 = vld [vmem:[#allocation64_spill] sm:$0xff] }
 0x5ed   :  { %v6197_v9 = vcombine.low %v25891_v25, %v25890_v0  ;;  %v6161_v40 = vcombine.low %v6137_v18, %v6153_v8  ;;  %v6162_v63 = vcombine.high %v6137_v18, %v6153_v8  ;;  %v25896_v8 = vld [vmem:[#allocation96_spill] sm:$0xff] }
 0x5ee   :  { %v23023_v48 = vpop.eup %18669  ;;  %v11277_v36 = vmul.f32 1.442695, %v11154_v24  ;;  %v11273_v37 = vmul.f32 1.442695, %v11152_v43  ;;  %11405 = vadd.xlane.f32.xlu0 %v11404_v27  ;;  %v6198_v24 = vcombine.high %v25891_v25, %v25890_v0  ;;  %v6177_v15 = vcombine.low %v6144_v23, %v6160_v31  ;;  %v25894_v27 = vld [vmem:[#allocation87_spill] sm:$0xff] }
 0x5ef   :  { %25888 = vst [vmem:[#allocation89_spill] sm:$0xff] %v23023_v48  ;;  %v11449_v44 = vsel %vm10902_vm3, %v23023_v48, 0.0  ;;  %v23034_v47 = vpop.eup %18671  ;;  %v11079_v59 = vpop.xlane.xlu1 %11078  ;;  %v6178_v26 = vcombine.high %v6144_v23, %v6160_v31  ;;  %v6621_v25 = vcombine.low %v25895_v54, %v25894_v27  ;;  %v25897_v31 = vld [vmem:[#allocation91_spill] sm:$0xff]  ;;  %v23063_v0 = vrot.slane %v6161_v40, %v25868_v49 }
 0x5f0   :  { %25889 = vst [vmem:[#allocation88_spill] sm:$0xff] %v23034_v47  ;;  %11450 = vadd.xlane.f32.xlu1 %v11449_v44  ;;  %v11073_v61 = vpop.xlane.xlu0 %11072  ;;  %18675 = vpow2.f32 %v11277_v36  ;;  %v11153_v43 = vsub.f32 %v22582_v12, %v11079_v59  ;;  %v11446_v38 = vsel %vm10902_vm3, %v23034_v47, 0.0  ;;  %v23047_v44 = vpop.eup %18673  ;;  %v6622_v12 = vcombine.high %v25895_v54, %v25894_v27 }
 0x5f1   :  { %v11151_v48 = vsub.f32 %v22580_v29, %v11073_v61  ;;  %18677 = vpow2.f32 %v11273_v37  ;;  %25893 = vst [vmem:[#allocation78_spill] sm:$0xff] %v23047_v44  ;;  %v6205_v29 = vrot.slane %v6197_v9, %v25851_v14  ;;  %v11253_v59 = vmul.f32 1.442695, %v11142_v5  ;;  %v25904_v37 = vld [vmem:[#allocation26_spill] sm:$0xff] }
 0x5f2   :  { %v11275_v42 = vmul.f32 1.442695, %v11153_v43  ;;  %11447 = vadd.xlane.f32.xlu0 %v11446_v38  ;;  %v6757_v36 = vcombine.low %v25897_v31, %v25896_v8  ;;  %v23066_v9 = vrot.slane %v6162_v63, %v25868_v49  ;;  %v6212_v5 = vrot.slane %v6198_v24, %v25851_v14  ;;  %v25898_v38 = vld [vmem:[#allocation93_spill] sm:$0xff] }
 0x5f3   :  { %v11271_v10 = vmul.f32 1.442695, %v11151_v48  ;;  %v23070_v61 = vrot.slane %v6177_v15, %v25868_v49  ;;  %v23073_v43 = vrot.slane %v6178_v26, %v25868_v49  ;;  %v11443_v27 = vsel %vm10902_vm3, %v23047_v44, 0.0  ;;  %v25925_v44 = vld [vmem:[#allocation73_spill] sm:$0xff] }
 0x5f4   :  { %v11088_v18 = vpop.xlane.xlu0 %11087  ;;  %18679 = vpow2.f32 %v11275_v42  ;;  %v23060_v23 = vpop.xlane.xlu1 %11093  ;;  %v11150_v42 = vsub.f32 %v25898_v38, %v22884_v3  ;;  %v23080_v40 = vrot.slane %v6621_v25, %v25851_v14  ;;  %v23083_v63 = vrot.slane %v6622_v12, %v25851_v14 }
 0x5f5   :  { %18681 = vpow2.f32 %v11271_v10  ;;  %v6229_v10 = vcombine.low %v6205_v29, %v22897_v60  ;;  %v6230_v26 = vcombine.high %v6205_v29, %v22897_v60  ;;  %v6758_v24 = vcombine.high %v25897_v31, %v25896_v8  ;;  %v25905_v60 = vld [vmem:[#allocation42_spill] sm:$0xff] }
 0x5f6   :  { %25899 = vst [vmem:[#allocation25_spill] sm:$0xff] %v23080_v40  ;;  %25900 = vst [vmem:[#allocation59_spill] sm:$0xff] %v23083_v63  ;;  %18683 = vpow2.f32 %v11253_v59  ;;  %11444 = vadd.xlane.f32.xlu0 %v11443_v27  ;;  %v23090_v3 = vrot.slane %v6757_v36, %v25851_v14  ;;  %v6245_v38 = vcombine.low %v6212_v5, %v22902_v1  ;;  %v11269_v8 = vmul.f32 1.442695, %v11150_v42  ;;  %v25928_v63 = vld [vmem:[#allocation67_spill] sm:$0xff] }
 0x5f7   :  { %v6246_v59 = vcombine.high %v6212_v5, %v22902_v1  ;;  %v23107_v36 = vrot.slane %v6229_v10, %v25868_v49  ;;  %v6281_v29 = vcombine.low %v25905_v60, %v25904_v37  ;;  %v25906_v10 = vcombine.low %v22877_v30, %v22880_v45 }
 0x5f8   :  { %v11085_v15 = vpop.xlane.xlu0 %11084  ;;  %25901 = vst [vmem:[#allocation51_spill] sm:$0xff] %v23090_v3  ;;  %v11091_v54 = vpop.xlane.xlu1 %11090 }
 0x5f9   :  { %v11155_v25 = vsub.f32 %v22602_v62, %v11085_v15  ;;  %v11157_v27 = vsub.f32 %v22606_v51, %v11091_v54  ;;  %v11156_v51 = vsub.f32 %v22595_v2, %v11088_v18  ;;  %v23113_v54 = vrot.slane %v6230_v26, %v25868_v49 }
 0x5fa   :  { %v23098_v48 = vpop.eup %18675  ;;  %v25907_v2 = vcombine.high %v22877_v30, %v22880_v45  ;;  %v25908_v26 = vcombine.low %v22948_v34, %v22951_v46  ;;  %v25911_v30 = vcombine.low %v22960_v57, %v22963_v33 }
 0x5fb   :  { %25902 = vst [vmem:[#allocation60_spill] sm:$0xff] %v23098_v48  ;;  %v11279_v31 = vmul.f32 1.442695, %v11155_v25  ;;  %v23104_v62 = vpop.eup %18677  ;;  %v11283_v15 = vmul.f32 1.442695, %v11157_v27  ;;  %v11464_v1 = vsel %vm10902_vm3, %v23098_v48, 0.0  ;;  %v23123_v25 = vrot.slane %v25906_v10, %v25851_v14 }
 0x5fc   :  { %25903 = vst [vmem:[#allocation57_spill] sm:$0xff] %v23104_v62  ;;  %v11292_v5 = vpop.xlane.xlu0 %11291  ;;  %11465 = vadd.xlane.f32.xlu1 %v11464_v1  ;;  %v11458_v42 = vsel %vm10902_vm3, %v23104_v62, 0.0  ;;  %v23129_v18 = vrot.slane %v25907_v2, %v25851_v14  ;;  %v23135_v27 = vrot.slane %v25908_v26, %v25851_v14  ;;  %v23149_v45 = vrot.slane %v25911_v30, %v25851_v14 }
 0x5fd   :  { %18685 = vpow2.f32 %v11279_v31  ;;  %11459 = vadd.xlane.f32.xlu0 %v11458_v42  ;;  %v25912_v42 = vcombine.high %v22960_v57, %v22963_v33  ;;  %v25915_v33 = vcombine.high %v22908_v39, %v22911_v16 }
 0x5fe   :  { %18687 = vpow2.f32 %v11283_v15  ;;  %v23137_v31 = vpop.eup %18679  ;;  %v25910_v15 = vcombine.high %v22948_v34, %v22951_v46  ;;  %v11281_v34 = vmul.f32 1.442695, %v11156_v51  ;;  %v6289_v51 = vrot.slane %v6281_v29, %v25851_v14  ;;  %v25920_v29 = vld [vmem:[#allocation72_spill] sm:$0xff] }
 0x5ff   :  { %25909 = vst [vmem:[#allocation74_spill] sm:$0xff] %v23137_v31  ;;  %18689 = vpow2.f32 %v11269_v8  ;;  %v23155_v10 = vrot.slane %v25912_v42, %v25851_v14  ;;  %v23157_v2 = vpop.eup %18681  ;;  %v11158_v8 = vsub.f32 %v22598_v13, %v23060_v23  ;;  %v11461_v46 = vsel %vm10902_vm3, %v23137_v31, 0.0 }
 0x600   :  { %v23143_v1 = vrot.slane %v25910_v15, %v25851_v14  ;;  %25913 = vst [vmem:[#allocation45_spill] sm:$0xff] %v23157_v2  ;;  %18691 = vrcp.f32 %v11292_v5  ;;  %v11289_v26 = vpop.xlane.xlu0 %11288  ;;  %11462 = vadd.xlane.f32.xlu1 %v11461_v46  ;;  %v25914_v15 = vcombine.low %v22908_v39, %v22911_v16  ;;  %v23173_v30 = vrot.slane %v25915_v33, %v25851_v14  ;;  %v23177_v23 = vpop.eup %18683  ;;  %v25917_v46 = vld [vmem:[#allocation65_spill] sm:$0xff] }
 0x601   :  { %18693 = vrcp.f32 %v11289_v26  ;;  %v11455_v13 = vsel %vm10902_vm3, %v23157_v2, 0.0  ;;  %25916 = vst [vmem:[#allocation69_spill] sm:$0xff] %v23177_v23  ;;  %v23182_v5 = vrot.slane %v6245_v38, %v25868_v49  ;;  %v23185_v42 = vrot.slane %v6246_v59, %v25868_v49  ;;  %v25918_v26 = vld [vmem:[#allocation55_spill] sm:$0xff] }
 0x602   :  { %v23167_v57 = vrot.slane %v25914_v15, %v25851_v14  ;;  %v6265_v15 = vcombine.low %v25918_v26, %v25917_v46  ;;  %11456 = vadd.xlane.f32.xlu0 %v11455_v13  ;;  %v23190_v39 = vrot.slane %v6758_v24, %v25851_v14  ;;  %v6266_v16 = vcombine.high %v25918_v26, %v25917_v46 }
 0x603   :  { %v7113_v33 = vcombine.low %v23135_v27, %v23143_v1  ;;  %v7129_v38 = vcombine.low %v23149_v45, %v23155_v10  ;;  %v6282_v59 = vcombine.high %v25905_v60, %v25904_v37  ;;  %v11285_v12 = vmul.f32 1.442695, %v11158_v8  ;;  %v25921_v8 = vld [vmem:[#allocation61_spill] sm:$0xff] }
 0x604   :  { %25919 = vst [vmem:[#allocation54_spill] sm:$0xff] %v23190_v39  ;;  %18695 = vpow2.f32 %v11281_v34  ;;  %v7045_v13 = vcombine.low %v23123_v25, %v23129_v18  ;;  %v7061_v46 = vcombine.low %v23167_v57, %v23173_v30  ;;  %v11428_v26 = vsel %vm10902_vm3, %v23177_v23, 0.0 }
 0x605   :  { %v6273_v60 = vrot.slane %v6265_v15, %v25851_v14  ;;  %v6333_v34 = vcombine.low %v25921_v8, %v25920_v29  ;;  %v6334_v23 = vcombine.high %v25921_v8, %v25920_v29  ;;  %v23223_v62 = vrot.slane %v7113_v33, %v25868_v49 }
 0x606   :  { %11429 = vadd.xlane.f32.xlu0 %v11428_v26  ;;  %v23226_v48 = vrot.slane %v7129_v38, %v25868_v49  ;;  %v6280_v15 = vrot.slane %v6266_v16, %v25851_v14  ;;  %v6296_v26 = vrot.slane %v6282_v59, %v25851_v14  ;;  %18697 = vpow2.f32 %v11285_v12  ;;  %v25926_v12 = vld [vmem:[#allocation33_spill] sm:$0xff] }
 0x607   :  { %v23216_v24 = vpop.eup %18685  ;;  %v6297_v2 = vcombine.low %v6273_v60, %v6289_v51  ;;  %v23237_v29 = vrot.slane %v7045_v13, %v25868_v49  ;;  %v23240_v33 = vrot.slane %v7061_v46, %v25868_v49  ;;  %v6298_v16 = vcombine.high %v6273_v60, %v6289_v51  ;;  %v25927_v46 = vld [vmem:[#allocation77_spill] sm:$0xff]  ;;  %v23254_v51 = vpop.xlane.xlu0 %11315 }
 0x608   :  { %25922 = vst [vmem:[#allocation95_spill] sm:$0xff] %v23216_v24  ;;  %v23228_v37 = vpop.eup %18687  ;;  %v11467_v38 = vsel %vm10902_vm3, %v23216_v24, 0.0  ;;  %v6341_v59 = vrot.slane %v6333_v34, %v25851_v14  ;;  %v6401_v39 = vcombine.low %v25926_v12, %v25925_v44  ;;  %v6402_v13 = vcombine.high %v25926_v12, %v25925_v44 }
 0x609   :  { %25923 = vst [vmem:[#allocation94_spill] sm:$0xff] %v23228_v37  ;;  %v23232_v47 = vpop.eup %18689  ;;  %v11473_v31 = vsel %vm10902_vm3, %v23228_v37, 0.0  ;;  %v6348_v37 = vrot.slane %v6334_v23, %v25851_v14  ;;  %v6417_v56 = vcombine.low %v25928_v63, %v25927_v46  ;;  %v7145_v24 = vcombine.low %v23223_v62, %v23226_v48 }
 0x60a   :  { %25924 = vst [vmem:[#allocation27_spill] sm:$0xff] %v23232_v47  ;;  %v18692_v8 = vpop.eup %18691  ;;  %11474 = vadd.xlane.f32.xlu1 %v11473_v31  ;;  %11468 = vadd.xlane.f32.xlu0 %v11467_v38  ;;  %v23257_v60 = vrot.slane %v6297_v2, %v25868_v49  ;;  %v6313_v34 = vcombine.low %v6280_v15, %v6296_v26  ;;  %v11452_v6 = vsel %vm10902_vm3, %v23232_v47, 0.0 }
 0x60b   :  { %v18694_v3 = vpop.eup %18693  ;;  %v6418_v31 = vcombine.high %v25928_v63, %v25927_v46  ;;  %v6314_v38 = vcombine.high %v6280_v15, %v6296_v26  ;;  %v11544_v44 = vmul.f32 %v18692_v8, %v25929_v58  ;;  %v7077_v12 = vcombine.low %v23237_v29, %v23240_v33  ;;  %v25933_v63 = vld [vmem:[#allocation62_spill] sm:$0xff] }
 0x60c   :  { %v11543_v23 = vmul.f32 %v18694_v3, %v22619_v35  ;;  %v23270_v2 = vrot.slane %v6298_v16, %v25868_v49  ;;  %v6365_v20 = vcombine.low %v6341_v59, %v22966_v7  ;;  %v6469_v46 = vcombine.low %v25933_v63, %v25932_v28 }
 0x60d   :  { %v6366_v35 = vcombine.high %v6341_v59, %v22966_v7  ;;  %v6381_v58 = vcombine.low %v6348_v37, %v22973_v53  ;;  %v6382_v3 = vcombine.high %v6348_v37, %v22973_v53  ;;  %v23280_v15 = vpack.c.bf16 %v7145_v24, %v7077_v12  ;;  %v11298_v24 = vpop.xlane.xlu1 %11297 }
 0x60e   :  { %v23267_v40 = vpop.eup %18695  ;;  %25931 = vst [vmem:[#allocation47_spill] sm:$0xff] %v23270_v2  ;;  %17907 = vmatprep.mubr.msk.f32.mxu0 %vm10902_vm3, %v11543_v23  ;;  %11453 = vadd.xlane.f32.xlu0 %v11452_v6  ;;  %v6409_v26 = vrot.slane %v6401_v39, %v25851_v14  ;;  %v6416_v8 = vrot.slane %v6402_v13, %v25851_v14  ;;  %v25935_v23 = vld [vmem:[#allocation38_spill] sm:$0xff]  ;;  %v23296_v39 = vpop.xlane.xlu0 %11312  ;;  %18699 = vrcp.f32 %v11298_v24 }
 0x60f   :  { %25930 = vst [vmem:[#allocation81_spill] sm:$0xff] %v23267_v40  ;;  %17908 = vmatmul.mubr.msk.f32.vlgmr.msra.gmra.mrb[52].mxu0 %vm10902_vm3, %v11544_v44  ;;  %25934 = vst [vmem:[#allocation29_spill] sm:$0xff] %v23280_v15  ;;  %v6425_v16 = vrot.slane %v6417_v56, %v25851_v14  ;;  %v6432_v47 = vrot.slane %v6418_v31, %v25851_v14  ;;  %v23288_v6 = vrot.slane %v6313_v34, %v25868_v49  ;;  %v25937_v31 = vld [vmem:[#allocation30_spill] sm:$0xff] }
 0x610   :  { %18386 = vmatpush3.bf16.msra.mxu0 %v25935_v23  ;;  %v23291_v7 = vrot.slane %v6314_v38, %v25868_v49  ;;  %v6470_v53 = vcombine.high %v25933_v63, %v25932_v28  ;;  %v11470_v56 = vsel %vm10902_vm3, %v23267_v40, 0.0  ;;  %v23300_v37 = vpop.eup %18697  ;;  %v6477_v34 = vrot.slane %v6469_v46, %v25851_v14  ;;  %v25938_v28 = vld [vmem:[#allocation28_spill] sm:$0xff]  ;;  %v25939_v46 = vld [vmem:[#allocation82_spill] sm:$0xff] }
 0x611   :  { %18392 = vmatprep.subr.bf16.mxu0 %v23280_v15  ;;  %25936 = vst [vmem:[#allocation68_spill] sm:$0xff] %v23300_v37  ;;  %v6553_v38 = vcombine.low %v25938_v28, %v25937_v31  ;;  %v23310_v44 = vrot.slane %v6365_v20, %v25868_v49  ;;  %v23313_v12 = vrot.slane %v6366_v35, %v25868_v49  ;;  %v25940_v15 = vld [vmem:[#allocation34_spill] sm:$0xff]  ;;  %v11476_v20 = vsel %vm10902_vm3, %v23300_v37, 0.0  ;;  %v11295_v35 = vpop.xlane.xlu1 %11294 }
 0x612   :  { %11471 = vadd.xlane.f32.xlu0 %v11470_v56  ;;  %v23316_v63 = vrot.slane %v6381_v58, %v25868_v49  ;;  %v23319_v23 = vrot.slane %v6382_v3, %v25868_v49  ;;  %v6433_v59 = vcombine.low %v6409_v26, %v6425_v16  ;;  %v6434_v13 = vcombine.high %v6409_v26, %v6425_v16  ;;  %v23326_v2 = vpop.xlane.xlu0 %11327 }
 0x613   :  { %v6449_v40 = vcombine.low %v6416_v8, %v6432_v47  ;;  %v6537_v4 = vcombine.low %v25940_v15, %v25939_v46  ;;  %v6450_v32 = vcombine.high %v6416_v8, %v6432_v47  ;;  %v6484_v56 = vrot.slane %v6470_v53, %v25851_v14  ;;  %v25943_v47 = vld [vmem:[#allocation63_spill] sm:$0xff] }
 0x614   :  { %v6501_v58 = vcombine.low %v6477_v34, %v23009_v55  ;;  %v6502_v3 = vcombine.high %v6477_v34, %v23009_v55  ;;  %v6561_v26 = vrot.slane %v6553_v38, %v25851_v14  ;;  %18701 = vrcp.f32 %v11295_v35 }
 0x615   :  { %v6554_v53 = vcombine.high %v25938_v28, %v25937_v31  ;;  %v23340_v24 = vrot.slane %v6433_v59, %v25868_v49  ;;  %v23343_v55 = vrot.slane %v6434_v13, %v25868_v49  ;;  %v6538_v34 = vcombine.high %v25940_v15, %v25939_v46  ;;  %v11307_v59 = vpop.xlane.xlu1 %11306 }
 0x616   :  { %11477 = vadd.xlane.f32.xlu0 %v11476_v20  ;;  %v6545_v38 = vrot.slane %v6537_v4, %v25851_v14  ;;  %v23349_v20 = vrot.slane %v6449_v40, %v25868_v49  ;;  %v23352_v35 = vrot.slane %v6450_v32, %v25868_v49  ;;  %v6517_v16 = vcombine.low %v6484_v56, %v23012_v17  ;;  %v23356_v28 = vpop.xlane.xlu0 %11324 }
 0x617   :  { %v6518_v31 = vcombine.high %v6484_v56, %v23012_v17  ;;  %v23359_v13 = vrot.slane %v6501_v58, %v25868_v49  ;;  %v23362_v15 = vrot.slane %v6502_v3, %v25868_v49  ;;  %18703 = vrcp.f32 %v11307_v59 }
 0x618   :  { %v6569_v4 = vcombine.low %v6545_v38, %v6561_v26  ;;  %v23369_v46 = vrot.slane %v6554_v53, %v25851_v14  ;;  %v6570_v17 = vcombine.high %v6545_v38, %v6561_v26  ;;  %v6552_v59 = vrot.slane %v6538_v34, %v25851_v14  ;;  %v18700_v32 = vpop.eup %18699 }
 0x619   :  { %v23383_v53 = vrot.slane %v6517_v16, %v25868_v49  ;;  %v23386_v26 = vrot.slane %v6518_v31, %v25868_v49  ;;  %v7114_v34 = vcombine.high %v23135_v27, %v23143_v1  ;;  %v7130_v40 = vcombine.high %v23149_v45, %v23155_v10 }
 0x61a   :  { %v11304_v38 = vpop.xlane.xlu0 %11303  ;;  %v23391_v3 = vrot.slane %v6569_v4, %v25868_v49  ;;  %v23398_v16 = vrot.slane %v6570_v17, %v25868_v49  ;;  %v6585_v31 = vcombine.low %v6552_v59, %v23369_v46  ;;  %v6586_v58 = vcombine.high %v6552_v59, %v23369_v46  ;;  %v25942_v4 = vld [vmem:[#allocation50_spill] sm:$0xff]  ;;  %v25949_v59 = vld [vmem:[#allocation40_spill] sm:$0xff] }
 0x61b   :  { %25941 = vst [vmem:[#allocation53_spill] sm:$0xff] %v23386_v26  ;;  %v7046_v56 = vcombine.high %v23123_v25, %v23129_v18  ;;  %v6605_v37 = vcombine.low %v25943_v47, %v25942_v4  ;;  %v6606_v27 = vcombine.high %v25943_v47, %v25942_v4  ;;  %v7146_v1 = vcombine.high %v23223_v62, %v23226_v48 }
 0x61c   :  { %v7062_v45 = vcombine.high %v23167_v57, %v23173_v30  ;;  %18705 = vrcp.f32 %v23296_v39  ;;  %v7078_v25 = vcombine.high %v23237_v29, %v23240_v33  ;;  %v25944_v18 = vcombine.low %v22983_v50, %v22986_v22  ;;  %v23429_v57 = vpop.xlane.xlu1 %11321 }
 0x61d   :  { %v11546_v47 = vmul.f32 %v18700_v32, %v22642_v41  ;;  %18707 = vrcp.f32 %v11304_v38  ;;  %v23424_v48 = vrot.slane %v7114_v34, %v25868_v49  ;;  %v23427_v62 = vrot.slane %v7130_v40, %v25868_v49 }
 0x61e   :  { %v18702_v8 = vpop.eup %18701  ;;  %v11301_v10 = vpop.xlane.xlu0 %11300  ;;  %v23420_v17 = vrot.slane %v25944_v18, %v25851_v14  ;;  %v25945_v30 = vcombine.low %v23063_v0, %v23066_v9  ;;  %v25946_v29 = vcombine.high %v23063_v0, %v23066_v9  ;;  %v23451_v40 = vrot.slane %v7062_v45, %v25868_v49 }
 0x61f   :  { %v11545_v46 = vmul.f32 %v18702_v8, %v22645_v19  ;;  %18709 = vrcp.f32 %v11301_v10  ;;  %v23433_v19 = vrot.slane %v7046_v56, %v25868_v49  ;;  %v23448_v8 = vpack.c.bf16 %v7146_v1, %v7078_v25 }
 0x620   :  { %v23439_v41 = vrot.slane %v25945_v30, %v25851_v14  ;;  %v23445_v33 = vrot.slane %v25946_v29, %v25851_v14  ;;  %v25947_v32 = vcombine.low %v23070_v61, %v23073_v43  ;;  %v25948_v0 = vcombine.high %v23070_v61, %v23073_v43  ;;  %v11319_v30 = vpop.xlane.xlu1 %11318 }
 0x621   :  { %17914 = vmatprep.mubr.msk.f32.mxu1 %vm10902_vm3, %v11545_v46  ;;  %v18704_v39 = vpop.eup %18703  ;;  %v25950_v4 = vcombine.high %v22983_v50, %v22986_v22  ;;  %v25951_v45 = vcombine.low %v23006_v52, %v23017_v11  ;;  %v25952_v61 = vcombine.high %v23006_v52, %v23017_v11  ;;  %18711 = vrcp.f32 %v23254_v51  ;;  %v25970_v22 = vld [vmem:[#allocation104_spill] sm:$0xff] }
 0x622   :  { %17915 = vmatmul.mubr.msk.f32.vlgmr.msra.gmra.mrb[60].mxu1 %vm10902_vm3, %v11546_v47  ;;  %v23457_v56 = vrot.slane %v25947_v32, %v25851_v14  ;;  %v7248_v9 = vrot.slane %v25948_v0, %v25851_v14  ;;  %v11340_v38 = vpop.xlane.xlu0 %11339  ;;  %v11549_v34 = vmul.f32 %v18704_v39, %v22659_v21  ;;  %v7147_v50 = vcombine.low %v23424_v48, %v23427_v62 }
 0x623   :  { %18390 = vmatpush3.bf16.msra.mxu1 %v25949_v59  ;;  %v7164_v1 = vrot.slane %v25950_v4, %v25851_v14  ;;  %v23473_v10 = vrot.slane %v25951_v45, %v25851_v14  ;;  %v23479_v43 = vrot.slane %v25952_v61, %v25851_v14  ;;  %v23492_v11 = vrot.slane %v6585_v31, %v25868_v49 }
 0x624   :  { %18396 = vmatprep.subr.bf16.mxu1 %v23448_v8  ;;  %18713 = vrcp.f32 %v23356_v28  ;;  %17928 = vmatprep.mubr.msk.f32.mxu1 %vm10902_vm3, %v11549_v34  ;;  %v7249_v52 = vcombine.low %v23439_v41, %v23445_v33  ;;  %v23499_v51 = vrot.slane %v6586_v58, %v25868_v49  ;;  %v7079_v18 = vcombine.low %v23433_v19, %v23451_v40 }
 0x625   :  { %v7265_v47 = vcombine.low %v23457_v56, %v7248_v9  ;;  %v23507_v31 = vrot.slane %v6605_v37, %v25851_v14  ;;  %v23510_v28 = vrot.slane %v6606_v27, %v25851_v14  ;;  %v7181_v39 = vcombine.low %v23420_v17, %v7164_v1 }
 0x626   :  { %v11337_v29 = vpop.xlane.xlu0 %11336  ;;  %v7197_v58 = vcombine.low %v23473_v10, %v23479_v43  ;;  %18715 = vrcp.f32 %v23326_v2  ;;  %v23516_v32 = vpack.c.bf16 %v7147_v50, %v7079_v18  ;;  %v7182_v0 = vcombine.high %v23420_v17, %v7164_v1  ;;  %v18706_v59 = vpop.eup %18705 }
 0x627   :  { %v7198_v37 = vcombine.high %v23473_v10, %v23479_v43  ;;  %18717 = vrcp.f32 %v11337_v29  ;;  %v23522_v27 = vrot.slane %v7249_v52, %v25868_v49  ;;  %v7250_v34 = vcombine.high %v23439_v41, %v23445_v33  ;;  %v18708_v45 = vpop.eup %18707 }
 0x628   :  { %v7266_v4 = vcombine.high %v23457_v56, %v7248_v9  ;;  %v23528_v2 = vrot.slane %v7265_v47, %v25868_v49  ;;  %v25953_v17 = vcombine.low %v23107_v36, %v23113_v54  ;;  %v25954_v10 = vcombine.high %v23107_v36, %v23113_v54  ;;  %v25957_v36 = vld [vmem:[#allocation47_spill] sm:$0xff] }
 0x629   :  { %v25955_v41 = vcombine.low %v23182_v5, %v23185_v42  ;;  %v18710_v56 = vpop.eup %18709  ;;  %18719 = vrcp.f32 %v11319_v30  ;;  %v25956_v43 = vcombine.high %v23182_v5, %v23185_v42  ;;  %v25958_v54 = vcombine.low %v23257_v60, %v25957_v36  ;;  %v25960_v30 = vld [vmem:[#allocation108_spill] sm:$0xff] }
 0x62a   :  { %v23534_v1 = vrot.slane %v25953_v17, %v25851_v14  ;;  %v23540_v61 = vrot.slane %v25954_v10, %v25851_v14  ;;  %v11310_v9 = vpop.xlane.xlu0 %11309  ;;  %v25959_v18 = vcombine.high %v23257_v60, %v25957_v36  ;;  %18721 = vrcp.f32 %v11340_v38  ;;  %v25963_v60 = vld [vmem:[#allocation106_spill] sm:$0xff] }
 0x62b   :  { %v23546_v33 = vrot.slane %v25955_v41, %v25851_v14  ;;  %v23552_v50 = vrot.slane %v25956_v43, %v25851_v14  ;;  %v23558_v52 = vrot.slane %v25958_v54, %v25851_v14  ;;  %v11547_v29 = vmul.f32 %v18710_v56, %v25960_v30  ;;  %v11331_v41 = vpop.xlane.xlu1 %11330  ;;  %v18712_v36 = vpop.eup %18711  ;;  %v25964_v54 = vld [vmem:[#allocation102_spill] sm:$0xff] }
 0x62c   :  { %v23564_v47 = vrot.slane %v25959_v18, %v25851_v14  ;;  %v25961_v5 = vcombine.low %v23288_v6, %v23291_v7  ;;  %v25962_v17 = vcombine.high %v23288_v6, %v23291_v7  ;;  %18723 = vrcp.f32 %v11310_v9 }
 0x62d   :  { %v11548_v43 = vmul.f32 %v18708_v45, %v25963_v60  ;;  %v23581_v38 = vrot.slane %v7181_v39, %v25868_v49  ;;  %v23584_v56 = vrot.slane %v7197_v58, %v25868_v49  ;;  %17921 = vmatprep.mubr.msk.f32.mxu0 %vm10902_vm3, %v11547_v29  ;;  %v11551_v18 = vmul.f32 %v18706_v59, %v25964_v54  ;;  %v25966_v29 = vld [vmem:[#allocation84_spill] sm:$0xff] }
 0x62e   :  { %v23571_v42 = vrot.slane %v25961_v5, %v25851_v14  ;;  %v23577_v10 = vrot.slane %v25962_v17, %v25851_v14  ;;  %v23589_v30 = vrot.slane %v7182_v0, %v25868_v49  ;;  %v23592_v6 = vrot.slane %v7250_v34, %v25868_v49  ;;  %v18714_v45 = vpop.eup %18713  ;;  %v11352_v39 = vpop.xlane.xlu0 %11351  ;;  %v25965_v34 = vld [vmem:[#allocation29_spill] sm:$0xff]  ;;  %v25967_v5 = vld [vmem:[#allocation35_spill] sm:$0xff] }
 0x62f   :  { %v23595_v7 = vrot.slane %v7266_v4, %v25868_v49  ;;  %18725 = vrcp.f32 %v23429_v57  ;;  %17922 = vmatmul.mubr.msk.f32.vlgmr.msra.gmra.mrb[54].mxu0 %vm10902_vm3, %v11548_v43  ;;  %v7281_v58 = vcombine.low %v23522_v27, %v23528_v2  ;;  %v7317_v59 = vcombine.low %v23534_v1, %v23540_v61 }
 0x630   :  { %v7333_v0 = vcombine.low %v23546_v33, %v23552_v50  ;;  %18727 = vrcp.f32 %v11331_v41  ;;  %18394 = vmatpush3.bf16.msra.mxu0 %v25965_v34  ;;  %17935 = vmatprep.mubr.msk.f32.mxu0 %vm10902_vm3, %v11551_v18  ;;  %v23608_v4 = vrot.slane %v7198_v37, %v25868_v49  ;;  %v7385_v57 = vcombine.low %v23558_v52, %v23564_v47  ;;  %v25968_v41 = vld [vmem:[#allocation101_spill] sm:$0xff]  ;;  %v18716_v54 = vpop.eup %18715 }
 0x631   :  { %v7401_v9 = vcombine.low %v23571_v42, %v23577_v10  ;;  %18400 = vmatprep.subr.bf16.mxu0 %v23516_v32  ;;  %v11552_v43 = vmul.f32 %v18712_v36, %v25968_v41  ;;  %v7213_v37 = vcombine.low %v23581_v38, %v23584_v56  ;;  %v25969_v18 = vld [vmem:[#allocation25_spill] sm:$0xff]  ;;  %v11555_v46 = vmul.f32 %v18714_v45, %v25970_v22  ;;  %v18718_v60 = vpop.eup %18717  ;;  %v23648_v22 = vpop.xlane.xlu1 %11345  ;;  %v25971_v45 = vld [vmem:[#allocation103_spill] sm:$0xff] }
 0x632   :  { %v7080_v21 = vcombine.high %v23433_v19, %v23451_v40  ;;  %v7148_v25 = vcombine.high %v23424_v48, %v23427_v62  ;;  %v11349_v36 = vpop.xlane.xlu0 %11348  ;;  %v7283_v41 = vcombine.low %v23592_v6, %v23595_v7  ;;  %v23633_v26 = vrot.slane %v7317_v59, %v25868_v49 }
 0x633   :  { %17936 = vmatmul.mubr.msk.f32.vlgmr.msra.gmra.mrb[56].mxu0 %vm10902_vm3, %v11552_v43  ;;  %v18407_v17 = vpack.c.bf16 %v7281_v58, %v7213_v37  ;;  %v23636_v34 = vrot.slane %v7333_v0, %v25868_v49  ;;  %18729 = vrcp.f32 %v11352_v39  ;;  %v7215_v48 = vcombine.low %v23589_v30, %v23608_v4  ;;  %v18720_v40 = vpop.eup %18719  ;;  %v25972_v0 = vld [vmem:[#allocation112_spill] sm:$0xff] }
 0x634   :  { %18402 = vmatpush3.bf16.msra.mxu0 %v23516_v32  ;;  %17949 = vmatprep.mubr.msk.f32.mxu0 %vm10902_vm3, %v11555_v46  ;;  %v23643_v62 = vrot.slane %v7385_v57, %v25868_v49  ;;  %v23646_v19 = vrot.slane %v7401_v9, %v25868_v49  ;;  %18731 = vrcp.f32 %v11349_v36  ;;  %v11556_v39 = vmul.f32 %v18716_v54, %v25971_v45  ;;  %v18722_v58 = vpop.eup %18721 }
 0x635   :  { %18408 = vmatprep.subr.bf16.mxu0 %v18407_v17  ;;  %v7318_v32 = vcombine.high %v23534_v1, %v23540_v61  ;;  %v7334_v46 = vcombine.high %v23546_v33, %v23552_v50  ;;  %v6638_v59 = vcombine.high %v23507_v31, %v25969_v18  ;;  %v11559_v57 = vmul.f32 %v18718_v60, %v25972_v0  ;;  %v25973_v60 = vld [vmem:[#allocation113_spill] sm:$0xff] }
 0x636   :  { %v7386_v9 = vcombine.high %v23558_v52, %v23564_v47  ;;  %v7402_v43 = vcombine.high %v23571_v42, %v23577_v10  ;;  %v18724_v37 = vpop.eup %18723  ;;  %v18415_v54 = vpack.c.bf16 %v7283_v41, %v7215_v48  ;;  %v11364_v1 = vpop.xlane.xlu0 %11363  ;;  %v18403_v61 = vpack.c.bf16 %v7148_v25, %v7080_v21  ;;  %v25974_v21 = vld [vmem:[#allocation107_spill] sm:$0xff] }
 0x637   :  { %17950 = vmatmul.mubr.msk.f32.vlgmr.msra.gmra.mrb[58].mxu0 %vm10902_vm3, %v11556_v39  ;;  %v7349_v33 = vcombine.low %v23633_v26, %v23636_v34  ;;  %v7214_v50 = vcombine.high %v23581_v38, %v23584_v56  ;;  %v11550_v52 = vmul.f32 %v18724_v37, %v25973_v60  ;;  %v7417_v47 = vcombine.low %v23643_v62, %v23646_v19  ;;  %v25981_v37 = vld [vmem:[#allocation105_spill] sm:$0xff] }
 0x638   :  { %18410 = vmatpush3.bf16.msra.mxu0 %v18407_v17  ;;  %17963 = vmatprep.mubr.msk.f32.mxu0 %vm10902_vm3, %v11559_v57  ;;  %v7282_v42 = vcombine.high %v23522_v27, %v23528_v2  ;;  %v11553_v25 = vmul.f32 %v18720_v40, %v25974_v21  ;;  %v23675_v36 = vrot.slane %v7318_v32, %v25868_v49  ;;  %v25976_v27 = vld [vmem:[#allocation110_spill] sm:$0xff]  ;;  %v11343_v32 = vpop.xlane.xlu1 %11342  ;;  %18733 = vrcp.f32 %v11364_v1  ;;  %v25983_v21 = vld [vmem:[#allocation109_spill] sm:$0xff] }
 0x639   :  { %v18726_v10 = vpop.eup %18725  ;;  %18416 = vmatprep.subr.bf16.mxu0 %v18415_v54  ;;  %v23678_v38 = vrot.slane %v7334_v46, %v25868_v49  ;;  %v25975_v56 = vcombine.low %v23310_v44, %v23313_v12  ;;  %17929 = vmatmul.mubr.msk.f32.vlgmr.msra.gmra.mrb[62].mxu1 %vm10902_vm3, %v11550_v52  ;;  %v11560_v2 = vmul.f32 %v18722_v58, %v25976_v27 }
 0x63a   :  { %v18728_v41 = vpop.eup %18727  ;;  %v23689_v48 = vrot.slane %v7386_v9, %v25868_v49  ;;  %v23692_v40 = vrot.slane %v7402_v43, %v25868_v49  ;;  %v25977_v45 = vcombine.low %v23340_v24, %v23343_v55  ;;  %18398 = vmatpush3.bf16.msra.mxu1 %v23448_v8  ;;  %17942 = vmatprep.mubr.msk.f32.mxu1 %vm10902_vm3, %v11553_v25  ;;  %v11361_v46 = vpop.xlane.xlu0 %11360 }
 0x63b   :  { %v23684_v17 = vrot.slane %v25975_v56, %v25851_v14  ;;  %v25978_v58 = vcombine.high %v23340_v24, %v23343_v55  ;;  %v25979_v57 = vcombine.low %v23349_v20, %v23352_v35  ;;  %v25980_v43 = vcombine.high %v23349_v20, %v23352_v35  ;;  %18404 = vmatprep.subr.bf16.mxu1 %v18403_v61 }
 0x63c   :  { %v23698_v39 = vrot.slane %v25977_v45, %v25851_v14  ;;  %v11554_v60 = vmul.f32 %v18726_v10, %v25981_v37  ;;  %17964 = vmatmul.mubr.msk.f32.vlgmr.msra.gmra.mrb[60].mxu0 %vm10902_vm3, %v11560_v2  ;;  %v18423_v24 = vpack.c.bf16 %v7417_v47, %v7349_v33  ;;  %v25982_v55 = vcombine.high %v23310_v44, %v23313_v12  ;;  %v25986_v44 = vld [vmem:[#allocation59_spill] sm:$0xff]  ;;  %v25988_v2 = vld [vmem:[#allocation46_spill] sm:$0xff] }
 0x63d   :  { %v23706_v0 = vrot.slane %v25978_v58, %v25851_v14  ;;  %v23712_v9 = vrot.slane %v25979_v57, %v25851_v14  ;;  %v23718_v8 = vrot.slane %v25980_v43, %v25851_v14  ;;  %18418 = vmatpush3.bf16.msra.mxu0 %v18415_v54  ;;  %18735 = vrcp.f32 %v11361_v46  ;;  %v18730_v47 = vpop.eup %18729  ;;  %v11355_v46 = vpop.xlane.xlu1 %11354  ;;  %v25990_v58 = vld [vmem:[#allocation116_spill] sm:$0xff] }
 0x63e   :  { %v23726_v52 = vrot.slane %v25982_v55, %v25851_v14  ;;  %v11557_v25 = vmul.f32 %v18728_v41, %v25983_v21  ;;  %v25984_v20 = vcombine.low %v23316_v63, %v23319_v23  ;;  %v25985_v1 = vcombine.high %v23316_v63, %v23319_v23  ;;  %18424 = vmatprep.subr.bf16.mxu0 %v18423_v24  ;;  %v18732_v56 = vpop.eup %18731  ;;  %v11334_v41 = vpop.xlane.xlu0 %11333 }
 0x63f   :  { %v6653_v12 = vcombine.low %v23510_v28, %v25986_v44  ;;  %v6654_v54 = vcombine.high %v23510_v28, %v25986_v44  ;;  %17943 = vmatmul.mubr.msk.f32.vlgmr.msra.gmra.mrb[64].mxu1 %vm10902_vm3, %v11554_v60  ;;  %v23746_v10 = vpack.c.bf16 %v7282_v42, %v7214_v50  ;;  %v7419_v63 = vcombine.low %v23689_v48, %v23692_v40  ;;  %v25987_v28 = vld [vmem:[#allocation90_spill] sm:$0xff] }
 0x640   :  { %v23733_v35 = vrot.slane %v25984_v20, %v25851_v14  ;;  %v23739_v33 = vrot.slane %v25985_v1, %v25851_v14  ;;  %18406 = vmatpush3.bf16.msra.mxu1 %v18403_v61  ;;  %17956 = vmatprep.mubr.msk.f32.mxu1 %vm10902_vm3, %v11557_v25  ;;  %v7521_v23 = vcombine.low %v23698_v39, %v23706_v0  ;;  %18737 = vrcp.f32 %v11343_v32  ;;  %v25989_v50 = vld [vmem:[#allocation118_spill] sm:$0xff] }
 0x641   :  { %v7537_v27 = vcombine.low %v23712_v9, %v23718_v8  ;;  %v6689_v45 = vcombine.low %v25988_v2, %v25987_v28  ;;  %18412 = vmatprep.subr.bf16.mxu1 %v23746_v10  ;;  %v11563_v61 = vmul.f32 %v18732_v56, %v25989_v50  ;;  %v7351_v42 = vcombine.low %v23675_v36, %v23678_v38 }
 0x642   :  { %18739 = vrcp.f32 %v11334_v41  ;;  %v11564_v57 = vmul.f32 %v18730_v47, %v25990_v58  ;;  %v7453_v43 = vcombine.low %v23684_v17, %v23726_v52  ;;  %v7469_v37 = vcombine.low %v23733_v35, %v23739_v33  ;;  %v11376_v1 = vpop.xlane.xlu0 %11375  ;;  %v25995_v58 = vld [vmem:[#allocation36_spill] sm:$0xff] }
 0x643   :  { %v25991_v32 = vcombine.low %v23507_v31, %v25969_v18  ;;  %v23776_v55 = vrot.slane %v6638_v59, %v25868_v49  ;;  %v23779_v21 = vrot.slane %v6653_v12, %v25868_v49  ;;  %v23782_v25 = vrot.slane %v6654_v54, %v25868_v49  ;;  %17977 = vmatprep.mubr.msk.f32.mxu0 %vm10902_vm3, %v11563_v61  ;;  %v25999_v59 = vld [vmem:[#allocation92_spill] sm:$0xff] }
 0x644   :  { %18741 = vrcp.f32 %v23648_v22  ;;  %17978 = vmatmul.mubr.msk.f32.vlgmr.msra.gmra.mrb[62].mxu0 %vm10902_vm3, %v11564_v57  ;;  %v18431_v20 = vpack.c.bf16 %v7419_v63, %v7351_v42  ;;  %v23788_v47 = vrot.slane %v7521_v23, %v25868_v49  ;;  %v23791_v31 = vrot.slane %v7537_v27, %v25868_v49  ;;  %v18734_v63 = vpop.eup %18733  ;;  %v25998_v57 = vld [vmem:[#allocation98_spill] sm:$0xff] }
 0x645   :  { %v23770_v60 = vrot.slane %v25991_v32, %v25868_v49  ;;  %v16996_v18 = vcombine.high %v23391_v3, %v23398_v16  ;;  %v23798_v44 = vrot.slane %v6689_v45, %v25851_v14  ;;  %18743 = vrcp.f32 %v11355_v46  ;;  %18426 = vmatpush3.bf16.msra.mxu0 %v18423_v24  ;;  %v25994_v46 = vld [vmem:[#allocation97_spill] sm:$0xff] }
 0x646   :  { %v16997_v22 = vcombine.high %v23492_v11, %v23499_v51  ;;  %v25992_v12 = vcombine.low %v25967_v5, %v25966_v29  ;;  %18432 = vmatprep.subr.bf16.mxu0 %v18431_v20  ;;  %v23809_v56 = vrot.slane %v7453_v43, %v25868_v49  ;;  %v23812_v41 = vrot.slane %v7469_v37, %v25868_v49  ;;  %v11373_v37 = vpop.xlane.xlu0 %11372 }
 0x647   :  { %v25993_v45 = vcombine.high %v25967_v5, %v25966_v29  ;;  %v18736_v61 = vpop.eup %18735  ;;  %v6690_v42 = vcombine.high %v25988_v2, %v25987_v28  ;;  %v7553_v32 = vcombine.low %v23788_v47, %v23791_v31  ;;  %18745 = vrcp.f32 %v11376_v1  ;;  %v25996_v29 = vld [vmem:[#allocation122_spill] sm:$0xff]  ;;  %v23839_v28 = vpop.xlane.xlu1 %11369  ;;  %v25997_v2 = vld [vmem:[#allocation120_spill] sm:$0xff] }
 0x648   :  { %v23806_v54 = vrot.slane %v25992_v12, %v25851_v14  ;;  %v11567_v5 = vmul.f32 %v18736_v61, %v25996_v29  ;;  %18747 = vrcp.f32 %v11373_v37  ;;  %v11568_v27 = vmul.f32 %v18734_v63, %v25997_v2 }
 0x649   :  { %v23824_v50 = vrot.slane %v25993_v45, %v25851_v14  ;;  %v7284_v45 = vcombine.high %v23592_v6, %v23595_v7  ;;  %v7485_v23 = vcombine.low %v23809_v56, %v23812_v41  ;;  %v7454_v24 = vcombine.high %v23684_v17, %v23726_v52 }
 0x64a   :  { %v6705_v12 = vcombine.low %v23806_v54, %v23798_v44  ;;  %v18738_v43 = vpop.eup %18737  ;;  %v6825_v1 = vcombine.low %v25999_v59, %v25998_v57  ;;  %17991 = vmatprep.mubr.msk.f32.mxu0 %vm10902_vm3, %v11567_v5  ;;  %v7470_v6 = vcombine.high %v23733_v35, %v23739_v33  ;;  %v7522_v7 = vcombine.high %v23698_v39, %v23706_v0  ;;  %v11388_v29 = vpop.xlane.xlu0 %11387  ;;  %v26004_v5 = vld [vmem:[#allocation111_spill] sm:$0xff] }
 0x64b   :  { %v7538_v63 = vcombine.high %v23712_v9, %v23718_v8  ;;  %v23856_v37 = vrot.slane %v6690_v42, %v25851_v14  ;;  %v6706_v17 = vcombine.high %v23806_v54, %v23798_v44  ;;  %17992 = vmatmul.mubr.msk.f32.vlgmr.msra.gmra.mrb[64].mxu0 %vm10902_vm3, %v11568_v27  ;;  %v23861_v52 = vpack.c.bf16 %v7553_v32, %v7485_v23  ;;  %v26000_v9 = vld [vmem:[#allocation123_spill] sm:$0xff]  ;;  %v26001_v54 = vld [vmem:[#allocation114_spill] sm:$0xff] }
 0x64c   :  { %v18740_v61 = vpop.eup %18739  ;;  %v7216_v35 = vcombine.high %v23589_v30, %v23608_v4  ;;  %v23866_v39 = vrot.slane %v6705_v12, %v25868_v49  ;;  %v6826_v0 = vcombine.high %v25999_v59, %v25998_v57  ;;  %18434 = vmatpush3.bf16.msra.mxu0 %v18431_v20  ;;  %v7350_v33 = vcombine.high %v23633_v26, %v23636_v34 }
 0x64d   :  { %v11558_v8 = vmul.f32 %v18740_v61, %v26000_v9  ;;  %18440 = vmatprep.subr.bf16.mxu0 %v23861_v52  ;;  %v11561_v23 = vmul.f32 %v18738_v43, %v26001_v54  ;;  %v7418_v30 = vcombine.high %v23643_v62, %v23646_v19  ;;  %v23878_v4 = vrot.slane %v7454_v24, %v25868_v49  ;;  %v11367_v19 = vpop.xlane.xlu1 %11366 }
 0x64e   :  { %v18742_v44 = vpop.eup %18741  ;;  %v18419_v27 = vpack.c.bf16 %v7284_v45, %v7216_v35  ;;  %v23882_v20 = vrot.slane %v7470_v6, %v25868_v49  ;;  %v23885_v26 = vrot.slane %v7522_v7, %v25868_v49  ;;  %v23888_v34 = vrot.slane %v7538_v63, %v25868_v49  ;;  %v11385_v24 = vpop.xlane.xlu0 %11384 }
 0x64f   :  { %v18744_v42 = vpop.eup %18743  ;;  %17957 = vmatmul.mubr.msk.f32.vlgmr.msra.gmra.mrb[66].mxu1 %vm10902_vm3, %v11558_v8  ;;  %v26002_v59 = vcombine.low %v23391_v3, %v23398_v16  ;;  %v23902_v57 = vrot.slane %v16996_v18, %v25851_v14  ;;  %v26003_v43 = vcombine.low %v23492_v11, %v23499_v51  ;;  %v23911_v12 = vrot.slane %v16997_v22, %v25851_v14  ;;  %v26007_v51 = vld [vmem:[#allocation115_spill] sm:$0xff]  ;;  %v26008_v22 = vld [vmem:[#allocation53_spill] sm:$0xff] }
 0x650   :  { %18414 = vmatpush3.bf16.msra.mxu1 %v23746_v10  ;;  %17970 = vmatprep.mubr.msk.f32.mxu1 %vm10902_vm3, %v11561_v23  ;;  %v11562_v10 = vmul.f32 %v18742_v44, %v26004_v5  ;;  %18749 = vrcp.f32 %v11388_v29  ;;  %v26005_v45 = vcombine.low %v23359_v13, %v23362_v15  ;;  %v26006_v16 = vcombine.high %v23359_v13, %v23362_v15 }
 0x651   :  { %v23894_v62 = vrot.slane %v26002_v59, %v25851_v14  ;;  %v23908_v32 = vrot.slane %v26003_v43, %v25851_v14  ;;  %18420 = vmatprep.subr.bf16.mxu1 %v18419_v27  ;;  %18751 = vrcp.f32 %v11385_v24  ;;  %v11565_v18 = vmul.f32 %v18744_v42, %v26007_v51  ;;  %v18746_v61 = vpop.eup %18745  ;;  %v11379_v23 = vpop.xlane.xlu1 %11378 }
 0x652   :  { %v23918_v3 = vrot.slane %v26005_v45, %v25851_v14  ;;  %v23924_v11 = vrot.slane %v26006_v16, %v25851_v14  ;;  %v26009_v2 = vcombine.low %v23383_v53, %v26008_v22  ;;  %v26010_v7 = vcombine.high %v23383_v53, %v26008_v22  ;;  %v18748_v9 = vpop.eup %18747 }
 0x653   :  { %v23940_v13 = vrot.slane %v6706_v17, %v25868_v49  ;;  %v6721_v15 = vcombine.low %v23824_v50, %v23856_v37  ;;  %v6722_v29 = vcombine.high %v23824_v50, %v23856_v37  ;;  %17971 = vmatmul.mubr.msk.f32.vlgmr.msra.gmra.mrb[68].mxu1 %vm10902_vm3, %v11562_v10  ;;  %v23947_v35 = vpack.c.bf16 %v7418_v30, %v7350_v33  ;;  %v11358_v53 = vpop.xlane.xlu0 %11357  ;;  %v26011_v37 = vld [vmem:[#allocation127_spill] sm:$0xff] }
 0x654   :  { %v23931_v6 = vrot.slane %v26009_v2, %v25851_v14  ;;  %v23937_v63 = vrot.slane %v26010_v7, %v25851_v14  ;;  %18422 = vmatpush3.bf16.msra.mxu1 %v18419_v27  ;;  %17984 = vmatprep.mubr.msk.f32.mxu1 %vm10902_vm3, %v11565_v18  ;;  %v7555_v8 = vcombine.low %v23885_v26, %v23888_v34  ;;  %18753 = vrcp.f32 %v11367_v19  ;;  %v26012_v27 = vld [vmem:[#allocation125_spill] sm:$0xff] }
 0x655   :  { %v7657_v17 = vcombine.low %v23894_v62, %v23902_v57  ;;  %v7673_v44 = vcombine.low %v23908_v32, %v23911_v12  ;;  %v6833_v50 = vrot.slane %v6825_v1, %v25851_v14  ;;  %18428 = vmatprep.subr.bf16.mxu1 %v23947_v35  ;;  %v11571_v33 = vmul.f32 %v18748_v9, %v26011_v37 }
 0x656   :  { %v7487_v54 = vcombine.low %v23878_v4, %v23882_v20  ;;  %v11572_v30 = vmul.f32 %v18746_v61, %v26012_v27  ;;  %18755 = vrcp.f32 %v11358_v53  ;;  %v7589_v42 = vcombine.low %v23918_v3, %v23924_v11  ;;  %v26016_v53 = vld [vmem:[#allocation37_spill] sm:$0xff] }
 0x657   :  { %v7605_v59 = vcombine.low %v23931_v6, %v23937_v63  ;;  %v16999_v1 = vcombine.high %v23779_v21, %v23782_v25  ;;  %v26013_v19 = vcombine.low %v25995_v58, %v25994_v46  ;;  %v26014_v43 = vcombine.high %v25995_v58, %v25994_v46  ;;  %18005 = vmatprep.mubr.msk.f32.mxu0 %vm10902_vm3, %v11571_v33  ;;  %v11400_v16 = vpop.xlane.xlu0 %11399 }
 0x658   :  { %v23979_v10 = vrot.slane %v6826_v0, %v25851_v14  ;;  %18757 = vrcp.f32 %v23839_v28  ;;  %18006 = vmatmul.mubr.msk.f32.vlgmr.msra.gmra.mrb[66].mxu0 %vm10902_vm3, %v11572_v30  ;;  %v18447_v45 = vpack.c.bf16 %v7555_v8, %v7487_v54  ;;  %v23985_v51 = vrot.slane %v7657_v17, %v25868_v49  ;;  %v24023_v54 = vpop.xlane.xlu1 %11393  ;;  %v26018_v30 = vld [vmem:[#allocation80_spill] sm:$0xff] }
 0x659   :  { %v6817_v24 = vrot.slane %v26013_v19, %v25851_v14  ;;  %v23976_v5 = vrot.slane %v26014_v43, %v25851_v14  ;;  %v23988_v18 = vrot.slane %v7673_v44, %v25868_v49  ;;  %v23991_v46 = vrot.slane %v6721_v15, %v25868_v49  ;;  %18442 = vmatpush3.bf16.msra.mxu0 %v23861_v52  ;;  %v26015_v52 = vld [vmem:[#allocation99_spill] sm:$0xff] }
 0x65a   :  { %v23994_v58 = vrot.slane %v6722_v29, %v25868_v49  ;;  %v7761_v0 = vcombine.low %v23866_v39, %v23940_v13  ;;  %18759 = vrcp.f32 %v11379_v23  ;;  %v17000_v28 = vcombine.high %v23866_v39, %v23940_v13  ;;  %18448 = vmatprep.subr.bf16.mxu0 %v18447_v45  ;;  %v18750_v61 = vpop.eup %18749  ;;  %v26017_v23 = vld [vmem:[#allocation44_spill] sm:$0xff] }
 0x65b   :  { %v6841_v22 = vcombine.low %v6817_v24, %v6833_v50  ;;  %v24002_v2 = vrot.slane %v7589_v42, %v25868_v49  ;;  %v24005_v7 = vrot.slane %v7605_v59, %v25868_v49  ;;  %v6842_v15 = vcombine.high %v6817_v24, %v6833_v50  ;;  %v18752_v39 = vpop.eup %18751  ;;  %v11397_v17 = vpop.xlane.xlu0 %11396 }
 0x65c   :  { %v6857_v29 = vcombine.low %v23976_v5, %v23979_v10  ;;  %v6858_v9 = vcombine.high %v23976_v5, %v23979_v10  ;;  %v6741_v8 = vcombine.low %v26016_v53, %v26015_v52  ;;  %v6742_v13 = vcombine.high %v26016_v53, %v26015_v52 }
 0x65d   :  { %18761 = vrcp.f32 %v11400_v16  ;;  %v7689_v44 = vcombine.low %v23985_v51, %v23988_v18  ;;  %v7420_v50 = vcombine.high %v23689_v48, %v23692_v40  ;;  %v7777_v37 = vcombine.low %v23991_v46, %v23994_v58 }
 0x65e   :  { %v17001_v33 = vcombine.high %v23991_v46, %v23994_v58  ;;  %18763 = vrcp.f32 %v11397_v17  ;;  %v11575_v27 = vmul.f32 %v18752_v39, %v26017_v23  ;;  %v11576_v42 = vmul.f32 %v18750_v61, %v26018_v30  ;;  %v18754_v40 = vpop.eup %18753  ;;  %v26019_v61 = vld [vmem:[#allocation129_spill] sm:$0xff] }
 0x65f   :  { %v7621_v59 = vcombine.low %v24002_v2, %v24005_v7  ;;  %v7352_v19 = vcombine.high %v23675_v36, %v23678_v38  ;;  %v7658_v48 = vcombine.high %v23894_v62, %v23902_v57  ;;  %v24034_v24 = vrot.slane %v6841_v22, %v25868_v49  ;;  %v11412_v62 = vpop.xlane.xlu0 %11411 }
 0x660   :  { %v24037_v43 = vrot.slane %v6842_v15, %v25868_v49  ;;  %v24040_v16 = vrot.slane %v6741_v8, %v25851_v14  ;;  %18019 = vmatprep.mubr.msk.f32.mxu0 %vm10902_vm3, %v11575_v27  ;;  %v7674_v46 = vcombine.high %v23908_v32, %v23911_v12  ;;  %v18756_v58 = vpop.eup %18755  ;;  %v24046_v36 = vrot.slane %v6742_v13, %v25851_v14  ;;  %v26020_v8 = vld [vmem:[#allocation119_spill] sm:$0xff] }
 0x661   :  { %18020 = vmatmul.mubr.msk.f32.vlgmr.msra.gmra.mrb[68].mxu0 %vm10902_vm3, %v11576_v42  ;;  %v24049_v38 = vpack.c.bf16 %v7689_v44, %v7621_v59  ;;  %v18435_v57 = vpack.c.bf16 %v7420_v50, %v7352_v19  ;;  %v7486_v22 = vcombine.high %v23809_v56, %v23812_v41  ;;  %v11566_v15 = vmul.f32 %v18756_v58, %v26019_v61  ;;  %v26025_v27 = vld [vmem:[#allocation51_spill] sm:$0xff] }
 0x662   :  { %18450 = vmatpush3.bf16.msra.mxu0 %v18447_v45  ;;  %v7554_v52 = vcombine.high %v23788_v47, %v23791_v31  ;;  %v7590_v32 = vcombine.high %v23918_v3, %v23924_v11  ;;  %v7606_v12 = vcombine.high %v23931_v6, %v23937_v63  ;;  %v18758_v53 = vpop.eup %18757  ;;  %v11569_v39 = vmul.f32 %v18754_v40, %v26020_v8  ;;  %v11391_v11 = vpop.xlane.xlu1 %11390 }
 0x663   :  { %18456 = vmatprep.subr.bf16.mxu0 %v24049_v38  ;;  %v24063_v13 = vrot.slane %v7658_v48, %v25868_v49  ;;  %v26021_v56 = vcombine.low %v23770_v60, %v23776_v55  ;;  %v26022_v47 = vcombine.high %v23770_v60, %v23776_v55  ;;  %17985 = vmatmul.mubr.msk.f32.vlgmr.msra.gmra.mrb[70].mxu1 %vm10902_vm3, %v11566_v15  ;;  %v11409_v17 = vpop.xlane.xlu0 %11408  ;;  %18765 = vrcp.f32 %v11412_v62 }
 0x664   :  { %v18760_v3 = vpop.eup %18759  ;;  %v24079_v6 = vrot.slane %v7674_v46, %v25868_v49  ;;  %v26023_v63 = vcombine.low %v23779_v21, %v23782_v25  ;;  %v24091_v60 = vrot.slane %v16999_v1, %v25851_v14  ;;  %v24094_v55 = vrot.slane %v7761_v0, %v25851_v14  ;;  %18430 = vmatpush3.bf16.msra.mxu1 %v23947_v35  ;;  %v26024_v21 = vld [vmem:[#allocation117_spill] sm:$0xff]  ;;  %v26027_v46 = vld [vmem:[#allocation48_spill] sm:$0xff] }
 0x665   :  { %v24069_v41 = vrot.slane %v26021_v56, %v25851_v14  ;;  %v24075_v31 = vrot.slane %v26022_v47, %v25851_v14  ;;  %17998 = vmatprep.mubr.msk.f32.mxu1 %vm10902_vm3, %v11569_v39  ;;  %v24099_v44 = vrot.slane %v17000_v28, %v25851_v14  ;;  %v24102_v50 = vrot.slane %v7777_v37, %v25851_v14 }
 0x666   :  { %v24085_v45 = vrot.slane %v26023_v63, %v25851_v14  ;;  %v24105_v23 = vrot.slane %v17001_v33, %v25851_v14  ;;  %v11570_v25 = vmul.f32 %v18758_v53, %v26024_v21  ;;  %18436 = vmatprep.subr.bf16.mxu1 %v18435_v57  ;;  %v24109_v1 = vrot.slane %v7590_v32, %v25868_v49  ;;  %v26026_v33 = vld [vmem:[#allocation121_spill] sm:$0xff]  ;;  %v11403_v15 = vpop.xlane.xlu1 %11402 }
 0x667   :  { %v24112_v35 = vrot.slane %v7606_v12, %v25868_v49  ;;  %v18762_v0 = vpop.eup %18761  ;;  %v6773_v28 = vcombine.low %v24040_v16, %v26025_v27  ;;  %v6774_v37 = vcombine.high %v24040_v16, %v26025_v27  ;;  %18767 = vrcp.f32 %v11409_v17  ;;  %v11382_v16 = vpop.xlane.xlu0 %11381 }
 0x668   :  { %v11573_v30 = vmul.f32 %v18760_v3, %v26026_v33  ;;  %v18764_v42 = vpop.eup %18763  ;;  %17999 = vmatmul.mubr.msk.f32.vlgmr.msra.gmra.mrb[72].mxu1 %vm10902_vm3, %v11570_v25  ;;  %v24120_v59 = vpack.c.bf16 %v7554_v52, %v7486_v22  ;;  %v7691_v19 = vcombine.low %v24063_v13, %v24079_v6  ;;  %v7725_v48 = vcombine.low %v24069_v41, %v24075_v31  ;;  %v26028_v52 = vld [vmem:[#allocation70_spill] sm:$0xff] }
 0x669   :  { %v7741_v40 = vcombine.low %v24085_v45, %v24091_v60  ;;  %18769 = vrcp.f32 %v11391_v11  ;;  %18438 = vmatpush3.bf16.msra.mxu1 %v18435_v57  ;;  %v11579_v58 = vmul.f32 %v18764_v42, %v26027_v46  ;;  %v7793_v62 = vcombine.low %v24094_v55, %v24099_v44  ;;  %v26030_v33 = vld [vmem:[#allocation58_spill] sm:$0xff] }
 0x66a   :  { %18012 = vmatprep.mubr.msk.f32.mxu1 %vm10902_vm3, %v11573_v30  ;;  %v7809_v22 = vcombine.low %v24102_v50, %v24105_v23  ;;  %v24138_v61 = vrot.slane %v6857_v29, %v25868_v49  ;;  %v11580_v57 = vmul.f32 %v18762_v0, %v26028_v52  ;;  %18444 = vmatprep.subr.bf16.mxu1 %v24120_v59  ;;  %18771 = vrcp.f32 %v11382_v16  ;;  %v26029_v29 = vld [vmem:[#allocation54_spill] sm:$0xff] }
 0x66b   :  { %v7623_v32 = vcombine.low %v24109_v1, %v24112_v35  ;;  %v24148_v12 = vrot.slane %v6858_v9, %v25868_v49  ;;  %v24151_v53 = vrot.slane %v6773_v28, %v25868_v49  ;;  %v6789_v8 = vcombine.low %v24046_v36, %v26029_v29  ;;  %18033 = vmatprep.mubr.msk.f32.mxu0 %vm10902_vm3, %v11579_v58  ;;  %v11424_v9 = vpop.xlane.xlu0 %11423 }
 0x66c   :  { %v6790_v39 = vcombine.high %v24046_v36, %v26029_v29  ;;  %v24159_v56 = vrot.slane %v6774_v37, %v25868_v49  ;;  %18773 = vrcp.f32 %v24023_v54  ;;  %18034 = vmatmul.mubr.msk.f32.vlgmr.msra.gmra.mrb[70].mxu0 %vm10902_vm3, %v11580_v57  ;;  %v24164_v10 = vrot.slane %v7725_v48, %v25868_v49  ;;  %v24192_v37 = vpop.xlane.xlu1 %11417 }
 0x66d   :  { %v18463_v5 = vpack.c.bf16 %v7691_v19, %v7623_v32  ;;  %18775 = vrcp.f32 %v11403_v15  ;;  %18458 = vmatpush3.bf16.msra.mxu0 %v24049_v38  ;;  %v24168_v47 = vrot.slane %v7741_v40, %v25868_v49  ;;  %v24171_v36 = vrot.slane %v7793_v62, %v25868_v49  ;;  %v18766_v63 = vpop.eup %18765  ;;  %v26031_v40 = vld [vmem:[#allocation32_spill] sm:$0xff] }
 0x66e   :  { %v24174_v3 = vrot.slane %v7809_v22, %v25868_v49  ;;  %v7897_v54 = vcombine.low %v24034_v24, %v24037_v43  ;;  %v17004_v11 = vcombine.high %v24034_v24, %v24037_v43  ;;  %v7913_v38 = vcombine.low %v24138_v61, %v24148_v12 }
 0x66f   :  { %18464 = vmatprep.subr.bf16.mxu0 %v18463_v5  ;;  %v17005_v17 = vcombine.high %v24138_v61, %v24148_v12  ;;  %v6797_v21 = vrot.slane %v6789_v8, %v25868_v49  ;;  %v6804_v25 = vrot.slane %v6790_v39, %v25868_v49  ;;  %v7829_v27 = vcombine.low %v24151_v53, %v24159_v56  ;;  %v11421_v28 = vpop.xlane.xlu0 %11420  ;;  %v26034_v8 = vld [vmem:[#allocation124_spill] sm:$0xff] }
 0x670   :  { %18777 = vrcp.f32 %v11424_v9  ;;  %v7757_v24 = vcombine.low %v24164_v10, %v24168_v47  ;;  %v7825_v43 = vcombine.low %v24171_v36, %v24174_v3  ;;  %v7556_v42 = vcombine.high %v23885_v26, %v23888_v34  ;;  %v26035_v9 = vld [vmem:[#allocation128_spill] sm:$0xff] }
 0x671   :  { %v18768_v0 = vpop.eup %18767  ;;  %18779 = vrcp.f32 %v11421_v28  ;;  %v7726_v19 = vcombine.high %v24069_v41, %v24075_v31  ;;  %v11584_v16 = vmul.f32 %v18766_v63, %v26031_v40  ;;  %v7742_v46 = vcombine.high %v24085_v45, %v24091_v60  ;;  %v26032_v31 = vld [vmem:[#allocation31_spill] sm:$0xff] }
 0x672   :  { %v11583_v30 = vmul.f32 %v18768_v0, %v26030_v33  ;;  %v7794_v58 = vcombine.high %v24094_v55, %v24099_v44  ;;  %v7810_v62 = vcombine.high %v24102_v50, %v24105_v23  ;;  %v17002_v61 = vcombine.high %v24151_v53, %v24159_v56  ;;  %v26033_v23 = vld [vmem:[#allocation126_spill] sm:$0xff] }
 0x673   :  { %v18770_v48 = vpop.eup %18769  ;;  %v7845_v26 = vcombine.low %v6797_v21, %v6804_v25  ;;  %v17003_v34 = vcombine.high %v6797_v21, %v6804_v25  ;;  %v7488_v41 = vcombine.high %v23878_v4, %v23882_v20  ;;  %v18471_v45 = vpack.c.bf16 %v7825_v43, %v7757_v24  ;;  %v11436_v60 = vpop.xlane.xlu0 %11435  ;;  %v26036_v24 = vld [vmem:[#allocation66_spill] sm:$0xff] }
 0x674   :  { %v18772_v22 = vpop.eup %18771  ;;  %18047 = vmatprep.mubr.msk.f32.mxu0 %vm10902_vm3, %v11583_v30  ;;  %v7622_v55 = vcombine.high %v24002_v2, %v24005_v7  ;;  %v7690_v44 = vcombine.high %v23985_v51, %v23988_v18  ;;  %v11577_v52 = vmul.f32 %v18770_v48, %v26033_v23  ;;  %v24219_v32 = vrot.slane %v7726_v19, %v25868_v49  ;;  %v11415_v7 = vpop.xlane.xlu1 %11414 }
 0x675   :  { %v11574_v15 = vmul.f32 %v18772_v22, %v26032_v31  ;;  %18048 = vmatmul.mubr.msk.f32.vlgmr.msra.gmra.mrb[72].mxu0 %vm10902_vm3, %v11584_v16  ;;  %v18451_v57 = vpack.c.bf16 %v7556_v42, %v7488_v41  ;;  %v24222_v4 = vrot.slane %v7829_v27, %v25851_v14  ;;  %v24226_v2 = vrot.slane %v7742_v46, %v25868_v49  ;;  %v26037_v42 = vld [vmem:[#allocation71_spill] sm:$0xff] }
 0x676   :  { %v18774_v50 = vpop.eup %18773  ;;  %18466 = vmatpush3.bf16.msra.mxu0 %v18463_v5  ;;  %v24229_v51 = vrot.slane %v7794_v58, %v25868_v49  ;;  %v24232_v18 = vrot.slane %v7810_v62, %v25868_v49  ;;  %v24237_v12 = vrot.slane %v17002_v61, %v25851_v14  ;;  %v24240_v53 = vrot.slane %v7845_v26, %v25851_v14 }
 0x677   :  { %v18776_v20 = vpop.eup %18775  ;;  %18472 = vmatprep.subr.bf16.mxu0 %v18471_v45  ;;  %18013 = vmatmul.mubr.msk.f32.vlgmr.msra.gmra.mrb[74].mxu1 %vm10902_vm3, %v11574_v15  ;;  %v24243_v29 = vrot.slane %v17003_v34, %v25851_v14  ;;  %v11578_v39 = vmul.f32 %v18774_v50, %v26034_v8  ;;  %18781 = vrcp.f32 %v11436_v60  ;;  %v11433_v56 = vpop.xlane.xlu0 %11432  ;;  %v24247_v5 = vrot.slane %v7897_v54, %v25851_v14  ;;  %v26038_v60 = vld [vmem:[#allocation75_spill] sm:$0xff] }
 0x678   :  { %18446 = vmatpush3.bf16.msra.mxu1 %v24120_v59  ;;  %18026 = vmatprep.mubr.msk.f32.mxu1 %vm10902_vm3, %v11577_v52  ;;  %v24250_v59 = vrot.slane %v17004_v11, %v25851_v14  ;;  %18783 = vrcp.f32 %v11433_v56  ;;  %v11581_v63 = vmul.f32 %v18776_v20, %v26035_v9  ;;  %v24254_v21 = vrot.slane %v7913_v38, %v25851_v14  ;;  %v11427_v30 = vpop.xlane.xlu1 %11426 }
 0x679   :  { %18452 = vmatprep.subr.bf16.mxu1 %v18451_v57  ;;  %v24257_v25 = vrot.slane %v17005_v17, %v25851_v14  ;;  %v24260_v27 = vpack.c.bf16 %v7690_v44, %v7622_v55  ;;  %v7827_v54 = vcombine.low %v24229_v51, %v24232_v18  ;;  %v7861_v11 = vcombine.low %v24222_v4, %v24237_v12 }
 0x67a   :  { %v18778_v0 = vpop.eup %18777  ;;  %v7877_v38 = vcombine.low %v24240_v53, %v24243_v29  ;;  %v7759_v33 = vcombine.low %v24219_v32, %v24226_v2  ;;  %18785 = vrcp.f32 %v11415_v7  ;;  %v7929_v48 = vcombine.low %v24247_v5, %v24250_v59 }
 0x67b   :  { %18027 = vmatmul.mubr.msk.f32.vlgmr.msra.gmra.mrb[76].mxu1 %vm10902_vm3, %v11578_v39  ;;  %v18780_v28 = vpop.eup %18779  ;;  %v11406_v17 = vpop.xlane.xlu0 %11405  ;;  %v11588_v19 = vmul.f32 %v18778_v0, %v26037_v42  ;;  %v7945_v40 = vcombine.low %v24254_v21, %v24257_v25  ;;  %v24281_v46 = vrot.slane %v7861_v11, %v25868_v49  ;;  %v7692_v52 = vcombine.high %v24063_v13, %v24079_v6  ;;  %v26040_v39 = vld [vmem:[#allocation76_spill] sm:$0xff] }
 0x67c   :  { %18454 = vmatpush3.bf16.msra.mxu1 %v18451_v57  ;;  %18040 = vmatprep.mubr.msk.f32.mxu1 %vm10902_vm3, %v11581_v63  ;;  %v11587_v43 = vmul.f32 %v18780_v28, %v26036_v24  ;;  %18787 = vrcp.f32 %v11406_v17  ;;  %v18479_v16 = vpack.c.bf16 %v7827_v54, %v7759_v33  ;;  %v24284_v58 = vrot.slane %v7877_v38, %v25868_v49  ;;  %v11442_v41 = vpop.xlane.xlu1 %11441  ;;  %v26043_v38 = vld [vmem:[#allocation52_spill] sm:$0xff] }
 0x67d   :  { %18460 = vmatprep.subr.bf16.mxu1 %v24260_v27  ;;  %18789 = vrcp.f32 %v24192_v37  ;;  %v24288_v22 = vrot.slane %v7929_v48, %v25868_v49  ;;  %v24291_v61 = vrot.slane %v7945_v40, %v25868_v49  ;;  %v7862_v57 = vcombine.high %v24222_v4, %v24237_v12  ;;  %v26041_v12 = vld [vmem:[#allocation130_spill] sm:$0xff] }
 0x67e   :  { %18061 = vmatprep.mubr.msk.f32.mxu0 %vm10902_vm3, %v11587_v43  ;;  %18791 = vrcp.f32 %v11427_v30  ;;  %v7893_v31 = vcombine.low %v24281_v46, %v24284_v58  ;;  %v7878_v20 = vcombine.high %v24240_v53, %v24243_v29  ;;  %v7624_v9 = vcombine.high %v24109_v1, %v24112_v35  ;;  %v26042_v35 = vld [vmem:[#allocation83_spill] sm:$0xff]  ;;  %v26045_v30 = vld [vmem:[#allocation88_spill] sm:$0xff] }
 0x67f   :  { %18062 = vmatmul.mubr.msk.f32.vlgmr.msra.gmra.mrb[74].mxu0 %vm10902_vm3, %v11588_v19  ;;  %v11448_v62 = vpop.xlane.xlu0 %11447  ;;  %v7961_v44 = vcombine.low %v24288_v22, %v24291_v61  ;;  %v7930_v63 = vcombine.high %v24247_v5, %v24250_v59  ;;  %v7946_v13 = vcombine.high %v24254_v21, %v24257_v25  ;;  %v7826_v28 = vcombine.high %v24171_v36, %v24174_v3 }
 0x680   :  { %18474 = vmatpush3.bf16.msra.mxu0 %v18471_v45  ;;  %18793 = vrcp.f32 %v11448_v62  ;;  %v26039_v45 = vld [vmem:[#allocation86_spill] sm:$0xff]  ;;  %v11439_v8 = vpop.xlane.xlu1 %11438  ;;  %v18467_v29 = vpack.c.bf16 %v7692_v52, %v7624_v9  ;;  %v24319_v54 = vrot.slane %v7862_v57, %v25868_v49  ;;  %v24322_v1 = vrot.slane %v7878_v20, %v25868_v49 }
 0x681   :  { %18480 = vmatprep.subr.bf16.mxu0 %v18479_v16  ;;  %v18782_v26 = vpop.eup %18781  ;;  %v18487_v23 = vpack.c.bf16 %v7961_v44, %v7893_v31  ;;  %v7758_v21 = vcombine.high %v24164_v10, %v24168_v47  ;;  %v24330_v25 = vrot.slane %v7930_v63, %v25868_v49  ;;  %v24333_v36 = vrot.slane %v7946_v13, %v25868_v49  ;;  %v26044_v10 = vld [vmem:[#allocation78_spill] sm:$0xff]  ;;  %v26050_v63 = vld [vmem:[#allocation43_spill] sm:$0xff] }
 0x682   :  { %v18784_v34 = vpop.eup %18783  ;;  %v11592_v55 = vmul.f32 %v18782_v26, %v26039_v45  ;;  %v7895_v43 = vcombine.low %v24319_v54, %v24322_v1  ;;  %v26047_v45 = vld [vmem:[#allocation57_spill] sm:$0xff]  ;;  %v7760_v20 = vcombine.high %v24219_v32, %v24226_v2  ;;  %v7962_v32 = vcombine.high %v24288_v22, %v24291_v61  ;;  %v26051_v2 = vld [vmem:[#allocation95_spill] sm:$0xff] }
 0x683   :  { %v11445_v15 = vpop.xlane.xlu0 %11444  ;;  %v11591_v37 = vmul.f32 %v18784_v34, %v26038_v60  ;;  %v18475_v24 = vpack.c.bf16 %v7826_v28, %v7758_v21  ;;  %v7963_v19 = vcombine.low %v24330_v25, %v24333_v36  ;;  %v26053_v28 = vld [vmem:[#allocation27_spill] sm:$0xff]  ;;  %v7964_v22 = vcombine.high %v24330_v25, %v24333_v36  ;;  %v26058_v36 = vld [vmem:[#allocation68_spill] sm:$0xff] }
 0x684   :  { %18795 = vrcp.f32 %v11445_v15  ;;  %v18786_v50 = vpop.eup %18785  ;;  %v11451_v59 = vpop.xlane.xlu1 %11450  ;;  %v26046_v15 = vld [vmem:[#allocation45_spill] sm:$0xff] }
 0x685   :  { %18075 = vmatprep.mubr.msk.f32.mxu0 %vm10902_vm3, %v11591_v37  ;;  %v11585_v0 = vmul.f32 %v18786_v50, %v26041_v12  ;;  %v18495_v40 = vpack.c.bf16 %v7963_v19, %v7895_v43 }
 0x686   :  { %18076 = vmatmul.mubr.msk.f32.vlgmr.msra.gmra.mrb[76].mxu0 %vm10902_vm3, %v11592_v55  ;;  %v18788_v7 = vpop.eup %18787 }
 0x687   :  { %18482 = vmatpush3.bf16.msra.mxu0 %v18479_v16  ;;  %v11582_v56 = vmul.f32 %v18788_v7, %v26040_v39  ;;  %v18790_v6 = vpop.eup %18789 }
 0x688   :  { %18488 = vmatprep.subr.bf16.mxu0 %v18487_v23  ;;  %v18792_v53 = vpop.eup %18791  ;;  %v11586_v5 = vmul.f32 %v18790_v6, %v26042_v35 }
 0x689   :  { %18041 = vmatmul.mubr.msk.f32.vlgmr.msra.gmra.mrb[78].mxu1 %vm10902_vm3, %v11582_v56  ;;  %v11466_v33 = vpop.xlane.xlu1 %11465 }
 0x68a   :  { %v11460_v4 = vpop.xlane.xlu0 %11459  ;;  %18462 = vmatpush3.bf16.msra.mxu1 %v24260_v27  ;;  %18054 = vmatprep.mubr.msk.f32.mxu1 %vm10902_vm3, %v11585_v0  ;;  %v18794_v3 = vpop.eup %18793  ;;  %v11589_v27 = vmul.f32 %v18792_v53, %v26043_v38  ;;  %v26052_v0 = vld [vmem:[#allocation89_spill] sm:$0xff]  ;;  %v7896_v53 = vcombine.high %v24319_v54, %v24322_v1  ;;  %v26055_v1 = vld [vmem:[#allocation60_spill] sm:$0xff] }
 0x68b   :  { %18468 = vmatprep.subr.bf16.mxu1 %v18467_v29  ;;  %18797 = vrcp.f32 %v11460_v4  ;;  %v11596_v42 = vmul.f32 %v18794_v3, %v26045_v30  ;;  %v26056_v38 = vld [vmem:[#allocation81_spill] sm:$0xff] }
 0x68c   :  { %v18499_v3 = vpack.c.bf16 %v7964_v22, %v7896_v53 }
 0x68d   :  { %18055 = vmatmul.mubr.msk.f32.vlgmr.msra.gmra.mrb[80].mxu1 %vm10902_vm3, %v11586_v5  ;;  %v11463_v62 = vpop.xlane.xlu1 %11462  ;;  %v26054_v5 = vld [vmem:[#allocation74_spill] sm:$0xff] }
 0x68e   :  { %v18796_v17 = vpop.eup %18795  ;;  %18470 = vmatpush3.bf16.msra.mxu1 %v18467_v29  ;;  %18068 = vmatprep.mubr.msk.f32.mxu1 %vm10902_vm3, %v11589_v27 }
 0x68f   :  { %v11457_v11 = vpop.xlane.xlu0 %11456  ;;  %v11595_v47 = vmul.f32 %v18796_v17, %v26044_v10  ;;  %18476 = vmatprep.subr.bf16.mxu1 %v18475_v24  ;;  %v26057_v17 = vld [vmem:[#allocation94_spill] sm:$0xff] }
 0x690   :  { %18799 = vrcp.f32 %v11457_v11 }
 0x691   :  { %18801 = vrcp.f32 %v11439_v8  ;;  %18089 = vmatprep.mubr.msk.f32.mxu0 %vm10902_vm3, %v11595_v47  ;;  %v26049_v8 = vld [vmem:[#allocation85_spill] sm:$0xff] }
 0x692   :  { %18090 = vmatmul.mubr.msk.f32.vlgmr.msra.gmra.mrb[78].mxu0 %vm10902_vm3, %v11596_v42 }
 0x693   :  { %v11430_v48 = vpop.xlane.xlu0 %11429  ;;  %18490 = vmatpush3.bf16.msra.mxu0 %v18487_v23  ;;  %v26048_v23 = vld [vmem:[#allocation69_spill] sm:$0xff] }
 0x694   :  { %18803 = vrcp.f32 %v11430_v48  ;;  %18496 = vmatprep.subr.bf16.mxu0 %v18495_v40 }
 0x695   :  { %18805 = vrcp.f32 %v11442_v41  ;;  %v18798_v26 = vpop.eup %18797  ;;  %v7828_v41 = vcombine.high %v24229_v51, %v24232_v18  ;;  %v7894_v51 = vcombine.high %v24281_v46, %v24284_v58 }
 0x696   :  { %18807 = vrcp.f32 %v11451_v59  ;;  %v11600_v55 = vmul.f32 %v18798_v26, %v26047_v45 }
 0x697   :  { %v11469_v16 = vpop.xlane.xlu0 %11468  ;;  %v11475_v37 = vpop.xlane.xlu1 %11474  ;;  %v18483_v56 = vpack.c.bf16 %v7828_v41, %v7760_v20  ;;  %v18491_v58 = vpack.c.bf16 %v7962_v32, %v7894_v51 }
 0x698   :  { %18809 = vrcp.f32 %v11469_v16 }
 0x699   :  { %18811 = vrcp.f32 %v11463_v62 }
 0x69a   :  { %v18800_v34 = vpop.eup %18799 }
 0x69b   :  { %v11454_v31 = vpop.xlane.xlu0 %11453  ;;  %v11599_v60 = vmul.f32 %v18800_v34, %v26046_v15  ;;  %v18802_v44 = vpop.eup %18801 }
 0x69c   :  { %18813 = vrcp.f32 %v11454_v31  ;;  %v11593_v39 = vmul.f32 %v18802_v44, %v26049_v8 }
 0x69d   :  { %18103 = vmatprep.mubr.msk.f32.mxu0 %vm10902_vm3, %v11599_v60  ;;  %18815 = vrcp.f32 %v11466_v33 }
 0x69e   :  { %v18804_v50 = vpop.eup %18803  ;;  %18104 = vmatmul.mubr.msk.f32.vlgmr.msra.gmra.mrb[80].mxu0 %vm10902_vm3, %v11600_v55  ;;  %18817 = vrcp.f32 %v11475_v37 }
 0x69f   :  { %v11590_v52 = vmul.f32 %v18804_v50, %v26048_v23  ;;  %18498 = vmatpush3.bf16.msra.mxu0 %v18495_v40  ;;  %v11472_v57 = vpop.xlane.xlu0 %11471  ;;  %v18806_v7 = vpop.eup %18805 }
 0x6a0   :  { %18819 = vrcp.f32 %v11472_v57  ;;  %v18808_v18 = vpop.eup %18807  ;;  %v11594_v13 = vmul.f32 %v18806_v7, %v26050_v63 }
 0x6a1   :  { %18069 = vmatmul.mubr.msk.f32.vlgmr.msra.gmra.mrb[82].mxu1 %vm10902_vm3, %v11590_v52  ;;  %v11597_v46 = vmul.f32 %v18808_v18, %v26052_v0 }
 0x6a2   :  { %18478 = vmatpush3.bf16.msra.mxu1 %v18475_v24  ;;  %18082 = vmatprep.mubr.msk.f32.mxu1 %vm10902_vm3, %v11593_v39  ;;  %v18810_v9 = vpop.eup %18809 }
 0x6a3   :  { %18484 = vmatprep.subr.bf16.mxu1 %v18483_v56  ;;  %v11478_v6 = vpop.xlane.xlu0 %11477  ;;  %v11603_v4 = vmul.f32 %v18810_v9, %v26051_v2  ;;  %v18812_v12 = vpop.eup %18811 }
 0x6a4   :  { %18821 = vrcp.f32 %v11478_v6  ;;  %v11601_v59 = vmul.f32 %v18812_v12, %v26054_v5 }
 0x6a5   :  { %18083 = vmatmul.mubr.msk.f32.vlgmr.msra.gmra.mrb[84].mxu1 %vm10902_vm3, %v11594_v13  ;;  %18117 = vmatprep.mubr.msk.f32.mxu0 %vm10902_vm3, %v11603_v4 }
 0x6a6   :  { %v18814_v29 = vpop.eup %18813  ;;  %18486 = vmatpush3.bf16.msra.mxu1 %v18483_v56  ;;  %18096 = vmatprep.mubr.msk.f32.mxu1 %vm10902_vm3, %v11597_v46 }
 0x6a7   :  { %v11598_v35 = vmul.f32 %v18814_v29, %v26053_v28  ;;  %18492 = vmatprep.subr.bf16.mxu1 %v18491_v58  ;;  %v18816_v61 = vpop.eup %18815 }
 0x6a8   :  { %v18818_v21 = vpop.eup %18817  ;;  %v11602_v11 = vmul.f32 %v18816_v61, %v26055_v1 }
 0x6a9   :  { %18097 = vmatmul.mubr.msk.f32.vlgmr.msra.gmra.mrb[86].mxu1 %vm10902_vm3, %v11598_v35  ;;  %v11605_v24 = vmul.f32 %v18818_v21, %v26057_v17 }
 0x6aa   :  { %v18820_v54 = vpop.eup %18819  ;;  %18494 = vmatpush3.bf16.msra.mxu1 %v18491_v58  ;;  %18110 = vmatprep.mubr.msk.f32.mxu1 %vm10902_vm3, %v11601_v59 }
 0x6ab   :  { %v11604_v27 = vmul.f32 %v18820_v54, %v26056_v38  ;;  %18500 = vmatprep.subr.bf16.mxu1 %v18499_v3 }
 0x6ad   :  { %18111 = vmatmul.mubr.msk.f32.vlgmr.msra.gmra.mrb[88].mxu1 %vm10902_vm3, %v11602_v11  ;;  %18118 = vmatmul.mubr.msk.f32.vlgmr.msra.gmra.mrb[82].mxu0 %vm10902_vm3, %v11604_v27 }
 0x6ae   :  { %v18822_v25 = vpop.eup %18821  ;;  %18502 = vmatpush3.bf16.msra.mxu1 %v18499_v3  ;;  %18124 = vmatprep.mubr.msk.f32.mxu1 %vm10902_vm3, %v11605_v24 }
 0x6af   :  { %v11606_v43 = vmul.f32 %v18822_v25, %v26058_v36 }
 0x6b1   :  { %18125 = vmatmul.mubr.msk.f32.vlgmr.msra.gmra.mrb[90].mxu1 %vm10902_vm3, %v11606_v43 }
 0x6e2   :  { %v17909_v10 = vpop.f32.mrb[52].mxu0 }
 0x6e3   :  { %v11679_v47 = vpop.f32.mrb[53].mxu0 }
 0x6f5   :  { %v17916_v33 = vpop.f32.mrb[60].mxu1 }
 0x6f6   :  { %v11760_v30 = vpop.f32.mrb[61].mxu1 }
 0x702   :  { %v17923_v42 = vpop.f32.mrb[54].mxu0 }
 0x703   :  { %v14267_v19 = vcombine.low %v17909_v10, %v17923_v42  ;;  %v14268_v48 = vcombine.high %v17909_v10, %v17923_v42  ;;  %v11841_v40 = vpop.f32.mrb[55].mxu0 }
 0x704   :  { %v14199_v16 = vcombine.low %v11679_v47, %v11841_v40  ;;  %v14200_v62 = vcombine.high %v11679_v47, %v11841_v40 }
 0x705   :  { %v14275_v7 = vrot.slane %v14267_v19, %v25851_v14  ;;  %v14282_v8 = vrot.slane %v14268_v48, %v25851_v14 }
 0x706   :  { %v24384_v26 = vpop.f32.mrb[56].mxu0  ;;  %v14207_v18 = vrot.slane %v14199_v16, %v25851_v14  ;;  %v14214_v9 = vrot.slane %v14200_v62, %v25851_v14 }
 0x707   :  { %v24386_v34 = vpop.f32.mrb[57].mxu0 }
 0x70a   :  { %v24388_v31 = vpop.f32.mrb[58].mxu0 }
 0x70b   :  { %v14403_v15 = vcombine.low %v24384_v26, %v24388_v31  ;;  %v14404_v60 = vcombine.high %v24384_v26, %v24388_v31  ;;  %v24394_v37 = vpop.f32.mrb[59].mxu0 }
 0x70c   :  { %v14335_v45 = vcombine.low %v24386_v34, %v24394_v37  ;;  %v14336_v55 = vcombine.high %v24386_v34, %v24394_v37  ;;  %v17930_v44 = vpop.f32.mrb[62].mxu1 }
 0x70d   :  { %v14283_v41 = vcombine.low %v17916_v33, %v17930_v44  ;;  %v14284_v50 = vcombine.high %v17916_v33, %v17930_v44  ;;  %v11922_v23 = vpop.f32.mrb[63].mxu1 }
 0x70e   :  { %v14215_v52 = vcombine.low %v11760_v30, %v11922_v23  ;;  %v14216_v57 = vcombine.high %v11760_v30, %v11922_v23 }
 0x70f   :  { %v24400_v20 = vpop.f32.mrb[60].mxu0  ;;  %v14291_v39 = vrot.slane %v14283_v41, %v25851_v14  ;;  %v14298_v56 = vrot.slane %v14284_v50, %v25851_v14 }
 0x710   :  { %v24406_v51 = vpop.f32.mrb[61].mxu0  ;;  %v14223_v63 = vrot.slane %v14215_v52, %v25851_v14  ;;  %v14230_v13 = vrot.slane %v14216_v57, %v25851_v14 }
 0x711   :  { %v14299_v32 = vcombine.low %v14275_v7, %v14291_v39  ;;  %v14300_v2 = vcombine.high %v14275_v7, %v14291_v39  ;;  %v14315_v4 = vcombine.low %v14282_v8, %v14298_v56  ;;  %v14316_v12 = vcombine.high %v14282_v8, %v14298_v56 }
 0x712   :  { %v24412_v6 = vpop.f32.mrb[64].mxu1  ;;  %v14231_v46 = vcombine.low %v14207_v18, %v14223_v63  ;;  %v14232_v58 = vcombine.high %v14207_v18, %v14223_v63  ;;  %v14247_v53 = vcombine.low %v14214_v9, %v14230_v13  ;;  %v14248_v29 = vcombine.high %v14214_v9, %v14230_v13 }
 0x713   :  { %v24414_v0 = vpop.f32.mrb[65].mxu1  ;;  %v14307_v28 = vrot.slane %v14299_v32, %v25868_v49  ;;  %v14314_v35 = vrot.slane %v14300_v2, %v25868_v49  ;;  %v14323_v22 = vrot.slane %v14315_v4, %v25868_v49  ;;  %v14330_v61 = vrot.slane %v14316_v12, %v25868_v49 }
 0x714   :  { %v14239_v5 = vrot.slane %v14231_v46, %v25868_v49  ;;  %v14246_v59 = vrot.slane %v14232_v58, %v25868_v49  ;;  %v14255_v21 = vrot.slane %v14247_v53, %v25868_v49  ;;  %v14262_v3 = vrot.slane %v14248_v29, %v25868_v49 }
 0x715   :  { %v15355_v54 = vcombine.low %v14307_v28, %v14314_v35  ;;  %v17200_v1 = vcombine.high %v14307_v28, %v14314_v35  ;;  %v15371_v11 = vcombine.low %v14323_v22, %v14330_v61  ;;  %v17201_v38 = vcombine.high %v14323_v22, %v14330_v61 }
 0x716   :  { %v15287_v17 = vcombine.low %v14239_v5, %v14246_v59  ;;  %v17198_v24 = vcombine.high %v14239_v5, %v14246_v59  ;;  %v15303_v25 = vcombine.low %v14255_v21, %v14262_v3  ;;  %v17199_v36 = vcombine.high %v14255_v21, %v14262_v3 }
 0x717   :  { %v24424_v27 = vpop.f32.mrb[62].mxu0  ;;  %v15362_v42 = vrot.slane %v15355_v54, %v25851_v14  ;;  %v15370_v19 = vrot.slane %v17200_v1, %v25851_v14  ;;  %v15378_v48 = vrot.slane %v15371_v11, %v25851_v14  ;;  %v15386_v40 = vrot.slane %v17201_v38, %v25851_v14 }
 0x718   :  { %v24426_v43 = vpop.f32.mrb[63].mxu0  ;;  %v14539_v10 = vcombine.low %v24400_v20, %v24424_v27  ;;  %v14540_v47 = vcombine.high %v24400_v20, %v24424_v27  ;;  %v15294_v44 = vrot.slane %v15287_v17, %v25851_v14  ;;  %v15302_v41 = vrot.slane %v17198_v24, %v25851_v14 }
 0x719   :  { %v14471_v33 = vcombine.low %v24406_v51, %v24426_v43  ;;  %v14472_v30 = vcombine.high %v24406_v51, %v24426_v43  ;;  %v15387_v16 = vcombine.low %v15362_v42, %v15370_v19  ;;  %v15403_v62 = vcombine.low %v15378_v48, %v15386_v40 }
 0x71a   :  { %v15310_v50 = vrot.slane %v15303_v25, %v25851_v14  ;;  %v15318_v23 = vrot.slane %v17199_v36, %v25851_v14  ;;  %v15388_v52 = vcombine.high %v15362_v42, %v15370_v19  ;;  %v15404_v57 = vcombine.high %v15378_v48, %v15386_v40 }
 0x71b   :  { %v24445_v7 = vrot.slane %v15387_v16, %v25868_v49  ;;  %v24448_v8 = vrot.slane %v15403_v62, %v25868_v49  ;;  %v15319_v39 = vcombine.low %v15294_v44, %v15302_v41  ;;  %v15320_v56 = vcombine.high %v15294_v44, %v15302_v41 }
 0x71c   :  { %v15335_v9 = vcombine.low %v15310_v50, %v15318_v23  ;;  %v15402_v63 = vrot.slane %v15388_v52, %v25868_v49  ;;  %v15418_v13 = vrot.slane %v15404_v57, %v25868_v49  ;;  %v15336_v32 = vcombine.high %v15310_v50, %v15318_v23 }
 0x71d   :  { %v15420_v4 = vcombine.high %v24445_v7, %v24448_v8  ;;  %v24459_v12 = vrot.slane %v15319_v39, %v25868_v49  ;;  %v15334_v46 = vrot.slane %v15320_v56, %v25868_v49  ;;  %v14411_v17 = vrot.slane %v14403_v15, %v25851_v14 }
 0x71e   :  { %v24450_v18 = vpop.f32.mrb[64].mxu0  ;;  %v24465_v53 = vrot.slane %v15335_v9, %v25868_v49  ;;  %v15421_v29 = vcombine.low %v15402_v63, %v15418_v13  ;;  %v15350_v28 = vrot.slane %v15336_v32, %v25868_v49  ;;  %v15422_v35 = vcombine.high %v15402_v63, %v15418_v13 }
 0x71f   :  { %v24454_v2 = vpop.f32.mrb[65].mxu0  ;;  %16393 = vrot.lane.b32.xlu1 %v15420_v4, %s19058_s22  ;;  %v14343_v25 = vrot.slane %v14335_v45, %v25851_v14  ;;  %v14350_v15 = vrot.slane %v14336_v55, %v25851_v14 }
 0x720   :  { %v15352_v61 = vcombine.high %v24459_v12, %v24465_v53  ;;  %v15354_v3 = vcombine.high %v15334_v46, %v15350_v28  ;;  %v15353_v11 = vcombine.low %v15334_v46, %v15350_v28 }
 0x722   :  { %v17958_v22 = vpop.f32.mrb[66].mxu1  ;;  %16391 = vrot.lane.b32.xlu0 %v15352_v61, %s19058_s22 }
 0x723   :  { %v14419_v5 = vcombine.low %v24412_v6, %v17958_v22  ;;  %v14420_v59 = vcombine.high %v24412_v6, %v17958_v22  ;;  %v12246_v21 = vpop.f32.mrb[67].mxu1  ;;  %v14418_v6 = vrot.slane %v14404_v60, %v25851_v14  ;;  %16457 = vrot.lane.b32.xlu1 %v15421_v29, %s19063_s15 }
 0x724   :  { %v14351_v54 = vcombine.low %v24414_v0, %v12246_v21  ;;  %v14352_v1 = vcombine.high %v24414_v0, %v12246_v21 }
 0x725   :  { %v14427_v24 = vrot.slane %v14419_v5, %v25851_v14  ;;  %v14434_v0 = vrot.slane %v14420_v59, %v25851_v14 }
 0x726   :  { %v14359_v36 = vrot.slane %v14351_v54, %v25851_v14  ;;  %v14366_v26 = vrot.slane %v14352_v1, %v25851_v14  ;;  %v24499_v31 = vpop.f32.mrb[68].mxu1  ;;  %16519 = vrot.lane.b32.xlu0 %v15354_v3, %s19073_s13 }
 0x727   :  { %v14435_v60 = vcombine.low %v14411_v17, %v14427_v24  ;;  %v14436_v42 = vcombine.high %v14411_v17, %v14427_v24  ;;  %v14451_v19 = vcombine.low %v14418_v6, %v14434_v0  ;;  %v14452_v48 = vcombine.high %v14418_v6, %v14434_v0  ;;  %v24501_v40 = vpop.f32.mrb[69].mxu1  ;;  %16521 = vrot.lane.b32.xlu1 %v15422_v35, %s19073_s13 }
 0x728   :  { %v14367_v45 = vcombine.low %v14343_v25, %v14359_v36  ;;  %v14368_v16 = vcombine.high %v14343_v25, %v14359_v36  ;;  %v14383_v62 = vcombine.low %v14350_v15, %v14366_v26  ;;  %v14384_v44 = vcombine.high %v14350_v15, %v14366_v26 }
 0x729   :  { %v14443_v34 = vrot.slane %v14435_v60, %v25868_v49  ;;  %v14450_v37 = vrot.slane %v14436_v42, %v25868_v49  ;;  %v14459_v55 = vrot.slane %v14451_v19, %v25868_v49  ;;  %v14466_v41 = vrot.slane %v14452_v48, %v25868_v49  ;;  %v16616_v19 = vld [vmem:[#allocation8] sm:$0xff] }
 0x72a   :  { %v14375_v50 = vrot.slane %v14367_v45, %v25868_v49  ;;  %v14382_v23 = vrot.slane %v14368_v16, %v25868_v49  ;;  %v14391_v52 = vrot.slane %v14383_v62, %v25868_v49  ;;  %v14398_v57 = vrot.slane %v14384_v44, %v25868_v49 }
 0x72b   :  { %v15491_v39 = vcombine.low %v14443_v34, %v14450_v37  ;;  %v17204_v56 = vcombine.high %v14443_v34, %v14450_v37  ;;  %v15507_v9 = vcombine.low %v14459_v55, %v14466_v41  ;;  %v17205_v63 = vcombine.high %v14459_v55, %v14466_v41  ;;  %v24513_v13 = vpop.f32.mrb[66].mxu0  ;;  %16455 = vrot.lane.b32.xlu1 %v15353_v11, %s19063_s15  ;;  %v16617_v34 = vld [vmem:[#allocation8 + $0x8] sm:$0xff]  ;;  %v16618_v37 = vld [vmem:[#allocation8 + $0x10] sm:$0xff]  ;;  %v16619_v55 = vld [vmem:[#allocation8 + $0x18] sm:$0xff] }
 0x72c   :  { %v15423_v32 = vcombine.low %v14375_v50, %v14382_v23  ;;  %v17202_v4 = vcombine.high %v14375_v50, %v14382_v23  ;;  %v15439_v46 = vcombine.low %v14391_v52, %v14398_v57  ;;  %v17203_v29 = vcombine.high %v14391_v52, %v14398_v57  ;;  %v24515_v28 = vpop.f32.mrb[67].mxu0 }
 0x72d   :  { %v14675_v22 = vcombine.low %v24450_v18, %v24513_v13  ;;  %v14676_v61 = vcombine.high %v24450_v18, %v24513_v13  ;;  %v14607_v35 = vcombine.low %v24454_v2, %v24515_v28  ;;  %v14608_v5 = vcombine.high %v24454_v2, %v24515_v28 }
 0x72e   :  { %v15498_v59 = vrot.slane %v15491_v39, %v25851_v14  ;;  %v15506_v21 = vrot.slane %v17204_v56, %v25851_v14  ;;  %v15514_v3 = vrot.slane %v15507_v9, %v25851_v14  ;;  %v15522_v54 = vrot.slane %v17205_v63, %v25851_v14 }
 0x72f   :  { %v15430_v6 = vrot.slane %v15423_v32, %v25851_v14  ;;  %v15438_v24 = vrot.slane %v17202_v4, %v25851_v14  ;;  %v15446_v0 = vrot.slane %v15439_v46, %v25851_v14  ;;  %v15454_v25 = vrot.slane %v17203_v29, %v25851_v14 }
 0x730   :  { %v15523_v1 = vcombine.low %v15498_v59, %v15506_v21  ;;  %v15539_v17 = vcombine.low %v15514_v3, %v15522_v54  ;;  %v15524_v15 = vcombine.high %v15498_v59, %v15506_v21  ;;  %v15540_v11 = vcombine.high %v15514_v3, %v15522_v54 }
 0x731   :  { %v15455_v60 = vcombine.low %v15430_v6, %v15438_v24  ;;  %v15456_v42 = vcombine.high %v15430_v6, %v15438_v24  ;;  %v15471_v45 = vcombine.low %v15446_v0, %v15454_v25  ;;  %v15472_v44 = vcombine.high %v15446_v0, %v15454_v25 }
 0x732   :  { %v24535_v36 = vrot.slane %v15523_v1, %v25868_v49  ;;  %v24538_v26 = vrot.slane %v15539_v17, %v25868_v49  ;;  %v15538_v16 = vrot.slane %v15524_v15, %v25868_v49  ;;  %v15554_v62 = vrot.slane %v15540_v11, %v25868_v49 }
 0x733   :  { %v14547_v41 = vrot.slane %v14539_v10, %v25851_v14  ;;  %v24553_v52 = vrot.slane %v15455_v60, %v25868_v49  ;;  %v15470_v57 = vrot.slane %v15456_v42, %v25868_v49  ;;  %v24557_v39 = vrot.slane %v15471_v45, %v25868_v49 }
 0x734   :  { %v24540_v48 = vpop.f32.mrb[68].mxu0  ;;  %v15556_v23 = vcombine.high %v24535_v36, %v24538_v26  ;;  %v15557_v56 = vcombine.low %v15538_v16, %v15554_v62  ;;  %v15486_v9 = vrot.slane %v15472_v44, %v25868_v49  ;;  %v15558_v63 = vcombine.high %v15538_v16, %v15554_v62 }
 0x735   :  { %v24548_v50 = vpop.f32.mrb[69].mxu0  ;;  %v14554_v10 = vrot.slane %v14540_v47, %v25851_v14  ;;  %v18503_v4 = vpack.c.bf16 %v16617_v34, %v16616_v19  ;;  %v18507_v46 = vpack.c.bf16 %v16619_v55, %v16618_v37  ;;  %v15488_v59 = vcombine.high %v24553_v52, %v24557_v39 }
 0x736   :  { %16397 = vrot.lane.b32.xlu1 %v15556_v23, %s19058_s22  ;;  %v17986_v32 = vpop.f32.mrb[70].mxu1  ;;  %v15489_v1 = vcombine.low %v15470_v57, %v15486_v9  ;;  %v15490_v47 = vcombine.high %v15470_v57, %v15486_v9  ;;  %v14479_v6 = vrot.slane %v14471_v33, %v25851_v14 }
 0x737   :  { %v14555_v21 = vcombine.low %v24499_v31, %v17986_v32  ;;  %v14556_v3 = vcombine.high %v24499_v31, %v17986_v32  ;;  %v12570_v54 = vpop.f32.mrb[71].mxu1  ;;  %18504 = vmatprep.subr.bf16.mxu0 %v18503_v4  ;;  %16395 = vrot.lane.b32.xlu0 %v15488_v59, %s19058_s22 }
 0x738   :  { %v14487_v20 = vcombine.low %v24501_v40, %v12570_v54  ;;  %v14488_v27 = vcombine.high %v24501_v40, %v12570_v54  ;;  %18506 = vmatpush3.bf16.msra.mxu0 %v18503_v4  ;;  %v14486_v40 = vrot.slane %v14472_v30, %v25851_v14 }
 0x739   :  { %v14563_v31 = vrot.slane %v14555_v21, %v25851_v14  ;;  %v14570_v24 = vrot.slane %v14556_v3, %v25851_v14  ;;  %18508 = vmatprep.subr.bf16.mxu0 %v18507_v46 }
 0x73a   :  { %v14495_v0 = vrot.slane %v14487_v20, %v25851_v14  ;;  %v14502_v25 = vrot.slane %v14488_v27, %v25851_v14  ;;  %16461 = vrot.lane.b32.xlu1 %v15557_v56, %s19063_s15 }
 0x73b   :  { %v24589_v15 = vpop.f32.mrb[72].mxu1  ;;  %v14571_v33 = vcombine.low %v14547_v41, %v14563_v31  ;;  %v14572_v11 = vcombine.high %v14547_v41, %v14563_v31  ;;  %v14587_v60 = vcombine.low %v14554_v10, %v14570_v24  ;;  %v14588_v42 = vcombine.high %v14554_v10, %v14570_v24  ;;  %16459 = vrot.lane.b32.xlu0 %v15489_v1, %s19063_s15 }
 0x73c   :  { %v24591_v19 = vpop.f32.mrb[73].mxu1  ;;  %v14503_v45 = vcombine.low %v14479_v6, %v14495_v0  ;;  %v14504_v16 = vcombine.high %v14479_v6, %v14495_v0  ;;  %v14519_v62 = vcombine.low %v14486_v40, %v14502_v25  ;;  %v14520_v51 = vcombine.high %v14486_v40, %v14502_v25  ;;  %18510 = vmatpush3.bf16.msra.mxu0 %v18507_v46 }
 0x73d   :  { %v14579_v43 = vrot.slane %v14571_v33, %v25868_v49  ;;  %v14586_v30 = vrot.slane %v14572_v11, %v25868_v49  ;;  %v14595_v44 = vrot.slane %v14587_v60, %v25868_v49  ;;  %v14602_v34 = vrot.slane %v14588_v42, %v25868_v49 }
 0x73e   :  { %v14511_v37 = vrot.slane %v14503_v45, %v25868_v49  ;;  %v14518_v55 = vrot.slane %v14504_v16, %v25868_v49  ;;  %v14527_v41 = vrot.slane %v14519_v62, %v25868_v49  ;;  %v14534_v23 = vrot.slane %v14520_v51, %v25868_v49  ;;  %16525 = vrot.lane.b32.xlu1 %v15558_v63, %s19073_s13 }
 0x73f   :  { %v24603_v57 = vpop.f32.mrb[70].mxu0  ;;  %v15627_v56 = vcombine.low %v14579_v43, %v14586_v30  ;;  %v17208_v9 = vcombine.high %v14579_v43, %v14586_v30  ;;  %v15643_v10 = vcombine.low %v14595_v44, %v14602_v34  ;;  %v17209_v32 = vcombine.high %v14595_v44, %v14602_v34  ;;  %16523 = vrot.lane.b32.xlu0 %v15490_v47, %s19073_s13 }
 0x740   :  { %v24605_v4 = vpop.f32.mrb[71].mxu0  ;;  %v15559_v59 = vcombine.low %v14511_v37, %v14518_v55  ;;  %v17206_v21 = vcombine.high %v14511_v37, %v14518_v55  ;;  %v15575_v3 = vcombine.low %v14527_v41, %v14534_v23  ;;  %v17207_v54 = vcombine.high %v14527_v41, %v14534_v23 }
 0x741   :  { %v14811_v1 = vcombine.low %v24540_v48, %v24603_v57  ;;  %v14812_v63 = vcombine.high %v24540_v48, %v24603_v57  ;;  %v14743_v20 = vcombine.low %v24548_v50, %v24605_v4  ;;  %v14744_v27 = vcombine.high %v24548_v50, %v24605_v4 }
 0x742   :  { %v15634_v46 = vrot.slane %v15627_v56, %v25851_v14  ;;  %v15642_v6 = vrot.slane %v17208_v9, %v25851_v14  ;;  %v15650_v31 = vrot.slane %v15643_v10, %v25851_v14  ;;  %v15658_v47 = vrot.slane %v17209_v32, %v25851_v14 }
 0x743   :  { %v15566_v0 = vrot.slane %v15559_v59, %v25851_v14  ;;  %v15574_v25 = vrot.slane %v17206_v21, %v25851_v14  ;;  %v15582_v33 = vrot.slane %v15575_v3, %v25851_v14  ;;  %v15590_v11 = vrot.slane %v17207_v54, %v25851_v14 }
 0x744   :  { %v15659_v24 = vcombine.low %v15634_v46, %v15642_v6  ;;  %v15675_v40 = vcombine.low %v15650_v31, %v15658_v47  ;;  %v15660_v60 = vcombine.high %v15634_v46, %v15642_v6  ;;  %v15676_v42 = vcombine.high %v15650_v31, %v15658_v47 }
 0x745   :  { %v15591_v62 = vcombine.low %v15566_v0, %v15574_v25  ;;  %v15592_v51 = vcombine.high %v15566_v0, %v15574_v25  ;;  %v15607_v30 = vcombine.low %v15582_v33, %v15590_v11  ;;  %v15608_v37 = vcombine.high %v15582_v33, %v15590_v11 }
 0x746   :  { %v24625_v45 = vrot.slane %v15659_v24, %v25868_v49  ;;  %v24628_v16 = vrot.slane %v15675_v40, %v25868_v49  ;;  %v15674_v44 = vrot.slane %v15660_v60, %v25868_v49  ;;  %v15690_v34 = vrot.slane %v15676_v42, %v25868_v49 }
 0x747   :  { %v24639_v23 = vrot.slane %v15591_v62, %v25868_v49  ;;  %v15606_v56 = vrot.slane %v15592_v51, %v25868_v49  ;;  %v24645_v10 = vrot.slane %v15607_v30, %v25868_v49  ;;  %v15622_v21 = vrot.slane %v15608_v37, %v25868_v49 }
 0x748   :  { %v24630_v43 = vpop.f32.mrb[72].mxu0  ;;  %v15692_v41 = vcombine.high %v24625_v45, %v24628_v16  ;;  %v15693_v59 = vcombine.low %v15674_v44, %v15690_v34  ;;  %v15694_v3 = vcombine.high %v15674_v44, %v15690_v34  ;;  %v14683_v54 = vrot.slane %v14675_v22, %v25851_v14 }
 0x749   :  { %v24634_v55 = vpop.f32.mrb[73].mxu0  ;;  %v14690_v46 = vrot.slane %v14676_v61, %v25851_v14  ;;  %v15624_v24 = vcombine.high %v24639_v23, %v24645_v10  ;;  %v15625_v22 = vcombine.low %v15606_v56, %v15622_v21  ;;  %v15626_v13 = vcombine.high %v15606_v56, %v15622_v21 }
 0x74a   :  { %v18014_v32 = vpop.f32.mrb[74].mxu1  ;;  %16401 = vrot.lane.b32.xlu1 %v15692_v41, %s19058_s22  ;;  %v14622_v33 = vrot.slane %v14608_v5, %v25851_v14 }
 0x74b   :  { %v14691_v6 = vcombine.low %v24589_v15, %v18014_v32  ;;  %v14692_v31 = vcombine.high %v24589_v15, %v18014_v32  ;;  %v12894_v47 = vpop.f32.mrb[75].mxu1  ;;  %v14615_v15 = vrot.slane %v14607_v35, %v25851_v14  ;;  %16399 = vrot.lane.b32.xlu0 %v15624_v24, %s19058_s22 }
 0x74c   :  { %v14623_v40 = vcombine.low %v24591_v19, %v12894_v47  ;;  %v14624_v0 = vcombine.high %v24591_v19, %v12894_v47 }
 0x74d   :  { %v14699_v25 = vrot.slane %v14691_v6, %v25851_v14  ;;  %v14706_v18 = vrot.slane %v14692_v31, %v25851_v14 }
 0x74e   :  { %v14631_v19 = vrot.slane %v14623_v40, %v25851_v14  ;;  %v14638_v11 = vrot.slane %v14624_v0, %v25851_v14  ;;  %v24678_v60 = vpop.f32.mrb[76].mxu1  ;;  %16465 = vrot.lane.b32.xlu1 %v15693_v59, %s19063_s15 }
 0x74f   :  { %v14707_v42 = vcombine.low %v14683_v54, %v14699_v25  ;;  %v14708_v62 = vcombine.high %v14683_v54, %v14699_v25  ;;  %v14723_v51 = vcombine.low %v14690_v46, %v14706_v18  ;;  %v14724_v30 = vcombine.high %v14690_v46, %v14706_v18  ;;  %v24681_v35 = vpop.f32.mrb[77].mxu1  ;;  %16463 = vrot.lane.b32.xlu0 %v15625_v22, %s19063_s15 }
 0x750   :  { %v14639_v44 = vcombine.low %v14615_v15, %v14631_v19  ;;  %v14640_v34 = vcombine.high %v14615_v15, %v14631_v19  ;;  %v14655_v2 = vcombine.low %v14622_v33, %v14638_v11  ;;  %v14656_v28 = vcombine.high %v14622_v33, %v14638_v11 }
 0x751   :  { %v14715_v5 = vrot.slane %v14707_v42, %v25868_v49  ;;  %v14722_v37 = vrot.slane %v14708_v62, %v25868_v49  ;;  %v14731_v41 = vrot.slane %v14723_v51, %v25868_v49  ;;  %v14738_v56 = vrot.slane %v14724_v30, %v25868_v49 }
 0x752   :  { %v14647_v32 = vrot.slane %v14639_v44, %v25868_v49  ;;  %v14654_v21 = vrot.slane %v14640_v34, %v25868_v49  ;;  %v14663_v59 = vrot.slane %v14655_v2, %v25868_v49  ;;  %v14670_v54 = vrot.slane %v14656_v28, %v25868_v49  ;;  %16529 = vrot.lane.b32.xlu1 %v15694_v3, %s19073_s13  ;;  %v24693_v24 = vpop.f32.mrb[74].mxu0 }
 0x753   :  { %v15763_v46 = vcombine.low %v14715_v5, %v14722_v37  ;;  %v17212_v6 = vcombine.high %v14715_v5, %v14722_v37  ;;  %v15779_v31 = vcombine.low %v14731_v41, %v14738_v56  ;;  %v17213_v47 = vcombine.high %v14731_v41, %v14738_v56  ;;  %v24695_v15 = vpop.f32.mrb[75].mxu0  ;;  %16527 = vrot.lane.b32.xlu0 %v15626_v13, %s19073_s13 }
 0x754   :  { %v15695_v40 = vcombine.low %v14647_v32, %v14654_v21  ;;  %v17210_v0 = vcombine.high %v14647_v32, %v14654_v21  ;;  %v15711_v25 = vcombine.low %v14663_v59, %v14670_v54  ;;  %v17211_v18 = vcombine.high %v14663_v59, %v14670_v54 }
 0x755   :  { %v14947_v33 = vcombine.low %v24630_v43, %v24693_v24  ;;  %v14948_v22 = vcombine.high %v24630_v43, %v24693_v24  ;;  %v14879_v19 = vcombine.low %v24634_v55, %v24695_v15  ;;  %v14880_v3 = vcombine.high %v24634_v55, %v24695_v15 }
 0x756   :  { %v15770_v11 = vrot.slane %v15763_v46, %v25851_v14  ;;  %v15778_v42 = vrot.slane %v17212_v6, %v25851_v14  ;;  %v15786_v62 = vrot.slane %v15779_v31, %v25851_v14  ;;  %v15794_v51 = vrot.slane %v17213_v47, %v25851_v14 }
 0x757   :  { %v15702_v34 = vrot.slane %v15695_v40, %v25851_v14  ;;  %v15710_v2 = vrot.slane %v17210_v0, %v25851_v14  ;;  %v15718_v28 = vrot.slane %v15711_v25, %v25851_v14  ;;  %v15726_v5 = vrot.slane %v17211_v18, %v25851_v14 }
 0x758   :  { %v15795_v30 = vcombine.low %v15770_v11, %v15778_v42  ;;  %v15811_v44 = vcombine.low %v15786_v62, %v15794_v51  ;;  %v15796_v37 = vcombine.high %v15770_v11, %v15778_v42  ;;  %v15812_v13 = vcombine.high %v15786_v62, %v15794_v51 }
 0x759   :  { %v15727_v32 = vcombine.low %v15702_v34, %v15710_v2  ;;  %v15728_v21 = vcombine.high %v15702_v34, %v15710_v2  ;;  %v24720_v59 = vpop.f32.mrb[76].mxu0  ;;  %v15743_v54 = vcombine.low %v15718_v28, %v15726_v5  ;;  %v15744_v31 = vcombine.high %v15718_v28, %v15726_v5 }
 0x75a   :  { %v24715_v41 = vrot.slane %v15795_v30, %v25868_v49  ;;  %v24718_v56 = vrot.slane %v15811_v44, %v25868_v49  ;;  %v15810_v46 = vrot.slane %v15796_v37, %v25868_v49  ;;  %v15826_v6 = vrot.slane %v15812_v13, %v25868_v49  ;;  %v24724_v47 = vpop.f32.mrb[77].mxu0 }
 0x75b   :  { %v24729_v0 = vrot.slane %v15727_v32, %v25868_v49  ;;  %v15742_v25 = vrot.slane %v15728_v21, %v25868_v49  ;;  %v24735_v11 = vrot.slane %v15743_v54, %v25868_v49  ;;  %v15758_v62 = vrot.slane %v15744_v31, %v25868_v49 }
 0x75c   :  { %v15828_v40 = vcombine.high %v24715_v41, %v24718_v56  ;;  %v15829_v42 = vcombine.low %v15810_v46, %v15826_v6  ;;  %v15830_v51 = vcombine.high %v15810_v46, %v15826_v6  ;;  %v18042_v44 = vpop.f32.mrb[78].mxu1  ;;  %v14819_v54 = vrot.slane %v14811_v1, %v25851_v14 }
 0x75d   :  { %v15760_v30 = vcombine.high %v24729_v0, %v24735_v11  ;;  %v15761_v34 = vcombine.low %v15742_v25, %v15758_v62  ;;  %v15762_v2 = vcombine.high %v15742_v25, %v15758_v62  ;;  %v14827_v5 = vcombine.low %v24678_v60, %v18042_v44  ;;  %v13218_v13 = vpop.f32.mrb[79].mxu1 }
 0x75e   :  { %16405 = vrot.lane.b32.xlu1 %v15828_v40, %s19058_s22  ;;  %v14828_v37 = vcombine.high %v24678_v60, %v18042_v44  ;;  %v14759_v32 = vcombine.low %v24681_v35, %v13218_v13  ;;  %v14760_v21 = vcombine.high %v24681_v35, %v13218_v13  ;;  %v14826_v46 = vrot.slane %v14812_v63, %v25851_v14 }
 0x75f   :  { %16403 = vrot.lane.b32.xlu0 %v15760_v30, %s19058_s22  ;;  %v14835_v6 = vrot.slane %v14827_v5, %v25851_v14  ;;  %v14751_v35 = vrot.slane %v14743_v20, %v25851_v14  ;;  %v14758_v1 = vrot.slane %v14744_v27, %v25851_v14 }
 0x760   :  { %v14842_v60 = vrot.slane %v14828_v37, %v25851_v14  ;;  %v14767_v31 = vrot.slane %v14759_v32, %v25851_v14  ;;  %v14774_v48 = vrot.slane %v14760_v21, %v25851_v14  ;;  %v24769_v57 = vpop.f32.mrb[80].mxu1 }
 0x761   :  { %v14843_v63 = vcombine.low %v14819_v54, %v14835_v6  ;;  %v14844_v40 = vcombine.high %v14819_v54, %v14835_v6  ;;  %v24771_v62 = vpop.f32.mrb[81].mxu1 }
 0x762   :  { %16469 = vrot.lane.b32.xlu1 %v15829_v42, %s19063_s15  ;;  %v14859_v25 = vcombine.low %v14826_v46, %v14842_v60  ;;  %v14860_v42 = vcombine.high %v14826_v46, %v14842_v60  ;;  %v14775_v30 = vcombine.low %v14751_v35, %v14767_v31  ;;  %v14776_v44 = vcombine.high %v14751_v35, %v14767_v31 }
 0x763   :  { %v14791_v20 = vcombine.low %v14758_v1, %v14774_v48  ;;  %v14792_v5 = vcombine.high %v14758_v1, %v14774_v48  ;;  %16467 = vrot.lane.b32.xlu0 %v15761_v34, %s19063_s15  ;;  %v14851_v50 = vrot.slane %v14843_v63, %v25868_v49  ;;  %v14858_v4 = vrot.slane %v14844_v40, %v25868_v49 }
 0x764   :  { %v14867_v27 = vrot.slane %v14859_v25, %v25868_v49  ;;  %v14874_v37 = vrot.slane %v14860_v42, %v25868_v49  ;;  %v14783_v13 = vrot.slane %v14775_v30, %v25868_v49  ;;  %v14790_v32 = vrot.slane %v14776_v44, %v25868_v49 }
 0x765   :  { %v14799_v21 = vrot.slane %v14791_v20, %v25868_v49  ;;  %v14806_v54 = vrot.slane %v14792_v5, %v25868_v49  ;;  %v24783_v46 = vpop.f32.mrb[78].mxu0  ;;  %v15899_v34 = vcombine.low %v14851_v50, %v14858_v4  ;;  %v17216_v6 = vcombine.high %v14851_v50, %v14858_v4 }
 0x766   :  { %16533 = vrot.lane.b32.xlu1 %v15830_v51, %s19073_s13  ;;  %v15915_v60 = vcombine.low %v14867_v27, %v14874_v37  ;;  %v17217_v35 = vcombine.high %v14867_v27, %v14874_v37  ;;  %v24785_v1 = vpop.f32.mrb[79].mxu0  ;;  %v15831_v31 = vcombine.low %v14783_v13, %v14790_v32  ;;  %v17214_v48 = vcombine.high %v14783_v13, %v14790_v32 }
 0x767   :  { %v15847_v63 = vcombine.low %v14799_v21, %v14806_v54  ;;  %v17215_v51 = vcombine.high %v14799_v21, %v14806_v54  ;;  %16531 = vrot.lane.b32.xlu0 %v15762_v2, %s19073_s13  ;;  %v15083_v40 = vcombine.low %v24720_v59, %v24783_v46  ;;  %v15084_v25 = vcombine.high %v24720_v59, %v24783_v46 }
 0x768   :  { %v15015_v42 = vcombine.low %v24724_v47, %v24785_v1  ;;  %v15016_v30 = vcombine.high %v24724_v47, %v24785_v1  ;;  %v15906_v44 = vrot.slane %v15899_v34, %v25851_v14  ;;  %v15914_v20 = vrot.slane %v17216_v6, %v25851_v14 }
 0x769   :  { %v15922_v5 = vrot.slane %v15915_v60, %v25851_v14  ;;  %v15930_v2 = vrot.slane %v17217_v35, %v25851_v14  ;;  %v15838_v27 = vrot.slane %v15831_v31, %v25851_v14  ;;  %v15846_v59 = vrot.slane %v17214_v48, %v25851_v14 }
 0x76a   :  { %v15931_v50 = vcombine.low %v15906_v44, %v15914_v20  ;;  %v15854_v37 = vrot.slane %v15847_v63, %v25851_v14  ;;  %v15862_v13 = vrot.slane %v17215_v51, %v25851_v14  ;;  %v15932_v32 = vcombine.high %v15906_v44, %v15914_v20 }
 0x76b   :  { %v15947_v4 = vcombine.low %v15922_v5, %v15930_v2  ;;  %v15948_v47 = vcombine.high %v15922_v5, %v15930_v2  ;;  %v15863_v46 = vcombine.low %v15838_v27, %v15846_v59  ;;  %v15864_v34 = vcombine.high %v15838_v27, %v15846_v59 }
 0x76c   :  { %v24805_v21 = vrot.slane %v15931_v50, %v25868_v49  ;;  %v15879_v6 = vcombine.low %v15854_v37, %v15862_v13  ;;  %v15946_v60 = vrot.slane %v15932_v32, %v25868_v49  ;;  %v15880_v1 = vcombine.high %v15854_v37, %v15862_v13 }
 0x76d   :  { %v24808_v54 = vrot.slane %v15947_v4, %v25868_v49  ;;  %v15962_v35 = vrot.slane %v15948_v47, %v25868_v49  ;;  %v24817_v63 = vrot.slane %v15863_v46, %v25868_v49  ;;  %v15878_v51 = vrot.slane %v15864_v34, %v25868_v49 }
 0x76e   :  { %v24825_v5 = vrot.slane %v15879_v6, %v25868_v49  ;;  %v15894_v50 = vrot.slane %v15880_v1, %v25868_v49  ;;  %v14955_v47 = vrot.slane %v14947_v33, %v25851_v14  ;;  %v14962_v46 = vrot.slane %v14948_v22, %v25851_v14 }
 0x76f   :  { %v15964_v48 = vcombine.high %v24805_v21, %v24808_v54  ;;  %v15965_v2 = vcombine.low %v15946_v60, %v15962_v35  ;;  %v15966_v4 = vcombine.high %v15946_v60, %v15962_v35  ;;  %v14887_v35 = vrot.slane %v14879_v19, %v25851_v14 }
 0x770   :  { %v15896_v27 = vcombine.high %v24817_v63, %v24825_v5  ;;  %v15897_v37 = vcombine.low %v15878_v51, %v15894_v50  ;;  %v15898_v13 = vcombine.high %v15878_v51, %v15894_v50  ;;  %v14894_v33 = vrot.slane %v14880_v3, %v25851_v14 }
 0x771   :  { %v24812_v31 = vpop.f32.mrb[80].mxu0  ;;  %16409 = vrot.lane.b32.xlu1 %v15964_v48, %s19058_s22  ;;  %v24855_v22 = vrot.slane %v15083_v40, %v25851_v14  ;;  %v24864_v55 = vrot.slane %v15015_v42, %v25851_v14  ;;  %v24867_v15 = vrot.slane %v15016_v30, %v25851_v14 }
 0x772   :  { %v24822_v20 = vpop.f32.mrb[81].mxu0  ;;  %16407 = vrot.lane.b32.xlu0 %v15896_v27, %s19058_s22 }
 0x774   :  { %v18070_v59 = vpop.f32.mrb[82].mxu1 }
 0x775   :  { %v14963_v34 = vcombine.low %v24769_v57, %v18070_v59  ;;  %v14964_v6 = vcombine.high %v24769_v57, %v18070_v59  ;;  %v13542_v60 = vpop.f32.mrb[83].mxu1  ;;  %v24858_v57 = vrot.slane %v15084_v25, %v25851_v14  ;;  %16473 = vrot.lane.b32.xlu1 %v15965_v2, %s19063_s15 }
 0x776   :  { %v14895_v43 = vcombine.low %v24771_v62, %v13542_v60  ;;  %v14896_v24 = vcombine.high %v24771_v62, %v13542_v60  ;;  %16471 = vrot.lane.b32.xlu0 %v15897_v37, %s19063_s15 }
 0x777   :  { %v14971_v1 = vrot.slane %v14963_v34, %v25851_v14  ;;  %v14978_v19 = vrot.slane %v14964_v6, %v25851_v14 }
 0x778   :  { %v14903_v3 = vrot.slane %v14895_v43, %v25851_v14  ;;  %v14910_v62 = vrot.slane %v14896_v24, %v25851_v14  ;;  %v18084_v40 = vpop.f32.mrb[84].mxu1 }
 0x779   :  { %v14979_v48 = vcombine.low %v14955_v47, %v14971_v1  ;;  %v14980_v25 = vcombine.high %v14955_v47, %v14971_v1  ;;  %v14995_v51 = vcombine.low %v14962_v46, %v14978_v19  ;;  %v14996_v50 = vcombine.high %v14962_v46, %v14978_v19  ;;  %v13704_v27 = vpop.f32.mrb[85].mxu1  ;;  %16537 = vrot.lane.b32.xlu1 %v15966_v4, %s19073_s13 }
 0x77a   :  { %v14911_v59 = vcombine.low %v14887_v35, %v14903_v3  ;;  %v14912_v34 = vcombine.high %v14887_v35, %v14903_v3  ;;  %v14927_v6 = vcombine.low %v14894_v33, %v14910_v62  ;;  %v14928_v2 = vcombine.high %v14894_v33, %v14910_v62  ;;  %16535 = vrot.lane.b32.xlu0 %v15898_v13, %s19073_s13 }
 0x77b   :  { %v14987_v42 = vrot.slane %v14979_v48, %v25868_v49  ;;  %v14994_v30 = vrot.slane %v14980_v25, %v25868_v49  ;;  %v15003_v60 = vrot.slane %v14995_v51, %v25868_v49  ;;  %v15010_v43 = vrot.slane %v14996_v50, %v25868_v49 }
 0x77c   :  { %v24878_v47 = vrot.slane %v14911_v59, %v25868_v49  ;;  %v24881_v46 = vrot.slane %v14912_v34, %v25868_v49  ;;  %v24884_v35 = vrot.slane %v14927_v6, %v25868_v49  ;;  %v24887_v37 = vrot.slane %v14928_v2, %v25868_v49  ;;  %v18098_v33 = vpop.f32.mrb[86].mxu1 }
 0x77d   :  { %v16035_v24 = vcombine.low %v14987_v42, %v14994_v30  ;;  %v17220_v1 = vcombine.high %v14987_v42, %v14994_v30  ;;  %v16051_v19 = vcombine.low %v15003_v60, %v15010_v43  ;;  %v17221_v3 = vcombine.high %v15003_v60, %v15010_v43  ;;  %v13866_v62 = vpop.f32.mrb[87].mxu1 }
 0x77e   :  { %v15967_v4 = vcombine.low %v24878_v47, %v24881_v46  ;;  %v17218_v48 = vcombine.high %v24878_v47, %v24881_v46  ;;  %v15983_v25 = vcombine.low %v24884_v35, %v24887_v37  ;;  %v17219_v51 = vcombine.high %v24884_v35, %v24887_v37 }
 0x77f   :  { %v15099_v50 = vcombine.low %v18084_v40, %v18098_v33  ;;  %v15100_v59 = vcombine.high %v18084_v40, %v18098_v33  ;;  %v15031_v34 = vcombine.low %v13704_v27, %v13866_v62  ;;  %v15032_v6 = vcombine.high %v13704_v27, %v13866_v62 }
 0x780   :  { %v18112_v2 = vpop.f32.mrb[88].mxu1  ;;  %v18119_v42 = vpop.f32.mrb[82].mxu0  ;;  %v24899_v30 = vrot.slane %v16035_v24, %v25851_v14  ;;  %v24902_v60 = vrot.slane %v17220_v1, %v25851_v14  ;;  %v24905_v43 = vrot.slane %v16051_v19, %v25851_v14  ;;  %v24908_v47 = vrot.slane %v17221_v3, %v25851_v14 }
 0x781   :  { %v15107_v13 = vrot.slane %v15099_v50, %v25851_v14  ;;  %v15114_v40 = vrot.slane %v15100_v59, %v25851_v14  ;;  %v15039_v27 = vrot.slane %v15031_v34, %v25851_v14  ;;  %v15046_v46 = vrot.slane %v15032_v6, %v25851_v14  ;;  %v14028_v33 = vpop.f32.mrb[89].mxu1  ;;  %v14109_v24 = vpop.f32.mrb[83].mxu0 }
 0x782   :  { %v15219_v62 = vcombine.low %v24812_v31, %v18119_v42  ;;  %v15220_v1 = vcombine.high %v24812_v31, %v18119_v42  ;;  %v15151_v19 = vcombine.low %v24822_v20, %v14109_v24  ;;  %v15152_v44 = vcombine.high %v24822_v20, %v14109_v24 }
 0x783   :  { %v15115_v3 = vcombine.low %v24855_v22, %v15107_v13  ;;  %v15116_v50 = vcombine.high %v24855_v22, %v15107_v13  ;;  %v15131_v59 = vcombine.low %v24858_v57, %v15114_v40  ;;  %v15132_v34 = vcombine.high %v24858_v57, %v15114_v40 }
 0x784   :  { %v15047_v6 = vcombine.low %v24864_v55, %v15039_v27  ;;  %v15048_v32 = vcombine.high %v24864_v55, %v15039_v27  ;;  %v15063_v18 = vcombine.low %v24867_v15, %v15046_v46  ;;  %v15064_v31 = vcombine.high %v24867_v15, %v15046_v46  ;;  %v18126_v42 = vpop.f32.mrb[90].mxu1 }
 0x785   :  { %v24927_v28 = vrot.slane %v15115_v3, %v25868_v49  ;;  %v24930_v20 = vrot.slane %v15116_v50, %v25868_v49  ;;  %v24933_v22 = vrot.slane %v15131_v59, %v25868_v49  ;;  %v24936_v57 = vrot.slane %v15132_v34, %v25868_v49  ;;  %v14190_v13 = vpop.f32.mrb[91].mxu1 }
 0x786   :  { %v24939_v55 = vrot.slane %v15047_v6, %v25868_v49  ;;  %v24942_v40 = vrot.slane %v15048_v32, %v25868_v49  ;;  %v24945_v15 = vrot.slane %v15063_v18, %v25868_v49  ;;  %v24948_v27 = vrot.slane %v15064_v31, %v25868_v49 }
 0x787   :  { %v16171_v46 = vcombine.low %v24927_v28, %v24930_v20  ;;  %v17224_v24 = vcombine.high %v24927_v28, %v24930_v20  ;;  %v15227_v6 = vrot.slane %v15219_v62, %v25851_v14  ;;  %v15234_v31 = vrot.slane %v15220_v1, %v25851_v14 }
 0x788   :  { %v15159_v9 = vrot.slane %v15151_v19, %v25851_v14  ;;  %v15166_v61 = vrot.slane %v15152_v44, %v25851_v14  ;;  %v15235_v29 = vcombine.low %v18112_v2, %v18126_v42  ;;  %v15236_v17 = vcombine.high %v18112_v2, %v18126_v42 }
 0x789   :  { %v15167_v38 = vcombine.low %v14028_v33, %v14190_v13  ;;  %v15168_v58 = vcombine.high %v14028_v33, %v14190_v13  ;;  %v16067_v18 = vcombine.low %v24899_v30, %v24902_v60  ;;  %v16083_v59 = vcombine.low %v24905_v43, %v24908_v47 }
 0x78a   :  { %v15974_v34 = vrot.slane %v15967_v4, %v25851_v14  ;;  %v15982_v62 = vrot.slane %v17218_v48, %v25851_v14  ;;  %v15243_v1 = vrot.slane %v15235_v29, %v25851_v14  ;;  %v15250_v19 = vrot.slane %v15236_v17, %v25851_v14 }
 0x78b   :  { %v15175_v44 = vrot.slane %v15167_v38, %v25851_v14  ;;  %v15182_v2 = vrot.slane %v15168_v58, %v25851_v14  ;;  %v24981_v33 = vrot.slane %v16067_v18, %v25868_v49  ;;  %v24984_v42 = vrot.slane %v16083_v59, %v25868_v49 }
 0x78c   :  { %v15990_v4 = vrot.slane %v15983_v25, %v25851_v14  ;;  %v15998_v29 = vrot.slane %v17219_v51, %v25851_v14  ;;  %v15251_v17 = vcombine.low %v15227_v6, %v15243_v1  ;;  %v15252_v38 = vcombine.high %v15227_v6, %v15243_v1 }
 0x78d   :  { %v15267_v48 = vcombine.low %v15234_v31, %v15250_v19  ;;  %v15268_v58 = vcombine.high %v15234_v31, %v15250_v19  ;;  %v15183_v13 = vcombine.low %v15159_v9, %v15175_v44  ;;  %v15184_v18 = vcombine.high %v15159_v9, %v15175_v44 }
 0x78e   :  { %v15199_v32 = vcombine.low %v15166_v61, %v15182_v2  ;;  %v15200_v50 = vcombine.high %v15166_v61, %v15182_v2  ;;  %v24995_v59 = vrot.slane %v15251_v17, %v25868_v49  ;;  %v24998_v3 = vrot.slane %v15252_v38, %v25868_v49 }
 0x78f   :  { %v25001_v25 = vrot.slane %v15267_v48, %v25868_v49  ;;  %v25004_v35 = vrot.slane %v15268_v58, %v25868_v49  ;;  %v25007_v37 = vrot.slane %v15183_v13, %v25868_v49  ;;  %v25010_v51 = vrot.slane %v15184_v18, %v25868_v49 }
 0x790   :  { %v25013_v9 = vrot.slane %v15199_v32, %v25868_v49  ;;  %v25016_v61 = vrot.slane %v15200_v50, %v25868_v49  ;;  %v16307_v6 = vcombine.low %v24995_v59, %v24998_v3  ;;  %v16100_v17 = vcombine.high %v24981_v33, %v24984_v42 }
 0x791   :  { %v15999_v38 = vcombine.low %v15974_v34, %v15982_v62  ;;  %v16015_v48 = vcombine.low %v15990_v4, %v15998_v29  ;;  %v16068_v58 = vcombine.high %v24899_v30, %v24902_v60  ;;  %v16084_v13 = vcombine.high %v24905_v43, %v24908_v47  ;;  %v16394_v50 = vpop.permute.xlu1 %16393 }
 0x792   :  { %v16000_v18 = vcombine.high %v15974_v34, %v15982_v62  ;;  %v16016_v32 = vcombine.high %v15990_v4, %v15998_v29  ;;  %v16178_v44 = vrot.slane %v16171_v46, %v25851_v14  ;;  %16413 = vrot.lane.b32.xlu1 %v16100_v17, %s19058_s22  ;;  %v16186_v30 = vrot.slane %v17224_v24, %v25851_v14 }
 0x793   :  { %v25043_v2 = vrot.slane %v15999_v38, %v25868_v49  ;;  %v25046_v19 = vrot.slane %v16015_v48, %v25868_v49  ;;  %v16082_v1 = vrot.slane %v16068_v58, %v25868_v49  ;;  %v16098_v60 = vrot.slane %v16084_v13, %v25868_v49 }
 0x794   :  { %v16014_v43 = vrot.slane %v16000_v18, %v25868_v49  ;;  %v16030_v47 = vrot.slane %v16016_v32, %v25868_v49  ;;  %v26059_v46 = vcombine.low %v24933_v22, %v24936_v57  ;;  %v26060_v4 = vcombine.high %v24933_v22, %v24936_v57  ;;  %v16392_v32 = vpop.permute.xlu0 %16391 }
 0x795   :  { %v16032_v62 = vcombine.high %v25043_v2, %v25046_v19  ;;  %v16203_v20 = vcombine.low %v16178_v44, %v16186_v30  ;;  %v26061_v24 = vcombine.low %v24939_v55, %v24942_v40  ;;  %v16101_v17 = vcombine.low %v16082_v1, %v16098_v60  ;;  %v16458_v13 = vpop.permute.xlu1 %16457 }
 0x796   :  { %v16194_v34 = vrot.slane %v26059_v46, %v25851_v14  ;;  %v16202_v28 = vrot.slane %v26060_v4, %v25851_v14  ;;  %v16033_v38 = vcombine.low %v16014_v43, %v16030_v47  ;;  %v16102_v48 = vcombine.high %v16082_v1, %v16098_v60 }
 0x797   :  { %v16110_v29 = vrot.slane %v26061_v24, %v25851_v14  ;;  %v16034_v58 = vcombine.high %v16014_v43, %v16030_v47  ;;  %16411 = vrot.lane.b32.xlu0 %v16032_v62, %s19058_s22  ;;  %v25072_v18 = vrot.slane %v16203_v20, %v25868_v49  ;;  %v26062_v22 = vcombine.high %v24939_v55, %v24942_v40 }
 0x798   :  { %v16219_v46 = vcombine.low %v16194_v34, %v16202_v28  ;;  %v26063_v4 = vcombine.low %v24945_v15, %v24948_v27  ;;  %16477 = vrot.lane.b32.xlu1 %v16101_v17, %s19063_s15  ;;  %v26064_v1 = vcombine.high %v24945_v15, %v24948_v27  ;;  %v26065_v43 = vcombine.low %v24445_v7, %v24448_v8 }
 0x799   :  { %v16118_v57 = vrot.slane %v26062_v22, %v25851_v14  ;;  %v26066_v55 = vcombine.low %v24459_v12, %v24465_v53  ;;  %v16204_v62 = vcombine.high %v16178_v44, %v16186_v30  ;;  %v16220_v22 = vcombine.high %v16194_v34, %v16202_v28  ;;  %v16522_v8 = vpop.permute.xlu1 %16521 }
 0x79a   :  { %v16126_v24 = vrot.slane %v26063_v4, %v25851_v14  ;;  %v16134_v60 = vrot.slane %v26064_v1, %v25851_v14  ;;  %v16568_v47 = vsel %vm7965_vm1, %v26065_v43, %v16394_v50  ;;  %v25096_v20 = vrot.slane %v16219_v46, %v25868_v49 }
 0x79b   :  { %v16567_v40 = vsel %vm7965_vm1, %v26066_v55, %v16392_v32  ;;  %v16135_v17 = vcombine.low %v16110_v29, %v16118_v57  ;;  %v16136_v4 = vcombine.high %v16110_v29, %v16118_v57  ;;  %v25099_v15 = vrot.slane %v16204_v62, %v25868_v49  ;;  %16475 = vrot.lane.b32.xlu0 %v16033_v38, %s19063_s15 }
 0x79c   :  { %v16151_v31 = vcombine.low %v16126_v24, %v16134_v60  ;;  %v16152_v27 = vcombine.high %v16126_v24, %v16134_v60  ;;  %v16584_v7 = vsel %vm10902_vm3, %v16568_v47, %v16458_v13  ;;  %v16236_v12 = vcombine.high %v25072_v18, %v25096_v20  ;;  %16541 = vrot.lane.b32.xlu1 %v16102_v48, %s19073_s13 }
 0x79d   :  { %v25106_v53 = vrot.slane %v16135_v17, %v25868_v49  ;;  %v16234_v44 = vrot.slane %v16220_v22, %v25868_v49  ;;  %v16150_v50 = vrot.slane %v16136_v4, %v25868_v49  ;;  %v16601_v28 = vsel %vm16599_vm4, %v16584_v7, %v16522_v8  ;;  %v16456_v43 = vpop.permute.xlu1 %16455  ;;  %v16520_v8 = vpop.permute.xlu0 %16519 }
 0x79e   :  { %v25112_v30 = vrot.slane %v16151_v31, %v25868_v49  ;;  %v16166_v34 = vrot.slane %v16152_v27, %v25868_v49  ;;  %v16314_v29 = vrot.slane %v16307_v6, %v25851_v14  ;;  %v26067_v48 = vcombine.high %v24995_v59, %v24998_v3 }
 0x79f   :  { %v16237_v32 = vcombine.low %v25099_v15, %v16234_v44  ;;  %v16238_v38 = vcombine.high %v25099_v15, %v16234_v44  ;;  %v26068_v31 = vcombine.low %v25001_v25, %v25004_v35  ;;  %v26069_v6 = vcombine.high %v25001_v25, %v25004_v35  ;;  %16539 = vrot.lane.b32.xlu0 %v16034_v58, %s19073_s13 }
 0x7a0   :  { %v16322_v13 = vrot.slane %v26067_v48, %v25851_v14  ;;  %v16168_v57 = vcombine.high %v25106_v53, %v25112_v30  ;;  %v16169_v24 = vcombine.low %v16150_v50, %v16166_v34  ;;  %v16170_v1 = vcombine.high %v16150_v50, %v16166_v34  ;;  %16417 = vrot.lane.b32.xlu1 %v16236_v12, %s19058_s22 }
 0x7a1   :  { %v16330_v46 = vrot.slane %v26068_v31, %v25851_v14  ;;  %v16338_v60 = vrot.slane %v26069_v6, %v25851_v14  ;;  %v26070_v59 = vcombine.low %v25007_v37, %v25010_v51  ;;  %v26071_v55 = vcombine.high %v25007_v37, %v25010_v51 }
 0x7a2   :  { %v16339_v3 = vcombine.low %v16314_v29, %v16322_v13  ;;  %v26072_v17 = vcombine.low %v25013_v9, %v25016_v61  ;;  %v26073_v58 = vcombine.high %v25013_v9, %v25016_v61  ;;  %v16583_v4 = vsel %vm10902_vm3, %v16567_v40, %v16456_v43 }
 0x7a3   :  { %v16246_v47 = vrot.slane %v26070_v59, %v25851_v14  ;;  %v16254_v62 = vrot.slane %v26071_v55, %v25851_v14  ;;  %v16355_v35 = vcombine.low %v16330_v46, %v16338_v60  ;;  %v16340_v15 = vcombine.high %v16314_v29, %v16322_v13  ;;  %16415 = vrot.lane.b32.xlu0 %v16168_v57, %s19058_s22 }
 0x7a4   :  { %v16262_v25 = vrot.slane %v26072_v17, %v25851_v14  ;;  %v16270_v22 = vrot.slane %v26073_v58, %v25851_v14  ;;  %v25156_v27 = vrot.slane %v16339_v3, %v25868_v49  ;;  %v16356_v51 = vcombine.high %v16330_v46, %v16338_v60  ;;  %16481 = vrot.lane.b32.xlu1 %v16237_v32, %s19063_s15 }
 0x7a5   :  { %v16271_v37 = vcombine.low %v16246_v47, %v16254_v62  ;;  %v16272_v7 = vcombine.high %v16246_v47, %v16254_v62  ;;  %v25159_v44 = vrot.slane %v16355_v35, %v25868_v49  ;;  %v16354_v50 = vrot.slane %v16340_v15, %v25868_v49 }
 0x7a6   :  { %v16287_v12 = vcombine.low %v16262_v25, %v16270_v22  ;;  %v16288_v34 = vcombine.high %v16262_v25, %v16270_v22  ;;  %v16370_v9 = vrot.slane %v16356_v51, %v25868_v49  ;;  %v16600_v40 = vsel %vm16599_vm4, %v16583_v4, %v16520_v8 }
 0x7a7   :  { %v25164_v14 = vrot.slane %v16271_v37, %v25868_v49  ;;  %v16286_v61 = vrot.slane %v16272_v7, %v25868_v49  ;;  %v16372_v29 = vcombine.high %v25156_v27, %v25159_v44  ;;  %18135 = vmatprep.mubr.msk.f32.mxu0 %vm165_vm0, %v16600_v40  ;;  %v16099_v57 = vcombine.low %v24981_v33, %v24984_v42 }
 0x7a8   :  { %v25173_v48 = vrot.slane %v16287_v12, %v25868_v49  ;;  %v16302_v13 = vrot.slane %v16288_v34, %v25868_v49  ;;  %v16373_v31 = vcombine.low %v16354_v50, %v16370_v9  ;;  %18136 = vmatmul.mubr.msk.f32.vlgmr.msra.gmra.mrb[84].mxu0 %vm165_vm0, %v16601_v28  ;;  %v16374_v46 = vcombine.high %v16354_v50, %v16370_v9  ;;  %v16398_v3 = vpop.permute.xlu1 %16397 }
 0x7a9   :  { %v16031_v32 = vcombine.low %v25043_v2, %v25046_v19  ;;  %v16235_v49 = vcombine.low %v25072_v18, %v25096_v20  ;;  %16479 = vrot.lane.b32.xlu0 %v16169_v24, %s19063_s15  ;;  %v16167_v28 = vcombine.low %v25106_v53, %v25112_v30  ;;  %v16371_v59 = vcombine.low %v25156_v27, %v25159_v44  ;;  %v16396_v55 = vpop.permute.xlu0 %16395 }
 0x7aa   :  { %v16304_v6 = vcombine.high %v25164_v14, %v25173_v48  ;;  %v16305_v60 = vcombine.low %v16286_v61, %v16302_v13  ;;  %v16306_v43 = vcombine.high %v16286_v61, %v16302_v13  ;;  %v16303_v47 = vcombine.low %v25164_v14, %v25173_v48  ;;  %16545 = vrot.lane.b32.xlu1 %v16238_v38, %s19073_s13  ;;  %v17230_v14 = vld [vmem:[#allocation10] ss:$0 sm:$0xff] }
 0x7ab   :  { %v26074_v24 = vcombine.low %v24553_v52, %v24557_v39  ;;  %v26075_v38 = vcombine.low %v24535_v36, %v24538_v26  ;;  %v26076_v51 = vcombine.low %v24639_v23, %v24645_v10  ;;  %v26077_v12 = vcombine.low %v24625_v45, %v24628_v16 }
 0x7ac   :  { %v16462_v62 = vpop.permute.xlu1 %16461  ;;  %v26078_v45 = vcombine.low %v24729_v0, %v24735_v11 }
 0x7ad   :  { %16543 = vrot.lane.b32.xlu0 %v16170_v1, %s19073_s13  ;;  %v16460_v17 = vpop.permute.xlu0 %16459  ;;  %v16569_v25 = vsel %vm7965_vm1, %v26074_v24, %v16396_v55  ;;  %v16570_v58 = vsel %vm7965_vm1, %v26075_v38, %v16398_v3  ;;  %v26081_v38 = vcombine.low %v24805_v21, %v24808_v54 }
 0x7ae   :  { %16421 = vrot.lane.b32.xlu1 %v16372_v29, %s19058_s22  ;;  %v16585_v1 = vsel %vm10902_vm3, %v16569_v25, %v16460_v17  ;;  %v16586_v4 = vsel %vm10902_vm3, %v16570_v58, %v16462_v62 }
 0x7b0   :  { %v16526_v35 = vpop.permute.xlu1 %16525 }
 0x7b1   :  { %16419 = vrot.lane.b32.xlu0 %v16304_v6, %s19058_s22  ;;  %v16524_v22 = vpop.permute.xlu0 %16523  ;;  %v16603_v37 = vsel %vm16599_vm4, %v16586_v4, %v16526_v35  ;;  %v26079_v6 = vcombine.low %v24715_v41, %v24718_v56  ;;  %v26080_v41 = vcombine.low %v24817_v63, %v24825_v5 }
 0x7b2   :  { %16485 = vrot.lane.b32.xlu1 %v16373_v31, %s19063_s15  ;;  %v16602_v15 = vsel %vm16599_vm4, %v16585_v1, %v16524_v22 }
 0x7b3   :  { %18138 = vmatprep.mubr.msk.f32.mxu0 %vm165_vm0, %v16602_v15 }
 0x7b4   :  { %18139 = vmatmul.mubr.msk.f32.gmra.mrb[86].mxu0 %vm165_vm0, %v16603_v37 }
 0x7b5   :  { %16483 = vrot.lane.b32.xlu0 %v16305_v60, %s19063_s15  ;;  %s19074_s15 = smov [#allocation17]  }
 0x7b6   :  { %16549 = vrot.lane.b32.xlu1 %v16374_v46, %s19073_s13  ;;  %s16841_s1 = sshll.u32 %s19074_s15, 4  ;;  %s16842_s1 = int_to_ptr.vmem [resolvable:$true] %s16841_s1 }
 0x7b7   :  { %s19021_s10 = scalar_lea.vmem %s16842_s1, 2048  ;;  %p19026_p3 = scmp.lt.s32.totalorder %s16842_s1, %s16842_s1 }
 0x7b8   :  { %p19022_p2 = scmp.ne.s32.totalorder %s16842_s1, %s19021_s10  ;;  %p19027_p4 = scmp.lt.s32.totalorder %s19021_s10, %s19021_s10 }
 0x7b9   :  { %16547 = vrot.lane.b32.xlu0 %v16306_v43, %s19073_s13 }
 0x7ba   :  { %p19028_p5 = por %p19027_p4, %p19026_p3 }
 0x7bc   :  { %v16402_v36 = vpop.permute.xlu1 %16401  ;;  %p19029_p6 = pnand %p19028_p5, %p19022_p2 }
 0x7bd   :  { %v16400_v26 = vpop.permute.xlu0 %16399  ;;  %v16572_v50 = vsel %vm7965_vm1, %v26077_v12, %v16402_v36 }
 0x7be   :  { %v16571_v7 = vsel %vm7965_vm1, %v26076_v51, %v16400_v26 }
 0x7c0   :  { %v16466_v52 = vpop.permute.xlu1 %16465 }
 0x7c1   :  { %v16464_v39 = vpop.permute.xlu0 %16463  ;;  %v16588_v61 = vsel %vm10902_vm3, %v16572_v50, %v16466_v52 }
 0x7c2   :  { %v16587_v34 = vsel %vm10902_vm3, %v16571_v7, %v16464_v39 }
 0x7c4   :  { %v16530_v8 = vpop.permute.xlu1 %16529 }
 0x7c5   :  { %v16528_v9 = vpop.permute.xlu0 %16527  ;;  %v16605_v29 = vsel %vm16599_vm4, %v16588_v61, %v16530_v8 }
 0x7c6   :  { %v16604_v40 = vsel %vm16599_vm4, %v16587_v34, %v16528_v9 }
 0x7c7   :  { %18141 = vmatprep.mubr.msk.f32.mxu0 %vm165_vm0, %v16604_v40 }
 0x7c8   :  { %18142 = vmatmul.mubr.msk.f32.gmra.mrb[88].mxu0 %vm165_vm0, %v16605_v29 }
 0x7d0   :  { %v16406_v23 = vpop.permute.xlu1 %16405 }
 0x7d1   :  { %v16404_v10 = vpop.permute.xlu0 %16403  ;;  %v16574_v60 = vsel %vm7965_vm1, %v26079_v6, %v16406_v23 }
 0x7d2   :  { %v16573_v16 = vsel %vm7965_vm1, %v26078_v45, %v16404_v10 }
 0x7d4   :  { %v16470_v13 = vpop.permute.xlu1 %16469 }
 0x7d5   :  { %v16468_v31 = vpop.permute.xlu0 %16467  ;;  %v16590_v55 = vsel %vm10902_vm3, %v16574_v60, %v16470_v13 }
 0x7d6   :  { %v16589_v43 = vsel %vm10902_vm3, %v16573_v16, %v16468_v31 }
 0x7d8   :  { %v16534_v46 = vpop.permute.xlu1 %16533 }
 0x7d9   :  { %v16532_v3 = vpop.permute.xlu0 %16531  ;;  %v16607_v17 = vsel %vm16599_vm4, %v16590_v55, %v16534_v46 }
 0x7da   :  { %v16606_v62 = vsel %vm16599_vm4, %v16589_v43, %v16532_v3 }
 0x7db   :  { %18144 = vmatprep.mubr.msk.f32.mxu0 %vm165_vm0, %v16606_v62 }
 0x7dc   :  { %18145 = vmatmul.mubr.msk.f32.gmra.mrb[90].mxu0 %vm165_vm0, %v16607_v17 }
 0x7e3   :  { %v16410_v0 = vpop.permute.xlu1 %16409 }
 0x7e4   :  { %v16408_v11 = vpop.permute.xlu0 %16407  ;;  %v16576_v58 = vsel %vm7965_vm1, %v26081_v38, %v16410_v0 }
 0x7e5   :  { %v16575_v56 = vsel %vm7965_vm1, %v26080_v41, %v16408_v11 }
 0x7e7   :  { %v16474_v24 = vpop.permute.xlu1 %16473 }
 0x7e8   :  { %v16472_v25 = vpop.permute.xlu0 %16471  ;;  %v16592_v4 = vsel %vm10902_vm3, %v16576_v58, %v16474_v24 }
 0x7e9   :  { %v16591_v1 = vsel %vm10902_vm3, %v16575_v56, %v16472_v25 }
 0x7eb   :  { %v16538_v35 = vpop.permute.xlu1 %16537 }
 0x7ec   :  { %v16536_v22 = vpop.permute.xlu0 %16535  ;;  %v16609_v37 = vsel %vm16599_vm4, %v16592_v4, %v16538_v35 }
 0x7ed   :  { %v16608_v15 = vsel %vm16599_vm4, %v16591_v1, %v16536_v22 }
 0x7ee   :  { %18147 = vmatprep.mubr.msk.f32.mxu0 %vm165_vm0, %v16608_v15 }
 0x7ef   :  { %18148 = vmatmul.mubr.msk.f32.gmra.mrb[92].mxu0 %vm165_vm0, %v16609_v37 }
 0x804   :  { %v16414_v63 = vpop.permute.xlu1 %16413 }
 0x805   :  { %v16578_v52 = vsel %vm7965_vm1, %v16099_v57, %v16414_v63 }
 0x809   :  { %v16412_v5 = vpop.permute.xlu0 %16411 }
 0x80a   :  { %v16478_v36 = vpop.permute.xlu1 %16477  ;;  %v16577_v54 = vsel %vm7965_vm1, %v16031_v32, %v16412_v5 }
 0x80b   :  { %v16594_v7 = vsel %vm10902_vm3, %v16578_v52, %v16478_v36 }
 0x80d   :  { %v16476_v26 = vpop.permute.xlu0 %16475 }
 0x80e   :  { %v16542_v21 = vpop.permute.xlu1 %16541  ;;  %v16593_v39 = vsel %vm10902_vm3, %v16577_v54, %v16476_v26 }
 0x80f   :  { %v16611_v50 = vsel %vm16599_vm4, %v16594_v7, %v16542_v21 }
 0x811   :  { %v16540_v51 = vpop.permute.xlu0 %16539 }
 0x812   :  { %v16610_v8 = vsel %vm16599_vm4, %v16593_v39, %v16540_v51  ;;  %v16418_v12 = vpop.permute.xlu1 %16417 }
 0x813   :  { %18150 = vmatprep.mubr.msk.f32.mxu0 %vm165_vm0, %v16610_v8  ;;  %v16580_v57 = vsel %vm7965_vm1, %v16235_v49, %v16418_v12 }
 0x814   :  { %18151 = vmatmul.mubr.msk.f32.gmra.mrb[94].mxu0 %vm165_vm0, %v16611_v50 }
 0x815   :  { %v16416_v19 = vpop.permute.xlu0 %16415 }
 0x816   :  { %v16482_v2 = vpop.permute.xlu1 %16481  ;;  %v16579_v42 = vsel %vm7965_vm1, %v16167_v28, %v16416_v19 }
 0x817   :  { %v16596_v61 = vsel %vm10902_vm3, %v16580_v57, %v16482_v2 }
 0x81b   :  { %v16480_v32 = vpop.permute.xlu0 %16479 }
 0x81c   :  { %v16546_v33 = vpop.permute.xlu1 %16545  ;;  %v16595_v34 = vsel %vm10902_vm3, %v16579_v42, %v16480_v32 }
 0x81d   :  { %v16613_v23 = vsel %vm16599_vm4, %v16596_v61, %v16546_v33 }
 0x81f   :  { %v16544_v9 = vpop.permute.xlu0 %16543 }
 0x820   :  { %v16612_v40 = vsel %vm16599_vm4, %v16595_v34, %v16544_v9  ;;  %v16422_v29 = vpop.permute.xlu1 %16421 }
 0x821   :  { %18153 = vmatprep.mubr.msk.f32.mxu0 %vm165_vm0, %v16612_v40  ;;  %v16582_v49 = vsel %vm7965_vm1, %v16371_v59, %v16422_v29 }
 0x822   :  { %18154 = vmatmul.mubr.msk.f32.gmra.mrb[96].mxu0 %vm165_vm0, %v16613_v23 }
 0x823   :  { %v16420_v53 = vpop.permute.xlu0 %16419 }
 0x824   :  { %v16486_v30 = vpop.permute.xlu1 %16485  ;;  %v16581_v18 = vsel %vm7965_vm1, %v16303_v47, %v16420_v53 }
 0x825   :  { %v16598_v31 = vsel %vm10902_vm3, %v16582_v49, %v16486_v30 }
 0x827   :  { %v16484_v28 = vpop.permute.xlu0 %16483 }
 0x828   :  { %v16550_v20 = vpop.permute.xlu1 %16549  ;;  %v16597_v10 = vsel %vm10902_vm3, %v16581_v18, %v16484_v28 }
 0x829   :  { %v16615_v16 = vsel %vm16599_vm4, %v16598_v31, %v16550_v20 }
 0x82b   :  { %v16548_v13 = vpop.permute.xlu0 %16547 }
 0x82c   :  { %v16614_v45 = vsel %vm16599_vm4, %v16597_v10, %v16548_v13 }
 0x82d   :  { %18156 = vmatprep.mubr.msk.f32.mxu0 %vm165_vm0, %v16614_v45 }
 0x82e   :  { %18157 = vmatmul.mubr.msk.f32.gmra.mrb[98].mxu0 %vm165_vm0, %v16615_v16 }
 0x87b   :  { %v18137_v48 = vpop.f32.mrb[84].mxu0 }
 0x87c   :  { %v16747_v47 = vadd.f32 %v18137_v48, %v17230_v14  ;;  %v16741_v46 = vpop.f32.mrb[85].mxu0 }
 0x87d   :  { %v16742_v27 = vadd.f32 %v17230_v14, %v16741_v46 }
 0x87e   :  { %16821 = vst.msk [vmem:[#allocation17 + $0x8] sm:$0xff] %vm165_vm0, %v16747_v47 }
 0x87f   :  { %16820 = vst.msk [vmem:[#allocation17] sm:$0xff] %vm165_vm0, %v16742_v27 }
 0x887   :  { %v18140_v44 = vpop.f32.mrb[86].mxu0 }
 0x888   :  { %v16757_v59 = vadd.f32 %v18140_v44, %v17230_v14  ;;  %v16751_v6 = vpop.f32.mrb[87].mxu0 }
 0x889   :  { %v16752_v60 = vadd.f32 %v17230_v14, %v16751_v6 }
 0x88a   :  { %16823 = vst.msk [vmem:[#allocation17 + $0x18] sm:$0xff] %vm165_vm0, %v16757_v59 }
 0x88b   :  { %16822 = vst.msk [vmem:[#allocation17 + $0x10] sm:$0xff] %vm165_vm0, %v16752_v60 }
 0x89b   :  { %v18143_v43 = vpop.f32.mrb[88].mxu0 }
 0x89c   :  { %v16767_v3 = vadd.f32 %v18143_v43, %v17230_v14  ;;  %v16761_v55 = vpop.f32.mrb[89].mxu0 }
 0x89d   :  { %v16762_v62 = vadd.f32 %v17230_v14, %v16761_v55 }
 0x89e   :  { %16825 = vst.msk [vmem:[#allocation17 + $0x28] sm:$0xff] %vm165_vm0, %v16767_v3 }
 0x89f   :  { %16824 = vst.msk [vmem:[#allocation17 + $0x20] sm:$0xff] %vm165_vm0, %v16762_v62 }
 0x8af   :  { %v18146_v17 = vpop.f32.mrb[90].mxu0 }
 0x8b0   :  { %v16777_v0 = vadd.f32 %v18146_v17, %v17230_v14  ;;  %v16771_v11 = vpop.f32.mrb[91].mxu0 }
 0x8b1   :  { %v16772_v24 = vadd.f32 %v17230_v14, %v16771_v11 }
 0x8b2   :  { %16827 = vst.msk [vmem:[#allocation17 + $0x38] sm:$0xff] %vm165_vm0, %v16777_v0 }
 0x8b3   :  { %16826 = vst.msk [vmem:[#allocation17 + $0x30] sm:$0xff] %vm165_vm0, %v16772_v24 }
 0x8c2   :  { %v18149_v25 = vpop.f32.mrb[92].mxu0 }
 0x8c3   :  { %v16787_v41 = vadd.f32 %v18149_v25, %v17230_v14  ;;  %v16781_v56 = vpop.f32.mrb[93].mxu0 }
 0x8c4   :  { %v16782_v35 = vadd.f32 %v17230_v14, %v16781_v56 }
 0x8c5   :  { %16829 = vst.msk [vmem:[#allocation17 + $0x48] sm:$0xff] %vm165_vm0, %v16787_v41 }
 0x8c6   :  { %16828 = vst.msk [vmem:[#allocation17 + $0x40] sm:$0xff] %vm165_vm0, %v16782_v35 }
 0x8e7   :  { %v18152_v38 = vpop.f32.mrb[94].mxu0 }
 0x8e8   :  { %v16797_v58 = vadd.f32 %v18152_v38, %v17230_v14  ;;  %v16791_v1 = vpop.f32.mrb[95].mxu0 }
 0x8e9   :  { %v16792_v22 = vadd.f32 %v17230_v14, %v16791_v1 }
 0x8ea   :  { %16831 = vst.msk [vmem:[#allocation17 + $0x58] sm:$0xff] %vm165_vm0, %v16797_v58 }
 0x8eb   :  { %16830 = vst.msk [vmem:[#allocation17 + $0x50] sm:$0xff] %vm165_vm0, %v16792_v22 }
 0x8f5   :  { %v18155_v4 = vpop.f32.mrb[96].mxu0 }
 0x8f6   :  { %v16807_v15 = vadd.f32 %v18155_v4, %v17230_v14  ;;  %v16801_v37 = vpop.f32.mrb[97].mxu0 }
 0x8f7   :  { %v16802_v63 = vadd.f32 %v17230_v14, %v16801_v37 }
 0x8f8   :  { %16833 = vst.msk [vmem:[#allocation17 + $0x68] sm:$0xff] %vm165_vm0, %v16807_v15 }
 0x8f9   :  { %16832 = vst.msk [vmem:[#allocation17 + $0x60] sm:$0xff] %vm165_vm0, %v16802_v63 }
 0x901   :  { %v18158_v5 = vpop.f32.mrb[98].mxu0 }
 0x902   :  { %v16817_v36 = vadd.f32 %v18158_v5, %v17230_v14  ;;  %v16811_v26 = vpop.f32.mrb[99].mxu0 }
 0x903   :  { %v16812_v21 = vadd.f32 %v17230_v14, %v16811_v26 }
 0x904   :  { %16835 = vst.msk [vmem:[#allocation17 + $0x78] sm:$0xff] %vm165_vm0, %v16817_v36 }
 0x905   :  { %16834 = vst.msk [vmem:[#allocation17 + $0x70] sm:$0xff] %vm165_vm0, %v16812_v21 }
 0x906   :  { %19032 = shalt.err (!%p19029_p6)
}
 0x907   :  { %s19033_s5 = scalar_lea.hbm %s25339_s9, 2048 }
 0x908   :  { %p19034_p7 = scmp.ne.s32.totalorder %s25339_s9, %s19033_s5  ;;  %p19037_p8 = scmp.lt.u32.totalorder %s19033_s5, %s25339_s9 }
 0x90a   :  { %p19039_p9 = pnand %p19037_p8, %p19034_p7 }
 0x90c   :  { %19042 = shalt.err (!%p19039_p9)
}
 0x90d   :  { %16847 = dma.vmem_to_hbm [thread:$0]  %s16842_s1, 2048, %s25339_s9, [#allocation4], %s19057_s21, %s19057_s21, %s19058_s22  }
 0x90e   :  { %19053 = dma.done.wait [#allocation4], 2048  }
 0x90f   :  { %19054 = vsyncadd [#allocation4], 4294965248 }
 0x910   :  { %16851 = vsyncpa [#allocation3], 1 }
 0x911   :  { %16852 = vsyncpa [#allocation6], 1 }
 0x912   :  { %16853 = vsyncpa [#allocation9], 1 }
 0x913   :  { %16854 = vsyncpa [#allocation12], 1 }
 0x914   :  { %16855 = vsyncpa [#allocation15], 1 }
 0x915   :  { %16856 = vsyncpa [#allocation4], 1 }

</bundles_post_ra>
